<compile_context>
chip_gen: v5e
topology: v5e:2x2
jax: 0.10.0
libtpu: 0.0.40
codegen_flags: <defaults>
</compile_context>

<pallas_src>
import functools

import jax
import jax.numpy as jnp
from jax import lax
from jax.experimental import pallas as pl
from jax.experimental.pallas import tpu as pltpu

CP = 128                                  # all channel dims padded once to 128 lanes
VMEM_LIMIT_BYTES = 32 * 1024 * 1024       # explicit, safe on v5e/v6e/v7x
STAGE_STRIDES = (1, 2, 2, 2)


def _rep_spec(arr):
    """BlockSpec for an input that is fully replicated across the grid."""
    nd = arr.ndim
    return pl.BlockSpec(arr.shape, lambda *_: (0,) * nd)


def _cparams():
    return pltpu.CompilerParams(dimension_semantics=("parallel",),
                                vmem_limit_bytes=VMEM_LIMIT_BYTES)


# ----------------------------------------------------------------------------
# Kernel 1: stem = 7x7/s2 conv (pre-im2col'd patches, K padded to 256) + BN + ReLU.
# ----------------------------------------------------------------------------
def _stem_kernel(x_ref, w_ref, s_ref, b_ref, o_ref):
    acc = jnp.dot(x_ref[0], w_ref[...], preferred_element_type=jnp.float32)
    acc = jnp.maximum(acc * s_ref[...] + b_ref[...], 0.0)
    o_ref[0] = acc.astype(o_ref.dtype)


def stem_conv_bn_relu(patches, w, scale, shift):
    B, M, K = patches.shape
    N = w.shape[1]
    return pl.pallas_call(
        _stem_kernel,
        out_shape=jax.ShapeDtypeStruct((B, M, N), jnp.bfloat16),
        grid_spec=pltpu.PrefetchScalarGridSpec(
            num_scalar_prefetch=0,
            grid=(B,),
            in_specs=[pl.BlockSpec((1, M, K), lambda b: (b, 0, 0)),
                      _rep_spec(w), _rep_spec(scale), _rep_spec(shift)],
            out_specs=pl.BlockSpec((1, M, N), lambda b: (b, 0, 0))),
        compiler_params=_cparams(),
    )(patches, w, scale, shift)


# ----------------------------------------------------------------------------
# Kernel 2: ONE fused SE-bottleneck per sample.
#   conv1 1x1+BN+ReLU -> conv2 3x3/s1/p1 (+BN+ReLU, padded VMEM scratch, 9 taps)
#   -> conv3 1x1+BN -> SE (GAP, fc1+ReLU, fc2+sigmoid, channel gate)
#   -> residual (identity or fused 1x1 proj+BN) -> ReLU
#   -> optionally the model head (global mean + Linear), writing logits only.
# ----------------------------------------------------------------------------
def _se_block_kernel(x_ref, w1_ref, s1_ref, b1_ref, w2_ref, s2_ref, b2_ref,
                     w3_ref, s3_ref, b3_ref, f1w_ref, f1b_ref, f2w_ref, f2b_ref,
                     *rest, ho, wo, proj, with_head):
    i = 0
    if proj:
        wd_ref, sd_ref, bd_ref = rest[i:i + 3]
        i += 3
    if with_head:
        hw_ref, hb_ref = rest[i:i + 2]
        i += 2
    o_ref, pad_ref = rest[i], rest[i + 1]

    m = ho * wo
    x = x_ref[0]                                              # (m, CP) bf16

    # ---- conv1 1x1 + BN + ReLU (block stride already folded into the input) ----
    t1 = jnp.dot(x, w1_ref[...], preferred_element_type=jnp.float32)
    t1 = jnp.maximum(t1 * s1_ref[...] + b1_ref[...], 0.0)     # (m, CP) f32

    # ---- conv2 3x3 / stride 1 / pad 1 + BN + ReLU ------------------------------
    # pad_ref is (ho+2, wo+16, CP): logical xpad[a, b] lives at pad_ref[a, b+7], so
    # the interior store starts at column 8 (sublane-aligned for f32); only the tap
    # reads use small static offsets.
    pad_ref[...] = jnp.zeros_like(pad_ref)
    pad_ref[1:ho + 1, 8:wo + 8, :] = t1.reshape(ho, wo, CP)
    acc = None
    for ki in range(3):
        for kj in range(3):
            tap = pad_ref[ki:ki + ho, kj + 7:kj + 7 + wo, :]
            tap = tap.reshape(m, CP).astype(jnp.bfloat16)
            wt = w2_ref[(ki * 3 + kj) * CP:(ki * 3 + kj + 1) * CP, :]
            part = jnp.dot(tap, wt, preferred_element_type=jnp.float32)
            acc = part if acc is None else acc + part
    t2 = jnp.maximum(acc * s2_ref[...] + b2_ref[...], 0.0)    # (m, CP) f32

    # ---- conv3 1x1 + BN (no ReLU before SE) ------------------------------------
    t3 = jnp.dot(t2.astype(jnp.bfloat16), w3_ref[...],
                 preferred_element_type=jnp.float32)
    t3 = t3 * s3_ref[...] + b3_ref[...]                       # (m, CP) f32

    # ---- SE: global average pool -> fc1+ReLU -> fc2+sigmoid -> channel gate -----
    pooled = jnp.mean(t3, axis=0, keepdims=True)              # (1, CP) f32
    z = jnp.dot(pooled.astype(jnp.bfloat16), f1w_ref[...],
                preferred_element_type=jnp.float32) + f1b_ref[...]
    z = jnp.maximum(z, 0.0)
    gate = jax.nn.sigmoid(
        jnp.dot(z.astype(jnp.bfloat16), f2w_ref[...],
                preferred_element_type=jnp.float32) + f2b_ref[...])

    # ---- residual (identity or fused 1x1 projection + BN), gate, final ReLU -----
    if proj:
        r = jnp.dot(x, wd_ref[...], preferred_element_type=jnp.float32)
        r = r * sd_ref[...] + bd_ref[...]
    else:
        r = x.astype(jnp.float32)
    y = jnp.maximum(t3 * gate + r, 0.0)                       # (m, CP) f32

    if with_head:
        # AvgPool2d(input_size // 32, stride=1) on the final kxk map == global mean
        # over the m spatial rows, then the final Linear: write logits only.
        py = jnp.mean(y, axis=0, keepdims=True)               # (1, CP) f32
        logits = jnp.dot(py.astype(jnp.bfloat16), hw_ref[...],
                         preferred_element_type=jnp.float32) + hb_ref[...]
        o_ref[0] = logits
    else:
        o_ref[0] = y.astype(o_ref.dtype)


def se_block(x_nhwc, p, stride, head_w=None, head_b=None):
    """One fused SE-bottleneck (optionally with the model head fused in)."""
    B = x_nhwc.shape[0]
    assert x_nhwc.shape[-1] == CP
    # se_resnet (Caffe-style) bottleneck: the stride sits on conv1 and the 1x1
    # downsample projection, so a stride-2 block == a stride-1 block applied to
    # x[:, ::2, ::2, :]; conv2 is always 3x3 / stride 1 / pad 1.
    xs = x_nhwc[:, ::stride, ::stride, :] if stride != 1 else x_nhwc
    ho, wo = xs.shape[1], xs.shape[2]
    m = ho * wo
    x2 = xs.reshape(B, m, CP)
    proj = "wd" in p
    with_head = head_w is not None

    inputs = [x2, p["w1"], p["s1"], p["b1"], p["w2"], p["s2"], p["b2"],
              p["w3"], p["s3"], p["b3"],
              p["fc1_w"], p["fc1_b"], p["fc2_w"], p["fc2_b"]]
    in_specs = [pl.BlockSpec((1, m, CP), lambda b: (b, 0, 0))]
    in_specs += [_rep_spec(a) for a in inputs[1:]]
    if proj:
        inputs += [p["wd"], p["sd"], p["bd"]]
        in_specs += [_rep_spec(p["wd"]), _rep_spec(p["sd"]), _rep_spec(p["bd"])]
    if with_head:
        inputs += [head_w, head_b]
        in_specs += [_rep_spec(head_w), _rep_spec(head_b)]

    if with_head:
        out_shape = jax.ShapeDtypeStruct((B, 1, CP), jnp.float32)
        out_specs = pl.BlockSpec((1, 1, CP), lambda b: (b, 0, 0))
    else:
        out_shape = jax.ShapeDtypeStruct((B, m, CP), jnp.bfloat16)
        out_specs = pl.BlockSpec((1, m, CP), lambda b: (b, 0, 0))

    out = pl.pallas_call(
        functools.partial(_se_block_kernel, ho=ho, wo=wo, proj=proj,
                          with_head=with_head),
        out_shape=out_shape,
        grid_spec=pltpu.PrefetchScalarGridSpec(
            num_scalar_prefetch=0,
            grid=(B,),
            in_specs=in_specs,
            out_specs=out_specs,
            scratch_shapes=[pltpu.VMEM((ho + 2, wo + 16, CP), jnp.float32)]),
        compiler_params=_cparams(),
    )(*inputs)
    if with_head:
        return out.reshape(B, CP)
    return out.reshape(B, ho, wo, CP)


# ----------------------------------------------------------------------------
# XLA glue (layout only, tiny tensors): stem im2col + ceil-mode max-pool.
# ----------------------------------------------------------------------------
def stem_im2col(x, kh=7, kw=7, stride=2, pad=3, k_pad=2 * CP):
    """Patch extraction for the 3-channel stem; K zero-padded to 256 lanes.

    Synthetic weight rows are ordered ((kh, kw) outer, channel inner) to match;
    a real PyTorch checkpoint (C_out, C_in, kh, kw) would need transposing to
    (kh, kw, C_in) before padding.
    """
    B, H, W, C = x.shape
    xp = jnp.pad(x, ((0, 0), (pad, pad), (pad, pad), (0, 0)))
    Ho = (H + 2 * pad - kh) // stride + 1
    Wo = (W + 2 * pad - kw) // stride + 1
    cols = []
    for i in range(kh):
        for j in range(kw):
            cols.append(xp[:, i:i + (Ho - 1) * stride + 1:stride,
                           j:j + (Wo - 1) * stride + 1:stride, :])
    cols.append(jnp.zeros((B, Ho, Wo, k_pad - kh * kw * C), x.dtype))
    patches = jnp.concatenate(cols, axis=-1)
    return patches.reshape(B, Ho * Wo, k_pad), Ho, Wo


def maxpool_3x3_s2_ceil(x):
    # TODO(synk): MaxPool2d(3, stride=2, ceil_mode=True) kept as XLA reduce_window
    # glue; the stride-2 sublane decimation has no clean Pallas/Mosaic lowering.
    init = jnp.array(-jnp.inf, dtype=x.dtype)
    return lax.reduce_window(x, init, lax.max, (1, 3, 3, 1), (1, 2, 2, 1),
                             [(0, 0), (0, 1), (0, 1), (0, 0)])


# ----------------------------------------------------------------------------
# Synthetic miniature SE-ResNet weights (zero-padded once to CP=128 channels).
# ----------------------------------------------------------------------------
def make_params(key, num_classes):
    stem_out = 16
    planes = (8, 16, 32, 64)
    expansion = 2
    reduction = 4
    assert num_classes <= CP

    def nxt():
        nonlocal key
        key, sub = jax.random.split(key)
        return sub

    def rnd(shape, fan_in):
        return jax.random.normal(nxt(), shape, jnp.float32) / jnp.sqrt(float(fan_in))

    def pad2(a, rows, cols):
        return jnp.pad(a, ((0, rows - a.shape[0]), (0, cols - a.shape[1])))

    def vec(n_real, val):
        v = jnp.full((n_real,), val, jnp.float32)
        return jnp.pad(v, ((0, CP - n_real),)).reshape(1, CP)

    stem_w = rnd((7 * 7 * 3, stem_out), 7 * 7 * 3)
    params = {
        "stem_w": pad2(stem_w, 2 * CP, CP).astype(jnp.bfloat16),   # K: 147 -> 256
        "stem_s": vec(stem_out, 1.0),
        "stem_b": vec(stem_out, 0.0),
    }
    blocks = []
    c_in = stem_out
    for width, st in zip(planes, STAGE_STRIDES):
        c_out = width * expansion
        red = max(c_out // reduction, 4)
        w2 = rnd((9, width, width), 9 * width)
        p = {
            "w1": pad2(rnd((c_in, width), c_in), CP, CP).astype(jnp.bfloat16),
            "s1": vec(width, 1.0), "b1": vec(width, 0.0),
            "w2": jnp.concatenate([pad2(w2[t], CP, CP) for t in range(9)],
                                  axis=0).astype(jnp.bfloat16),
            "s2": vec(width, 1.0), "b2": vec(width, 0.0),
            "w3": pad2(rnd((width, c_out), width), CP, CP).astype(jnp.bfloat16),
            "s3": vec(c_out, 1.0), "b3": vec(c_out, 0.0),
            "fc1_w": pad2(rnd((c_out, red), c_out), CP, CP).astype(jnp.bfloat16),
            "fc1_b": vec(red, 0.0),
            "fc2_w": pad2(rnd((red, c_out), red), CP, CP).astype(jnp.bfloat16),
            "fc2_b": vec(c_out, 0.0),
        }
        if st != 1 or c_in != c_out:
            p["wd"] = pad2(rnd((c_in, c_out), c_in), CP, CP).astype(jnp.bfloat16)
            p["sd"] = vec(c_out, 1.0)
            p["bd"] = vec(c_out, 0.0)
        blocks.append(p)
        c_in = c_out
    params["blocks"] = blocks
    params["fc_w"] = pad2(rnd((c_in, num_classes), c_in), CP, CP).astype(jnp.bfloat16)
    params["fc_b"] = vec(num_classes, 0.0)
    return params


# ----------------------------------------------------------------------------
# Full forward pass.
# ----------------------------------------------------------------------------
def landmarks_model_forward(x_nchw, params, *, input_size, num_classes):
    assert input_size % 32 == 0
    B = x_nchw.shape[0]
    # NCHW -> NHWC (channels on the 128-lane axis), bf16 MXU operands.
    x = jnp.transpose(x_nchw, (0, 2, 3, 1)).astype(jnp.bfloat16)
    # Stem: 7x7/s2 conv + BN + ReLU (3-channel im2col in XLA, K padded to 256).
    patches, ho, wo = stem_im2col(x)
    x = stem_conv_bn_relu(patches, params["stem_w"], params["stem_s"],
                          params["stem_b"]).reshape(B, ho, wo, CP)
    x = maxpool_3x3_s2_ceil(x)                                   # total stride /4
    logits = None
    n_blocks = len(params["blocks"])
    for bi, (p, st) in enumerate(zip(params["blocks"], STAGE_STRIDES)):
        if bi == n_blocks - 1:
            # Last block fuses the head (global mean + Linear) and emits logits.
            logits = se_block(x, p, st, head_w=params["fc_w"],
                              head_b=params["fc_b"])
        else:
            x = se_block(x, p, st)
    return logits[:, :num_classes]


if __name__ == "__main__":
    num_classes = 10
    input_size = 64
    batch = 2

    key_x, key_p = jax.random.split(jax.random.PRNGKey(0))
    x = jax.random.normal(key_x, (batch, 3, input_size, input_size), jnp.float32)
    params = make_params(key_p, num_classes)

    fwd = jax.jit(functools.partial(landmarks_model_forward,
                                    input_size=input_size,
                                    num_classes=num_classes))
    out = jax.block_until_ready(fwd(x, params))

    assert out.shape == (batch, num_classes)
    assert bool(jnp.all(jnp.isfinite(out)))
    print("KERNEL_OK")
</pallas_src>

<mosaic_0001>
module attributes {stable_mosaic.version = 11 : i64} {
  func.func @_stem_kernel(%arg0: i32, %arg1: memref<1x1024x256xbf16, #tpu.memory_space<vmem>>, %arg2: memref<256x128xbf16, #tpu.memory_space<vmem>>, %arg3: memref<1x128xf32, #tpu.memory_space<vmem>>, %arg4: memref<1x128xf32, #tpu.memory_space<vmem>>, %arg5: memref<1x1024x128xbf16, #tpu.memory_space<vmem>>) attributes {dimension_semantics = [#tpu.dimension_semantics<parallel>], iteration_bounds = array<i64: 2>, scalar_prefetch = 0 : i64, scratch_operands = 0 : i64, tpu.core_type = #tpu.core_type<tc>, window_params = [{transform_indices = @transform_0, window_bounds = array<i64: 1, 1024, 256>}, {pipeline_mode = #tpu.pipeline_mode<synchronous>, transform_indices = @transform_1, window_bounds = array<i64: 256, 128>}, {pipeline_mode = #tpu.pipeline_mode<synchronous>, transform_indices = @transform_2, window_bounds = array<i64: 1, 128>}, {pipeline_mode = #tpu.pipeline_mode<synchronous>, transform_indices = @transform_3, window_bounds = array<i64: 1, 128>}, {transform_indices = @transform_4, window_bounds = array<i64: 1, 1024, 128>}]} {
    %c0 = arith.constant 0 : index
    %c0_0 = arith.constant 0 : index
    %c0_1 = arith.constant 0 : index
    %0 = vector.load %arg1[%c0, %c0_0, %c0_1] : memref<1x1024x256xbf16, #tpu.memory_space<vmem>>, vector<1x1024x256xbf16>
    %1 = vector.shape_cast %0 : vector<1x1024x256xbf16> to vector<1024x256xbf16>
    %c0_2 = arith.constant 0 : index
    %c0_3 = arith.constant 0 : index
    %2 = vector.load %arg2[%c0_2, %c0_3] : memref<256x128xbf16, #tpu.memory_space<vmem>>, vector<256x128xbf16>
    %cst = arith.constant dense<0.000000e+00> : vector<1024x128xf32>
    %3 = tpu.matmul %1, %2, %cst {dimension_numbers = #tpu.dot_dimension_numbers<[1], [0], [0], [1], [0, 0, 1, 1], [], []>} : vector<1024x256xbf16>, vector<256x128xbf16>, vector<1024x128xf32> -> vector<1024x128xf32>
    %c0_4 = arith.constant 0 : index
    %c0_5 = arith.constant 0 : index
    %4 = vector.load %arg3[%c0_4, %c0_5] : memref<1x128xf32, #tpu.memory_space<vmem>>, vector<1x128xf32>
    %5 = vector.broadcast %4 : vector<1x128xf32> to vector<1024x128xf32>
    %6 = arith.mulf %3, %5 : vector<1024x128xf32>
    %c0_6 = arith.constant 0 : index
    %c0_7 = arith.constant 0 : index
    %7 = vector.load %arg4[%c0_6, %c0_7] : memref<1x128xf32, #tpu.memory_space<vmem>>, vector<1x128xf32>
    %8 = vector.broadcast %7 : vector<1x128xf32> to vector<1024x128xf32>
    %9 = arith.addf %6, %8 : vector<1024x128xf32>
    %cst_8 = arith.constant 0.000000e+00 : f32
    %10 = vector.broadcast %cst_8 : f32 to vector<1024x128xf32>
    %11 = arith.maximumf %9, %10 : vector<1024x128xf32>
    %12 = arith.truncf %11 : vector<1024x128xf32> to vector<1024x128xbf16>
    %c0_9 = arith.constant 0 : index
    %c0_10 = arith.constant 0 : index
    %c0_11 = arith.constant 0 : index
    %13 = vector.load %arg5[%c0_9, %c0_10, %c0_11] : memref<1x1024x128xbf16, #tpu.memory_space<vmem>>, vector<1x1024x128xbf16>
    %14 = vector.shape_cast %13 : vector<1x1024x128xbf16> to vector<1024x128xbf16>
    %15 = vector.shape_cast %12 : vector<1024x128xbf16> to vector<1x1024x128xbf16>
    tpu.vector_store %arg5[%c0_9, %c0_10, %c0_11], %15 {strides = array<i32>} : memref<1x1024x128xbf16, #tpu.memory_space<vmem>>, vector<1x1024x128xbf16>,
    return
  }
  func.func @transform_0(%arg0: i32) -> (i32, i32, i32) {
    %c0_i32 = arith.constant 0 : i32
    %c0_i32_0 = arith.constant 0 : i32
    %c0_i32_1 = arith.constant 0 : i32
    return %arg0, %c0_i32, %c0_i32_0 : i32, i32, i32
  }
  func.func @transform_1(%arg0: i32) -> (i32, i32) {
    %c0_i32 = arith.constant 0 : i32
    %c0_i32_0 = arith.constant 0 : i32
    %c0_i32_1 = arith.constant 0 : i32
    return %c0_i32, %c0_i32_0 : i32, i32
  }
  func.func @transform_2(%arg0: i32) -> (i32, i32) {
    %c0_i32 = arith.constant 0 : i32
    %c0_i32_0 = arith.constant 0 : i32
    %c0_i32_1 = arith.constant 0 : i32
    return %c0_i32, %c0_i32_0 : i32, i32
  }
  func.func @transform_3(%arg0: i32) -> (i32, i32) {
    %c0_i32 = arith.constant 0 : i32
    %c0_i32_0 = arith.constant 0 : i32
    %c0_i32_1 = arith.constant 0 : i32
    return %c0_i32, %c0_i32_0 : i32, i32
  }
  func.func @transform_4(%arg0: i32) -> (i32, i32, i32) {
    %c0_i32 = arith.constant 0 : i32
    %c0_i32_0 = arith.constant 0 : i32
    %c0_i32_1 = arith.constant 0 : i32
    return %arg0, %c0_i32, %c0_i32_0 : i32, i32, i32
  }
}

module attributes {stable_mosaic.version = 11 : i64} {
  func.func @_se_block_kernel(%arg0: i32, %arg1: memref<1x256x128xbf16, #tpu.memory_space<vmem>>, %arg2: memref<128x128xbf16, #tpu.memory_space<vmem>>, %arg3: memref<1x128xf32, #tpu.memory_space<vmem>>, %arg4: memref<1x128xf32, #tpu.memory_space<vmem>>, %arg5: memref<1152x128xbf16, #tpu.memory_space<vmem>>, %arg6: memref<1x128xf32, #tpu.memory_space<vmem>>, %arg7: memref<1x128xf32, #tpu.memory_space<vmem>>, %arg8: memref<128x128xbf16, #tpu.memory_space<vmem>>, %arg9: memref<1x128xf32, #tpu.memory_space<vmem>>, %arg10: memref<1x128xf32, #tpu.memory_space<vmem>>, %arg11: memref<128x128xbf16, #tpu.memory_space<vmem>>, %arg12: memref<1x128xf32, #tpu.memory_space<vmem>>, %arg13: memref<128x128xbf16, #tpu.memory_space<vmem>>, %arg14: memref<1x128xf32, #tpu.memory_space<vmem>>, %arg15: memref<1x256x128xbf16, #tpu.memory_space<vmem>>, %arg16: memref<18x32x128xf32, #tpu.memory_space<vmem>>) attributes {dimension_semantics = [#tpu.dimension_semantics<parallel>], iteration_bounds = array<i64: 2>, scalar_prefetch = 0 : i64, scratch_operands = 1 : i64, tpu.core_type = #tpu.core_type<tc>, window_params = [{transform_indices = @transform_0, window_bounds = array<i64: 1, 256, 128>}, {pipeline_mode = #tpu.pipeline_mode<synchronous>, transform_indices = @transform_1, window_bounds = array<i64: 128, 128>}, {pipeline_mode = #tpu.pipeline_mode<synchronous>, transform_indices = @transform_2, window_bounds = array<i64: 1, 128>}, {pipeline_mode = #tpu.pipeline_mode<synchronous>, transform_indices = @transform_3, window_bounds = array<i64: 1, 128>}, {pipeline_mode = #tpu.pipeline_mode<synchronous>, transform_indices = @transform_4, window_bounds = array<i64: 1152, 128>}, {pipeline_mode = #tpu.pipeline_mode<synchronous>, transform_indices = @transform_5, window_bounds = array<i64: 1, 128>}, {pipeline_mode = #tpu.pipeline_mode<synchronous>, transform_indices = @transform_6, window_bounds = array<i64: 1, 128>}, {pipeline_mode = #tpu.pipeline_mode<synchronous>, transform_indices = @transform_7, window_bounds = array<i64: 128, 128>}, {pipeline_mode = #tpu.pipeline_mode<synchronous>, transform_indices = @transform_8, window_bounds = array<i64: 1, 128>}, {pipeline_mode = #tpu.pipeline_mode<synchronous>, transform_indices = @transform_9, window_bounds = array<i64: 1, 128>}, {pipeline_mode = #tpu.pipeline_mode<synchronous>, transform_indices = @transform_10, window_bounds = array<i64: 128, 128>}, {pipeline_mode = #tpu.pipeline_mode<synchronous>, transform_indices = @transform_11, window_bounds = array<i64: 1, 128>}, {pipeline_mode = #tpu.pipeline_mode<synchronous>, transform_indices = @transform_12, window_bounds = array<i64: 128, 128>}, {pipeline_mode = #tpu.pipeline_mode<synchronous>, transform_indices = @transform_13, window_bounds = array<i64: 1, 128>}, {transform_indices = @transform_14, window_bounds = array<i64: 1, 256, 128>}]} {
    %c0 = arith.constant 0 : index
    %c0_0 = arith.constant 0 : index
    %c0_1 = arith.constant 0 : index
    %0 = vector.load %arg1[%c0, %c0_0, %c0_1] : memref<1x256x128xbf16, #tpu.memory_space<vmem>>, vector<1x256x128xbf16>
    %1 = vector.shape_cast %0 : vector<1x256x128xbf16> to vector<256x128xbf16>
    %c0_2 = arith.constant 0 : index
    %c0_3 = arith.constant 0 : index
    %2 = vector.load %arg2[%c0_2, %c0_3] : memref<128x128xbf16, #tpu.memory_space<vmem>>, vector<128x128xbf16>
    %cst = arith.constant dense<0.000000e+00> : vector<256x128xf32>
    %3 = tpu.matmul %1, %2, %cst {dimension_numbers = #tpu.dot_dimension_numbers<[1], [0], [0], [1], [0, 0, 1, 1], [], []>} : vector<256x128xbf16>, vector<128x128xbf16>, vector<256x128xf32> -> vector<256x128xf32>
    %c0_4 = arith.constant 0 : index
    %c0_5 = arith.constant 0 : index
    %4 = vector.load %arg3[%c0_4, %c0_5] : memref<1x128xf32, #tpu.memory_space<vmem>>, vector<1x128xf32>
    %5 = vector.broadcast %4 : vector<1x128xf32> to vector<256x128xf32>
    %6 = arith.mulf %3, %5 : vector<256x128xf32>
    %c0_6 = arith.constant 0 : index
    %c0_7 = arith.constant 0 : index
    %7 = vector.load %arg4[%c0_6, %c0_7] : memref<1x128xf32, #tpu.memory_space<vmem>>, vector<1x128xf32>
    %8 = vector.broadcast %7 : vector<1x128xf32> to vector<256x128xf32>
    %9 = arith.addf %6, %8 : vector<256x128xf32>
    %cst_8 = arith.constant 0.000000e+00 : f32
    %10 = vector.broadcast %cst_8 : f32 to vector<256x128xf32>
    %11 = arith.maximumf %9, %10 : vector<256x128xf32>
    %cst_9 = arith.constant 0.000000e+00 : f32
    %12 = vector.broadcast %cst_9 : f32 to vector<18x32x128xf32>
    %c0_10 = arith.constant 0 : index
    %c0_11 = arith.constant 0 : index
    %c0_12 = arith.constant 0 : index
    %13 = vector.load %arg16[%c0_10, %c0_11, %c0_12] : memref<18x32x128xf32, #tpu.memory_space<vmem>>, vector<18x32x128xf32>
    tpu.vector_store %arg16[%c0_10, %c0_11, %c0_12], %12 {strides = array<i32>} : memref<18x32x128xf32, #tpu.memory_space<vmem>>, vector<18x32x128xf32>,
    %14 = vector.shape_cast %11 : vector<256x128xf32> to vector<16x16x128xf32>
    %c1 = arith.constant 1 : index
    %c8 = arith.constant 8 : index
    %c0_13 = arith.constant 0 : index
    %15 = vector.load %arg16[%c1, %c8, %c0_13] : memref<18x32x128xf32, #tpu.memory_space<vmem>>, vector<16x16x128xf32>
    tpu.vector_store %arg16[%c1, %c8, %c0_13], %14 {strides = array<i32>} : memref<18x32x128xf32, #tpu.memory_space<vmem>>, vector<16x16x128xf32>,
    %c0_14 = arith.constant 0 : index
    %c7 = arith.constant 7 : index
    %c0_15 = arith.constant 0 : index
    %16 = vector.load %arg16[%c0_14, %c7, %c0_15] : memref<18x32x128xf32, #tpu.memory_space<vmem>>, vector<16x16x128xf32>
    %17 = vector.shape_cast %16 : vector<16x16x128xf32> to vector<256x128xf32>
    %18 = arith.truncf %17 : vector<256x128xf32> to vector<256x128xbf16>
    %c0_16 = arith.constant 0 : index
    %c0_17 = arith.constant 0 : index
    %19 = vector.load %arg5[%c0_16, %c0_17] : memref<1152x128xbf16, #tpu.memory_space<vmem>>, vector<128x128xbf16>
    %cst_18 = arith.constant dense<0.000000e+00> : vector<256x128xf32>
    %20 = tpu.matmul %18, %19, %cst_18 {dimension_numbers = #tpu.dot_dimension_numbers<[1], [0], [0], [1], [0, 0, 1, 1], [], []>} : vector<256x128xbf16>, vector<128x128xbf16>, vector<256x128xf32> -> vector<256x128xf32>
    %c0_19 = arith.constant 0 : index
    %c8_20 = arith.constant 8 : index
    %c0_21 = arith.constant 0 : index
    %21 = vector.load %arg16[%c0_19, %c8_20, %c0_21] : memref<18x32x128xf32, #tpu.memory_space<vmem>>, vector<16x16x128xf32>
    %22 = vector.shape_cast %21 : vector<16x16x128xf32> to vector<256x128xf32>
    %23 = arith.truncf %22 : vector<256x128xf32> to vector<256x128xbf16>
    %c128 = arith.constant 128 : index
    %c0_22 = arith.constant 0 : index
    %24 = vector.load %arg5[%c128, %c0_22] : memref<1152x128xbf16, #tpu.memory_space<vmem>>, vector<128x128xbf16>
    %cst_23 = arith.constant dense<0.000000e+00> : vector<256x128xf32>
    %25 = tpu.matmul %23, %24, %cst_23 {dimension_numbers = #tpu.dot_dimension_numbers<[1], [0], [0], [1], [0, 0, 1, 1], [], []>} : vector<256x128xbf16>, vector<128x128xbf16>, vector<256x128xf32> -> vector<256x128xf32>
    %26 = arith.addf %20, %25 : vector<256x128xf32>
    %c0_24 = arith.constant 0 : index
    %c9 = arith.constant 9 : index
    %c0_25 = arith.constant 0 : index
    %27 = vector.load %arg16[%c0_24, %c9, %c0_25] : memref<18x32x128xf32, #tpu.memory_space<vmem>>, vector<16x16x128xf32>
    %28 = vector.shape_cast %27 : vector<16x16x128xf32> to vector<256x128xf32>
    %29 = arith.truncf %28 : vector<256x128xf32> to vector<256x128xbf16>
    %c256 = arith.constant 256 : index
    %c0_26 = arith.constant 0 : index
    %30 = vector.load %arg5[%c256, %c0_26] : memref<1152x128xbf16, #tpu.memory_space<vmem>>, vector<128x128xbf16>
    %cst_27 = arith.constant dense<0.000000e+00> : vector<256x128xf32>
    %31 = tpu.matmul %29, %30, %cst_27 {dimension_numbers = #tpu.dot_dimension_numbers<[1], [0], [0], [1], [0, 0, 1, 1], [], []>} : vector<256x128xbf16>, vector<128x128xbf16>, vector<256x128xf32> -> vector<256x128xf32>
    %32 = arith.addf %26, %31 : vector<256x128xf32>
    %c1_28 = arith.constant 1 : index
    %c7_29 = arith.constant 7 : index
    %c0_30 = arith.constant 0 : index
    %33 = vector.load %arg16[%c1_28, %c7_29, %c0_30] : memref<18x32x128xf32, #tpu.memory_space<vmem>>, vector<16x16x128xf32>
    %34 = vector.shape_cast %33 : vector<16x16x128xf32> to vector<256x128xf32>
    %35 = arith.truncf %34 : vector<256x128xf32> to vector<256x128xbf16>
    %c384 = arith.constant 384 : index
    %c0_31 = arith.constant 0 : index
    %36 = vector.load %arg5[%c384, %c0_31] : memref<1152x128xbf16, #tpu.memory_space<vmem>>, vector<128x128xbf16>
    %cst_32 = arith.constant dense<0.000000e+00> : vector<256x128xf32>
    %37 = tpu.matmul %35, %36, %cst_32 {dimension_numbers = #tpu.dot_dimension_numbers<[1], [0], [0], [1], [0, 0, 1, 1], [], []>} : vector<256x128xbf16>, vector<128x128xbf16>, vector<256x128xf32> -> vector<256x128xf32>
    %38 = arith.addf %32, %37 : vector<256x128xf32>
    %c1_33 = arith.constant 1 : index
    %c8_34 = arith.constant 8 : index
    %c0_35 = arith.constant 0 : index
    %39 = vector.load %arg16[%c1_33, %c8_34, %c0_35] : memref<18x32x128xf32, #tpu.memory_space<vmem>>, vector<16x16x128xf32>
    %40 = vector.shape_cast %39 : vector<16x16x128xf32> to vector<256x128xf32>
    %41 = arith.truncf %40 : vector<256x128xf32> to vector<256x128xbf16>
    %c512 = arith.constant 512 : index
    %c0_36 = arith.constant 0 : index
    %42 = vector.load %arg5[%c512, %c0_36] : memref<1152x128xbf16, #tpu.memory_space<vmem>>, vector<128x128xbf16>
    %cst_37 = arith.constant dense<0.000000e+00> : vector<256x128xf32>
    %43 = tpu.matmul %41, %42, %cst_37 {dimension_numbers = #tpu.dot_dimension_numbers<[1], [0], [0], [1], [0, 0, 1, 1], [], []>} : vector<256x128xbf16>, vector<128x128xbf16>, vector<256x128xf32> -> vector<256x128xf32>
    %44 = arith.addf %38, %43 : vector<256x128xf32>
    %c1_38 = arith.constant 1 : index
    %c9_39 = arith.constant 9 : index
    %c0_40 = arith.constant 0 : index
    %45 = vector.load %arg16[%c1_38, %c9_39, %c0_40] : memref<18x32x128xf32, #tpu.memory_space<vmem>>, vector<16x16x128xf32>
    %46 = vector.shape_cast %45 : vector<16x16x128xf32> to vector<256x128xf32>
    %47 = arith.truncf %46 : vector<256x128xf32> to vector<256x128xbf16>
    %c640 = arith.constant 640 : index
    %c0_41 = arith.constant 0 : index
    %48 = vector.load %arg5[%c640, %c0_41] : memref<1152x128xbf16, #tpu.memory_space<vmem>>, vector<128x128xbf16>
    %cst_42 = arith.constant dense<0.000000e+00> : vector<256x128xf32>
    %49 = tpu.matmul %47, %48, %cst_42 {dimension_numbers = #tpu.dot_dimension_numbers<[1], [0], [0], [1], [0, 0, 1, 1], [], []>} : vector<256x128xbf16>, vector<128x128xbf16>, vector<256x128xf32> -> vector<256x128xf32>
    %50 = arith.addf %44, %49 : vector<256x128xf32>
    %c2 = arith.constant 2 : index
    %c7_43 = arith.constant 7 : index
    %c0_44 = arith.constant 0 : index
    %51 = vector.load %arg16[%c2, %c7_43, %c0_44] : memref<18x32x128xf32, #tpu.memory_space<vmem>>, vector<16x16x128xf32>
    %52 = vector.shape_cast %51 : vector<16x16x128xf32> to vector<256x128xf32>
    %53 = arith.truncf %52 : vector<256x128xf32> to vector<256x128xbf16>
    %c768 = arith.constant 768 : index
    %c0_45 = arith.constant 0 : index
    %54 = vector.load %arg5[%c768, %c0_45] : memref<1152x128xbf16, #tpu.memory_space<vmem>>, vector<128x128xbf16>
    %cst_46 = arith.constant dense<0.000000e+00> : vector<256x128xf32>
    %55 = tpu.matmul %53, %54, %cst_46 {dimension_numbers = #tpu.dot_dimension_numbers<[1], [0], [0], [1], [0, 0, 1, 1], [], []>} : vector<256x128xbf16>, vector<128x128xbf16>, vector<256x128xf32> -> vector<256x128xf32>
    %56 = arith.addf %50, %55 : vector<256x128xf32>
    %c2_47 = arith.constant 2 : index
    %c8_48 = arith.constant 8 : index
    %c0_49 = arith.constant 0 : index
    %57 = vector.load %arg16[%c2_47, %c8_48, %c0_49] : memref<18x32x128xf32, #tpu.memory_space<vmem>>, vector<16x16x128xf32>
    %58 = vector.shape_cast %57 : vector<16x16x128xf32> to vector<256x128xf32>
    %59 = arith.truncf %58 : vector<256x128xf32> to vector<256x128xbf16>
    %c896 = arith.constant 896 : index
    %c0_50 = arith.constant 0 : index
    %60 = vector.load %arg5[%c896, %c0_50] : memref<1152x128xbf16, #tpu.memory_space<vmem>>, vector<128x128xbf16>
    %cst_51 = arith.constant dense<0.000000e+00> : vector<256x128xf32>
    %61 = tpu.matmul %59, %60, %cst_51 {dimension_numbers = #tpu.dot_dimension_numbers<[1], [0], [0], [1], [0, 0, 1, 1], [], []>} : vector<256x128xbf16>, vector<128x128xbf16>, vector<256x128xf32> -> vector<256x128xf32>
    %62 = arith.addf %56, %61 : vector<256x128xf32>
    %c2_52 = arith.constant 2 : index
    %c9_53 = arith.constant 9 : index
    %c0_54 = arith.constant 0 : index
    %63 = vector.load %arg16[%c2_52, %c9_53, %c0_54] : memref<18x32x128xf32, #tpu.memory_space<vmem>>, vector<16x16x128xf32>
    %64 = vector.shape_cast %63 : vector<16x16x128xf32> to vector<256x128xf32>
    %65 = arith.truncf %64 : vector<256x128xf32> to vector<256x128xbf16>
    %c1024 = arith.constant 1024 : index
    %c0_55 = arith.constant 0 : index
    %66 = vector.load %arg5[%c1024, %c0_55] : memref<1152x128xbf16, #tpu.memory_space<vmem>>, vector<128x128xbf16>
    %cst_56 = arith.constant dense<0.000000e+00> : vector<256x128xf32>
    %67 = tpu.matmul %65, %66, %cst_56 {dimension_numbers = #tpu.dot_dimension_numbers<[1], [0], [0], [1], [0, 0, 1, 1], [], []>} : vector<256x128xbf16>, vector<128x128xbf16>, vector<256x128xf32> -> vector<256x128xf32>
    %68 = arith.addf %62, %67 : vector<256x128xf32>
    %c0_57 = arith.constant 0 : index
    %c0_58 = arith.constant 0 : index
    %69 = vector.load %arg6[%c0_57, %c0_58] : memref<1x128xf32, #tpu.memory_space<vmem>>, vector<1x128xf32>
    %70 = vector.broadcast %69 : vector<1x128xf32> to vector<256x128xf32>
    %71 = arith.mulf %68, %70 : vector<256x128xf32>
    %c0_59 = arith.constant 0 : index
    %c0_60 = arith.constant 0 : index
    %72 = vector.load %arg7[%c0_59, %c0_60] : memref<1x128xf32, #tpu.memory_space<vmem>>, vector<1x128xf32>
    %73 = vector.broadcast %72 : vector<1x128xf32> to vector<256x128xf32>
    %74 = arith.addf %71, %73 : vector<256x128xf32>
    %cst_61 = arith.constant 0.000000e+00 : f32
    %75 = vector.broadcast %cst_61 : f32 to vector<256x128xf32>
    %76 = arith.maximumf %74, %75 : vector<256x128xf32>
    %77 = arith.truncf %76 : vector<256x128xf32> to vector<256x128xbf16>
    %c0_62 = arith.constant 0 : index
    %c0_63 = arith.constant 0 : index
    %78 = vector.load %arg8[%c0_62, %c0_63] : memref<128x128xbf16, #tpu.memory_space<vmem>>, vector<128x128xbf16>
    %cst_64 = arith.constant dense<0.000000e+00> : vector<256x128xf32>
    %79 = tpu.matmul %77, %78, %cst_64 {dimension_numbers = #tpu.dot_dimension_numbers<[1], [0], [0], [1], [0, 0, 1, 1], [], []>} : vector<256x128xbf16>, vector<128x128xbf16>, vector<256x128xf32> -> vector<256x128xf32>
    %c0_65 = arith.constant 0 : index
    %c0_66 = arith.constant 0 : index
    %80 = vector.load %arg9[%c0_65, %c0_66] : memref<1x128xf32, #tpu.memory_space<vmem>>, vector<1x128xf32>
    %81 = vector.broadcast %80 : vector<1x128xf32> to vector<256x128xf32>
    %82 = arith.mulf %79, %81 : vector<256x128xf32>
    %c0_67 = arith.constant 0 : index
    %c0_68 = arith.constant 0 : index
    %83 = vector.load %arg10[%c0_67, %c0_68] : memref<1x128xf32, #tpu.memory_space<vmem>>, vector<1x128xf32>
    %84 = vector.broadcast %83 : vector<1x128xf32> to vector<256x128xf32>
    %85 = arith.addf %82, %84 : vector<256x128xf32>
    %cst_69 = arith.constant dense<0.000000e+00> : vector<128xf32>
    %86 = vector.multi_reduction <add>, %85, %cst_69 [0] : vector<256x128xf32> to vector<128xf32>
    %87 = vector.shape_cast %86 : vector<128xf32> to vector<1x128xf32>
    %cst_70 = arith.constant 2.560000e+02 : f32
    %88 = vector.broadcast %cst_70 : f32 to vector<1x128xf32>
    %89 = arith.divf %87, %88 : vector<1x128xf32>
    %90 = arith.truncf %89 : vector<1x128xf32> to vector<1x128xbf16>
    %c0_71 = arith.constant 0 : index
    %c0_72 = arith.constant 0 : index
    %91 = vector.load %arg11[%c0_71, %c0_72] : memref<128x128xbf16, #tpu.memory_space<vmem>>, vector<128x128xbf16>
    %cst_73 = arith.constant dense<0.000000e+00> : vector<1x128xf32>
    %92 = tpu.matmul %90, %91, %cst_73 {dimension_numbers = #tpu.dot_dimension_numbers<[1], [0], [0], [1], [0, 0, 1, 1], [], []>} : vector<1x128xbf16>, vector<128x128xbf16>, vector<1x128xf32> -> vector<1x128xf32>
    %c0_74 = arith.constant 0 : index
    %c0_75 = arith.constant 0 : index
    %93 = vector.load %arg12[%c0_74, %c0_75] : memref<1x128xf32, #tpu.memory_space<vmem>>, vector<1x128xf32>
    %94 = arith.addf %92, %93 : vector<1x128xf32>
    %cst_76 = arith.constant 0.000000e+00 : f32
    %95 = vector.broadcast %cst_76 : f32 to vector<1x128xf32>
    %96 = arith.maximumf %94, %95 : vector<1x128xf32>
    %97 = arith.truncf %96 : vector<1x128xf32> to vector<1x128xbf16>
    %c0_77 = arith.constant 0 : index
    %c0_78 = arith.constant 0 : index
    %98 = vector.load %arg13[%c0_77, %c0_78] : memref<128x128xbf16, #tpu.memory_space<vmem>>, vector<128x128xbf16>
    %cst_79 = arith.constant dense<0.000000e+00> : vector<1x128xf32>
    %99 = tpu.matmul %97, %98, %cst_79 {dimension_numbers = #tpu.dot_dimension_numbers<[1], [0], [0], [1], [0, 0, 1, 1], [], []>} : vector<1x128xbf16>, vector<128x128xbf16>, vector<1x128xf32> -> vector<1x128xf32>
    %c0_80 = arith.constant 0 : index
    %c0_81 = arith.constant 0 : index
    %100 = vector.load %arg14[%c0_80, %c0_81] : memref<1x128xf32, #tpu.memory_space<vmem>>, vector<1x128xf32>
    %101 = arith.addf %99, %100 : vector<1x128xf32>
    %102 = arith.negf %101 : vector<1x128xf32>
    %103 = math.exp %102 : vector<1x128xf32>
    %cst_82 = arith.constant 1.000000e+00 : f32
    %104 = vector.broadcast %cst_82 : f32 to vector<1x128xf32>
    %105 = arith.addf %104, %103 : vector<1x128xf32>
    %106 = arith.divf %104, %105 : vector<1x128xf32>
    %107 = arith.extf %1 : vector<256x128xbf16> to vector<256x128xf32>
    %108 = vector.broadcast %106 : vector<1x128xf32> to vector<256x128xf32>
    %109 = arith.mulf %85, %108 : vector<256x128xf32>
    %110 = arith.addf %109, %107 : vector<256x128xf32>
    %cst_83 = arith.constant 0.000000e+00 : f32
    %111 = vector.broadcast %cst_83 : f32 to vector<256x128xf32>
    %112 = arith.maximumf %110, %111 : vector<256x128xf32>
    %113 = arith.truncf %112 : vector<256x128xf32> to vector<256x128xbf16>
    %c0_84 = arith.constant 0 : index
    %c0_85 = arith.constant 0 : index
    %c0_86 = arith.constant 0 : index
    %114 = vector.load %arg15[%c0_84, %c0_85, %c0_86] : memref<1x256x128xbf16, #tpu.memory_space<vmem>>, vector<1x256x128xbf16>
    %115 = vector.shape_cast %114 : vector<1x256x128xbf16> to vector<256x128xbf16>
    %116 = vector.shape_cast %113 : vector<256x128xbf16> to vector<1x256x128xbf16>
    tpu.vector_store %arg15[%c0_84, %c0_85, %c0_86], %116 {strides = array<i32>} : memref<1x256x128xbf16, #tpu.memory_space<vmem>>, vector<1x256x128xbf16>,
    return
  }
  func.func @transform_0(%arg0: i32) -> (i32, i32, i32) {
    %c0_i32 = arith.constant 0 : i32
    %c0_i32_0 = arith.constant 0 : i32
    %c0_i32_1 = arith.constant 0 : i32
    return %arg0, %c0_i32, %c0_i32_0 : i32, i32, i32
  }
  func.func @transform_1(%arg0: i32) -> (i32, i32) {
    %c0_i32 = arith.constant 0 : i32
    %c0_i32_0 = arith.constant 0 : i32
    %c0_i32_1 = arith.constant 0 : i32
    return %c0_i32, %c0_i32_0 : i32, i32
  }
  func.func @transform_2(%arg0: i32) -> (i32, i32) {
    %c0_i32 = arith.constant 0 : i32
    %c0_i32_0 = arith.constant 0 : i32
    %c0_i32_1 = arith.constant 0 : i32
    return %c0_i32, %c0_i32_0 : i32, i32
  }
  func.func @transform_3(%arg0: i32) -> (i32, i32) {
    %c0_i32 = arith.constant 0 : i32
    %c0_i32_0 = arith.constant 0 : i32
    %c0_i32_1 = arith.constant 0 : i32
    return %c0_i32, %c0_i32_0 : i32, i32
  }
  func.func @transform_4(%arg0: i32) -> (i32, i32) {
    %c0_i32 = arith.constant 0 : i32
    %c0_i32_0 = arith.constant 0 : i32
    %c0_i32_1 = arith.constant 0 : i32
    return %c0_i32, %c0_i32_0 : i32, i32
  }
  func.func @transform_5(%arg0: i32) -> (i32, i32) {
    %c0_i32 = arith.constant 0 : i32
    %c0_i32_0 = arith.constant 0 : i32
    %c0_i32_1 = arith.constant 0 : i32
    return %c0_i32, %c0_i32_0 : i32, i32
  }
  func.func @transform_6(%arg0: i32) -> (i32, i32) {
    %c0_i32 = arith.constant 0 : i32
    %c0_i32_0 = arith.constant 0 : i32
    %c0_i32_1 = arith.constant 0 : i32
    return %c0_i32, %c0_i32_0 : i32, i32
  }
  func.func @transform_7(%arg0: i32) -> (i32, i32) {
    %c0_i32 = arith.constant 0 : i32
    %c0_i32_0 = arith.constant 0 : i32
    %c0_i32_1 = arith.constant 0 : i32
    return %c0_i32, %c0_i32_0 : i32, i32
  }
  func.func @transform_8(%arg0: i32) -> (i32, i32) {
    %c0_i32 = arith.constant 0 : i32
    %c0_i32_0 = arith.constant 0 : i32
    %c0_i32_1 = arith.constant 0 : i32
    return %c0_i32, %c0_i32_0 : i32, i32
  }
  func.func @transform_9(%arg0: i32) -> (i32, i32) {
    %c0_i32 = arith.constant 0 : i32
    %c0_i32_0 = arith.constant 0 : i32
    %c0_i32_1 = arith.constant 0 : i32
    return %c0_i32, %c0_i32_0 : i32, i32
  }
  func.func @transform_10(%arg0: i32) -> (i32, i32) {
    %c0_i32 = arith.constant 0 : i32
    %c0_i32_0 = arith.constant 0 : i32
    %c0_i32_1 = arith.constant 0 : i32
    return %c0_i32, %c0_i32_0 : i32, i32
  }
  func.func @transform_11(%arg0: i32) -> (i32, i32) {
    %c0_i32 = arith.constant 0 : i32
    %c0_i32_0 = arith.constant 0 : i32
    %c0_i32_1 = arith.constant 0 : i32
    return %c0_i32, %c0_i32_0 : i32, i32
  }
  func.func @transform_12(%arg0: i32) -> (i32, i32) {
    %c0_i32 = arith.constant 0 : i32
    %c0_i32_0 = arith.constant 0 : i32
    %c0_i32_1 = arith.constant 0 : i32
    return %c0_i32, %c0_i32_0 : i32, i32
  }
  func.func @transform_13(%arg0: i32) -> (i32, i32) {
    %c0_i32 = arith.constant 0 : i32
    %c0_i32_0 = arith.constant 0 : i32
    %c0_i32_1 = arith.constant 0 : i32
    return %c0_i32, %c0_i32_0 : i32, i32
  }
  func.func @transform_14(%arg0: i32) -> (i32, i32, i32) {
    %c0_i32 = arith.constant 0 : i32
    %c0_i32_0 = arith.constant 0 : i32
    %c0_i32_1 = arith.constant 0 : i32
    return %arg0, %c0_i32, %c0_i32_0 : i32, i32, i32
  }
}

module attributes {stable_mosaic.version = 11 : i64} {
  func.func @_se_block_kernel(%arg0: i32, %arg1: memref<1x64x128xbf16, #tpu.memory_space<vmem>>, %arg2: memref<128x128xbf16, #tpu.memory_space<vmem>>, %arg3: memref<1x128xf32, #tpu.memory_space<vmem>>, %arg4: memref<1x128xf32, #tpu.memory_space<vmem>>, %arg5: memref<1152x128xbf16, #tpu.memory_space<vmem>>, %arg6: memref<1x128xf32, #tpu.memory_space<vmem>>, %arg7: memref<1x128xf32, #tpu.memory_space<vmem>>, %arg8: memref<128x128xbf16, #tpu.memory_space<vmem>>, %arg9: memref<1x128xf32, #tpu.memory_space<vmem>>, %arg10: memref<1x128xf32, #tpu.memory_space<vmem>>, %arg11: memref<128x128xbf16, #tpu.memory_space<vmem>>, %arg12: memref<1x128xf32, #tpu.memory_space<vmem>>, %arg13: memref<128x128xbf16, #tpu.memory_space<vmem>>, %arg14: memref<1x128xf32, #tpu.memory_space<vmem>>, %arg15: memref<128x128xbf16, #tpu.memory_space<vmem>>, %arg16: memref<1x128xf32, #tpu.memory_space<vmem>>, %arg17: memref<1x128xf32, #tpu.memory_space<vmem>>, %arg18: memref<1x64x128xbf16, #tpu.memory_space<vmem>>, %arg19: memref<10x24x128xf32, #tpu.memory_space<vmem>>) attributes {dimension_semantics = [#tpu.dimension_semantics<parallel>], iteration_bounds = array<i64: 2>, scalar_prefetch = 0 : i64, scratch_operands = 1 : i64, tpu.core_type = #tpu.core_type<tc>, window_params = [{transform_indices = @transform_0, window_bounds = array<i64: 1, 64, 128>}, {pipeline_mode = #tpu.pipeline_mode<synchronous>, transform_indices = @transform_1, window_bounds = array<i64: 128, 128>}, {pipeline_mode = #tpu.pipeline_mode<synchronous>, transform_indices = @transform_2, window_bounds = array<i64: 1, 128>}, {pipeline_mode = #tpu.pipeline_mode<synchronous>, transform_indices = @transform_3, window_bounds = array<i64: 1, 128>}, {pipeline_mode = #tpu.pipeline_mode<synchronous>, transform_indices = @transform_4, window_bounds = array<i64: 1152, 128>}, {pipeline_mode = #tpu.pipeline_mode<synchronous>, transform_indices = @transform_5, window_bounds = array<i64: 1, 128>}, {pipeline_mode = #tpu.pipeline_mode<synchronous>, transform_indices = @transform_6, window_bounds = array<i64: 1, 128>}, {pipeline_mode = #tpu.pipeline_mode<synchronous>, transform_indices = @transform_7, window_bounds = array<i64: 128, 128>}, {pipeline_mode = #tpu.pipeline_mode<synchronous>, transform_indices = @transform_8, window_bounds = array<i64: 1, 128>}, {pipeline_mode = #tpu.pipeline_mode<synchronous>, transform_indices = @transform_9, window_bounds = array<i64: 1, 128>}, {pipeline_mode = #tpu.pipeline_mode<synchronous>, transform_indices = @transform_10, window_bounds = array<i64: 128, 128>}, {pipeline_mode = #tpu.pipeline_mode<synchronous>, transform_indices = @transform_11, window_bounds = array<i64: 1, 128>}, {pipeline_mode = #tpu.pipeline_mode<synchronous>, transform_indices = @transform_12, window_bounds = array<i64: 128, 128>}, {pipeline_mode = #tpu.pipeline_mode<synchronous>, transform_indices = @transform_13, window_bounds = array<i64: 1, 128>}, {pipeline_mode = #tpu.pipeline_mode<synchronous>, transform_indices = @transform_14, window_bounds = array<i64: 128, 128>}, {pipeline_mode = #tpu.pipeline_mode<synchronous>, transform_indices = @transform_15, window_bounds = array<i64: 1, 128>}, {pipeline_mode = #tpu.pipeline_mode<synchronous>, transform_indices = @transform_16, window_bounds = array<i64: 1, 128>}, {transform_indices = @transform_17, window_bounds = array<i64: 1, 64, 128>}]} {
    %c0 = arith.constant 0 : index
    %c0_0 = arith.constant 0 : index
    %c0_1 = arith.constant 0 : index
    %0 = vector.load %arg1[%c0, %c0_0, %c0_1] : memref<1x64x128xbf16, #tpu.memory_space<vmem>>, vector<1x64x128xbf16>
    %1 = vector.shape_cast %0 : vector<1x64x128xbf16> to vector<64x128xbf16>
    %c0_2 = arith.constant 0 : index
    %c0_3 = arith.constant 0 : index
    %2 = vector.load %arg2[%c0_2, %c0_3] : memref<128x128xbf16, #tpu.memory_space<vmem>>, vector<128x128xbf16>
    %cst = arith.constant dense<0.000000e+00> : vector<64x128xf32>
    %3 = tpu.matmul %1, %2, %cst {dimension_numbers = #tpu.dot_dimension_numbers<[1], [0], [0], [1], [0, 0, 1, 1], [], []>} : vector<64x128xbf16>, vector<128x128xbf16>, vector<64x128xf32> -> vector<64x128xf32>
    %c0_4 = arith.constant 0 : index
    %c0_5 = arith.constant 0 : index
    %4 = vector.load %arg3[%c0_4, %c0_5] : memref<1x128xf32, #tpu.memory_space<vmem>>, vector<1x128xf32>
    %5 = vector.broadcast %4 : vector<1x128xf32> to vector<64x128xf32>
    %6 = arith.mulf %3, %5 : vector<64x128xf32>
    %c0_6 = arith.constant 0 : index
    %c0_7 = arith.constant 0 : index
    %7 = vector.load %arg4[%c0_6, %c0_7] : memref<1x128xf32, #tpu.memory_space<vmem>>, vector<1x128xf32>
    %8 = vector.broadcast %7 : vector<1x128xf32> to vector<64x128xf32>
    %9 = arith.addf %6, %8 : vector<64x128xf32>
    %cst_8 = arith.constant 0.000000e+00 : f32
    %10 = vector.broadcast %cst_8 : f32 to vector<64x128xf32>
    %11 = arith.maximumf %9, %10 : vector<64x128xf32>
    %cst_9 = arith.constant 0.000000e+00 : f32
    %12 = vector.broadcast %cst_9 : f32 to vector<10x24x128xf32>
    %c0_10 = arith.constant 0 : index
    %c0_11 = arith.constant 0 : index
    %c0_12 = arith.constant 0 : index
    %13 = vector.load %arg19[%c0_10, %c0_11, %c0_12] : memref<10x24x128xf32, #tpu.memory_space<vmem>>, vector<10x24x128xf32>
    tpu.vector_store %arg19[%c0_10, %c0_11, %c0_12], %12 {strides = array<i32>} : memref<10x24x128xf32, #tpu.memory_space<vmem>>, vector<10x24x128xf32>,
    %14 = vector.shape_cast %11 : vector<64x128xf32> to vector<8x8x128xf32>
    %c1 = arith.constant 1 : index
    %c8 = arith.constant 8 : index
    %c0_13 = arith.constant 0 : index
    %15 = vector.load %arg19[%c1, %c8, %c0_13] : memref<10x24x128xf32, #tpu.memory_space<vmem>>, vector<8x8x128xf32>
    tpu.vector_store %arg19[%c1, %c8, %c0_13], %14 {strides = array<i32>} : memref<10x24x128xf32, #tpu.memory_space<vmem>>, vector<8x8x128xf32>,
    %c0_14 = arith.constant 0 : index
    %c7 = arith.constant 7 : index
    %c0_15 = arith.constant 0 : index
    %16 = vector.load %arg19[%c0_14, %c7, %c0_15] : memref<10x24x128xf32, #tpu.memory_space<vmem>>, vector<8x8x128xf32>
    %17 = vector.shape_cast %16 : vector<8x8x128xf32> to vector<64x128xf32>
    %18 = arith.truncf %17 : vector<64x128xf32> to vector<64x128xbf16>
    %c0_16 = arith.constant 0 : index
    %c0_17 = arith.constant 0 : index
    %19 = vector.load %arg5[%c0_16, %c0_17] : memref<1152x128xbf16, #tpu.memory_space<vmem>>, vector<128x128xbf16>
    %cst_18 = arith.constant dense<0.000000e+00> : vector<64x128xf32>
    %20 = tpu.matmul %18, %19, %cst_18 {dimension_numbers = #tpu.dot_dimension_numbers<[1], [0], [0], [1], [0, 0, 1, 1], [], []>} : vector<64x128xbf16>, vector<128x128xbf16>, vector<64x128xf32> -> vector<64x128xf32>
    %c0_19 = arith.constant 0 : index
    %c8_20 = arith.constant 8 : index
    %c0_21 = arith.constant 0 : index
    %21 = vector.load %arg19[%c0_19, %c8_20, %c0_21] : memref<10x24x128xf32, #tpu.memory_space<vmem>>, vector<8x8x128xf32>
    %22 = vector.shape_cast %21 : vector<8x8x128xf32> to vector<64x128xf32>
    %23 = arith.truncf %22 : vector<64x128xf32> to vector<64x128xbf16>
    %c128 = arith.constant 128 : index
    %c0_22 = arith.constant 0 : index
    %24 = vector.load %arg5[%c128, %c0_22] : memref<1152x128xbf16, #tpu.memory_space<vmem>>, vector<128x128xbf16>
    %cst_23 = arith.constant dense<0.000000e+00> : vector<64x128xf32>
    %25 = tpu.matmul %23, %24, %cst_23 {dimension_numbers = #tpu.dot_dimension_numbers<[1], [0], [0], [1], [0, 0, 1, 1], [], []>} : vector<64x128xbf16>, vector<128x128xbf16>, vector<64x128xf32> -> vector<64x128xf32>
    %26 = arith.addf %20, %25 : vector<64x128xf32>
    %c0_24 = arith.constant 0 : index
    %c9 = arith.constant 9 : index
    %c0_25 = arith.constant 0 : index
    %27 = vector.load %arg19[%c0_24, %c9, %c0_25] : memref<10x24x128xf32, #tpu.memory_space<vmem>>, vector<8x8x128xf32>
    %28 = vector.shape_cast %27 : vector<8x8x128xf32> to vector<64x128xf32>
    %29 = arith.truncf %28 : vector<64x128xf32> to vector<64x128xbf16>
    %c256 = arith.constant 256 : index
    %c0_26 = arith.constant 0 : index
    %30 = vector.load %arg5[%c256, %c0_26] : memref<1152x128xbf16, #tpu.memory_space<vmem>>, vector<128x128xbf16>
    %cst_27 = arith.constant dense<0.000000e+00> : vector<64x128xf32>
    %31 = tpu.matmul %29, %30, %cst_27 {dimension_numbers = #tpu.dot_dimension_numbers<[1], [0], [0], [1], [0, 0, 1, 1], [], []>} : vector<64x128xbf16>, vector<128x128xbf16>, vector<64x128xf32> -> vector<64x128xf32>
    %32 = arith.addf %26, %31 : vector<64x128xf32>
    %c1_28 = arith.constant 1 : index
    %c7_29 = arith.constant 7 : index
    %c0_30 = arith.constant 0 : index
    %33 = vector.load %arg19[%c1_28, %c7_29, %c0_30] : memref<10x24x128xf32, #tpu.memory_space<vmem>>, vector<8x8x128xf32>
    %34 = vector.shape_cast %33 : vector<8x8x128xf32> to vector<64x128xf32>
    %35 = arith.truncf %34 : vector<64x128xf32> to vector<64x128xbf16>
    %c384 = arith.constant 384 : index
    %c0_31 = arith.constant 0 : index
    %36 = vector.load %arg5[%c384, %c0_31] : memref<1152x128xbf16, #tpu.memory_space<vmem>>, vector<128x128xbf16>
    %cst_32 = arith.constant dense<0.000000e+00> : vector<64x128xf32>
    %37 = tpu.matmul %35, %36, %cst_32 {dimension_numbers = #tpu.dot_dimension_numbers<[1], [0], [0], [1], [0, 0, 1, 1], [], []>} : vector<64x128xbf16>, vector<128x128xbf16>, vector<64x128xf32> -> vector<64x128xf32>
    %38 = arith.addf %32, %37 : vector<64x128xf32>
    %c1_33 = arith.constant 1 : index
    %c8_34 = arith.constant 8 : index
    %c0_35 = arith.constant 0 : index
    %39 = vector.load %arg19[%c1_33, %c8_34, %c0_35] : memref<10x24x128xf32, #tpu.memory_space<vmem>>, vector<8x8x128xf32>
    %40 = vector.shape_cast %39 : vector<8x8x128xf32> to vector<64x128xf32>
    %41 = arith.truncf %40 : vector<64x128xf32> to vector<64x128xbf16>
    %c512 = arith.constant 512 : index
    %c0_36 = arith.constant 0 : index
    %42 = vector.load %arg5[%c512, %c0_36] : memref<1152x128xbf16, #tpu.memory_space<vmem>>, vector<128x128xbf16>
    %cst_37 = arith.constant dense<0.000000e+00> : vector<64x128xf32>
    %43 = tpu.matmul %41, %42, %cst_37 {dimension_numbers = #tpu.dot_dimension_numbers<[1], [0], [0], [1], [0, 0, 1, 1], [], []>} : vector<64x128xbf16>, vector<128x128xbf16>, vector<64x128xf32> -> vector<64x128xf32>
    %44 = arith.addf %38, %43 : vector<64x128xf32>
    %c1_38 = arith.constant 1 : index
    %c9_39 = arith.constant 9 : index
    %c0_40 = arith.constant 0 : index
    %45 = vector.load %arg19[%c1_38, %c9_39, %c0_40] : memref<10x24x128xf32, #tpu.memory_space<vmem>>, vector<8x8x128xf32>
    %46 = vector.shape_cast %45 : vector<8x8x128xf32> to vector<64x128xf32>
    %47 = arith.truncf %46 : vector<64x128xf32> to vector<64x128xbf16>
    %c640 = arith.constant 640 : index
    %c0_41 = arith.constant 0 : index
    %48 = vector.load %arg5[%c640, %c0_41] : memref<1152x128xbf16, #tpu.memory_space<vmem>>, vector<128x128xbf16>
    %cst_42 = arith.constant dense<0.000000e+00> : vector<64x128xf32>
    %49 = tpu.matmul %47, %48, %cst_42 {dimension_numbers = #tpu.dot_dimension_numbers<[1], [0], [0], [1], [0, 0, 1, 1], [], []>} : vector<64x128xbf16>, vector<128x128xbf16>, vector<64x128xf32> -> vector<64x128xf32>
    %50 = arith.addf %44, %49 : vector<64x128xf32>
    %c2 = arith.constant 2 : index
    %c7_43 = arith.constant 7 : index
    %c0_44 = arith.constant 0 : index
    %51 = vector.load %arg19[%c2, %c7_43, %c0_44] : memref<10x24x128xf32, #tpu.memory_space<vmem>>, vector<8x8x128xf32>
    %52 = vector.shape_cast %51 : vector<8x8x128xf32> to vector<64x128xf32>
    %53 = arith.truncf %52 : vector<64x128xf32> to vector<64x128xbf16>
    %c768 = arith.constant 768 : index
    %c0_45 = arith.constant 0 : index
    %54 = vector.load %arg5[%c768, %c0_45] : memref<1152x128xbf16, #tpu.memory_space<vmem>>, vector<128x128xbf16>
    %cst_46 = arith.constant dense<0.000000e+00> : vector<64x128xf32>
    %55 = tpu.matmul %53, %54, %cst_46 {dimension_numbers = #tpu.dot_dimension_numbers<[1], [0], [0], [1], [0, 0, 1, 1], [], []>} : vector<64x128xbf16>, vector<128x128xbf16>, vector<64x128xf32> -> vector<64x128xf32>
    %56 = arith.addf %50, %55 : vector<64x128xf32>
    %c2_47 = arith.constant 2 : index
    %c8_48 = arith.constant 8 : index
    %c0_49 = arith.constant 0 : index
    %57 = vector.load %arg19[%c2_47, %c8_48, %c0_49] : memref<10x24x128xf32, #tpu.memory_space<vmem>>, vector<8x8x128xf32>
    %58 = vector.shape_cast %57 : vector<8x8x128xf32> to vector<64x128xf32>
    %59 = arith.truncf %58 : vector<64x128xf32> to vector<64x128xbf16>
    %c896 = arith.constant 896 : index
    %c0_50 = arith.constant 0 : index
    %60 = vector.load %arg5[%c896, %c0_50] : memref<1152x128xbf16, #tpu.memory_space<vmem>>, vector<128x128xbf16>
    %cst_51 = arith.constant dense<0.000000e+00> : vector<64x128xf32>
    %61 = tpu.matmul %59, %60, %cst_51 {dimension_numbers = #tpu.dot_dimension_numbers<[1], [0], [0], [1], [0, 0, 1, 1], [], []>} : vector<64x128xbf16>, vector<128x128xbf16>, vector<64x128xf32> -> vector<64x128xf32>
    %62 = arith.addf %56, %61 : vector<64x128xf32>
    %c2_52 = arith.constant 2 : index
    %c9_53 = arith.constant 9 : index
    %c0_54 = arith.constant 0 : index
    %63 = vector.load %arg19[%c2_52, %c9_53, %c0_54] : memref<10x24x128xf32, #tpu.memory_space<vmem>>, vector<8x8x128xf32>
    %64 = vector.shape_cast %63 : vector<8x8x128xf32> to vector<64x128xf32>
    %65 = arith.truncf %64 : vector<64x128xf32> to vector<64x128xbf16>
    %c1024 = arith.constant 1024 : index
    %c0_55 = arith.constant 0 : index
    %66 = vector.load %arg5[%c1024, %c0_55] : memref<1152x128xbf16, #tpu.memory_space<vmem>>, vector<128x128xbf16>
    %cst_56 = arith.constant dense<0.000000e+00> : vector<64x128xf32>
    %67 = tpu.matmul %65, %66, %cst_56 {dimension_numbers = #tpu.dot_dimension_numbers<[1], [0], [0], [1], [0, 0, 1, 1], [], []>} : vector<64x128xbf16>, vector<128x128xbf16>, vector<64x128xf32> -> vector<64x128xf32>
    %68 = arith.addf %62, %67 : vector<64x128xf32>
    %c0_57 = arith.constant 0 : index
    %c0_58 = arith.constant 0 : index
    %69 = vector.load %arg6[%c0_57, %c0_58] : memref<1x128xf32, #tpu.memory_space<vmem>>, vector<1x128xf32>
    %70 = vector.broadcast %69 : vector<1x128xf32> to vector<64x128xf32>
    %71 = arith.mulf %68, %70 : vector<64x128xf32>
    %c0_59 = arith.constant 0 : index
    %c0_60 = arith.constant 0 : index
    %72 = vector.load %arg7[%c0_59, %c0_60] : memref<1x128xf32, #tpu.memory_space<vmem>>, vector<1x128xf32>
    %73 = vector.broadcast %72 : vector<1x128xf32> to vector<64x128xf32>
    %74 = arith.addf %71, %73 : vector<64x128xf32>
    %cst_61 = arith.constant 0.000000e+00 : f32
    %75 = vector.broadcast %cst_61 : f32 to vector<64x128xf32>
    %76 = arith.maximumf %74, %75 : vector<64x128xf32>
    %77 = arith.truncf %76 : vector<64x128xf32> to vector<64x128xbf16>
    %c0_62 = arith.constant 0 : index
    %c0_63 = arith.constant 0 : index
    %78 = vector.load %arg8[%c0_62, %c0_63] : memref<128x128xbf16, #tpu.memory_space<vmem>>, vector<128x128xbf16>
    %cst_64 = arith.constant dense<0.000000e+00> : vector<64x128xf32>
    %79 = tpu.matmul %77, %78, %cst_64 {dimension_numbers = #tpu.dot_dimension_numbers<[1], [0], [0], [1], [0, 0, 1, 1], [], []>} : vector<64x128xbf16>, vector<128x128xbf16>, vector<64x128xf32> -> vector<64x128xf32>
    %c0_65 = arith.constant 0 : index
    %c0_66 = arith.constant 0 : index
    %80 = vector.load %arg9[%c0_65, %c0_66] : memref<1x128xf32, #tpu.memory_space<vmem>>, vector<1x128xf32>
    %81 = vector.broadcast %80 : vector<1x128xf32> to vector<64x128xf32>
    %82 = arith.mulf %79, %81 : vector<64x128xf32>
    %c0_67 = arith.constant 0 : index
    %c0_68 = arith.constant 0 : index
    %83 = vector.load %arg10[%c0_67, %c0_68] : memref<1x128xf32, #tpu.memory_space<vmem>>, vector<1x128xf32>
    %84 = vector.broadcast %83 : vector<1x128xf32> to vector<64x128xf32>
    %85 = arith.addf %82, %84 : vector<64x128xf32>
    %cst_69 = arith.constant dense<0.000000e+00> : vector<128xf32>
    %86 = vector.multi_reduction <add>, %85, %cst_69 [0] : vector<64x128xf32> to vector<128xf32>
    %87 = vector.shape_cast %86 : vector<128xf32> to vector<1x128xf32>
    %cst_70 = arith.constant 6.400000e+01 : f32
    %88 = vector.broadcast %cst_70 : f32 to vector<1x128xf32>
    %89 = arith.divf %87, %88 : vector<1x128xf32>
    %90 = arith.truncf %89 : vector<1x128xf32> to vector<1x128xbf16>
    %c0_71 = arith.constant 0 : index
    %c0_72 = arith.constant 0 : index
    %91 = vector.load %arg11[%c0_71, %c0_72] : memref<128x128xbf16, #tpu.memory_space<vmem>>, vector<128x128xbf16>
    %cst_73 = arith.constant dense<0.000000e+00> : vector<1x128xf32>
    %92 = tpu.matmul %90, %91, %cst_73 {dimension_numbers = #tpu.dot_dimension_numbers<[1], [0], [0], [1], [0, 0, 1, 1], [], []>} : vector<1x128xbf16>, vector<128x128xbf16>, vector<1x128xf32> -> vector<1x128xf32>
    %c0_74 = arith.constant 0 : index
    %c0_75 = arith.constant 0 : index
    %93 = vector.load %arg12[%c0_74, %c0_75] : memref<1x128xf32, #tpu.memory_space<vmem>>, vector<1x128xf32>
    %94 = arith.addf %92, %93 : vector<1x128xf32>
    %cst_76 = arith.constant 0.000000e+00 : f32
    %95 = vector.broadcast %cst_76 : f32 to vector<1x128xf32>
    %96 = arith.maximumf %94, %95 : vector<1x128xf32>
    %97 = arith.truncf %96 : vector<1x128xf32> to vector<1x128xbf16>
    %c0_77 = arith.constant 0 : index
    %c0_78 = arith.constant 0 : index
    %98 = vector.load %arg13[%c0_77, %c0_78] : memref<128x128xbf16, #tpu.memory_space<vmem>>, vector<128x128xbf16>
    %cst_79 = arith.constant dense<0.000000e+00> : vector<1x128xf32>
    %99 = tpu.matmul %97, %98, %cst_79 {dimension_numbers = #tpu.dot_dimension_numbers<[1], [0], [0], [1], [0, 0, 1, 1], [], []>} : vector<1x128xbf16>, vector<128x128xbf16>, vector<1x128xf32> -> vector<1x128xf32>
    %c0_80 = arith.constant 0 : index
    %c0_81 = arith.constant 0 : index
    %100 = vector.load %arg14[%c0_80, %c0_81] : memref<1x128xf32, #tpu.memory_space<vmem>>, vector<1x128xf32>
    %101 = arith.addf %99, %100 : vector<1x128xf32>
    %102 = arith.negf %101 : vector<1x128xf32>
    %103 = math.exp %102 : vector<1x128xf32>
    %cst_82 = arith.constant 1.000000e+00 : f32
    %104 = vector.broadcast %cst_82 : f32 to vector<1x128xf32>
    %105 = arith.addf %104, %103 : vector<1x128xf32>
    %106 = arith.divf %104, %105 : vector<1x128xf32>
    %c0_83 = arith.constant 0 : index
    %c0_84 = arith.constant 0 : index
    %107 = vector.load %arg15[%c0_83, %c0_84] : memref<128x128xbf16, #tpu.memory_space<vmem>>, vector<128x128xbf16>
    %cst_85 = arith.constant dense<0.000000e+00> : vector<64x128xf32>
    %108 = tpu.matmul %1, %107, %cst_85 {dimension_numbers = #tpu.dot_dimension_numbers<[1], [0], [0], [1], [0, 0, 1, 1], [], []>} : vector<64x128xbf16>, vector<128x128xbf16>, vector<64x128xf32> -> vector<64x128xf32>
    %c0_86 = arith.constant 0 : index
    %c0_87 = arith.constant 0 : index
    %109 = vector.load %arg16[%c0_86, %c0_87] : memref<1x128xf32, #tpu.memory_space<vmem>>, vector<1x128xf32>
    %110 = vector.broadcast %109 : vector<1x128xf32> to vector<64x128xf32>
    %111 = arith.mulf %108, %110 : vector<64x128xf32>
    %c0_88 = arith.constant 0 : index
    %c0_89 = arith.constant 0 : index
    %112 = vector.load %arg17[%c0_88, %c0_89] : memref<1x128xf32, #tpu.memory_space<vmem>>, vector<1x128xf32>
    %113 = vector.broadcast %112 : vector<1x128xf32> to vector<64x128xf32>
    %114 = arith.addf %111, %113 : vector<64x128xf32>
    %115 = vector.broadcast %106 : vector<1x128xf32> to vector<64x128xf32>
    %116 = arith.mulf %85, %115 : vector<64x128xf32>
    %117 = arith.addf %116, %114 : vector<64x128xf32>
    %cst_90 = arith.constant 0.000000e+00 : f32
    %118 = vector.broadcast %cst_90 : f32 to vector<64x128xf32>
    %119 = arith.maximumf %117, %118 : vector<64x128xf32>
    %120 = arith.truncf %119 : vector<64x128xf32> to vector<64x128xbf16>
    %c0_91 = arith.constant 0 : index
    %c0_92 = arith.constant 0 : index
    %c0_93 = arith.constant 0 : index
    %121 = vector.load %arg18[%c0_91, %c0_92, %c0_93] : memref<1x64x128xbf16, #tpu.memory_space<vmem>>, vector<1x64x128xbf16>
    %122 = vector.shape_cast %121 : vector<1x64x128xbf16> to vector<64x128xbf16>
    %123 = vector.shape_cast %120 : vector<64x128xbf16> to vector<1x64x128xbf16>
    tpu.vector_store %arg18[%c0_91, %c0_92, %c0_93], %123 {strides = array<i32>} : memref<1x64x128xbf16, #tpu.memory_space<vmem>>, vector<1x64x128xbf16>,
    return
  }
  func.func @transform_0(%arg0: i32) -> (i32, i32, i32) {
    %c0_i32 = arith.constant 0 : i32
    %c0_i32_0 = arith.constant 0 : i32
    %c0_i32_1 = arith.constant 0 : i32
    return %arg0, %c0_i32, %c0_i32_0 : i32, i32, i32
  }
  func.func @transform_1(%arg0: i32) -> (i32, i32) {
    %c0_i32 = arith.constant 0 : i32
    %c0_i32_0 = arith.constant 0 : i32
    %c0_i32_1 = arith.constant 0 : i32
    return %c0_i32, %c0_i32_0 : i32, i32
  }
  func.func @transform_2(%arg0: i32) -> (i32, i32) {
    %c0_i32 = arith.constant 0 : i32
    %c0_i32_0 = arith.constant 0 : i32
    %c0_i32_1 = arith.constant 0 : i32
    return %c0_i32, %c0_i32_0 : i32, i32
  }
  func.func @transform_3(%arg0: i32) -> (i32, i32) {
    %c0_i32 = arith.constant 0 : i32
    %c0_i32_0 = arith.constant 0 : i32
    %c0_i32_1 = arith.constant 0 : i32
    return %c0_i32, %c0_i32_0 : i32, i32
  }
  func.func @transform_4(%arg0: i32) -> (i32, i32) {
    %c0_i32 = arith.constant 0 : i32
    %c0_i32_0 = arith.constant 0 : i32
    %c0_i32_1 = arith.constant 0 : i32
    return %c0_i32, %c0_i32_0 : i32, i32
  }
  func.func @transform_5(%arg0: i32) -> (i32, i32) {
    %c0_i32 = arith.constant 0 : i32
    %c0_i32_0 = arith.constant 0 : i32
    %c0_i32_1 = arith.constant 0 : i32
    return %c0_i32, %c0_i32_0 : i32, i32
  }
  func.func @transform_6(%arg0: i32) -> (i32, i32) {
    %c0_i32 = arith.constant 0 : i32
    %c0_i32_0 = arith.constant 0 : i32
    %c0_i32_1 = arith.constant 0 : i32
    return %c0_i32, %c0_i32_0 : i32, i32
  }
  func.func @transform_7(%arg0: i32) -> (i32, i32) {
    %c0_i32 = arith.constant 0 : i32
    %c0_i32_0 = arith.constant 0 : i32
    %c0_i32_1 = arith.constant 0 : i32
    return %c0_i32, %c0_i32_0 : i32, i32
  }
  func.func @transform_8(%arg0: i32) -> (i32, i32) {
    %c0_i32 = arith.constant 0 : i32
    %c0_i32_0 = arith.constant 0 : i32
    %c0_i32_1 = arith.constant 0 : i32
    return %c0_i32, %c0_i32_0 : i32, i32
  }
  func.func @transform_9(%arg0: i32) -> (i32, i32) {
    %c0_i32 = arith.constant 0 : i32
    %c0_i32_0 = arith.constant 0 : i32
    %c0_i32_1 = arith.constant 0 : i32
    return %c0_i32, %c0_i32_0 : i32, i32
  }
  func.func @transform_10(%arg0: i32) -> (i32, i32) {
    %c0_i32 = arith.constant 0 : i32
    %c0_i32_0 = arith.constant 0 : i32
    %c0_i32_1 = arith.constant 0 : i32
    return %c0_i32, %c0_i32_0 : i32, i32
  }
  func.func @transform_11(%arg0: i32) -> (i32, i32) {
    %c0_i32 = arith.constant 0 : i32
    %c0_i32_0 = arith.constant 0 : i32
    %c0_i32_1 = arith.constant 0 : i32
    return %c0_i32, %c0_i32_0 : i32, i32
  }
  func.func @transform_12(%arg0: i32) -> (i32, i32) {
    %c0_i32 = arith.constant 0 : i32
    %c0_i32_0 = arith.constant 0 : i32
    %c0_i32_1 = arith.constant 0 : i32
    return %c0_i32, %c0_i32_0 : i32, i32
  }
  func.func @transform_13(%arg0: i32) -> (i32, i32) {
    %c0_i32 = arith.constant 0 : i32
    %c0_i32_0 = arith.constant 0 : i32
    %c0_i32_1 = arith.constant 0 : i32
    return %c0_i32, %c0_i32_0 : i32, i32
  }
  func.func @transform_14(%arg0: i32) -> (i32, i32) {
    %c0_i32 = arith.constant 0 : i32
    %c0_i32_0 = arith.constant 0 : i32
    %c0_i32_1 = arith.constant 0 : i32
    return %c0_i32, %c0_i32_0 : i32, i32
  }
  func.func @transform_15(%arg0: i32) -> (i32, i32) {
    %c0_i32 = arith.constant 0 : i32
    %c0_i32_0 = arith.constant 0 : i32
    %c0_i32_1 = arith.constant 0 : i32
    return %c0_i32, %c0_i32_0 : i32, i32
  }
  func.func @transform_16(%arg0: i32) -> (i32, i32) {
    %c0_i32 = arith.constant 0 : i32
    %c0_i32_0 = arith.constant 0 : i32
    %c0_i32_1 = arith.constant 0 : i32
    return %c0_i32, %c0_i32_0 : i32, i32
  }
  func.func @transform_17(%arg0: i32) -> (i32, i32, i32) {
    %c0_i32 = arith.constant 0 : i32
    %c0_i32_0 = arith.constant 0 : i32
    %c0_i32_1 = arith.constant 0 : i32
    return %arg0, %c0_i32, %c0_i32_0 : i32, i32, i32
  }
}

module attributes {stable_mosaic.version = 11 : i64} {
  func.func @_se_block_kernel(%arg0: i32, %arg1: memref<1x16x128xbf16, #tpu.memory_space<vmem>>, %arg2: memref<128x128xbf16, #tpu.memory_space<vmem>>, %arg3: memref<1x128xf32, #tpu.memory_space<vmem>>, %arg4: memref<1x128xf32, #tpu.memory_space<vmem>>, %arg5: memref<1152x128xbf16, #tpu.memory_space<vmem>>, %arg6: memref<1x128xf32, #tpu.memory_space<vmem>>, %arg7: memref<1x128xf32, #tpu.memory_space<vmem>>, %arg8: memref<128x128xbf16, #tpu.memory_space<vmem>>, %arg9: memref<1x128xf32, #tpu.memory_space<vmem>>, %arg10: memref<1x128xf32, #tpu.memory_space<vmem>>, %arg11: memref<128x128xbf16, #tpu.memory_space<vmem>>, %arg12: memref<1x128xf32, #tpu.memory_space<vmem>>, %arg13: memref<128x128xbf16, #tpu.memory_space<vmem>>, %arg14: memref<1x128xf32, #tpu.memory_space<vmem>>, %arg15: memref<128x128xbf16, #tpu.memory_space<vmem>>, %arg16: memref<1x128xf32, #tpu.memory_space<vmem>>, %arg17: memref<1x128xf32, #tpu.memory_space<vmem>>, %arg18: memref<1x16x128xbf16, #tpu.memory_space<vmem>>, %arg19: memref<6x20x128xf32, #tpu.memory_space<vmem>>) attributes {dimension_semantics = [#tpu.dimension_semantics<parallel>], iteration_bounds = array<i64: 2>, scalar_prefetch = 0 : i64, scratch_operands = 1 : i64, tpu.core_type = #tpu.core_type<tc>, window_params = [{transform_indices = @transform_0, window_bounds = array<i64: 1, 16, 128>}, {pipeline_mode = #tpu.pipeline_mode<synchronous>, transform_indices = @transform_1, window_bounds = array<i64: 128, 128>}, {pipeline_mode = #tpu.pipeline_mode<synchronous>, transform_indices = @transform_2, window_bounds = array<i64: 1, 128>}, {pipeline_mode = #tpu.pipeline_mode<synchronous>, transform_indices = @transform_3, window_bounds = array<i64: 1, 128>}, {pipeline_mode = #tpu.pipeline_mode<synchronous>, transform_indices = @transform_4, window_bounds = array<i64: 1152, 128>}, {pipeline_mode = #tpu.pipeline_mode<synchronous>, transform_indices = @transform_5, window_bounds = array<i64: 1, 128>}, {pipeline_mode = #tpu.pipeline_mode<synchronous>, transform_indices = @transform_6, window_bounds = array<i64: 1, 128>}, {pipeline_mode = #tpu.pipeline_mode<synchronous>, transform_indices = @transform_7, window_bounds = array<i64: 128, 128>}, {pipeline_mode = #tpu.pipeline_mode<synchronous>, transform_indices = @transform_8, window_bounds = array<i64: 1, 128>}, {pipeline_mode = #tpu.pipeline_mode<synchronous>, transform_indices = @transform_9, window_bounds = array<i64: 1, 128>}, {pipeline_mode = #tpu.pipeline_mode<synchronous>, transform_indices = @transform_10, window_bounds = array<i64: 128, 128>}, {pipeline_mode = #tpu.pipeline_mode<synchronous>, transform_indices = @transform_11, window_bounds = array<i64: 1, 128>}, {pipeline_mode = #tpu.pipeline_mode<synchronous>, transform_indices = @transform_12, window_bounds = array<i64: 128, 128>}, {pipeline_mode = #tpu.pipeline_mode<synchronous>, transform_indices = @transform_13, window_bounds = array<i64: 1, 128>}, {pipeline_mode = #tpu.pipeline_mode<synchronous>, transform_indices = @transform_14, window_bounds = array<i64: 128, 128>}, {pipeline_mode = #tpu.pipeline_mode<synchronous>, transform_indices = @transform_15, window_bounds = array<i64: 1, 128>}, {pipeline_mode = #tpu.pipeline_mode<synchronous>, transform_indices = @transform_16, window_bounds = array<i64: 1, 128>}, {transform_indices = @transform_17, window_bounds = array<i64: 1, 16, 128>}]} {
    %c0 = arith.constant 0 : index
    %c0_0 = arith.constant 0 : index
    %c0_1 = arith.constant 0 : index
    %0 = vector.load %arg1[%c0, %c0_0, %c0_1] : memref<1x16x128xbf16, #tpu.memory_space<vmem>>, vector<1x16x128xbf16>
    %1 = vector.shape_cast %0 : vector<1x16x128xbf16> to vector<16x128xbf16>
    %c0_2 = arith.constant 0 : index
    %c0_3 = arith.constant 0 : index
    %2 = vector.load %arg2[%c0_2, %c0_3] : memref<128x128xbf16, #tpu.memory_space<vmem>>, vector<128x128xbf16>
    %cst = arith.constant dense<0.000000e+00> : vector<16x128xf32>
    %3 = tpu.matmul %1, %2, %cst {dimension_numbers = #tpu.dot_dimension_numbers<[1], [0], [0], [1], [0, 0, 1, 1], [], []>} : vector<16x128xbf16>, vector<128x128xbf16>, vector<16x128xf32> -> vector<16x128xf32>
    %c0_4 = arith.constant 0 : index
    %c0_5 = arith.constant 0 : index
    %4 = vector.load %arg3[%c0_4, %c0_5] : memref<1x128xf32, #tpu.memory_space<vmem>>, vector<1x128xf32>
    %5 = vector.broadcast %4 : vector<1x128xf32> to vector<16x128xf32>
    %6 = arith.mulf %3, %5 : vector<16x128xf32>
    %c0_6 = arith.constant 0 : index
    %c0_7 = arith.constant 0 : index
    %7 = vector.load %arg4[%c0_6, %c0_7] : memref<1x128xf32, #tpu.memory_space<vmem>>, vector<1x128xf32>
    %8 = vector.broadcast %7 : vector<1x128xf32> to vector<16x128xf32>
    %9 = arith.addf %6, %8 : vector<16x128xf32>
    %cst_8 = arith.constant 0.000000e+00 : f32
    %10 = vector.broadcast %cst_8 : f32 to vector<16x128xf32>
    %11 = arith.maximumf %9, %10 : vector<16x128xf32>
    %cst_9 = arith.constant 0.000000e+00 : f32
    %12 = vector.broadcast %cst_9 : f32 to vector<6x20x128xf32>
    %c0_10 = arith.constant 0 : index
    %c0_11 = arith.constant 0 : index
    %c0_12 = arith.constant 0 : index
    %13 = vector.load %arg19[%c0_10, %c0_11, %c0_12] : memref<6x20x128xf32, #tpu.memory_space<vmem>>, vector<6x20x128xf32>
    tpu.vector_store %arg19[%c0_10, %c0_11, %c0_12], %12 {strides = array<i32>} : memref<6x20x128xf32, #tpu.memory_space<vmem>>, vector<6x20x128xf32>,
    %14 = vector.shape_cast %11 : vector<16x128xf32> to vector<4x4x128xf32>
    %c1 = arith.constant 1 : index
    %c8 = arith.constant 8 : index
    %c0_13 = arith.constant 0 : index
    %15 = vector.load %arg19[%c1, %c8, %c0_13] : memref<6x20x128xf32, #tpu.memory_space<vmem>>, vector<4x4x128xf32>
    tpu.vector_store %arg19[%c1, %c8, %c0_13], %14 {strides = array<i32>} : memref<6x20x128xf32, #tpu.memory_space<vmem>>, vector<4x4x128xf32>,
    %c0_14 = arith.constant 0 : index
    %c7 = arith.constant 7 : index
    %c0_15 = arith.constant 0 : index
    %16 = vector.load %arg19[%c0_14, %c7, %c0_15] : memref<6x20x128xf32, #tpu.memory_space<vmem>>, vector<4x4x128xf32>
    %17 = vector.shape_cast %16 : vector<4x4x128xf32> to vector<16x128xf32>
    %18 = arith.truncf %17 : vector<16x128xf32> to vector<16x128xbf16>
    %c0_16 = arith.constant 0 : index
    %c0_17 = arith.constant 0 : index
    %19 = vector.load %arg5[%c0_16, %c0_17] : memref<1152x128xbf16, #tpu.memory_space<vmem>>, vector<128x128xbf16>
    %cst_18 = arith.constant dense<0.000000e+00> : vector<16x128xf32>
    %20 = tpu.matmul %18, %19, %cst_18 {dimension_numbers = #tpu.dot_dimension_numbers<[1], [0], [0], [1], [0, 0, 1, 1], [], []>} : vector<16x128xbf16>, vector<128x128xbf16>, vector<16x128xf32> -> vector<16x128xf32>
    %c0_19 = arith.constant 0 : index
    %c8_20 = arith.constant 8 : index
    %c0_21 = arith.constant 0 : index
    %21 = vector.load %arg19[%c0_19, %c8_20, %c0_21] : memref<6x20x128xf32, #tpu.memory_space<vmem>>, vector<4x4x128xf32>
    %22 = vector.shape_cast %21 : vector<4x4x128xf32> to vector<16x128xf32>
    %23 = arith.truncf %22 : vector<16x128xf32> to vector<16x128xbf16>
    %c128 = arith.constant 128 : index
    %c0_22 = arith.constant 0 : index
    %24 = vector.load %arg5[%c128, %c0_22] : memref<1152x128xbf16, #tpu.memory_space<vmem>>, vector<128x128xbf16>
    %cst_23 = arith.constant dense<0.000000e+00> : vector<16x128xf32>
    %25 = tpu.matmul %23, %24, %cst_23 {dimension_numbers = #tpu.dot_dimension_numbers<[1], [0], [0], [1], [0, 0, 1, 1], [], []>} : vector<16x128xbf16>, vector<128x128xbf16>, vector<16x128xf32> -> vector<16x128xf32>
    %26 = arith.addf %20, %25 : vector<16x128xf32>
    %c0_24 = arith.constant 0 : index
    %c9 = arith.constant 9 : index
    %c0_25 = arith.constant 0 : index
    %27 = vector.load %arg19[%c0_24, %c9, %c0_25] : memref<6x20x128xf32, #tpu.memory_space<vmem>>, vector<4x4x128xf32>
    %28 = vector.shape_cast %27 : vector<4x4x128xf32> to vector<16x128xf32>
    %29 = arith.truncf %28 : vector<16x128xf32> to vector<16x128xbf16>
    %c256 = arith.constant 256 : index
    %c0_26 = arith.constant 0 : index
    %30 = vector.load %arg5[%c256, %c0_26] : memref<1152x128xbf16, #tpu.memory_space<vmem>>, vector<128x128xbf16>
    %cst_27 = arith.constant dense<0.000000e+00> : vector<16x128xf32>
    %31 = tpu.matmul %29, %30, %cst_27 {dimension_numbers = #tpu.dot_dimension_numbers<[1], [0], [0], [1], [0, 0, 1, 1], [], []>} : vector<16x128xbf16>, vector<128x128xbf16>, vector<16x128xf32> -> vector<16x128xf32>
    %32 = arith.addf %26, %31 : vector<16x128xf32>
    %c1_28 = arith.constant 1 : index
    %c7_29 = arith.constant 7 : index
    %c0_30 = arith.constant 0 : index
    %33 = vector.load %arg19[%c1_28, %c7_29, %c0_30] : memref<6x20x128xf32, #tpu.memory_space<vmem>>, vector<4x4x128xf32>
    %34 = vector.shape_cast %33 : vector<4x4x128xf32> to vector<16x128xf32>
    %35 = arith.truncf %34 : vector<16x128xf32> to vector<16x128xbf16>
    %c384 = arith.constant 384 : index
    %c0_31 = arith.constant 0 : index
    %36 = vector.load %arg5[%c384, %c0_31] : memref<1152x128xbf16, #tpu.memory_space<vmem>>, vector<128x128xbf16>
    %cst_32 = arith.constant dense<0.000000e+00> : vector<16x128xf32>
    %37 = tpu.matmul %35, %36, %cst_32 {dimension_numbers = #tpu.dot_dimension_numbers<[1], [0], [0], [1], [0, 0, 1, 1], [], []>} : vector<16x128xbf16>, vector<128x128xbf16>, vector<16x128xf32> -> vector<16x128xf32>
    %38 = arith.addf %32, %37 : vector<16x128xf32>
    %c1_33 = arith.constant 1 : index
    %c8_34 = arith.constant 8 : index
    %c0_35 = arith.constant 0 : index
    %39 = vector.load %arg19[%c1_33, %c8_34, %c0_35] : memref<6x20x128xf32, #tpu.memory_space<vmem>>, vector<4x4x128xf32>
    %40 = vector.shape_cast %39 : vector<4x4x128xf32> to vector<16x128xf32>
    %41 = arith.truncf %40 : vector<16x128xf32> to vector<16x128xbf16>
    %c512 = arith.constant 512 : index
    %c0_36 = arith.constant 0 : index
    %42 = vector.load %arg5[%c512, %c0_36] : memref<1152x128xbf16, #tpu.memory_space<vmem>>, vector<128x128xbf16>
    %cst_37 = arith.constant dense<0.000000e+00> : vector<16x128xf32>
    %43 = tpu.matmul %41, %42, %cst_37 {dimension_numbers = #tpu.dot_dimension_numbers<[1], [0], [0], [1], [0, 0, 1, 1], [], []>} : vector<16x128xbf16>, vector<128x128xbf16>, vector<16x128xf32> -> vector<16x128xf32>
    %44 = arith.addf %38, %43 : vector<16x128xf32>
    %c1_38 = arith.constant 1 : index
    %c9_39 = arith.constant 9 : index
    %c0_40 = arith.constant 0 : index
    %45 = vector.load %arg19[%c1_38, %c9_39, %c0_40] : memref<6x20x128xf32, #tpu.memory_space<vmem>>, vector<4x4x128xf32>
    %46 = vector.shape_cast %45 : vector<4x4x128xf32> to vector<16x128xf32>
    %47 = arith.truncf %46 : vector<16x128xf32> to vector<16x128xbf16>
    %c640 = arith.constant 640 : index
    %c0_41 = arith.constant 0 : index
    %48 = vector.load %arg5[%c640, %c0_41] : memref<1152x128xbf16, #tpu.memory_space<vmem>>, vector<128x128xbf16>
    %cst_42 = arith.constant dense<0.000000e+00> : vector<16x128xf32>
    %49 = tpu.matmul %47, %48, %cst_42 {dimension_numbers = #tpu.dot_dimension_numbers<[1], [0], [0], [1], [0, 0, 1, 1], [], []>} : vector<16x128xbf16>, vector<128x128xbf16>, vector<16x128xf32> -> vector<16x128xf32>
    %50 = arith.addf %44, %49 : vector<16x128xf32>
    %c2 = arith.constant 2 : index
    %c7_43 = arith.constant 7 : index
    %c0_44 = arith.constant 0 : index
    %51 = vector.load %arg19[%c2, %c7_43, %c0_44] : memref<6x20x128xf32, #tpu.memory_space<vmem>>, vector<4x4x128xf32>
    %52 = vector.shape_cast %51 : vector<4x4x128xf32> to vector<16x128xf32>
    %53 = arith.truncf %52 : vector<16x128xf32> to vector<16x128xbf16>
    %c768 = arith.constant 768 : index
    %c0_45 = arith.constant 0 : index
    %54 = vector.load %arg5[%c768, %c0_45] : memref<1152x128xbf16, #tpu.memory_space<vmem>>, vector<128x128xbf16>
    %cst_46 = arith.constant dense<0.000000e+00> : vector<16x128xf32>
    %55 = tpu.matmul %53, %54, %cst_46 {dimension_numbers = #tpu.dot_dimension_numbers<[1], [0], [0], [1], [0, 0, 1, 1], [], []>} : vector<16x128xbf16>, vector<128x128xbf16>, vector<16x128xf32> -> vector<16x128xf32>
    %56 = arith.addf %50, %55 : vector<16x128xf32>
    %c2_47 = arith.constant 2 : index
    %c8_48 = arith.constant 8 : index
    %c0_49 = arith.constant 0 : index
    %57 = vector.load %arg19[%c2_47, %c8_48, %c0_49] : memref<6x20x128xf32, #tpu.memory_space<vmem>>, vector<4x4x128xf32>
    %58 = vector.shape_cast %57 : vector<4x4x128xf32> to vector<16x128xf32>
    %59 = arith.truncf %58 : vector<16x128xf32> to vector<16x128xbf16>
    %c896 = arith.constant 896 : index
    %c0_50 = arith.constant 0 : index
    %60 = vector.load %arg5[%c896, %c0_50] : memref<1152x128xbf16, #tpu.memory_space<vmem>>, vector<128x128xbf16>
    %cst_51 = arith.constant dense<0.000000e+00> : vector<16x128xf32>
    %61 = tpu.matmul %59, %60, %cst_51 {dimension_numbers = #tpu.dot_dimension_numbers<[1], [0], [0], [1], [0, 0, 1, 1], [], []>} : vector<16x128xbf16>, vector<128x128xbf16>, vector<16x128xf32> -> vector<16x128xf32>
    %62 = arith.addf %56, %61 : vector<16x128xf32>
    %c2_52 = arith.constant 2 : index
    %c9_53 = arith.constant 9 : index
    %c0_54 = arith.constant 0 : index
    %63 = vector.load %arg19[%c2_52, %c9_53, %c0_54] : memref<6x20x128xf32, #tpu.memory_space<vmem>>, vector<4x4x128xf32>
    %64 = vector.shape_cast %63 : vector<4x4x128xf32> to vector<16x128xf32>
    %65 = arith.truncf %64 : vector<16x128xf32> to vector<16x128xbf16>
    %c1024 = arith.constant 1024 : index
    %c0_55 = arith.constant 0 : index
    %66 = vector.load %arg5[%c1024, %c0_55] : memref<1152x128xbf16, #tpu.memory_space<vmem>>, vector<128x128xbf16>
    %cst_56 = arith.constant dense<0.000000e+00> : vector<16x128xf32>
    %67 = tpu.matmul %65, %66, %cst_56 {dimension_numbers = #tpu.dot_dimension_numbers<[1], [0], [0], [1], [0, 0, 1, 1], [], []>} : vector<16x128xbf16>, vector<128x128xbf16>, vector<16x128xf32> -> vector<16x128xf32>
    %68 = arith.addf %62, %67 : vector<16x128xf32>
    %c0_57 = arith.constant 0 : index
    %c0_58 = arith.constant 0 : index
    %69 = vector.load %arg6[%c0_57, %c0_58] : memref<1x128xf32, #tpu.memory_space<vmem>>, vector<1x128xf32>
    %70 = vector.broadcast %69 : vector<1x128xf32> to vector<16x128xf32>
    %71 = arith.mulf %68, %70 : vector<16x128xf32>
    %c0_59 = arith.constant 0 : index
    %c0_60 = arith.constant 0 : index
    %72 = vector.load %arg7[%c0_59, %c0_60] : memref<1x128xf32, #tpu.memory_space<vmem>>, vector<1x128xf32>
    %73 = vector.broadcast %72 : vector<1x128xf32> to vector<16x128xf32>
    %74 = arith.addf %71, %73 : vector<16x128xf32>
    %cst_61 = arith.constant 0.000000e+00 : f32
    %75 = vector.broadcast %cst_61 : f32 to vector<16x128xf32>
    %76 = arith.maximumf %74, %75 : vector<16x128xf32>
    %77 = arith.truncf %76 : vector<16x128xf32> to vector<16x128xbf16>
    %c0_62 = arith.constant 0 : index
    %c0_63 = arith.constant 0 : index
    %78 = vector.load %arg8[%c0_62, %c0_63] : memref<128x128xbf16, #tpu.memory_space<vmem>>, vector<128x128xbf16>
    %cst_64 = arith.constant dense<0.000000e+00> : vector<16x128xf32>
    %79 = tpu.matmul %77, %78, %cst_64 {dimension_numbers = #tpu.dot_dimension_numbers<[1], [0], [0], [1], [0, 0, 1, 1], [], []>} : vector<16x128xbf16>, vector<128x128xbf16>, vector<16x128xf32> -> vector<16x128xf32>
    %c0_65 = arith.constant 0 : index
    %c0_66 = arith.constant 0 : index
    %80 = vector.load %arg9[%c0_65, %c0_66] : memref<1x128xf32, #tpu.memory_space<vmem>>, vector<1x128xf32>
    %81 = vector.broadcast %80 : vector<1x128xf32> to vector<16x128xf32>
    %82 = arith.mulf %79, %81 : vector<16x128xf32>
    %c0_67 = arith.constant 0 : index
    %c0_68 = arith.constant 0 : index
    %83 = vector.load %arg10[%c0_67, %c0_68] : memref<1x128xf32, #tpu.memory_space<vmem>>, vector<1x128xf32>
    %84 = vector.broadcast %83 : vector<1x128xf32> to vector<16x128xf32>
    %85 = arith.addf %82, %84 : vector<16x128xf32>
    %cst_69 = arith.constant dense<0.000000e+00> : vector<128xf32>
    %86 = vector.multi_reduction <add>, %85, %cst_69 [0] : vector<16x128xf32> to vector<128xf32>
    %87 = vector.shape_cast %86 : vector<128xf32> to vector<1x128xf32>
    %cst_70 = arith.constant 1.600000e+01 : f32
    %88 = vector.broadcast %cst_70 : f32 to vector<1x128xf32>
    %89 = arith.divf %87, %88 : vector<1x128xf32>
    %90 = arith.truncf %89 : vector<1x128xf32> to vector<1x128xbf16>
    %c0_71 = arith.constant 0 : index
    %c0_72 = arith.constant 0 : index
    %91 = vector.load %arg11[%c0_71, %c0_72] : memref<128x128xbf16, #tpu.memory_space<vmem>>, vector<128x128xbf16>
    %cst_73 = arith.constant dense<0.000000e+00> : vector<1x128xf32>
    %92 = tpu.matmul %90, %91, %cst_73 {dimension_numbers = #tpu.dot_dimension_numbers<[1], [0], [0], [1], [0, 0, 1, 1], [], []>} : vector<1x128xbf16>, vector<128x128xbf16>, vector<1x128xf32> -> vector<1x128xf32>
    %c0_74 = arith.constant 0 : index
    %c0_75 = arith.constant 0 : index
    %93 = vector.load %arg12[%c0_74, %c0_75] : memref<1x128xf32, #tpu.memory_space<vmem>>, vector<1x128xf32>
    %94 = arith.addf %92, %93 : vector<1x128xf32>
    %cst_76 = arith.constant 0.000000e+00 : f32
    %95 = vector.broadcast %cst_76 : f32 to vector<1x128xf32>
    %96 = arith.maximumf %94, %95 : vector<1x128xf32>
    %97 = arith.truncf %96 : vector<1x128xf32> to vector<1x128xbf16>
    %c0_77 = arith.constant 0 : index
    %c0_78 = arith.constant 0 : index
    %98 = vector.load %arg13[%c0_77, %c0_78] : memref<128x128xbf16, #tpu.memory_space<vmem>>, vector<128x128xbf16>
    %cst_79 = arith.constant dense<0.000000e+00> : vector<1x128xf32>
    %99 = tpu.matmul %97, %98, %cst_79 {dimension_numbers = #tpu.dot_dimension_numbers<[1], [0], [0], [1], [0, 0, 1, 1], [], []>} : vector<1x128xbf16>, vector<128x128xbf16>, vector<1x128xf32> -> vector<1x128xf32>
    %c0_80 = arith.constant 0 : index
    %c0_81 = arith.constant 0 : index
    %100 = vector.load %arg14[%c0_80, %c0_81] : memref<1x128xf32, #tpu.memory_space<vmem>>, vector<1x128xf32>
    %101 = arith.addf %99, %100 : vector<1x128xf32>
    %102 = arith.negf %101 : vector<1x128xf32>
    %103 = math.exp %102 : vector<1x128xf32>
    %cst_82 = arith.constant 1.000000e+00 : f32
    %104 = vector.broadcast %cst_82 : f32 to vector<1x128xf32>
    %105 = arith.addf %104, %103 : vector<1x128xf32>
    %106 = arith.divf %104, %105 : vector<1x128xf32>
    %c0_83 = arith.constant 0 : index
    %c0_84 = arith.constant 0 : index
    %107 = vector.load %arg15[%c0_83, %c0_84] : memref<128x128xbf16, #tpu.memory_space<vmem>>, vector<128x128xbf16>
    %cst_85 = arith.constant dense<0.000000e+00> : vector<16x128xf32>
    %108 = tpu.matmul %1, %107, %cst_85 {dimension_numbers = #tpu.dot_dimension_numbers<[1], [0], [0], [1], [0, 0, 1, 1], [], []>} : vector<16x128xbf16>, vector<128x128xbf16>, vector<16x128xf32> -> vector<16x128xf32>
    %c0_86 = arith.constant 0 : index
    %c0_87 = arith.constant 0 : index
    %109 = vector.load %arg16[%c0_86, %c0_87] : memref<1x128xf32, #tpu.memory_space<vmem>>, vector<1x128xf32>
    %110 = vector.broadcast %109 : vector<1x128xf32> to vector<16x128xf32>
    %111 = arith.mulf %108, %110 : vector<16x128xf32>
    %c0_88 = arith.constant 0 : index
    %c0_89 = arith.constant 0 : index
    %112 = vector.load %arg17[%c0_88, %c0_89] : memref<1x128xf32, #tpu.memory_space<vmem>>, vector<1x128xf32>
    %113 = vector.broadcast %112 : vector<1x128xf32> to vector<16x128xf32>
    %114 = arith.addf %111, %113 : vector<16x128xf32>
    %115 = vector.broadcast %106 : vector<1x128xf32> to vector<16x128xf32>
    %116 = arith.mulf %85, %115 : vector<16x128xf32>
    %117 = arith.addf %116, %114 : vector<16x128xf32>
    %cst_90 = arith.constant 0.000000e+00 : f32
    %118 = vector.broadcast %cst_90 : f32 to vector<16x128xf32>
    %119 = arith.maximumf %117, %118 : vector<16x128xf32>
    %120 = arith.truncf %119 : vector<16x128xf32> to vector<16x128xbf16>
    %c0_91 = arith.constant 0 : index
    %c0_92 = arith.constant 0 : index
    %c0_93 = arith.constant 0 : index
    %121 = vector.load %arg18[%c0_91, %c0_92, %c0_93] : memref<1x16x128xbf16, #tpu.memory_space<vmem>>, vector<1x16x128xbf16>
    %122 = vector.shape_cast %121 : vector<1x16x128xbf16> to vector<16x128xbf16>
    %123 = vector.shape_cast %120 : vector<16x128xbf16> to vector<1x16x128xbf16>
    tpu.vector_store %arg18[%c0_91, %c0_92, %c0_93], %123 {strides = array<i32>} : memref<1x16x128xbf16, #tpu.memory_space<vmem>>, vector<1x16x128xbf16>,
    return
  }
  func.func @transform_0(%arg0: i32) -> (i32, i32, i32) {
    %c0_i32 = arith.constant 0 : i32
    %c0_i32_0 = arith.constant 0 : i32
    %c0_i32_1 = arith.constant 0 : i32
    return %arg0, %c0_i32, %c0_i32_0 : i32, i32, i32
  }
  func.func @transform_1(%arg0: i32) -> (i32, i32) {
    %c0_i32 = arith.constant 0 : i32
    %c0_i32_0 = arith.constant 0 : i32
    %c0_i32_1 = arith.constant 0 : i32
    return %c0_i32, %c0_i32_0 : i32, i32
  }
  func.func @transform_2(%arg0: i32) -> (i32, i32) {
    %c0_i32 = arith.constant 0 : i32
    %c0_i32_0 = arith.constant 0 : i32
    %c0_i32_1 = arith.constant 0 : i32
    return %c0_i32, %c0_i32_0 : i32, i32
  }
  func.func @transform_3(%arg0: i32) -> (i32, i32) {
    %c0_i32 = arith.constant 0 : i32
    %c0_i32_0 = arith.constant 0 : i32
    %c0_i32_1 = arith.constant 0 : i32
    return %c0_i32, %c0_i32_0 : i32, i32
  }
  func.func @transform_4(%arg0: i32) -> (i32, i32) {
    %c0_i32 = arith.constant 0 : i32
    %c0_i32_0 = arith.constant 0 : i32
    %c0_i32_1 = arith.constant 0 : i32
    return %c0_i32, %c0_i32_0 : i32, i32
  }
  func.func @transform_5(%arg0: i32) -> (i32, i32) {
    %c0_i32 = arith.constant 0 : i32
    %c0_i32_0 = arith.constant 0 : i32
    %c0_i32_1 = arith.constant 0 : i32
    return %c0_i32, %c0_i32_0 : i32, i32
  }
  func.func @transform_6(%arg0: i32) -> (i32, i32) {
    %c0_i32 = arith.constant 0 : i32
    %c0_i32_0 = arith.constant 0 : i32
    %c0_i32_1 = arith.constant 0 : i32
    return %c0_i32, %c0_i32_0 : i32, i32
  }
  func.func @transform_7(%arg0: i32) -> (i32, i32) {
    %c0_i32 = arith.constant 0 : i32
    %c0_i32_0 = arith.constant 0 : i32
    %c0_i32_1 = arith.constant 0 : i32
    return %c0_i32, %c0_i32_0 : i32, i32
  }
  func.func @transform_8(%arg0: i32) -> (i32, i32) {
    %c0_i32 = arith.constant 0 : i32
    %c0_i32_0 = arith.constant 0 : i32
    %c0_i32_1 = arith.constant 0 : i32
    return %c0_i32, %c0_i32_0 : i32, i32
  }
  func.func @transform_9(%arg0: i32) -> (i32, i32) {
    %c0_i32 = arith.constant 0 : i32
    %c0_i32_0 = arith.constant 0 : i32
    %c0_i32_1 = arith.constant 0 : i32
    return %c0_i32, %c0_i32_0 : i32, i32
  }
  func.func @transform_10(%arg0: i32) -> (i32, i32) {
    %c0_i32 = arith.constant 0 : i32
    %c0_i32_0 = arith.constant 0 : i32
    %c0_i32_1 = arith.constant 0 : i32
    return %c0_i32, %c0_i32_0 : i32, i32
  }
  func.func @transform_11(%arg0: i32) -> (i32, i32) {
    %c0_i32 = arith.constant 0 : i32
    %c0_i32_0 = arith.constant 0 : i32
    %c0_i32_1 = arith.constant 0 : i32
    return %c0_i32, %c0_i32_0 : i32, i32
  }
  func.func @transform_12(%arg0: i32) -> (i32, i32) {
    %c0_i32 = arith.constant 0 : i32
    %c0_i32_0 = arith.constant 0 : i32
    %c0_i32_1 = arith.constant 0 : i32
    return %c0_i32, %c0_i32_0 : i32, i32
  }
  func.func @transform_13(%arg0: i32) -> (i32, i32) {
    %c0_i32 = arith.constant 0 : i32
    %c0_i32_0 = arith.constant 0 : i32
    %c0_i32_1 = arith.constant 0 : i32
    return %c0_i32, %c0_i32_0 : i32, i32
  }
  func.func @transform_14(%arg0: i32) -> (i32, i32) {
    %c0_i32 = arith.constant 0 : i32
    %c0_i32_0 = arith.constant 0 : i32
    %c0_i32_1 = arith.constant 0 : i32
    return %c0_i32, %c0_i32_0 : i32, i32
  }
  func.func @transform_15(%arg0: i32) -> (i32, i32) {
    %c0_i32 = arith.constant 0 : i32
    %c0_i32_0 = arith.constant 0 : i32
    %c0_i32_1 = arith.constant 0 : i32
    return %c0_i32, %c0_i32_0 : i32, i32
  }
  func.func @transform_16(%arg0: i32) -> (i32, i32) {
    %c0_i32 = arith.constant 0 : i32
    %c0_i32_0 = arith.constant 0 : i32
    %c0_i32_1 = arith.constant 0 : i32
    return %c0_i32, %c0_i32_0 : i32, i32
  }
  func.func @transform_17(%arg0: i32) -> (i32, i32, i32) {
    %c0_i32 = arith.constant 0 : i32
    %c0_i32_0 = arith.constant 0 : i32
    %c0_i32_1 = arith.constant 0 : i32
    return %arg0, %c0_i32, %c0_i32_0 : i32, i32, i32
  }
}

module attributes {stable_mosaic.version = 11 : i64} {
  func.func @_se_block_kernel(%arg0: i32, %arg1: memref<1x4x128xbf16, #tpu.memory_space<vmem>>, %arg2: memref<128x128xbf16, #tpu.memory_space<vmem>>, %arg3: memref<1x128xf32, #tpu.memory_space<vmem>>, %arg4: memref<1x128xf32, #tpu.memory_space<vmem>>, %arg5: memref<1152x128xbf16, #tpu.memory_space<vmem>>, %arg6: memref<1x128xf32, #tpu.memory_space<vmem>>, %arg7: memref<1x128xf32, #tpu.memory_space<vmem>>, %arg8: memref<128x128xbf16, #tpu.memory_space<vmem>>, %arg9: memref<1x128xf32, #tpu.memory_space<vmem>>, %arg10: memref<1x128xf32, #tpu.memory_space<vmem>>, %arg11: memref<128x128xbf16, #tpu.memory_space<vmem>>, %arg12: memref<1x128xf32, #tpu.memory_space<vmem>>, %arg13: memref<128x128xbf16, #tpu.memory_space<vmem>>, %arg14: memref<1x128xf32, #tpu.memory_space<vmem>>, %arg15: memref<128x128xbf16, #tpu.memory_space<vmem>>, %arg16: memref<1x128xf32, #tpu.memory_space<vmem>>, %arg17: memref<1x128xf32, #tpu.memory_space<vmem>>, %arg18: memref<128x128xbf16, #tpu.memory_space<vmem>>, %arg19: memref<1x128xf32, #tpu.memory_space<vmem>>, %arg20: memref<1x1x128xf32, #tpu.memory_space<vmem>>, %arg21: memref<4x18x128xf32, #tpu.memory_space<vmem>>) attributes {dimension_semantics = [#tpu.dimension_semantics<parallel>], iteration_bounds = array<i64: 2>, scalar_prefetch = 0 : i64, scratch_operands = 1 : i64, tpu.core_type = #tpu.core_type<tc>, window_params = [{transform_indices = @transform_0, window_bounds = array<i64: 1, 4, 128>}, {pipeline_mode = #tpu.pipeline_mode<synchronous>, transform_indices = @transform_1, window_bounds = array<i64: 128, 128>}, {pipeline_mode = #tpu.pipeline_mode<synchronous>, transform_indices = @transform_2, window_bounds = array<i64: 1, 128>}, {pipeline_mode = #tpu.pipeline_mode<synchronous>, transform_indices = @transform_3, window_bounds = array<i64: 1, 128>}, {pipeline_mode = #tpu.pipeline_mode<synchronous>, transform_indices = @transform_4, window_bounds = array<i64: 1152, 128>}, {pipeline_mode = #tpu.pipeline_mode<synchronous>, transform_indices = @transform_5, window_bounds = array<i64: 1, 128>}, {pipeline_mode = #tpu.pipeline_mode<synchronous>, transform_indices = @transform_6, window_bounds = array<i64: 1, 128>}, {pipeline_mode = #tpu.pipeline_mode<synchronous>, transform_indices = @transform_7, window_bounds = array<i64: 128, 128>}, {pipeline_mode = #tpu.pipeline_mode<synchronous>, transform_indices = @transform_8, window_bounds = array<i64: 1, 128>}, {pipeline_mode = #tpu.pipeline_mode<synchronous>, transform_indices = @transform_9, window_bounds = array<i64: 1, 128>}, {pipeline_mode = #tpu.pipeline_mode<synchronous>, transform_indices = @transform_10, window_bounds = array<i64: 128, 128>}, {pipeline_mode = #tpu.pipeline_mode<synchronous>, transform_indices = @transform_11, window_bounds = array<i64: 1, 128>}, {pipeline_mode = #tpu.pipeline_mode<synchronous>, transform_indices = @transform_12, window_bounds = array<i64: 128, 128>}, {pipeline_mode = #tpu.pipeline_mode<synchronous>, transform_indices = @transform_13, window_bounds = array<i64: 1, 128>}, {pipeline_mode = #tpu.pipeline_mode<synchronous>, transform_indices = @transform_14, window_bounds = array<i64: 128, 128>}, {pipeline_mode = #tpu.pipeline_mode<synchronous>, transform_indices = @transform_15, window_bounds = array<i64: 1, 128>}, {pipeline_mode = #tpu.pipeline_mode<synchronous>, transform_indices = @transform_16, window_bounds = array<i64: 1, 128>}, {pipeline_mode = #tpu.pipeline_mode<synchronous>, transform_indices = @transform_17, window_bounds = array<i64: 128, 128>}, {pipeline_mode = #tpu.pipeline_mode<synchronous>, transform_indices = @transform_18, window_bounds = array<i64: 1, 128>}, {transform_indices = @transform_19, window_bounds = array<i64: 1, 1, 128>}]} {
    %c0 = arith.constant 0 : index
    %c0_0 = arith.constant 0 : index
    %c0_1 = arith.constant 0 : index
    %0 = vector.load %arg1[%c0, %c0_0, %c0_1] : memref<1x4x128xbf16, #tpu.memory_space<vmem>>, vector<1x4x128xbf16>
    %1 = vector.shape_cast %0 : vector<1x4x128xbf16> to vector<4x128xbf16>
    %c0_2 = arith.constant 0 : index
    %c0_3 = arith.constant 0 : index
    %2 = vector.load %arg2[%c0_2, %c0_3] : memref<128x128xbf16, #tpu.memory_space<vmem>>, vector<128x128xbf16>
    %cst = arith.constant dense<0.000000e+00> : vector<4x128xf32>
    %3 = tpu.matmul %1, %2, %cst {dimension_numbers = #tpu.dot_dimension_numbers<[1], [0], [0], [1], [0, 0, 1, 1], [], []>} : vector<4x128xbf16>, vector<128x128xbf16>, vector<4x128xf32> -> vector<4x128xf32>
    %c0_4 = arith.constant 0 : index
    %c0_5 = arith.constant 0 : index
    %4 = vector.load %arg3[%c0_4, %c0_5] : memref<1x128xf32, #tpu.memory_space<vmem>>, vector<1x128xf32>
    %5 = vector.broadcast %4 : vector<1x128xf32> to vector<4x128xf32>
    %6 = arith.mulf %3, %5 : vector<4x128xf32>
    %c0_6 = arith.constant 0 : index
    %c0_7 = arith.constant 0 : index
    %7 = vector.load %arg4[%c0_6, %c0_7] : memref<1x128xf32, #tpu.memory_space<vmem>>, vector<1x128xf32>
    %8 = vector.broadcast %7 : vector<1x128xf32> to vector<4x128xf32>
    %9 = arith.addf %6, %8 : vector<4x128xf32>
    %cst_8 = arith.constant 0.000000e+00 : f32
    %10 = vector.broadcast %cst_8 : f32 to vector<4x128xf32>
    %11 = arith.maximumf %9, %10 : vector<4x128xf32>
    %cst_9 = arith.constant 0.000000e+00 : f32
    %12 = vector.broadcast %cst_9 : f32 to vector<4x18x128xf32>
    %c0_10 = arith.constant 0 : index
    %c0_11 = arith.constant 0 : index
    %c0_12 = arith.constant 0 : index
    %13 = vector.load %arg21[%c0_10, %c0_11, %c0_12] : memref<4x18x128xf32, #tpu.memory_space<vmem>>, vector<4x18x128xf32>
    tpu.vector_store %arg21[%c0_10, %c0_11, %c0_12], %12 {strides = array<i32>} : memref<4x18x128xf32, #tpu.memory_space<vmem>>, vector<4x18x128xf32>,
    %14 = vector.shape_cast %11 : vector<4x128xf32> to vector<2x2x128xf32>
    %c1 = arith.constant 1 : index
    %c8 = arith.constant 8 : index
    %c0_13 = arith.constant 0 : index
    %15 = vector.load %arg21[%c1, %c8, %c0_13] : memref<4x18x128xf32, #tpu.memory_space<vmem>>, vector<2x2x128xf32>
    tpu.vector_store %arg21[%c1, %c8, %c0_13], %14 {strides = array<i32>} : memref<4x18x128xf32, #tpu.memory_space<vmem>>, vector<2x2x128xf32>,
    %c0_14 = arith.constant 0 : index
    %c7 = arith.constant 7 : index
    %c0_15 = arith.constant 0 : index
    %16 = vector.load %arg21[%c0_14, %c7, %c0_15] : memref<4x18x128xf32, #tpu.memory_space<vmem>>, vector<2x2x128xf32>
    %17 = vector.shape_cast %16 : vector<2x2x128xf32> to vector<4x128xf32>
    %18 = arith.truncf %17 : vector<4x128xf32> to vector<4x128xbf16>
    %c0_16 = arith.constant 0 : index
    %c0_17 = arith.constant 0 : index
    %19 = vector.load %arg5[%c0_16, %c0_17] : memref<1152x128xbf16, #tpu.memory_space<vmem>>, vector<128x128xbf16>
    %cst_18 = arith.constant dense<0.000000e+00> : vector<4x128xf32>
    %20 = tpu.matmul %18, %19, %cst_18 {dimension_numbers = #tpu.dot_dimension_numbers<[1], [0], [0], [1], [0, 0, 1, 1], [], []>} : vector<4x128xbf16>, vector<128x128xbf16>, vector<4x128xf32> -> vector<4x128xf32>
    %c0_19 = arith.constant 0 : index
    %c8_20 = arith.constant 8 : index
    %c0_21 = arith.constant 0 : index
    %21 = vector.load %arg21[%c0_19, %c8_20, %c0_21] : memref<4x18x128xf32, #tpu.memory_space<vmem>>, vector<2x2x128xf32>
    %22 = vector.shape_cast %21 : vector<2x2x128xf32> to vector<4x128xf32>
    %23 = arith.truncf %22 : vector<4x128xf32> to vector<4x128xbf16>
    %c128 = arith.constant 128 : index
    %c0_22 = arith.constant 0 : index
    %24 = vector.load %arg5[%c128, %c0_22] : memref<1152x128xbf16, #tpu.memory_space<vmem>>, vector<128x128xbf16>
    %cst_23 = arith.constant dense<0.000000e+00> : vector<4x128xf32>
    %25 = tpu.matmul %23, %24, %cst_23 {dimension_numbers = #tpu.dot_dimension_numbers<[1], [0], [0], [1], [0, 0, 1, 1], [], []>} : vector<4x128xbf16>, vector<128x128xbf16>, vector<4x128xf32> -> vector<4x128xf32>
    %26 = arith.addf %20, %25 : vector<4x128xf32>
    %c0_24 = arith.constant 0 : index
    %c9 = arith.constant 9 : index
    %c0_25 = arith.constant 0 : index
    %27 = vector.load %arg21[%c0_24, %c9, %c0_25] : memref<4x18x128xf32, #tpu.memory_space<vmem>>, vector<2x2x128xf32>
    %28 = vector.shape_cast %27 : vector<2x2x128xf32> to vector<4x128xf32>
    %29 = arith.truncf %28 : vector<4x128xf32> to vector<4x128xbf16>
    %c256 = arith.constant 256 : index
    %c0_26 = arith.constant 0 : index
    %30 = vector.load %arg5[%c256, %c0_26] : memref<1152x128xbf16, #tpu.memory_space<vmem>>, vector<128x128xbf16>
    %cst_27 = arith.constant dense<0.000000e+00> : vector<4x128xf32>
    %31 = tpu.matmul %29, %30, %cst_27 {dimension_numbers = #tpu.dot_dimension_numbers<[1], [0], [0], [1], [0, 0, 1, 1], [], []>} : vector<4x128xbf16>, vector<128x128xbf16>, vector<4x128xf32> -> vector<4x128xf32>
    %32 = arith.addf %26, %31 : vector<4x128xf32>
    %c1_28 = arith.constant 1 : index
    %c7_29 = arith.constant 7 : index
    %c0_30 = arith.constant 0 : index
    %33 = vector.load %arg21[%c1_28, %c7_29, %c0_30] : memref<4x18x128xf32, #tpu.memory_space<vmem>>, vector<2x2x128xf32>
    %34 = vector.shape_cast %33 : vector<2x2x128xf32> to vector<4x128xf32>
    %35 = arith.truncf %34 : vector<4x128xf32> to vector<4x128xbf16>
    %c384 = arith.constant 384 : index
    %c0_31 = arith.constant 0 : index
    %36 = vector.load %arg5[%c384, %c0_31] : memref<1152x128xbf16, #tpu.memory_space<vmem>>, vector<128x128xbf16>
    %cst_32 = arith.constant dense<0.000000e+00> : vector<4x128xf32>
    %37 = tpu.matmul %35, %36, %cst_32 {dimension_numbers = #tpu.dot_dimension_numbers<[1], [0], [0], [1], [0, 0, 1, 1], [], []>} : vector<4x128xbf16>, vector<128x128xbf16>, vector<4x128xf32> -> vector<4x128xf32>
    %38 = arith.addf %32, %37 : vector<4x128xf32>
    %c1_33 = arith.constant 1 : index
    %c8_34 = arith.constant 8 : index
    %c0_35 = arith.constant 0 : index
    %39 = vector.load %arg21[%c1_33, %c8_34, %c0_35] : memref<4x18x128xf32, #tpu.memory_space<vmem>>, vector<2x2x128xf32>
    %40 = vector.shape_cast %39 : vector<2x2x128xf32> to vector<4x128xf32>
    %41 = arith.truncf %40 : vector<4x128xf32> to vector<4x128xbf16>
    %c512 = arith.constant 512 : index
    %c0_36 = arith.constant 0 : index
    %42 = vector.load %arg5[%c512, %c0_36] : memref<1152x128xbf16, #tpu.memory_space<vmem>>, vector<128x128xbf16>
    %cst_37 = arith.constant dense<0.000000e+00> : vector<4x128xf32>
    %43 = tpu.matmul %41, %42, %cst_37 {dimension_numbers = #tpu.dot_dimension_numbers<[1], [0], [0], [1], [0, 0, 1, 1], [], []>} : vector<4x128xbf16>, vector<128x128xbf16>, vector<4x128xf32> -> vector<4x128xf32>
    %44 = arith.addf %38, %43 : vector<4x128xf32>
    %c1_38 = arith.constant 1 : index
    %c9_39 = arith.constant 9 : index
    %c0_40 = arith.constant 0 : index
    %45 = vector.load %arg21[%c1_38, %c9_39, %c0_40] : memref<4x18x128xf32, #tpu.memory_space<vmem>>, vector<2x2x128xf32>
    %46 = vector.shape_cast %45 : vector<2x2x128xf32> to vector<4x128xf32>
    %47 = arith.truncf %46 : vector<4x128xf32> to vector<4x128xbf16>
    %c640 = arith.constant 640 : index
    %c0_41 = arith.constant 0 : index
    %48 = vector.load %arg5[%c640, %c0_41] : memref<1152x128xbf16, #tpu.memory_space<vmem>>, vector<128x128xbf16>
    %cst_42 = arith.constant dense<0.000000e+00> : vector<4x128xf32>
    %49 = tpu.matmul %47, %48, %cst_42 {dimension_numbers = #tpu.dot_dimension_numbers<[1], [0], [0], [1], [0, 0, 1, 1], [], []>} : vector<4x128xbf16>, vector<128x128xbf16>, vector<4x128xf32> -> vector<4x128xf32>
    %50 = arith.addf %44, %49 : vector<4x128xf32>
    %c2 = arith.constant 2 : index
    %c7_43 = arith.constant 7 : index
    %c0_44 = arith.constant 0 : index
    %51 = vector.load %arg21[%c2, %c7_43, %c0_44] : memref<4x18x128xf32, #tpu.memory_space<vmem>>, vector<2x2x128xf32>
    %52 = vector.shape_cast %51 : vector<2x2x128xf32> to vector<4x128xf32>
    %53 = arith.truncf %52 : vector<4x128xf32> to vector<4x128xbf16>
    %c768 = arith.constant 768 : index
    %c0_45 = arith.constant 0 : index
    %54 = vector.load %arg5[%c768, %c0_45] : memref<1152x128xbf16, #tpu.memory_space<vmem>>, vector<128x128xbf16>
    %cst_46 = arith.constant dense<0.000000e+00> : vector<4x128xf32>
    %55 = tpu.matmul %53, %54, %cst_46 {dimension_numbers = #tpu.dot_dimension_numbers<[1], [0], [0], [1], [0, 0, 1, 1], [], []>} : vector<4x128xbf16>, vector<128x128xbf16>, vector<4x128xf32> -> vector<4x128xf32>
    %56 = arith.addf %50, %55 : vector<4x128xf32>
    %c2_47 = arith.constant 2 : index
    %c8_48 = arith.constant 8 : index
    %c0_49 = arith.constant 0 : index
    %57 = vector.load %arg21[%c2_47, %c8_48, %c0_49] : memref<4x18x128xf32, #tpu.memory_space<vmem>>, vector<2x2x128xf32>
    %58 = vector.shape_cast %57 : vector<2x2x128xf32> to vector<4x128xf32>
    %59 = arith.truncf %58 : vector<4x128xf32> to vector<4x128xbf16>
    %c896 = arith.constant 896 : index
    %c0_50 = arith.constant 0 : index
    %60 = vector.load %arg5[%c896, %c0_50] : memref<1152x128xbf16, #tpu.memory_space<vmem>>, vector<128x128xbf16>
    %cst_51 = arith.constant dense<0.000000e+00> : vector<4x128xf32>
    %61 = tpu.matmul %59, %60, %cst_51 {dimension_numbers = #tpu.dot_dimension_numbers<[1], [0], [0], [1], [0, 0, 1, 1], [], []>} : vector<4x128xbf16>, vector<128x128xbf16>, vector<4x128xf32> -> vector<4x128xf32>
    %62 = arith.addf %56, %61 : vector<4x128xf32>
    %c2_52 = arith.constant 2 : index
    %c9_53 = arith.constant 9 : index
    %c0_54 = arith.constant 0 : index
    %63 = vector.load %arg21[%c2_52, %c9_53, %c0_54] : memref<4x18x128xf32, #tpu.memory_space<vmem>>, vector<2x2x128xf32>
    %64 = vector.shape_cast %63 : vector<2x2x128xf32> to vector<4x128xf32>
    %65 = arith.truncf %64 : vector<4x128xf32> to vector<4x128xbf16>
    %c1024 = arith.constant 1024 : index
    %c0_55 = arith.constant 0 : index
    %66 = vector.load %arg5[%c1024, %c0_55] : memref<1152x128xbf16, #tpu.memory_space<vmem>>, vector<128x128xbf16>
    %cst_56 = arith.constant dense<0.000000e+00> : vector<4x128xf32>
    %67 = tpu.matmul %65, %66, %cst_56 {dimension_numbers = #tpu.dot_dimension_numbers<[1], [0], [0], [1], [0, 0, 1, 1], [], []>} : vector<4x128xbf16>, vector<128x128xbf16>, vector<4x128xf32> -> vector<4x128xf32>
    %68 = arith.addf %62, %67 : vector<4x128xf32>
    %c0_57 = arith.constant 0 : index
    %c0_58 = arith.constant 0 : index
    %69 = vector.load %arg6[%c0_57, %c0_58] : memref<1x128xf32, #tpu.memory_space<vmem>>, vector<1x128xf32>
    %70 = vector.broadcast %69 : vector<1x128xf32> to vector<4x128xf32>
    %71 = arith.mulf %68, %70 : vector<4x128xf32>
    %c0_59 = arith.constant 0 : index
    %c0_60 = arith.constant 0 : index
    %72 = vector.load %arg7[%c0_59, %c0_60] : memref<1x128xf32, #tpu.memory_space<vmem>>, vector<1x128xf32>
    %73 = vector.broadcast %72 : vector<1x128xf32> to vector<4x128xf32>
    %74 = arith.addf %71, %73 : vector<4x128xf32>
    %cst_61 = arith.constant 0.000000e+00 : f32
    %75 = vector.broadcast %cst_61 : f32 to vector<4x128xf32>
    %76 = arith.maximumf %74, %75 : vector<4x128xf32>
    %77 = arith.truncf %76 : vector<4x128xf32> to vector<4x128xbf16>
    %c0_62 = arith.constant 0 : index
    %c0_63 = arith.constant 0 : index
    %78 = vector.load %arg8[%c0_62, %c0_63] : memref<128x128xbf16, #tpu.memory_space<vmem>>, vector<128x128xbf16>
    %cst_64 = arith.constant dense<0.000000e+00> : vector<4x128xf32>
    %79 = tpu.matmul %77, %78, %cst_64 {dimension_numbers = #tpu.dot_dimension_numbers<[1], [0], [0], [1], [0, 0, 1, 1], [], []>} : vector<4x128xbf16>, vector<128x128xbf16>, vector<4x128xf32> -> vector<4x128xf32>
    %c0_65 = arith.constant 0 : index
    %c0_66 = arith.constant 0 : index
    %80 = vector.load %arg9[%c0_65, %c0_66] : memref<1x128xf32, #tpu.memory_space<vmem>>, vector<1x128xf32>
    %81 = vector.broadcast %80 : vector<1x128xf32> to vector<4x128xf32>
    %82 = arith.mulf %79, %81 : vector<4x128xf32>
    %c0_67 = arith.constant 0 : index
    %c0_68 = arith.constant 0 : index
    %83 = vector.load %arg10[%c0_67, %c0_68] : memref<1x128xf32, #tpu.memory_space<vmem>>, vector<1x128xf32>
    %84 = vector.broadcast %83 : vector<1x128xf32> to vector<4x128xf32>
    %85 = arith.addf %82, %84 : vector<4x128xf32>
    %cst_69 = arith.constant dense<0.000000e+00> : vector<128xf32>
    %86 = vector.multi_reduction <add>, %85, %cst_69 [0] : vector<4x128xf32> to vector<128xf32>
    %87 = vector.shape_cast %86 : vector<128xf32> to vector<1x128xf32>
    %cst_70 = arith.constant 4.000000e+00 : f32
    %88 = vector.broadcast %cst_70 : f32 to vector<1x128xf32>
    %89 = arith.divf %87, %88 : vector<1x128xf32>
    %90 = arith.truncf %89 : vector<1x128xf32> to vector<1x128xbf16>
    %c0_71 = arith.constant 0 : index
    %c0_72 = arith.constant 0 : index
    %91 = vector.load %arg11[%c0_71, %c0_72] : memref<128x128xbf16, #tpu.memory_space<vmem>>, vector<128x128xbf16>
    %cst_73 = arith.constant dense<0.000000e+00> : vector<1x128xf32>
    %92 = tpu.matmul %90, %91, %cst_73 {dimension_numbers = #tpu.dot_dimension_numbers<[1], [0], [0], [1], [0, 0, 1, 1], [], []>} : vector<1x128xbf16>, vector<128x128xbf16>, vector<1x128xf32> -> vector<1x128xf32>
    %c0_74 = arith.constant 0 : index
    %c0_75 = arith.constant 0 : index
    %93 = vector.load %arg12[%c0_74, %c0_75] : memref<1x128xf32, #tpu.memory_space<vmem>>, vector<1x128xf32>
    %94 = arith.addf %92, %93 : vector<1x128xf32>
    %cst_76 = arith.constant 0.000000e+00 : f32
    %95 = vector.broadcast %cst_76 : f32 to vector<1x128xf32>
    %96 = arith.maximumf %94, %95 : vector<1x128xf32>
    %97 = arith.truncf %96 : vector<1x128xf32> to vector<1x128xbf16>
    %c0_77 = arith.constant 0 : index
    %c0_78 = arith.constant 0 : index
    %98 = vector.load %arg13[%c0_77, %c0_78] : memref<128x128xbf16, #tpu.memory_space<vmem>>, vector<128x128xbf16>
    %cst_79 = arith.constant dense<0.000000e+00> : vector<1x128xf32>
    %99 = tpu.matmul %97, %98, %cst_79 {dimension_numbers = #tpu.dot_dimension_numbers<[1], [0], [0], [1], [0, 0, 1, 1], [], []>} : vector<1x128xbf16>, vector<128x128xbf16>, vector<1x128xf32> -> vector<1x128xf32>
    %c0_80 = arith.constant 0 : index
    %c0_81 = arith.constant 0 : index
    %100 = vector.load %arg14[%c0_80, %c0_81] : memref<1x128xf32, #tpu.memory_space<vmem>>, vector<1x128xf32>
    %101 = arith.addf %99, %100 : vector<1x128xf32>
    %102 = arith.negf %101 : vector<1x128xf32>
    %103 = math.exp %102 : vector<1x128xf32>
    %cst_82 = arith.constant 1.000000e+00 : f32
    %104 = vector.broadcast %cst_82 : f32 to vector<1x128xf32>
    %105 = arith.addf %104, %103 : vector<1x128xf32>
    %106 = arith.divf %104, %105 : vector<1x128xf32>
    %c0_83 = arith.constant 0 : index
    %c0_84 = arith.constant 0 : index
    %107 = vector.load %arg15[%c0_83, %c0_84] : memref<128x128xbf16, #tpu.memory_space<vmem>>, vector<128x128xbf16>
    %cst_85 = arith.constant dense<0.000000e+00> : vector<4x128xf32>
    %108 = tpu.matmul %1, %107, %cst_85 {dimension_numbers = #tpu.dot_dimension_numbers<[1], [0], [0], [1], [0, 0, 1, 1], [], []>} : vector<4x128xbf16>, vector<128x128xbf16>, vector<4x128xf32> -> vector<4x128xf32>
    %c0_86 = arith.constant 0 : index
    %c0_87 = arith.constant 0 : index
    %109 = vector.load %arg16[%c0_86, %c0_87] : memref<1x128xf32, #tpu.memory_space<vmem>>, vector<1x128xf32>
    %110 = vector.broadcast %109 : vector<1x128xf32> to vector<4x128xf32>
    %111 = arith.mulf %108, %110 : vector<4x128xf32>
    %c0_88 = arith.constant 0 : index
    %c0_89 = arith.constant 0 : index
    %112 = vector.load %arg17[%c0_88, %c0_89] : memref<1x128xf32, #tpu.memory_space<vmem>>, vector<1x128xf32>
    %113 = vector.broadcast %112 : vector<1x128xf32> to vector<4x128xf32>
    %114 = arith.addf %111, %113 : vector<4x128xf32>
    %115 = vector.broadcast %106 : vector<1x128xf32> to vector<4x128xf32>
    %116 = arith.mulf %85, %115 : vector<4x128xf32>
    %117 = arith.addf %116, %114 : vector<4x128xf32>
    %cst_90 = arith.constant 0.000000e+00 : f32
    %118 = vector.broadcast %cst_90 : f32 to vector<4x128xf32>
    %119 = arith.maximumf %117, %118 : vector<4x128xf32>
    %cst_91 = arith.constant dense<0.000000e+00> : vector<128xf32>
    %120 = vector.multi_reduction <add>, %119, %cst_91 [0] : vector<4x128xf32> to vector<128xf32>
    %121 = vector.shape_cast %120 : vector<128xf32> to vector<1x128xf32>
    %cst_92 = arith.constant 4.000000e+00 : f32
    %122 = vector.broadcast %cst_92 : f32 to vector<1x128xf32>
    %123 = arith.divf %121, %122 : vector<1x128xf32>
    %124 = arith.truncf %123 : vector<1x128xf32> to vector<1x128xbf16>
    %c0_93 = arith.constant 0 : index
    %c0_94 = arith.constant 0 : index
    %125 = vector.load %arg18[%c0_93, %c0_94] : memref<128x128xbf16, #tpu.memory_space<vmem>>, vector<128x128xbf16>
    %cst_95 = arith.constant dense<0.000000e+00> : vector<1x128xf32>
    %126 = tpu.matmul %124, %125, %cst_95 {dimension_numbers = #tpu.dot_dimension_numbers<[1], [0], [0], [1], [0, 0, 1, 1], [], []>} : vector<1x128xbf16>, vector<128x128xbf16>, vector<1x128xf32> -> vector<1x128xf32>
    %c0_96 = arith.constant 0 : index
    %c0_97 = arith.constant 0 : index
    %127 = vector.load %arg19[%c0_96, %c0_97] : memref<1x128xf32, #tpu.memory_space<vmem>>, vector<1x128xf32>
    %128 = arith.addf %126, %127 : vector<1x128xf32>
    %c0_98 = arith.constant 0 : index
    %c0_99 = arith.constant 0 : index
    %c0_100 = arith.constant 0 : index
    %129 = vector.load %arg20[%c0_98, %c0_99, %c0_100] : memref<1x1x128xf32, #tpu.memory_space<vmem>>, vector<1x1x128xf32>
    %130 = vector.shape_cast %129 : vector<1x1x128xf32> to vector<1x128xf32>
    %131 = vector.shape_cast %128 : vector<1x128xf32> to vector<1x1x128xf32>
    tpu.vector_store %arg20[%c0_98, %c0_99, %c0_100], %131 {strides = array<i32>} : memref<1x1x128xf32, #tpu.memory_space<vmem>>, vector<1x1x128xf32>,
    return
  }
  func.func @transform_0(%arg0: i32) -> (i32, i32, i32) {
    %c0_i32 = arith.constant 0 : i32
    %c0_i32_0 = arith.constant 0 : i32
    %c0_i32_1 = arith.constant 0 : i32
    return %arg0, %c0_i32, %c0_i32_0 : i32, i32, i32
  }
  func.func @transform_1(%arg0: i32) -> (i32, i32) {
    %c0_i32 = arith.constant 0 : i32
    %c0_i32_0 = arith.constant 0 : i32
    %c0_i32_1 = arith.constant 0 : i32
    return %c0_i32, %c0_i32_0 : i32, i32
  }
  func.func @transform_2(%arg0: i32) -> (i32, i32) {
    %c0_i32 = arith.constant 0 : i32
    %c0_i32_0 = arith.constant 0 : i32
    %c0_i32_1 = arith.constant 0 : i32
    return %c0_i32, %c0_i32_0 : i32, i32
  }
  func.func @transform_3(%arg0: i32) -> (i32, i32) {
    %c0_i32 = arith.constant 0 : i32
    %c0_i32_0 = arith.constant 0 : i32
    %c0_i32_1 = arith.constant 0 : i32
    return %c0_i32, %c0_i32_0 : i32, i32
  }
  func.func @transform_4(%arg0: i32) -> (i32, i32) {
    %c0_i32 = arith.constant 0 : i32
    %c0_i32_0 = arith.constant 0 : i32
    %c0_i32_1 = arith.constant 0 : i32
    return %c0_i32, %c0_i32_0 : i32, i32
  }
  func.func @transform_5(%arg0: i32) -> (i32, i32) {
    %c0_i32 = arith.constant 0 : i32
    %c0_i32_0 = arith.constant 0 : i32
    %c0_i32_1 = arith.constant 0 : i32
    return %c0_i32, %c0_i32_0 : i32, i32
  }
  func.func @transform_6(%arg0: i32) -> (i32, i32) {
    %c0_i32 = arith.constant 0 : i32
    %c0_i32_0 = arith.constant 0 : i32
    %c0_i32_1 = arith.constant 0 : i32
    return %c0_i32, %c0_i32_0 : i32, i32
  }
  func.func @transform_7(%arg0: i32) -> (i32, i32) {
    %c0_i32 = arith.constant 0 : i32
    %c0_i32_0 = arith.constant 0 : i32
    %c0_i32_1 = arith.constant 0 : i32
    return %c0_i32, %c0_i32_0 : i32, i32
  }
  func.func @transform_8(%arg0: i32) -> (i32, i32) {
    %c0_i32 = arith.constant 0 : i32
    %c0_i32_0 = arith.constant 0 : i32
    %c0_i32_1 = arith.constant 0 : i32
    return %c0_i32, %c0_i32_0 : i32, i32
  }
  func.func @transform_9(%arg0: i32) -> (i32, i32) {
    %c0_i32 = arith.constant 0 : i32
    %c0_i32_0 = arith.constant 0 : i32
    %c0_i32_1 = arith.constant 0 : i32
    return %c0_i32, %c0_i32_0 : i32, i32
  }
  func.func @transform_10(%arg0: i32) -> (i32, i32) {
    %c0_i32 = arith.constant 0 : i32
    %c0_i32_0 = arith.constant 0 : i32
    %c0_i32_1 = arith.constant 0 : i32
    return %c0_i32, %c0_i32_0 : i32, i32
  }
  func.func @transform_11(%arg0: i32) -> (i32, i32) {
    %c0_i32 = arith.constant 0 : i32
    %c0_i32_0 = arith.constant 0 : i32
    %c0_i32_1 = arith.constant 0 : i32
    return %c0_i32, %c0_i32_0 : i32, i32
  }
  func.func @transform_12(%arg0: i32) -> (i32, i32) {
    %c0_i32 = arith.constant 0 : i32
    %c0_i32_0 = arith.constant 0 : i32
    %c0_i32_1 = arith.constant 0 : i32
    return %c0_i32, %c0_i32_0 : i32, i32
  }
  func.func @transform_13(%arg0: i32) -> (i32, i32) {
    %c0_i32 = arith.constant 0 : i32
    %c0_i32_0 = arith.constant 0 : i32
    %c0_i32_1 = arith.constant 0 : i32
    return %c0_i32, %c0_i32_0 : i32, i32
  }
  func.func @transform_14(%arg0: i32) -> (i32, i32) {
    %c0_i32 = arith.constant 0 : i32
    %c0_i32_0 = arith.constant 0 : i32
    %c0_i32_1 = arith.constant 0 : i32
    return %c0_i32, %c0_i32_0 : i32, i32
  }
  func.func @transform_15(%arg0: i32) -> (i32, i32) {
    %c0_i32 = arith.constant 0 : i32
    %c0_i32_0 = arith.constant 0 : i32
    %c0_i32_1 = arith.constant 0 : i32
    return %c0_i32, %c0_i32_0 : i32, i32
  }
  func.func @transform_16(%arg0: i32) -> (i32, i32) {
    %c0_i32 = arith.constant 0 : i32
    %c0_i32_0 = arith.constant 0 : i32
    %c0_i32_1 = arith.constant 0 : i32
    return %c0_i32, %c0_i32_0 : i32, i32
  }
  func.func @transform_17(%arg0: i32) -> (i32, i32) {
    %c0_i32 = arith.constant 0 : i32
    %c0_i32_0 = arith.constant 0 : i32
    %c0_i32_1 = arith.constant 0 : i32
    return %c0_i32, %c0_i32_0 : i32, i32
  }
  func.func @transform_18(%arg0: i32) -> (i32, i32) {
    %c0_i32 = arith.constant 0 : i32
    %c0_i32_0 = arith.constant 0 : i32
    %c0_i32_1 = arith.constant 0 : i32
    return %c0_i32, %c0_i32_0 : i32, i32
  }
  func.func @transform_19(%arg0: i32) -> (i32, i32, i32) {
    %c0_i32 = arith.constant 0 : i32
    %c0_i32_0 = arith.constant 0 : i32
    %c0_i32_1 = arith.constant 0 : i32
    return %arg0, %c0_i32, %c0_i32_0 : i32, i32, i32
  }
}

</mosaic_0001>

<bundles_post_ra>
// kernel: landmarks_model_forward.5
= control target key start
LH: loop header
LB: loop body
LE: loop exit
PB: predicated region body
PF: predicated region fallthrough
CT: control target
= control target key end

     0   :  { %s3634_s15 = smov 0   ;;  %s4317_s0 = inlined_call_operand.vmem [shape: bf16[2,1024,256], index: 0, kind: input, shape index: {}]   ;;  %s4318_s1 = inlined_call_operand.vmem [shape: bf16[256,128], index: 1, kind: input, shape index: {}]   ;;  %s4319_s2 = inlined_call_operand.vmem [shape: f32[1,128], index: 2, kind: input, shape index: {}]   ;;  %s4320_s3 = inlined_call_operand.vmem [shape: f32[1,128], index: 3, kind: input, shape index: {}]   ;;  %s4321_s4 = inlined_call_operand.vmem [shape: bf16[2,1024,128], index: 4, kind: output, shape index: {}]  }
   0x1 LB: > { %s2455_s16 = sadd.s32 4294967295, %s3607_s15   ;;  %p2459_p0 = scmp.ge.s32.totalorder %s3607_s15, 1  ;;  %s3607_s15 = sphi %s3634_s15, %s14_s15  }
   0x2   : > { %p162_p1 = scmp.lt.s32.totalorder %s3607_s15, 3 }
   0x4   : > { %p163_p2 = pnand %p2459_p0, %p162_p1 }
   0x5   : > { %p188_p3 = scmp.lt.s32.totalorder (!%p163_p2), %s2455_s16, 1 }
   0x6   : > { %166 = sbr.rel (%p163_p2) target bundleno = 691 (0x2b3), region = 36 }
   0xb   : > { %v3179_v0 = vld [vmem:[%s4318_s1 + $0x38] sm:$0xff]  ;;  %v3178_v2 = vld [vmem:[%s4318_s1 + $0x30] sm:$0xff]  ;;  %v3177_v4 = vld [vmem:[%s4318_s1 + $0x28] sm:$0xff]  ;;  %s4323_s16 = smov (!%p188_p3, %s2455_s16), 1 }
   0xc   : > { %v3187_v1 = vld [vmem:[%s4318_s1 + $0x78] sm:$0xff]  ;;  %1094 = vmatpush.bf16.msra.mxu0 %v3179_v0  ;;  %3571 = vmatpush.bf16.msra.mxu2 %v3179_v0  ;;  %v3186_v3 = vld [vmem:[%s4318_s1 + $0x70] sm:$0xff]  ;;  %v3185_v5 = vld [vmem:[%s4318_s1 + $0x68] sm:$0xff]  ;;  %s3042_s17 = sshll.u32 %s4323_s16, 10  ;;  %s3043_s7 = sshll.u32 %s4323_s16, 9 }
   0xd   : > { %1423 = vmatpush.bf16.msra.mxu1 %v3187_v1  ;;  %3579 = vmatpush.bf16.msra.mxu3 %v3187_v1  ;;  %v3176_v6 = vld [vmem:[%s4318_s1 + $0x20] sm:$0xff]  ;;  %v3175_v8 = vld [vmem:[%s4318_s1 + $0x18] sm:$0xff]  ;;  %v3174_v10 = vld [vmem:[%s4318_s1 + $0x10] sm:$0xff]  ;;  %s3691_s22 = scalar_lea.vmem %s4317_s0, %s3042_s17  ;;  %s3801_s10 = scalar_lea.vmem %s4321_s4, %s3043_s7 }
   0xe   : > { %v3184_v7 = vld [vmem:[%s4318_s1 + $0x60] sm:$0xff]  ;;  %v3183_v9 = vld [vmem:[%s4318_s1 + $0x58] sm:$0xff]  ;;  %v3182_v11 = vld [vmem:[%s4318_s1 + $0x50] sm:$0xff] }
   0xf   : > { %v3173_v12 = vld [vmem:[%s4318_s1 + $0x8] sm:$0xff]  ;;  %v3172_v14 = vld [vmem:[%s4318_s1] sm:$0xff]  ;;  %v2474_v28 = vld [vmem:[%s3691_s22 + $0x10] sm:$0xf] }
  0x10   : > { %1095 = vmatpush.bf16.msra.mxu0 %v3178_v2  ;;  %3572 = vmatpush.bf16.msra.mxu2 %v3178_v2  ;;  %v3181_v13 = vld [vmem:[%s4318_s1 + $0x48] sm:$0xff]  ;;  %v3180_v15 = vld [vmem:[%s4318_s1 + $0x40] sm:$0xff]  ;;  %v3047_v29 = vld [vmem:[%s3691_s22 + $0x14] sm:$0xf0] }
  0x11   : > { %1424 = vmatpush.bf16.msra.mxu1 %v3186_v3  ;;  %3580 = vmatpush.bf16.msra.mxu3 %v3186_v3  ;;  %v2466_v16 = vld [vmem:[%s3691_s22] sm:$0xf]  ;;  %v3045_v17 = vld [vmem:[%s3691_s22 + $0x4] sm:$0xf0]  ;;  %v3044_v20 = vld [vmem:[%s3691_s22 + $0x4] sm:$0xf]  ;;  %v2475_v36 = vor.u32 %v3047_v29, %v2474_v28 }
  0x12   : > { %v2722_v18 = vld [vmem:[%s3691_s22 + $0x200] sm:$0xf]  ;;  %v3109_v19 = vld [vmem:[%s3691_s22 + $0x204] sm:$0xf0]  ;;  %v2468_v21 = vld [vmem:[%s3691_s22 + $0x8] sm:$0xf0]  ;;  %v2467_v24 = vor.u32 %v3045_v17, %v2466_v16 }
  0x13   : > { %v3108_v22 = vld [vmem:[%s3691_s22 + $0x204] sm:$0xf]  ;;  %v2724_v23 = vld [vmem:[%s3691_s22 + $0x208] sm:$0xf0]  ;;  %v2723_v25 = vor.u32 %v3109_v19, %v2722_v18  ;;  %v2471_v26 = vor.u32 %v3044_v20, %v2468_v21  ;;  %v2730_v30 = vld [vmem:[%s3691_s22 + $0x210] sm:$0xf] }
  0x14   : > { %1096 = vmatpush.bf16.msra.mxu0 %v3177_v4  ;;  %3573 = vmatpush.bf16.msra.mxu2 %v3177_v4  ;;  %v2727_v27 = vor.u32 %v3108_v22, %v2724_v23  ;;  %v3111_v31 = vld [vmem:[%s3691_s22 + $0x214] sm:$0xf0]  ;;  %v3046_v32 = vld [vmem:[%s3691_s22 + $0x14] sm:$0xf]  ;;  %v2476_v33 = vld [vmem:[%s3691_s22 + $0x18] sm:$0xf0] }
  0x15   : > { %1425 = vmatpush.bf16.msra.mxu1 %v3185_v5  ;;  %3581 = vmatpush.bf16.msra.mxu3 %v3185_v5  ;;  %v3110_v34 = vld [vmem:[%s3691_s22 + $0x214] sm:$0xf]  ;;  %v2732_v35 = vld [vmem:[%s3691_s22 + $0x218] sm:$0xf0]  ;;  %v2731_v37 = vor.u32 %v3111_v31, %v2730_v30  ;;  %v2479_v38 = vor.u32 %v3046_v32, %v2476_v33  ;;  %v2482_v40 = vld [vmem:[%s3691_s22 + $0x20] sm:$0xf] }
  0x16   : > { %v2735_v39 = vor.u32 %v3110_v34, %v2732_v35  ;;  %v3049_v41 = vld [vmem:[%s3691_s22 + $0x24] sm:$0xf0]  ;;  %v2738_v42 = vld [vmem:[%s3691_s22 + $0x220] sm:$0xf]  ;;  %v3048_v44 = vld [vmem:[%s3691_s22 + $0x24] sm:$0xf] }
  0x17   : > { %v3113_v43 = vld [vmem:[%s3691_s22 + $0x224] sm:$0xf0]  ;;  %v2484_v45 = vld [vmem:[%s3691_s22 + $0x28] sm:$0xf0]  ;;  %v3112_v46 = vld [vmem:[%s3691_s22 + $0x224] sm:$0xf]  ;;  %v2483_v48 = vor.u32 %v3049_v41, %v2482_v40 }
  0x18   : > { %1097 = vmatpush.bf16.msra.mxu0 %v3176_v6  ;;  %3574 = vmatpush.bf16.msra.mxu2 %v3176_v6  ;;  %v2740_v47 = vld [vmem:[%s3691_s22 + $0x228] sm:$0xf0]  ;;  %v2739_v49 = vor.u32 %v3113_v43, %v2738_v42  ;;  %v2487_v50 = vor.u32 %v3048_v44, %v2484_v45  ;;  %v2490_v52 = vld [vmem:[%s3691_s22 + $0x30] sm:$0xf]  ;;  %v3051_v53 = vld [vmem:[%s3691_s22 + $0x34] sm:$0xf0] }
  0x19   : > { %1426 = vmatpush.bf16.msra.mxu1 %v3184_v7  ;;  %3582 = vmatpush.bf16.msra.mxu3 %v3184_v7  ;;  %v2743_v51 = vor.u32 %v3112_v46, %v2740_v47  ;;  %v2746_v54 = vld [vmem:[%s3691_s22 + $0x230] sm:$0xf]  ;;  %v3115_v55 = vld [vmem:[%s3691_s22 + $0x234] sm:$0xf0]  ;;  %v3050_v56 = vld [vmem:[%s3691_s22 + $0x34] sm:$0xf]  ;;  %v2491_v60 = vor.u32 %v3051_v53, %v2490_v52 }
  0x1a   : > { %v2492_v57 = vld [vmem:[%s3691_s22 + $0x38] sm:$0xf0]  ;;  %v3114_v58 = vld [vmem:[%s3691_s22 + $0x234] sm:$0xf]  ;;  %v2747_v61 = vor.u32 %v3115_v55, %v2746_v54  ;;  %v2498_v0 = vld [vmem:[%s3691_s22 + $0x40] sm:$0xf] }
  0x1b   : > { %v2748_v59 = vld [vmem:[%s3691_s22 + $0x238] sm:$0xf0]  ;;  %v2495_v62 = vor.u32 %v3050_v56, %v2492_v57  ;;  %v3053_v1 = vld [vmem:[%s3691_s22 + $0x44] sm:$0xf0]  ;;  %v2754_v2 = vld [vmem:[%s3691_s22 + $0x240] sm:$0xf] }
  0x1c   : > { %1098 = vmatpush.bf16.msra.mxu0 %v3175_v8  ;;  %3575 = vmatpush.bf16.msra.mxu2 %v3175_v8  ;;  %v2751_v63 = vor.u32 %v3114_v58, %v2748_v59  ;;  %v3117_v3 = vld [vmem:[%s3691_s22 + $0x244] sm:$0xf0]  ;;  %v3052_v4 = vld [vmem:[%s3691_s22 + $0x44] sm:$0xf]  ;;  %v2500_v5 = vld [vmem:[%s3691_s22 + $0x48] sm:$0xf0]  ;;  %v2499_v8 = vor.u32 %v3053_v1, %v2498_v0 }
  0x1d   : > { %1427 = vmatpush.bf16.msra.mxu1 %v3183_v9  ;;  %3583 = vmatpush.bf16.msra.mxu3 %v3183_v9  ;;  %v3116_v6 = vld [vmem:[%s3691_s22 + $0x244] sm:$0xf]  ;;  %v2756_v7 = vld [vmem:[%s3691_s22 + $0x248] sm:$0xf0]  ;;  %v2755_v9 = vor.u32 %v3117_v3, %v2754_v2  ;;  %v3054_v16 = vld [vmem:[%s3691_s22 + $0x54] sm:$0xf] }
  0x1e   : > { %v2508_v17 = vld [vmem:[%s3691_s22 + $0x58] sm:$0xf0]  ;;  %v3118_v18 = vld [vmem:[%s3691_s22 + $0x254] sm:$0xf]  ;;  %v3056_v28 = vld [vmem:[%s3691_s22 + $0x64] sm:$0xf] }
  0x1f   : > { %v2764_v19 = vld [vmem:[%s3691_s22 + $0x258] sm:$0xf0]  ;;  %v2511_v22 = vor.u32 %v3054_v16, %v2508_v17  ;;  %v2516_v29 = vld [vmem:[%s3691_s22 + $0x68] sm:$0xf0]  ;;  %v3120_v30 = vld [vmem:[%s3691_s22 + $0x264] sm:$0xf] }
  0x20   : > { %1099 = vmatpush.bf16.msra.mxu0 %v3174_v10  ;;  %3576 = vmatpush.bf16.msra.mxu2 %v3174_v10  ;;  %v2503_v10 = vor.u32 %v3052_v4, %v2500_v5  ;;  %v2767_v23 = vor.u32 %v3118_v18, %v2764_v19  ;;  %v2772_v31 = vld [vmem:[%s3691_s22 + $0x268] sm:$0xf0]  ;;  %v2519_v34 = vor.u32 %v3056_v28, %v2516_v29  ;;  %v3058_v40 = vld [vmem:[%s3691_s22 + $0x74] sm:$0xf]  ;;  %v2524_v41 = vld [vmem:[%s3691_s22 + $0x78] sm:$0xf0] }
  0x21   : > { %1428 = vmatpush.bf16.msra.mxu1 %v3182_v11  ;;  %3584 = vmatpush.bf16.msra.mxu3 %v3182_v11  ;;  %v2759_v11 = vor.u32 %v3116_v6, %v2756_v7  ;;  %v2775_v35 = vor.u32 %v3120_v30, %v2772_v31  ;;  %v3122_v42 = vld [vmem:[%s3691_s22 + $0x274] sm:$0xf]  ;;  %v2780_v43 = vld [vmem:[%s3691_s22 + $0x278] sm:$0xf0]  ;;  %v2527_v46 = vor.u32 %v3058_v40, %v2524_v41  ;;  %v3060_v52 = vld [vmem:[%s3691_s22 + $0x84] sm:$0xf] }
  0x22   : > { %v2783_v47 = vor.u32 %v3122_v42, %v2780_v43  ;;  %v2532_v53 = vld [vmem:[%s3691_s22 + $0x88] sm:$0xf0]  ;;  %v3124_v54 = vld [vmem:[%s3691_s22 + $0x284] sm:$0xf]  ;;  %v3783_v3 = vld [vmem:[%s4320_s3] ss:$0 sm:$0xff] }
  0x23   : > { %v2788_v55 = vld [vmem:[%s3691_s22 + $0x288] sm:$0xf0]  ;;  %v2535_v59 = vor.u32 %v3060_v52, %v2532_v53  ;;  %v3126_v16 = vld [vmem:[%s3691_s22 + $0x294] sm:$0xf]  ;;  %v2796_v17 = vld [vmem:[%s3691_s22 + $0x298] sm:$0xf0] }
  0x24   : > { %1100 = vmatpush.bf16.msra.mxu0 %v3173_v12  ;;  %3577 = vmatpush.bf16.msra.mxu2 %v3173_v12  ;;  %v2506_v12 = vld [vmem:[%s3691_s22 + $0x50] sm:$0xf]  ;;  %v2799_v29 = vor.u32 %v3126_v16, %v2796_v17  ;;  %v3064_v52 = vld [vmem:[%s3691_s22 + $0xa4] sm:$0xf]  ;;  %v2548_v53 = vld [vmem:[%s3691_s22 + $0xa8] sm:$0xf0] }
  0x25   : > { %1429 = vmatpush.bf16.msra.mxu1 %v3181_v13  ;;  %3585 = vmatpush.bf16.msra.mxu3 %v3181_v13  ;;  %v3055_v13 = vld [vmem:[%s3691_s22 + $0x54] sm:$0xf0] }
  0x26   : > { %v2507_v20 = vor.u32 %v3055_v13, %v2506_v12  ;;  %v3127_v13 = vld [vmem:[%s3691_s22 + $0x294] sm:$0xf0] }
  0x28   : > { %1101 = vmatpush.bf16.msra.mxu0 %v3172_v14  ;;  %3578 = vmatpush.bf16.msra.mxu2 %v3172_v14  ;;  %v2762_v14 = vld [vmem:[%s3691_s22 + $0x250] sm:$0xf] }
  0x29   : > { %1430 = vmatpush.bf16.msra.mxu1 %v3180_v15  ;;  %3586 = vmatpush.bf16.msra.mxu3 %v3180_v15  ;;  %v3119_v15 = vld [vmem:[%s3691_s22 + $0x254] sm:$0xf0] }
  0x2a   : > { %v2763_v21 = vor.u32 %v3119_v15, %v2762_v14  ;;  %v3062_v14 = vld [vmem:[%s3691_s22 + $0x94] sm:$0xf]  ;;  %v2540_v15 = vld [vmem:[%s3691_s22 + $0x98] sm:$0xf0] }
  0x2b   : > { %1102 = vmatmul.bf16.vlgmr.msra.gmra.mxu0 %v2467_v24  ;;  %1262 = vmatmul.bf16.vlgmr.msra.gmra.mxu2 %v2723_v25  ;;  %v2514_v24 = vld [vmem:[%s3691_s22 + $0x60] sm:$0xf]  ;;  %v3057_v25 = vld [vmem:[%s3691_s22 + $0x64] sm:$0xf0] }
  0x2c   : > { %1431 = vmatmul.bf16.vlgmr.msra.gmra.mxu1 %v2471_v26  ;;  %1591 = vmatmul.bf16.vlgmr.msra.gmra.mxu3 %v2727_v27  ;;  %v2770_v26 = vld [vmem:[%s3691_s22 + $0x260] sm:$0xf]  ;;  %v3121_v27 = vld [vmem:[%s3691_s22 + $0x264] sm:$0xf0]  ;;  %v2515_v32 = vor.u32 %v3057_v25, %v2514_v24  ;;  %v2543_v24 = vor.u32 %v3062_v14, %v2540_v15 }
  0x2d   : > { %v2771_v33 = vor.u32 %v3121_v27, %v2770_v26 }
  0x3b   : > { %1107 = vmatmul.bf16.gmra.mxu0 %v2475_v36  ;;  %1267 = vmatmul.bf16.gmra.mxu2 %v2731_v37  ;;  %v2522_v36 = vld [vmem:[%s3691_s22 + $0x70] sm:$0xf]  ;;  %v3059_v37 = vld [vmem:[%s3691_s22 + $0x74] sm:$0xf0] }
  0x3c   : > { %1436 = vmatmul.bf16.gmra.mxu1 %v2479_v38  ;;  %1596 = vmatmul.bf16.gmra.mxu3 %v2735_v39  ;;  %v2778_v38 = vld [vmem:[%s3691_s22 + $0x270] sm:$0xf]  ;;  %v3123_v39 = vld [vmem:[%s3691_s22 + $0x274] sm:$0xf0]  ;;  %v2523_v44 = vor.u32 %v3059_v37, %v2522_v36 }
  0x3d   : > { %v2779_v45 = vor.u32 %v3123_v39, %v2778_v38 }
  0x4b   : > { %1112 = vmatmul.bf16.gmra.mxu0 %v2483_v48  ;;  %1272 = vmatmul.bf16.gmra.mxu2 %v2739_v49  ;;  %v2530_v48 = vld [vmem:[%s3691_s22 + $0x80] sm:$0xf]  ;;  %v3061_v49 = vld [vmem:[%s3691_s22 + $0x84] sm:$0xf0] }
  0x4c   : > { %1441 = vmatmul.bf16.gmra.mxu1 %v2487_v50  ;;  %1601 = vmatmul.bf16.gmra.mxu3 %v2743_v51  ;;  %v2786_v50 = vld [vmem:[%s3691_s22 + $0x280] sm:$0xf]  ;;  %v3125_v51 = vld [vmem:[%s3691_s22 + $0x284] sm:$0xf0]  ;;  %v2531_v56 = vor.u32 %v3061_v49, %v2530_v48 }
  0x4d   : > { %v2787_v57 = vor.u32 %v3125_v51, %v2786_v50  ;;  %v2802_v48 = vld [vmem:[%s3691_s22 + $0x2a0] sm:$0xf]  ;;  %v3129_v51 = vld [vmem:[%s3691_s22 + $0x2a4] sm:$0xf0] }
  0x5b   : > { %1117 = vmatmul.bf16.gmra.mxu0 %v2491_v60  ;;  %1277 = vmatmul.bf16.gmra.mxu2 %v2747_v61  ;;  %v2791_v60 = vor.u32 %v3124_v54, %v2788_v55  ;;  %v3128_v54 = vld [vmem:[%s3691_s22 + $0x2a4] sm:$0xf]  ;;  %v2804_v55 = vld [vmem:[%s3691_s22 + $0x2a8] sm:$0xf0] }
  0x5c   : > { %1446 = vmatmul.bf16.gmra.mxu1 %v2495_v62  ;;  %1606 = vmatmul.bf16.gmra.mxu3 %v2751_v63  ;;  %v3777_v63 = vld [vmem:[%s4319_s2] ss:$0 sm:$0xff] }
  0x6b   : > { %1122 = vmatmul.bf16.gmra.mxu0 %v2499_v8  ;;  %1282 = vmatmul.bf16.gmra.mxu2 %v2755_v9  ;;  %v2538_v8 = vld [vmem:[%s3691_s22 + $0x90] sm:$0xf]  ;;  %v3063_v9 = vld [vmem:[%s3691_s22 + $0x94] sm:$0xf0] }
  0x6c   : > { %1451 = vmatmul.bf16.gmra.mxu1 %v2503_v10  ;;  %1611 = vmatmul.bf16.gmra.mxu3 %v2759_v11  ;;  %v2794_v10 = vld [vmem:[%s3691_s22 + $0x290] sm:$0xf] }
  0x7b   : > { %1127 = vmatmul.bf16.gmra.mxu0 %v2507_v20  ;;  %1287 = vmatmul.bf16.gmra.mxu2 %v2763_v21 }
  0x7c   : > { %1456 = vmatmul.bf16.gmra.mxu1 %v2511_v22  ;;  %1616 = vmatmul.bf16.gmra.mxu3 %v2767_v23  ;;  %v2539_v22 = vor.u32 %v3063_v9, %v2538_v8  ;;  %v2795_v23 = vor.u32 %v3127_v13, %v2794_v10 }
  0x8b   : > { %1132 = vmatmul.bf16.gmra.mxu0 %v2515_v32  ;;  %1292 = vmatmul.bf16.gmra.mxu2 %v2771_v33 }
  0x8c   : > { %1461 = vmatmul.bf16.gmra.mxu1 %v2519_v34  ;;  %1621 = vmatmul.bf16.gmra.mxu3 %v2775_v35 }
  0x9b   : > { %1137 = vmatmul.bf16.gmra.mxu0 %v2523_v44  ;;  %1297 = vmatmul.bf16.gmra.mxu2 %v2779_v45 }
  0x9c   : > { %1466 = vmatmul.bf16.gmra.mxu1 %v2527_v46  ;;  %1626 = vmatmul.bf16.gmra.mxu3 %v2783_v47  ;;  %v2546_v46 = vld [vmem:[%s3691_s22 + $0xa0] sm:$0xf]  ;;  %v3065_v47 = vld [vmem:[%s3691_s22 + $0xa4] sm:$0xf0] }
  0xa8   : > { %v1103_v58 = vpop.f32.mrf.mxu0 }
  0xa9   : > { %v1432_v61 = vpop.f32.mrf.mxu1 }
  0xaa   : > { %v1433_v62 = vadd.f32 %v1432_v61, %v1103_v58  ;;  %v2803_v61 = vor.u32 %v3129_v51, %v2802_v48 }
  0xab   : > { %1142 = vmatmul.bf16.gmra.mxu0 %v2531_v56  ;;  %1302 = vmatmul.bf16.gmra.mxu2 %v2787_v57 }
  0xac   : > { %1471 = vmatmul.bf16.gmra.mxu1 %v2535_v59  ;;  %1631 = vmatmul.bf16.gmra.mxu3 %v2791_v60  ;;  %v1756_v2 = vmul.f32 %v3777_v63, %v1433_v62  ;;  %v2547_v60 = vor.u32 %v3065_v47, %v2546_v46  ;;  %v2551_v62 = vor.u32 %v3064_v52, %v2548_v53 }
  0xae   : > { %v1263_v0 = vpop.f32.mrf.mxu2  ;;  %v1888_v11 = vadd.f32 %v3783_v3, %v1756_v2 }
  0xaf   : > { %v1592_v1 = vpop.f32.mrf.mxu3 }
  0xb0   : > { %v1105_v4 = vpop.f32.mrf.mxu0  ;;  %v1593_v6 = vadd.f32 %v1592_v1, %v1263_v0  ;;  %v2016_v25 = vmax.f32 %v1888_v11, 0.0 }
  0xb1   : > { %v1434_v5 = vpop.f32.mrf.mxu1 }
  0xb2   : > { %v1435_v7 = vadd.f32 %v1434_v5, %v1105_v4  ;;  %v1820_v18 = vmul.f32 %v3777_v63, %v1593_v6  ;;  %v2807_v5 = vor.u32 %v3128_v54, %v2804_v55 }
  0xb4   : > { %v1757_v12 = vmul.f32 %v3777_v63, %v1435_v7  ;;  %v1952_v31 = vadd.f32 %v3783_v3, %v1820_v18 }
  0xb6   : > { %v1889_v19 = vadd.f32 %v3783_v3, %v1757_v12  ;;  %v1265_v20 = vpop.f32.mrf.mxu2  ;;  %v2080_v36 = vmax.f32 %v1952_v31, 0.0  ;;  %v2812_v31 = vld [vmem:[%s3691_s22 + $0x2b8] sm:$0xf0] }
  0xb7   : > { %v1594_v21 = vpop.f32.mrf.mxu3 }
  0xb8   : > { %v2017_v26 = vmax.f32 %v1889_v19, 0.0  ;;  %v1595_v27 = vadd.f32 %v1594_v21, %v1265_v20  ;;  %v1108_v28 = vpop.f32.mrf.mxu0 }
  0xb9   : > { %v1437_v30 = vpop.f32.mrf.mxu1 }
  0xba   : > { %v3191_v32 = vpack.c.bf16 %v2017_v26, %v2016_v25  ;;  %v1821_v33 = vmul.f32 %v3777_v63, %v1595_v27  ;;  %v1438_v35 = vadd.f32 %v1437_v30, %v1108_v28  ;;  %v3131_v27 = vld [vmem:[%s3691_s22 + $0x2b4] sm:$0xf0]  ;;  %v3066_v28 = vld [vmem:[%s3691_s22 + $0xb4] sm:$0xf] }
  0xbb   : > { %1147 = vmatmul.bf16.gmra.mxu0 %v2539_v22  ;;  %1307 = vmatmul.bf16.gmra.mxu2 %v2795_v23  ;;  %v2554_v22 = vld [vmem:[%s3691_s22 + $0xb0] sm:$0xf]  ;;  %v3067_v23 = vld [vmem:[%s3691_s22 + $0xb4] sm:$0xf0]  ;;  %v3130_v30 = vld [vmem:[%s3691_s22 + $0x2b4] sm:$0xf] }
  0xbc   : > { %3192 = vst [vmem:[%s3801_s10] sm:$0xff] %v3191_v32   ;;  %v1953_v34 = vadd.f32 %v3783_v3, %v1821_v33  ;;  %1476 = vmatmul.bf16.gmra.mxu1 %v2543_v24  ;;  %1636 = vmatmul.bf16.gmra.mxu3 %v2799_v29  ;;  %v1758_v41 = vmul.f32 %v3777_v63, %v1438_v35  ;;  %v2810_v24 = vld [vmem:[%s3691_s22 + $0x2b0] sm:$0xf]  ;;  %v2556_v29 = vld [vmem:[%s3691_s22 + $0xb8] sm:$0xf0] }
  0xbe   : > { %v2081_v37 = vmax.f32 %v1953_v34, 0.0  ;;  %v1268_v38 = vpop.f32.mrf.mxu2  ;;  %v1890_v49 = vadd.f32 %v3783_v3, %v1758_v41 }
  0xbf   : > { %v1597_v39 = vpop.f32.mrf.mxu3 }
  0xc0   : > { %v3351_v40 = vpack.c.bf16 %v2081_v37, %v2080_v36  ;;  %v1110_v42 = vpop.f32.mrf.mxu0  ;;  %v1598_v44 = vadd.f32 %v1597_v39, %v1268_v38  ;;  %v2018_v0 = vmax.f32 %v1890_v49, 0.0  ;;  %v2555_v36 = vor.u32 %v3067_v23, %v2554_v22 }
  0xc1   : > { %v1439_v43 = vpop.f32.mrf.mxu1  ;;  %v2811_v37 = vor.u32 %v3131_v27, %v2810_v24  ;;  %v2559_v38 = vor.u32 %v3066_v28, %v2556_v29 }
  0xc2   : > { %3539 = vst [vmem:[%s3801_s10 + $0x100] sm:$0xff] %v3351_v40   ;;  %v1440_v45 = vadd.f32 %v1439_v43, %v1110_v42  ;;  %v1822_v56 = vmul.f32 %v3777_v63, %v1598_v44  ;;  %v2815_v43 = vor.u32 %v3130_v30, %v2812_v31 }
  0xc4   : > { %v1759_v50 = vmul.f32 %v3777_v63, %v1440_v45  ;;  %v1954_v7 = vadd.f32 %v3783_v3, %v1822_v56 }
  0xc6   : > { %v1891_v57 = vadd.f32 %v3783_v3, %v1759_v50  ;;  %v1270_v58 = vpop.f32.mrf.mxu2  ;;  %v2082_v12 = vmax.f32 %v1954_v7, 0.0  ;;  %v2820_v7 = vld [vmem:[%s3691_s22 + $0x2c8] sm:$0xf0] }
  0xc7   : > { %v1599_v59 = vpop.f32.mrf.mxu3 }
  0xc8   : > { %v2019_v1 = vmax.f32 %v1891_v57, 0.0  ;;  %v1600_v2 = vadd.f32 %v1599_v59, %v1270_v58  ;;  %v1113_v4 = vpop.f32.mrf.mxu0 }
  0xc9   : > { %v1442_v6 = vpop.f32.mrf.mxu1 }
  0xca   : > { %v3196_v8 = vpack.c.bf16 %v2019_v1, %v2018_v0  ;;  %v1823_v9 = vmul.f32 %v3777_v63, %v1600_v2  ;;  %v1443_v11 = vadd.f32 %v1442_v6, %v1113_v4  ;;  %v3133_v2 = vld [vmem:[%s3691_s22 + $0x2c4] sm:$0xf0]  ;;  %v3068_v4 = vld [vmem:[%s3691_s22 + $0xc4] sm:$0xf] }
  0xcb   : > { %1152 = vmatmul.bf16.gmra.mxu0 %v2547_v60  ;;  %1312 = vmatmul.bf16.gmra.mxu2 %v2803_v61  ;;  %v2562_v60 = vld [vmem:[%s3691_s22 + $0xc0] sm:$0xf]  ;;  %v3069_v61 = vld [vmem:[%s3691_s22 + $0xc4] sm:$0xf0]  ;;  %v3132_v6 = vld [vmem:[%s3691_s22 + $0x2c4] sm:$0xf] }
  0xcc   : > { %3508 = vst [vmem:[%s3801_s10 + $0x8] sm:$0xff] %v3196_v8   ;;  %v1955_v10 = vadd.f32 %v3783_v3, %v1823_v9  ;;  %1481 = vmatmul.bf16.gmra.mxu1 %v2551_v62  ;;  %1641 = vmatmul.bf16.gmra.mxu3 %v2807_v5  ;;  %v1760_v17 = vmul.f32 %v3777_v63, %v1443_v11  ;;  %v2818_v62 = vld [vmem:[%s3691_s22 + $0x2c0] sm:$0xf]  ;;  %v2564_v5 = vld [vmem:[%s3691_s22 + $0xc8] sm:$0xf0] }
  0xce   : > { %v2083_v13 = vmax.f32 %v1955_v10, 0.0  ;;  %v1273_v14 = vpop.f32.mrf.mxu2  ;;  %v1892_v25 = vadd.f32 %v3783_v3, %v1760_v17 }
  0xcf   : > { %v1602_v15 = vpop.f32.mrf.mxu3 }
  0xd0   : > { %v3356_v16 = vpack.c.bf16 %v2083_v13, %v2082_v12  ;;  %v1115_v18 = vpop.f32.mrf.mxu0  ;;  %v1603_v20 = vadd.f32 %v1602_v15, %v1273_v14  ;;  %v2020_v39 = vmax.f32 %v1892_v25, 0.0  ;;  %v2563_v12 = vor.u32 %v3069_v61, %v2562_v60 }
  0xd1   : > { %v1444_v19 = vpop.f32.mrf.mxu1  ;;  %v2819_v13 = vor.u32 %v3133_v2, %v2818_v62  ;;  %v2567_v14 = vor.u32 %v3068_v4, %v2564_v5 }
  0xd2   : > { %3540 = vst [vmem:[%s3801_s10 + $0x108] sm:$0xff] %v3356_v16   ;;  %v1445_v21 = vadd.f32 %v1444_v19, %v1115_v18  ;;  %v1824_v32 = vmul.f32 %v3777_v63, %v1603_v20  ;;  %v2823_v19 = vor.u32 %v3132_v6, %v2820_v7 }
  0xd4   : > { %v1761_v26 = vmul.f32 %v3777_v63, %v1445_v21  ;;  %v1956_v45 = vadd.f32 %v3783_v3, %v1824_v32 }
  0xd6   : > { %v1893_v33 = vadd.f32 %v3783_v3, %v1761_v26  ;;  %v1275_v34 = vpop.f32.mrf.mxu2  ;;  %v2084_v50 = vmax.f32 %v1956_v45, 0.0  ;;  %v2828_v45 = vld [vmem:[%s3691_s22 + $0x2d8] sm:$0xf0] }
  0xd7   : > { %v1604_v35 = vpop.f32.mrf.mxu3 }
  0xd8   : > { %v2021_v40 = vmax.f32 %v1893_v33, 0.0  ;;  %v1605_v41 = vadd.f32 %v1604_v35, %v1275_v34  ;;  %v1118_v42 = vpop.f32.mrf.mxu0 }
  0xd9   : > { %v1447_v44 = vpop.f32.mrf.mxu1 }
  0xda   : > { %v3201_v46 = vpack.c.bf16 %v2021_v40, %v2020_v39  ;;  %v1825_v47 = vmul.f32 %v3777_v63, %v1605_v41  ;;  %v1448_v49 = vadd.f32 %v1447_v44, %v1118_v42  ;;  %v3135_v41 = vld [vmem:[%s3691_s22 + $0x2d4] sm:$0xf0]  ;;  %v3070_v42 = vld [vmem:[%s3691_s22 + $0xd4] sm:$0xf] }
  0xdb   : > { %1157 = vmatmul.bf16.gmra.mxu0 %v2555_v36  ;;  %1317 = vmatmul.bf16.gmra.mxu2 %v2811_v37  ;;  %v2570_v36 = vld [vmem:[%s3691_s22 + $0xd0] sm:$0xf]  ;;  %v3071_v37 = vld [vmem:[%s3691_s22 + $0xd4] sm:$0xf0]  ;;  %v3134_v44 = vld [vmem:[%s3691_s22 + $0x2d4] sm:$0xf] }
  0xdc   : > { %3509 = vst [vmem:[%s3801_s10 + $0x10] sm:$0xff] %v3201_v46   ;;  %v1957_v48 = vadd.f32 %v3783_v3, %v1825_v47  ;;  %1486 = vmatmul.bf16.gmra.mxu1 %v2559_v38  ;;  %1646 = vmatmul.bf16.gmra.mxu3 %v2815_v43  ;;  %v1762_v55 = vmul.f32 %v3777_v63, %v1448_v49  ;;  %v2826_v38 = vld [vmem:[%s3691_s22 + $0x2d0] sm:$0xf]  ;;  %v2572_v43 = vld [vmem:[%s3691_s22 + $0xd8] sm:$0xf0] }
  0xde   : > { %v2085_v51 = vmax.f32 %v1957_v48, 0.0  ;;  %v1278_v52 = vpop.f32.mrf.mxu2  ;;  %v1894_v0 = vadd.f32 %v3783_v3, %v1762_v55 }
  0xdf   : > { %v1607_v53 = vpop.f32.mrf.mxu3 }
  0xe0   : > { %v3361_v54 = vpack.c.bf16 %v2085_v51, %v2084_v50  ;;  %v1120_v56 = vpop.f32.mrf.mxu0  ;;  %v1608_v58 = vadd.f32 %v1607_v53, %v1278_v52  ;;  %v2022_v15 = vmax.f32 %v1894_v0, 0.0  ;;  %v2571_v50 = vor.u32 %v3071_v37, %v2570_v36 }
  0xe1   : > { %v1449_v57 = vpop.f32.mrf.mxu1  ;;  %v2827_v51 = vor.u32 %v3135_v41, %v2826_v38  ;;  %v2575_v52 = vor.u32 %v3070_v42, %v2572_v43 }
  0xe2   : > { %3541 = vst [vmem:[%s3801_s10 + $0x110] sm:$0xff] %v3361_v54   ;;  %v1450_v59 = vadd.f32 %v1449_v57, %v1120_v56  ;;  %v1826_v8 = vmul.f32 %v3777_v63, %v1608_v58  ;;  %v2831_v57 = vor.u32 %v3134_v44, %v2828_v45 }
  0xe4   : > { %v1763_v1 = vmul.f32 %v3777_v63, %v1450_v59  ;;  %v1958_v21 = vadd.f32 %v3783_v3, %v1826_v8 }
  0xe6   : > { %v1895_v9 = vadd.f32 %v3783_v3, %v1763_v1  ;;  %v1280_v10 = vpop.f32.mrf.mxu2  ;;  %v2086_v26 = vmax.f32 %v1958_v21, 0.0  ;;  %v2836_v21 = vld [vmem:[%s3691_s22 + $0x2e8] sm:$0xf0] }
  0xe7   : > { %v1609_v11 = vpop.f32.mrf.mxu3 }
  0xe8   : > { %v2023_v16 = vmax.f32 %v1895_v9, 0.0  ;;  %v1610_v17 = vadd.f32 %v1609_v11, %v1280_v10  ;;  %v1123_v18 = vpop.f32.mrf.mxu0 }
  0xe9   : > { %v1452_v20 = vpop.f32.mrf.mxu1 }
  0xea   : > { %v3206_v22 = vpack.c.bf16 %v2023_v16, %v2022_v15  ;;  %v1827_v23 = vmul.f32 %v3777_v63, %v1610_v17  ;;  %v1453_v25 = vadd.f32 %v1452_v20, %v1123_v18  ;;  %v3137_v17 = vld [vmem:[%s3691_s22 + $0x2e4] sm:$0xf0]  ;;  %v3072_v18 = vld [vmem:[%s3691_s22 + $0xe4] sm:$0xf] }
  0xeb   : > { %1162 = vmatmul.bf16.gmra.mxu0 %v2563_v12  ;;  %1322 = vmatmul.bf16.gmra.mxu2 %v2819_v13  ;;  %v2578_v12 = vld [vmem:[%s3691_s22 + $0xe0] sm:$0xf]  ;;  %v3073_v13 = vld [vmem:[%s3691_s22 + $0xe4] sm:$0xf0]  ;;  %v3136_v20 = vld [vmem:[%s3691_s22 + $0x2e4] sm:$0xf] }
  0xec   : > { %3510 = vst [vmem:[%s3801_s10 + $0x18] sm:$0xff] %v3206_v22   ;;  %v1959_v24 = vadd.f32 %v3783_v3, %v1827_v23  ;;  %1491 = vmatmul.bf16.gmra.mxu1 %v2567_v14  ;;  %1651 = vmatmul.bf16.gmra.mxu3 %v2823_v19  ;;  %v1764_v31 = vmul.f32 %v3777_v63, %v1453_v25  ;;  %v2834_v14 = vld [vmem:[%s3691_s22 + $0x2e0] sm:$0xf]  ;;  %v2580_v19 = vld [vmem:[%s3691_s22 + $0xe8] sm:$0xf0] }
  0xee   : > { %v2087_v27 = vmax.f32 %v1959_v24, 0.0  ;;  %v1283_v28 = vpop.f32.mrf.mxu2  ;;  %v1896_v39 = vadd.f32 %v3783_v3, %v1764_v31 }
  0xef   : > { %v1612_v29 = vpop.f32.mrf.mxu3 }
  0xf0   : > { %v3366_v30 = vpack.c.bf16 %v2087_v27, %v2086_v26  ;;  %v1125_v32 = vpop.f32.mrf.mxu0  ;;  %v1613_v34 = vadd.f32 %v1612_v29, %v1283_v28  ;;  %v2024_v53 = vmax.f32 %v1896_v39, 0.0  ;;  %v2579_v26 = vor.u32 %v3073_v13, %v2578_v12 }
  0xf1   : > { %v1454_v33 = vpop.f32.mrf.mxu1  ;;  %v2835_v27 = vor.u32 %v3137_v17, %v2834_v14  ;;  %v2583_v28 = vor.u32 %v3072_v18, %v2580_v19 }
  0xf2   : > { %3542 = vst [vmem:[%s3801_s10 + $0x118] sm:$0xff] %v3366_v30   ;;  %v1455_v35 = vadd.f32 %v1454_v33, %v1125_v32  ;;  %v1828_v46 = vmul.f32 %v3777_v63, %v1613_v34  ;;  %v2839_v33 = vor.u32 %v3136_v20, %v2836_v21 }
  0xf4   : > { %v1765_v40 = vmul.f32 %v3777_v63, %v1455_v35  ;;  %v1960_v59 = vadd.f32 %v3783_v3, %v1828_v46 }
  0xf6   : > { %v1897_v47 = vadd.f32 %v3783_v3, %v1765_v40  ;;  %v1285_v48 = vpop.f32.mrf.mxu2  ;;  %v2088_v1 = vmax.f32 %v1960_v59, 0.0  ;;  %v2844_v59 = vld [vmem:[%s3691_s22 + $0x2f8] sm:$0xf0] }
  0xf7   : > { %v1614_v49 = vpop.f32.mrf.mxu3 }
  0xf8   : > { %v2025_v54 = vmax.f32 %v1897_v47, 0.0  ;;  %v1615_v55 = vadd.f32 %v1614_v49, %v1285_v48  ;;  %v1128_v56 = vpop.f32.mrf.mxu0 }
  0xf9   : > { %v1457_v58 = vpop.f32.mrf.mxu1 }
  0xfa   : > { %v3211_v60 = vpack.c.bf16 %v2025_v54, %v2024_v53  ;;  %v1829_v61 = vmul.f32 %v3777_v63, %v1615_v55  ;;  %v1458_v0 = vadd.f32 %v1457_v58, %v1128_v56  ;;  %v3139_v55 = vld [vmem:[%s3691_s22 + $0x2f4] sm:$0xf0]  ;;  %v3074_v56 = vld [vmem:[%s3691_s22 + $0xf4] sm:$0xf] }
  0xfb   : > { %1167 = vmatmul.bf16.gmra.mxu0 %v2571_v50  ;;  %1327 = vmatmul.bf16.gmra.mxu2 %v2827_v51  ;;  %v2586_v50 = vld [vmem:[%s3691_s22 + $0xf0] sm:$0xf]  ;;  %v3075_v51 = vld [vmem:[%s3691_s22 + $0xf4] sm:$0xf0]  ;;  %v3138_v58 = vld [vmem:[%s3691_s22 + $0x2f4] sm:$0xf] }
  0xfc   : > { %3511 = vst [vmem:[%s3801_s10 + $0x20] sm:$0xff] %v3211_v60   ;;  %v1961_v62 = vadd.f32 %v3783_v3, %v1829_v61  ;;  %1496 = vmatmul.bf16.gmra.mxu1 %v2575_v52  ;;  %1656 = vmatmul.bf16.gmra.mxu3 %v2831_v57  ;;  %v1766_v7 = vmul.f32 %v3777_v63, %v1458_v0  ;;  %v2842_v52 = vld [vmem:[%s3691_s22 + $0x2f0] sm:$0xf]  ;;  %v2588_v57 = vld [vmem:[%s3691_s22 + $0xf8] sm:$0xf0] }
  0xfe   : > { %v2089_v2 = vmax.f32 %v1961_v62, 0.0  ;;  %v1288_v4 = vpop.f32.mrf.mxu2  ;;  %v1898_v15 = vadd.f32 %v3783_v3, %v1766_v7 }
  0xff   : > { %v1617_v5 = vpop.f32.mrf.mxu3 }
 0x100   : > { %v3371_v6 = vpack.c.bf16 %v2089_v2, %v2088_v1  ;;  %v1130_v8 = vpop.f32.mrf.mxu0  ;;  %v1618_v10 = vadd.f32 %v1617_v5, %v1288_v4  ;;  %v2026_v29 = vmax.f32 %v1898_v15, 0.0  ;;  %v2587_v1 = vor.u32 %v3075_v51, %v2586_v50 }
 0x101   : > { %v1459_v9 = vpop.f32.mrf.mxu1  ;;  %v2843_v2 = vor.u32 %v3139_v55, %v2842_v52  ;;  %v2591_v4 = vor.u32 %v3074_v56, %v2588_v57 }
 0x102   : > { %3543 = vst [vmem:[%s3801_s10 + $0x120] sm:$0xff] %v3371_v6   ;;  %v1460_v11 = vadd.f32 %v1459_v9, %v1130_v8  ;;  %v1830_v22 = vmul.f32 %v3777_v63, %v1618_v10  ;;  %v2847_v9 = vor.u32 %v3138_v58, %v2844_v59 }
 0x104   : > { %v1767_v16 = vmul.f32 %v3777_v63, %v1460_v11  ;;  %v1962_v35 = vadd.f32 %v3783_v3, %v1830_v22 }
 0x106   : > { %v1899_v23 = vadd.f32 %v3783_v3, %v1767_v16  ;;  %v1290_v24 = vpop.f32.mrf.mxu2  ;;  %v2090_v40 = vmax.f32 %v1962_v35, 0.0  ;;  %v2852_v35 = vld [vmem:[%s3691_s22 + $0x308] sm:$0xf0] }
 0x107   : > { %v1619_v25 = vpop.f32.mrf.mxu3 }
 0x108   : > { %v2027_v30 = vmax.f32 %v1899_v23, 0.0  ;;  %v1620_v31 = vadd.f32 %v1619_v25, %v1290_v24  ;;  %v1133_v32 = vpop.f32.mrf.mxu0 }
 0x109   : > { %v1462_v34 = vpop.f32.mrf.mxu1 }
 0x10a   : > { %v3216_v36 = vpack.c.bf16 %v2027_v30, %v2026_v29  ;;  %v1831_v37 = vmul.f32 %v3777_v63, %v1620_v31  ;;  %v1463_v39 = vadd.f32 %v1462_v34, %v1133_v32  ;;  %v3141_v31 = vld [vmem:[%s3691_s22 + $0x304] sm:$0xf0]  ;;  %v3076_v32 = vld [vmem:[%s3691_s22 + $0x104] sm:$0xf] }
 0x10b   : > { %1172 = vmatmul.bf16.gmra.mxu0 %v2579_v26  ;;  %1332 = vmatmul.bf16.gmra.mxu2 %v2835_v27  ;;  %v2594_v26 = vld [vmem:[%s3691_s22 + $0x100] sm:$0xf]  ;;  %v3077_v27 = vld [vmem:[%s3691_s22 + $0x104] sm:$0xf0]  ;;  %v3140_v34 = vld [vmem:[%s3691_s22 + $0x304] sm:$0xf] }
 0x10c   : > { %3512 = vst [vmem:[%s3801_s10 + $0x28] sm:$0xff] %v3216_v36   ;;  %v1963_v38 = vadd.f32 %v3783_v3, %v1831_v37  ;;  %1501 = vmatmul.bf16.gmra.mxu1 %v2583_v28  ;;  %1661 = vmatmul.bf16.gmra.mxu3 %v2839_v33  ;;  %v1768_v45 = vmul.f32 %v3777_v63, %v1463_v39  ;;  %v2850_v28 = vld [vmem:[%s3691_s22 + $0x300] sm:$0xf]  ;;  %v2596_v33 = vld [vmem:[%s3691_s22 + $0x108] sm:$0xf0] }
 0x10e   : > { %v2091_v41 = vmax.f32 %v1963_v38, 0.0  ;;  %v1293_v42 = vpop.f32.mrf.mxu2  ;;  %v1900_v53 = vadd.f32 %v3783_v3, %v1768_v45 }
 0x10f   : > { %v1622_v43 = vpop.f32.mrf.mxu3 }
 0x110   : > { %v3376_v44 = vpack.c.bf16 %v2091_v41, %v2090_v40  ;;  %v1135_v46 = vpop.f32.mrf.mxu0  ;;  %v1623_v48 = vadd.f32 %v1622_v43, %v1293_v42  ;;  %v2028_v5 = vmax.f32 %v1900_v53, 0.0  ;;  %v2595_v40 = vor.u32 %v3077_v27, %v2594_v26 }
 0x111   : > { %v1464_v47 = vpop.f32.mrf.mxu1  ;;  %v2851_v41 = vor.u32 %v3141_v31, %v2850_v28  ;;  %v2599_v42 = vor.u32 %v3076_v32, %v2596_v33 }
 0x112   : > { %3544 = vst [vmem:[%s3801_s10 + $0x128] sm:$0xff] %v3376_v44   ;;  %v1465_v49 = vadd.f32 %v1464_v47, %v1135_v46  ;;  %v1832_v60 = vmul.f32 %v3777_v63, %v1623_v48  ;;  %v2855_v47 = vor.u32 %v3140_v34, %v2852_v35 }
 0x114   : > { %v1769_v54 = vmul.f32 %v3777_v63, %v1465_v49  ;;  %v1964_v11 = vadd.f32 %v3783_v3, %v1832_v60 }
 0x116   : > { %v1901_v61 = vadd.f32 %v3783_v3, %v1769_v54  ;;  %v1295_v62 = vpop.f32.mrf.mxu2  ;;  %v2092_v16 = vmax.f32 %v1964_v11, 0.0  ;;  %v2860_v11 = vld [vmem:[%s3691_s22 + $0x318] sm:$0xf0] }
 0x117   : > { %v1624_v0 = vpop.f32.mrf.mxu3 }
 0x118   : > { %v2029_v6 = vmax.f32 %v1901_v61, 0.0  ;;  %v1625_v7 = vadd.f32 %v1624_v0, %v1295_v62  ;;  %v1138_v8 = vpop.f32.mrf.mxu0 }
 0x119   : > { %v1467_v10 = vpop.f32.mrf.mxu1 }
 0x11a   : > { %v3221_v12 = vpack.c.bf16 %v2029_v6, %v2028_v5  ;;  %v1833_v13 = vmul.f32 %v3777_v63, %v1625_v7  ;;  %v1468_v15 = vadd.f32 %v1467_v10, %v1138_v8  ;;  %v3143_v7 = vld [vmem:[%s3691_s22 + $0x314] sm:$0xf0]  ;;  %v3078_v8 = vld [vmem:[%s3691_s22 + $0x114] sm:$0xf] }
 0x11b   : > { %1177 = vmatmul.bf16.gmra.mxu0 %v2587_v1  ;;  %1337 = vmatmul.bf16.gmra.mxu2 %v2843_v2  ;;  %v2602_v1 = vld [vmem:[%s3691_s22 + $0x110] sm:$0xf]  ;;  %v3079_v2 = vld [vmem:[%s3691_s22 + $0x114] sm:$0xf0]  ;;  %v3142_v10 = vld [vmem:[%s3691_s22 + $0x314] sm:$0xf] }
 0x11c   : > { %3513 = vst [vmem:[%s3801_s10 + $0x30] sm:$0xff] %v3221_v12   ;;  %v1965_v14 = vadd.f32 %v3783_v3, %v1833_v13  ;;  %1506 = vmatmul.bf16.gmra.mxu1 %v2591_v4  ;;  %1666 = vmatmul.bf16.gmra.mxu3 %v2847_v9  ;;  %v1770_v21 = vmul.f32 %v3777_v63, %v1468_v15  ;;  %v2858_v4 = vld [vmem:[%s3691_s22 + $0x310] sm:$0xf]  ;;  %v2604_v9 = vld [vmem:[%s3691_s22 + $0x118] sm:$0xf0] }
 0x11e   : > { %v2093_v17 = vmax.f32 %v1965_v14, 0.0  ;;  %v1298_v18 = vpop.f32.mrf.mxu2  ;;  %v1902_v29 = vadd.f32 %v3783_v3, %v1770_v21 }
 0x11f   : > { %v1627_v19 = vpop.f32.mrf.mxu3 }
 0x120   : > { %v3381_v20 = vpack.c.bf16 %v2093_v17, %v2092_v16  ;;  %v1140_v22 = vpop.f32.mrf.mxu0  ;;  %v1628_v24 = vadd.f32 %v1627_v19, %v1298_v18  ;;  %v2030_v43 = vmax.f32 %v1902_v29, 0.0  ;;  %v2603_v16 = vor.u32 %v3079_v2, %v2602_v1 }
 0x121   : > { %v1469_v23 = vpop.f32.mrf.mxu1  ;;  %v2859_v17 = vor.u32 %v3143_v7, %v2858_v4  ;;  %v2607_v18 = vor.u32 %v3078_v8, %v2604_v9 }
 0x122   : > { %3545 = vst [vmem:[%s3801_s10 + $0x130] sm:$0xff] %v3381_v20   ;;  %v1470_v25 = vadd.f32 %v1469_v23, %v1140_v22  ;;  %v1834_v36 = vmul.f32 %v3777_v63, %v1628_v24  ;;  %v2863_v23 = vor.u32 %v3142_v10, %v2860_v11 }
 0x124   : > { %v1771_v30 = vmul.f32 %v3777_v63, %v1470_v25  ;;  %v1966_v49 = vadd.f32 %v3783_v3, %v1834_v36 }
 0x126   : > { %v1903_v37 = vadd.f32 %v3783_v3, %v1771_v30  ;;  %v1300_v38 = vpop.f32.mrf.mxu2  ;;  %v2094_v54 = vmax.f32 %v1966_v49, 0.0  ;;  %v2868_v49 = vld [vmem:[%s3691_s22 + $0x328] sm:$0xf0] }
 0x127   : > { %v1629_v39 = vpop.f32.mrf.mxu3 }
 0x128   : > { %v2031_v44 = vmax.f32 %v1903_v37, 0.0  ;;  %v1630_v45 = vadd.f32 %v1629_v39, %v1300_v38  ;;  %v1143_v46 = vpop.f32.mrf.mxu0 }
 0x129   : > { %v1472_v48 = vpop.f32.mrf.mxu1 }
 0x12a   : > { %v3226_v50 = vpack.c.bf16 %v2031_v44, %v2030_v43  ;;  %v1835_v51 = vmul.f32 %v3777_v63, %v1630_v45  ;;  %v1473_v53 = vadd.f32 %v1472_v48, %v1143_v46  ;;  %v3145_v45 = vld [vmem:[%s3691_s22 + $0x324] sm:$0xf0]  ;;  %v3080_v46 = vld [vmem:[%s3691_s22 + $0x124] sm:$0xf] }
 0x12b   : > { %1182 = vmatmul.bf16.gmra.mxu0 %v2595_v40  ;;  %1342 = vmatmul.bf16.gmra.mxu2 %v2851_v41  ;;  %v2610_v40 = vld [vmem:[%s3691_s22 + $0x120] sm:$0xf]  ;;  %v3081_v41 = vld [vmem:[%s3691_s22 + $0x124] sm:$0xf0]  ;;  %v3144_v48 = vld [vmem:[%s3691_s22 + $0x324] sm:$0xf] }
 0x12c   : > { %3514 = vst [vmem:[%s3801_s10 + $0x38] sm:$0xff] %v3226_v50   ;;  %v1967_v52 = vadd.f32 %v3783_v3, %v1835_v51  ;;  %1511 = vmatmul.bf16.gmra.mxu1 %v2599_v42  ;;  %1671 = vmatmul.bf16.gmra.mxu3 %v2855_v47  ;;  %v1772_v59 = vmul.f32 %v3777_v63, %v1473_v53  ;;  %v2866_v42 = vld [vmem:[%s3691_s22 + $0x320] sm:$0xf]  ;;  %v2612_v47 = vld [vmem:[%s3691_s22 + $0x128] sm:$0xf0] }
 0x12e   : > { %v2095_v55 = vmax.f32 %v1967_v52, 0.0  ;;  %v1303_v56 = vpop.f32.mrf.mxu2  ;;  %v1904_v5 = vadd.f32 %v3783_v3, %v1772_v59 }
 0x12f   : > { %v1632_v57 = vpop.f32.mrf.mxu3 }
 0x130   : > { %v3386_v58 = vpack.c.bf16 %v2095_v55, %v2094_v54  ;;  %v1145_v60 = vpop.f32.mrf.mxu0  ;;  %v1633_v62 = vadd.f32 %v1632_v57, %v1303_v56  ;;  %v2032_v19 = vmax.f32 %v1904_v5, 0.0  ;;  %v2611_v54 = vor.u32 %v3081_v41, %v2610_v40 }
 0x131   : > { %v1474_v61 = vpop.f32.mrf.mxu1  ;;  %v2867_v55 = vor.u32 %v3145_v45, %v2866_v42  ;;  %v2615_v56 = vor.u32 %v3080_v46, %v2612_v47 }
 0x132   : > { %3546 = vst [vmem:[%s3801_s10 + $0x138] sm:$0xff] %v3386_v58   ;;  %v1475_v0 = vadd.f32 %v1474_v61, %v1145_v60  ;;  %v1836_v12 = vmul.f32 %v3777_v63, %v1633_v62  ;;  %v2871_v61 = vor.u32 %v3144_v48, %v2868_v49 }
 0x134   : > { %v1773_v6 = vmul.f32 %v3777_v63, %v1475_v0  ;;  %v1968_v25 = vadd.f32 %v3783_v3, %v1836_v12 }
 0x136   : > { %v1905_v13 = vadd.f32 %v3783_v3, %v1773_v6  ;;  %v1305_v14 = vpop.f32.mrf.mxu2  ;;  %v2096_v30 = vmax.f32 %v1968_v25, 0.0  ;;  %v2876_v25 = vld [vmem:[%s3691_s22 + $0x338] sm:$0xf0] }
 0x137   : > { %v1634_v15 = vpop.f32.mrf.mxu3 }
 0x138   : > { %v2033_v20 = vmax.f32 %v1905_v13, 0.0  ;;  %v1635_v21 = vadd.f32 %v1634_v15, %v1305_v14  ;;  %v1148_v22 = vpop.f32.mrf.mxu0 }
 0x139   : > { %v1477_v24 = vpop.f32.mrf.mxu1 }
 0x13a   : > { %v3231_v26 = vpack.c.bf16 %v2033_v20, %v2032_v19  ;;  %v1837_v27 = vmul.f32 %v3777_v63, %v1635_v21  ;;  %v1478_v29 = vadd.f32 %v1477_v24, %v1148_v22  ;;  %v3147_v21 = vld [vmem:[%s3691_s22 + $0x334] sm:$0xf0]  ;;  %v3082_v22 = vld [vmem:[%s3691_s22 + $0x134] sm:$0xf] }
 0x13b   : > { %1187 = vmatmul.bf16.gmra.mxu0 %v2603_v16  ;;  %1347 = vmatmul.bf16.gmra.mxu2 %v2859_v17  ;;  %v2618_v16 = vld [vmem:[%s3691_s22 + $0x130] sm:$0xf]  ;;  %v3083_v17 = vld [vmem:[%s3691_s22 + $0x134] sm:$0xf0]  ;;  %v3146_v24 = vld [vmem:[%s3691_s22 + $0x334] sm:$0xf] }
 0x13c   : > { %3515 = vst [vmem:[%s3801_s10 + $0x40] sm:$0xff] %v3231_v26   ;;  %v1969_v28 = vadd.f32 %v3783_v3, %v1837_v27  ;;  %1516 = vmatmul.bf16.gmra.mxu1 %v2607_v18  ;;  %1676 = vmatmul.bf16.gmra.mxu3 %v2863_v23  ;;  %v1774_v35 = vmul.f32 %v3777_v63, %v1478_v29  ;;  %v2874_v18 = vld [vmem:[%s3691_s22 + $0x330] sm:$0xf]  ;;  %v2620_v23 = vld [vmem:[%s3691_s22 + $0x138] sm:$0xf0] }
 0x13e   : > { %v2097_v31 = vmax.f32 %v1969_v28, 0.0  ;;  %v1308_v32 = vpop.f32.mrf.mxu2  ;;  %v1906_v43 = vadd.f32 %v3783_v3, %v1774_v35 }
 0x13f   : > { %v1637_v33 = vpop.f32.mrf.mxu3 }
 0x140   : > { %v3391_v34 = vpack.c.bf16 %v2097_v31, %v2096_v30  ;;  %v1150_v36 = vpop.f32.mrf.mxu0  ;;  %v1638_v38 = vadd.f32 %v1637_v33, %v1308_v32  ;;  %v2034_v57 = vmax.f32 %v1906_v43, 0.0  ;;  %v2619_v30 = vor.u32 %v3083_v17, %v2618_v16  ;;  %v4010_v16 = vld [vmem:[%s4319_s2] ss:$0 sm:$0xff] }
 0x141   : > { %v1479_v37 = vpop.f32.mrf.mxu1  ;;  %v2875_v31 = vor.u32 %v3147_v21, %v2874_v18  ;;  %v2623_v32 = vor.u32 %v3082_v22, %v2620_v23 }
 0x142   : > { %3547 = vst [vmem:[%s3801_s10 + $0x140] sm:$0xff] %v3391_v34   ;;  %v1480_v39 = vadd.f32 %v1479_v37, %v1150_v36  ;;  %v1838_v50 = vmul.f32 %v3777_v63, %v1638_v38  ;;  %v2879_v37 = vor.u32 %v3146_v24, %v2876_v25 }
 0x144   : > { %v1775_v44 = vmul.f32 %v3777_v63, %v1480_v39  ;;  %v1970_v0 = vadd.f32 %v3783_v3, %v1838_v50 }
 0x146   : > { %v1907_v51 = vadd.f32 %v3783_v3, %v1775_v44  ;;  %v1310_v52 = vpop.f32.mrf.mxu2  ;;  %v2098_v6 = vmax.f32 %v1970_v0, 0.0  ;;  %v2884_v0 = vld [vmem:[%s3691_s22 + $0x348] sm:$0xf0] }
 0x147   : > { %v1639_v53 = vpop.f32.mrf.mxu3 }
 0x148   : > { %v2035_v58 = vmax.f32 %v1907_v51, 0.0  ;;  %v1640_v59 = vadd.f32 %v1639_v53, %v1310_v52  ;;  %v1153_v60 = vpop.f32.mrf.mxu0 }
 0x149   : > { %v1482_v62 = vpop.f32.mrf.mxu1 }
 0x14a   : > { %v3236_v1 = vpack.c.bf16 %v2035_v58, %v2034_v57  ;;  %v1839_v2 = vmul.f32 %v3777_v63, %v1640_v59  ;;  %v1483_v5 = vadd.f32 %v1482_v62, %v1153_v60  ;;  %v3149_v59 = vld [vmem:[%s3691_s22 + $0x344] sm:$0xf0]  ;;  %v3084_v60 = vld [vmem:[%s3691_s22 + $0x144] sm:$0xf] }
 0x14b   : > { %1192 = vmatmul.bf16.gmra.mxu0 %v2611_v54  ;;  %1352 = vmatmul.bf16.gmra.mxu2 %v2867_v55  ;;  %v2626_v54 = vld [vmem:[%s3691_s22 + $0x140] sm:$0xf]  ;;  %v3085_v55 = vld [vmem:[%s3691_s22 + $0x144] sm:$0xf0]  ;;  %v3148_v62 = vld [vmem:[%s3691_s22 + $0x344] sm:$0xf] }
 0x14c   : > { %3516 = vst [vmem:[%s3801_s10 + $0x48] sm:$0xff] %v3236_v1   ;;  %v1971_v4 = vadd.f32 %v3783_v3, %v1839_v2  ;;  %1521 = vmatmul.bf16.gmra.mxu1 %v2615_v56  ;;  %1681 = vmatmul.bf16.gmra.mxu3 %v2871_v61  ;;  %v1776_v11 = vmul.f32 %v3777_v63, %v1483_v5  ;;  %v2882_v56 = vld [vmem:[%s3691_s22 + $0x340] sm:$0xf]  ;;  %v2628_v61 = vld [vmem:[%s3691_s22 + $0x148] sm:$0xf0] }
 0x14e   : > { %v2099_v7 = vmax.f32 %v1971_v4, 0.0  ;;  %v1313_v8 = vpop.f32.mrf.mxu2  ;;  %v1908_v19 = vadd.f32 %v3783_v3, %v1776_v11 }
 0x14f   : > { %v1642_v9 = vpop.f32.mrf.mxu3 }
 0x150   : > { %v3396_v10 = vpack.c.bf16 %v2099_v7, %v2098_v6  ;;  %v1155_v12 = vpop.f32.mrf.mxu0  ;;  %v1643_v14 = vadd.f32 %v1642_v9, %v1313_v8  ;;  %v2036_v33 = vmax.f32 %v1908_v19, 0.0  ;;  %v2627_v6 = vor.u32 %v3085_v55, %v2626_v54 }
 0x151   : > { %v1484_v13 = vpop.f32.mrf.mxu1  ;;  %v2883_v7 = vor.u32 %v3149_v59, %v2882_v56  ;;  %v2631_v8 = vor.u32 %v3084_v60, %v2628_v61 }
 0x152   : > { %3548 = vst [vmem:[%s3801_s10 + $0x148] sm:$0xff] %v3396_v10   ;;  %v1485_v15 = vadd.f32 %v1484_v13, %v1155_v12  ;;  %v1840_v26 = vmul.f32 %v3777_v63, %v1643_v14  ;;  %v2887_v13 = vor.u32 %v3148_v62, %v2884_v0 }
 0x154   : > { %v1777_v20 = vmul.f32 %v3777_v63, %v1485_v15  ;;  %v1972_v39 = vadd.f32 %v3783_v3, %v1840_v26  ;;  %v4004_v15 = vld [vmem:[%s4320_s3] ss:$0 sm:$0xff] }
 0x156   : > { %v1909_v27 = vadd.f32 %v3783_v3, %v1777_v20  ;;  %v1315_v28 = vpop.f32.mrf.mxu2  ;;  %v2100_v44 = vmax.f32 %v1972_v39, 0.0  ;;  %v2892_v39 = vld [vmem:[%s3691_s22 + $0x358] sm:$0xf0] }
 0x157   : > { %v1644_v29 = vpop.f32.mrf.mxu3 }
 0x158   : > { %v2037_v34 = vmax.f32 %v1909_v27, 0.0  ;;  %v1645_v35 = vadd.f32 %v1644_v29, %v1315_v28  ;;  %v1158_v36 = vpop.f32.mrf.mxu0 }
 0x159   : > { %v1487_v38 = vpop.f32.mrf.mxu1 }
 0x15a   : > { %v3241_v40 = vpack.c.bf16 %v2037_v34, %v2036_v33  ;;  %v1841_v41 = vmul.f32 %v3777_v63, %v1645_v35  ;;  %v1488_v43 = vadd.f32 %v1487_v38, %v1158_v36  ;;  %v3151_v35 = vld [vmem:[%s3691_s22 + $0x354] sm:$0xf0]  ;;  %v3086_v36 = vld [vmem:[%s3691_s22 + $0x154] sm:$0xf] }
 0x15b   : > { %1197 = vmatmul.bf16.gmra.mxu0 %v2619_v30  ;;  %1357 = vmatmul.bf16.gmra.mxu2 %v2875_v31  ;;  %v2634_v30 = vld [vmem:[%s3691_s22 + $0x150] sm:$0xf]  ;;  %v3087_v31 = vld [vmem:[%s3691_s22 + $0x154] sm:$0xf0]  ;;  %v3150_v38 = vld [vmem:[%s3691_s22 + $0x354] sm:$0xf] }
 0x15c   : > { %3517 = vst [vmem:[%s3801_s10 + $0x50] sm:$0xff] %v3241_v40   ;;  %v1973_v42 = vadd.f32 %v3783_v3, %v1841_v41  ;;  %1526 = vmatmul.bf16.gmra.mxu1 %v2623_v32  ;;  %1686 = vmatmul.bf16.gmra.mxu3 %v2879_v37  ;;  %v1778_v49 = vmul.f32 %v3777_v63, %v1488_v43  ;;  %v2890_v32 = vld [vmem:[%s3691_s22 + $0x350] sm:$0xf]  ;;  %v2636_v37 = vld [vmem:[%s3691_s22 + $0x158] sm:$0xf0] }
 0x15e   : > { %v2101_v45 = vmax.f32 %v1973_v42, 0.0  ;;  %v1318_v46 = vpop.f32.mrf.mxu2  ;;  %v1910_v57 = vadd.f32 %v3783_v3, %v1778_v49 }
 0x15f   : > { %v1647_v47 = vpop.f32.mrf.mxu3 }
 0x160   : > { %v3401_v48 = vpack.c.bf16 %v2101_v45, %v2100_v44  ;;  %v1160_v50 = vpop.f32.mrf.mxu0  ;;  %v1648_v52 = vadd.f32 %v1647_v47, %v1318_v46  ;;  %v2038_v9 = vmax.f32 %v1910_v57, 0.0  ;;  %v2635_v44 = vor.u32 %v3087_v31, %v2634_v30 }
 0x161   : > { %v1489_v51 = vpop.f32.mrf.mxu1  ;;  %v2891_v45 = vor.u32 %v3151_v35, %v2890_v32  ;;  %v2639_v46 = vor.u32 %v3086_v36, %v2636_v37 }
 0x162   : > { %3549 = vst [vmem:[%s3801_s10 + $0x150] sm:$0xff] %v3401_v48   ;;  %v1490_v53 = vadd.f32 %v1489_v51, %v1160_v50  ;;  %v1842_v1 = vmul.f32 %v3777_v63, %v1648_v52  ;;  %v2895_v51 = vor.u32 %v3150_v38, %v2892_v39 }
 0x164   : > { %v1779_v58 = vmul.f32 %v3777_v63, %v1490_v53  ;;  %v1974_v63 = vadd.f32 %v4004_v15, %v1842_v1 }
 0x166   : > { %v1911_v2 = vadd.f32 %v3783_v3, %v1779_v58  ;;  %v1320_v4 = vpop.f32.mrf.mxu2  ;;  %v2102_v20 = vmax.f32 %v1974_v63, 0.0  ;;  %v2900_v63 = vld [vmem:[%s3691_s22 + $0x368] sm:$0xf0] }
 0x167   : > { %v1649_v5 = vpop.f32.mrf.mxu3 }
 0x168   : > { %v2039_v10 = vmax.f32 %v1911_v2, 0.0  ;;  %v1650_v11 = vadd.f32 %v1649_v5, %v1320_v4  ;;  %v1163_v12 = vpop.f32.mrf.mxu0 }
 0x169   : > { %v1492_v14 = vpop.f32.mrf.mxu1 }
 0x16a   : > { %v3246_v3 = vpack.c.bf16 %v2039_v10, %v2038_v9  ;;  %v1843_v17 = vmul.f32 %v4010_v16, %v1650_v11  ;;  %v1493_v19 = vadd.f32 %v1492_v14, %v1163_v12  ;;  %v3153_v11 = vld [vmem:[%s3691_s22 + $0x364] sm:$0xf0]  ;;  %v3088_v12 = vld [vmem:[%s3691_s22 + $0x164] sm:$0xf] }
 0x16b   : > { %1202 = vmatmul.bf16.gmra.mxu0 %v2627_v6  ;;  %1362 = vmatmul.bf16.gmra.mxu2 %v2883_v7  ;;  %v2642_v6 = vld [vmem:[%s3691_s22 + $0x160] sm:$0xf]  ;;  %v3089_v7 = vld [vmem:[%s3691_s22 + $0x164] sm:$0xf0]  ;;  %v3152_v14 = vld [vmem:[%s3691_s22 + $0x364] sm:$0xf] }
 0x16c   : > { %3518 = vst [vmem:[%s3801_s10 + $0x58] sm:$0xff] %v3246_v3   ;;  %v1975_v18 = vadd.f32 %v4004_v15, %v1843_v17  ;;  %1531 = vmatmul.bf16.gmra.mxu1 %v2631_v8  ;;  %1691 = vmatmul.bf16.gmra.mxu3 %v2887_v13  ;;  %v1780_v25 = vmul.f32 %v4010_v16, %v1493_v19  ;;  %v2898_v8 = vld [vmem:[%s3691_s22 + $0x360] sm:$0xf]  ;;  %v2644_v13 = vld [vmem:[%s3691_s22 + $0x168] sm:$0xf0] }
 0x16e   : > { %v2103_v21 = vmax.f32 %v1975_v18, 0.0  ;;  %v1323_v22 = vpop.f32.mrf.mxu2  ;;  %v1912_v33 = vadd.f32 %v4004_v15, %v1780_v25 }
 0x16f   : > { %v1652_v23 = vpop.f32.mrf.mxu3 }
 0x170   : > { %v3406_v24 = vpack.c.bf16 %v2103_v21, %v2102_v20  ;;  %v1165_v26 = vpop.f32.mrf.mxu0  ;;  %v1653_v28 = vadd.f32 %v1652_v23, %v1323_v22  ;;  %v2040_v47 = vmax.f32 %v1912_v33, 0.0  ;;  %v2643_v20 = vor.u32 %v3089_v7, %v2642_v6 }
 0x171   : > { %v1494_v27 = vpop.f32.mrf.mxu1  ;;  %v2899_v21 = vor.u32 %v3153_v11, %v2898_v8  ;;  %v2647_v22 = vor.u32 %v3088_v12, %v2644_v13 }
 0x172   : > { %3550 = vst [vmem:[%s3801_s10 + $0x158] sm:$0xff] %v3406_v24   ;;  %v1495_v29 = vadd.f32 %v1494_v27, %v1165_v26  ;;  %v1844_v40 = vmul.f32 %v4010_v16, %v1653_v28  ;;  %v2903_v27 = vor.u32 %v3152_v14, %v2900_v63 }
 0x174   : > { %v1781_v34 = vmul.f32 %v4010_v16, %v1495_v29  ;;  %v1976_v53 = vadd.f32 %v4004_v15, %v1844_v40 }
 0x176   : > { %v1913_v41 = vadd.f32 %v4004_v15, %v1781_v34  ;;  %v1325_v42 = vpop.f32.mrf.mxu2  ;;  %v2104_v58 = vmax.f32 %v1976_v53, 0.0  ;;  %v2908_v53 = vld [vmem:[%s3691_s22 + $0x378] sm:$0xf0] }
 0x177   : > { %v1654_v43 = vpop.f32.mrf.mxu3 }
 0x178   : > { %v2041_v48 = vmax.f32 %v1913_v41, 0.0  ;;  %v1655_v49 = vadd.f32 %v1654_v43, %v1325_v42  ;;  %v1168_v50 = vpop.f32.mrf.mxu0 }
 0x179   : > { %v1497_v52 = vpop.f32.mrf.mxu1 }
 0x17a   : > { %v3251_v54 = vpack.c.bf16 %v2041_v48, %v2040_v47  ;;  %v1845_v55 = vmul.f32 %v4010_v16, %v1655_v49  ;;  %v1498_v57 = vadd.f32 %v1497_v52, %v1168_v50  ;;  %v3155_v49 = vld [vmem:[%s3691_s22 + $0x374] sm:$0xf0]  ;;  %v3090_v50 = vld [vmem:[%s3691_s22 + $0x174] sm:$0xf] }
 0x17b   : > { %1207 = vmatmul.bf16.gmra.mxu0 %v2635_v44  ;;  %1367 = vmatmul.bf16.gmra.mxu2 %v2891_v45  ;;  %v2650_v44 = vld [vmem:[%s3691_s22 + $0x170] sm:$0xf]  ;;  %v3091_v45 = vld [vmem:[%s3691_s22 + $0x174] sm:$0xf0]  ;;  %v3154_v52 = vld [vmem:[%s3691_s22 + $0x374] sm:$0xf] }
 0x17c   : > { %3519 = vst [vmem:[%s3801_s10 + $0x60] sm:$0xff] %v3251_v54   ;;  %v1977_v56 = vadd.f32 %v4004_v15, %v1845_v55  ;;  %1536 = vmatmul.bf16.gmra.mxu1 %v2639_v46  ;;  %1696 = vmatmul.bf16.gmra.mxu3 %v2895_v51  ;;  %v1782_v0 = vmul.f32 %v4010_v16, %v1498_v57  ;;  %v2906_v46 = vld [vmem:[%s3691_s22 + $0x370] sm:$0xf]  ;;  %v2652_v51 = vld [vmem:[%s3691_s22 + $0x178] sm:$0xf0] }
 0x17e   : > { %v2105_v59 = vmax.f32 %v1977_v56, 0.0  ;;  %v1328_v60 = vpop.f32.mrf.mxu2  ;;  %v1914_v9 = vadd.f32 %v4004_v15, %v1782_v0 }
 0x17f   : > { %v1657_v61 = vpop.f32.mrf.mxu3 }
 0x180   : > { %v3411_v62 = vpack.c.bf16 %v2105_v59, %v2104_v58  ;;  %v1170_v1 = vpop.f32.mrf.mxu0  ;;  %v1658_v4 = vadd.f32 %v1657_v61, %v1328_v60  ;;  %v2042_v23 = vmax.f32 %v1914_v9, 0.0  ;;  %v2651_v58 = vor.u32 %v3091_v45, %v2650_v44 }
 0x181   : > { %v1499_v2 = vpop.f32.mrf.mxu1  ;;  %v2907_v59 = vor.u32 %v3155_v49, %v2906_v46  ;;  %v2655_v60 = vor.u32 %v3090_v50, %v2652_v51 }
 0x182   : > { %3551 = vst [vmem:[%s3801_s10 + $0x160] sm:$0xff] %v3411_v62   ;;  %v1500_v5 = vadd.f32 %v1499_v2, %v1170_v1  ;;  %v1846_v3 = vmul.f32 %v4010_v16, %v1658_v4  ;;  %v2911_v2 = vor.u32 %v3154_v52, %v2908_v53 }
 0x184   : > { %v1783_v10 = vmul.f32 %v4010_v16, %v1500_v5  ;;  %v1978_v29 = vadd.f32 %v4004_v15, %v1846_v3 }
 0x186   : > { %v1915_v17 = vadd.f32 %v4004_v15, %v1783_v10  ;;  %v1330_v18 = vpop.f32.mrf.mxu2  ;;  %v2106_v34 = vmax.f32 %v1978_v29, 0.0  ;;  %v2916_v29 = vld [vmem:[%s3691_s22 + $0x388] sm:$0xf0] }
 0x187   : > { %v1659_v19 = vpop.f32.mrf.mxu3 }
 0x188   : > { %v2043_v24 = vmax.f32 %v1915_v17, 0.0  ;;  %v1660_v25 = vadd.f32 %v1659_v19, %v1330_v18  ;;  %v1173_v26 = vpop.f32.mrf.mxu0 }
 0x189   : > { %v1502_v28 = vpop.f32.mrf.mxu1 }
 0x18a   : > { %v3256_v30 = vpack.c.bf16 %v2043_v24, %v2042_v23  ;;  %v1847_v31 = vmul.f32 %v4010_v16, %v1660_v25  ;;  %v1503_v33 = vadd.f32 %v1502_v28, %v1173_v26  ;;  %v3157_v25 = vld [vmem:[%s3691_s22 + $0x384] sm:$0xf0]  ;;  %v3092_v26 = vld [vmem:[%s3691_s22 + $0x184] sm:$0xf] }
 0x18b   : > { %1212 = vmatmul.bf16.gmra.mxu0 %v2643_v20  ;;  %1372 = vmatmul.bf16.gmra.mxu2 %v2899_v21  ;;  %v2658_v20 = vld [vmem:[%s3691_s22 + $0x180] sm:$0xf]  ;;  %v3093_v21 = vld [vmem:[%s3691_s22 + $0x184] sm:$0xf0]  ;;  %v3156_v28 = vld [vmem:[%s3691_s22 + $0x384] sm:$0xf] }
 0x18c   : > { %3520 = vst [vmem:[%s3801_s10 + $0x68] sm:$0xff] %v3256_v30   ;;  %v1979_v32 = vadd.f32 %v4004_v15, %v1847_v31  ;;  %1541 = vmatmul.bf16.gmra.mxu1 %v2647_v22  ;;  %1701 = vmatmul.bf16.gmra.mxu3 %v2903_v27  ;;  %v1784_v39 = vmul.f32 %v4010_v16, %v1503_v33  ;;  %v2914_v22 = vld [vmem:[%s3691_s22 + $0x380] sm:$0xf]  ;;  %v2660_v27 = vld [vmem:[%s3691_s22 + $0x188] sm:$0xf0] }
 0x18e   : > { %v2107_v35 = vmax.f32 %v1979_v32, 0.0  ;;  %v1333_v36 = vpop.f32.mrf.mxu2  ;;  %v1916_v47 = vadd.f32 %v4004_v15, %v1784_v39 }
 0x18f   : > { %v1662_v37 = vpop.f32.mrf.mxu3 }
 0x190   : > { %v3416_v38 = vpack.c.bf16 %v2107_v35, %v2106_v34  ;;  %v1175_v40 = vpop.f32.mrf.mxu0  ;;  %v1663_v42 = vadd.f32 %v1662_v37, %v1333_v36  ;;  %v2044_v61 = vmax.f32 %v1916_v47, 0.0  ;;  %v2659_v34 = vor.u32 %v3093_v21, %v2658_v20 }
 0x191   : > { %v1504_v41 = vpop.f32.mrf.mxu1  ;;  %v2915_v35 = vor.u32 %v3157_v25, %v2914_v22  ;;  %v2663_v36 = vor.u32 %v3092_v26, %v2660_v27 }
 0x192   : > { %3552 = vst [vmem:[%s3801_s10 + $0x168] sm:$0xff] %v3416_v38   ;;  %v1505_v43 = vadd.f32 %v1504_v41, %v1175_v40  ;;  %v1848_v54 = vmul.f32 %v4010_v16, %v1663_v42  ;;  %v2919_v41 = vor.u32 %v3156_v28, %v2916_v29 }
 0x194   : > { %v1785_v48 = vmul.f32 %v4010_v16, %v1505_v43  ;;  %v1980_v5 = vadd.f32 %v4004_v15, %v1848_v54 }
 0x196   : > { %v1917_v55 = vadd.f32 %v4004_v15, %v1785_v48  ;;  %v1335_v56 = vpop.f32.mrf.mxu2  ;;  %v2108_v10 = vmax.f32 %v1980_v5, 0.0  ;;  %v2924_v5 = vld [vmem:[%s3691_s22 + $0x398] sm:$0xf0] }
 0x197   : > { %v1664_v57 = vpop.f32.mrf.mxu3 }
 0x198   : > { %v2045_v62 = vmax.f32 %v1917_v55, 0.0  ;;  %v1665_v0 = vadd.f32 %v1664_v57, %v1335_v56  ;;  %v1178_v1 = vpop.f32.mrf.mxu0 }
 0x199   : > { %v1507_v4 = vpop.f32.mrf.mxu1 }
 0x19a   : > { %v3261_v6 = vpack.c.bf16 %v2045_v62, %v2044_v61  ;;  %v1849_v7 = vmul.f32 %v4010_v16, %v1665_v0  ;;  %v1508_v9 = vadd.f32 %v1507_v4, %v1178_v1  ;;  %v3159_v0 = vld [vmem:[%s3691_s22 + $0x394] sm:$0xf0]  ;;  %v3094_v1 = vld [vmem:[%s3691_s22 + $0x194] sm:$0xf] }
 0x19b   : > { %1217 = vmatmul.bf16.gmra.mxu0 %v2651_v58  ;;  %1377 = vmatmul.bf16.gmra.mxu2 %v2907_v59  ;;  %v2666_v58 = vld [vmem:[%s3691_s22 + $0x190] sm:$0xf]  ;;  %v3095_v59 = vld [vmem:[%s3691_s22 + $0x194] sm:$0xf0]  ;;  %v3158_v4 = vld [vmem:[%s3691_s22 + $0x394] sm:$0xf] }
 0x19c   : > { %3521 = vst [vmem:[%s3801_s10 + $0x70] sm:$0xff] %v3261_v6   ;;  %v1981_v8 = vadd.f32 %v4004_v15, %v1849_v7  ;;  %1546 = vmatmul.bf16.gmra.mxu1 %v2655_v60  ;;  %1706 = vmatmul.bf16.gmra.mxu3 %v2911_v2  ;;  %v1786_v63 = vmul.f32 %v4010_v16, %v1508_v9  ;;  %v2922_v60 = vld [vmem:[%s3691_s22 + $0x390] sm:$0xf]  ;;  %v2668_v2 = vld [vmem:[%s3691_s22 + $0x198] sm:$0xf0] }
 0x19e   : > { %v2109_v11 = vmax.f32 %v1981_v8, 0.0  ;;  %v1338_v12 = vpop.f32.mrf.mxu2  ;;  %v1918_v23 = vadd.f32 %v4004_v15, %v1786_v63 }
 0x19f   : > { %v1667_v13 = vpop.f32.mrf.mxu3 }
 0x1a0   : > { %v3421_v14 = vpack.c.bf16 %v2109_v11, %v2108_v10  ;;  %v1180_v3 = vpop.f32.mrf.mxu0  ;;  %v1668_v18 = vadd.f32 %v1667_v13, %v1338_v12  ;;  %v2046_v37 = vmax.f32 %v1918_v23, 0.0  ;;  %v2667_v10 = vor.u32 %v3095_v59, %v2666_v58 }
 0x1a1   : > { %v1509_v17 = vpop.f32.mrf.mxu1  ;;  %v2923_v11 = vor.u32 %v3159_v0, %v2922_v60  ;;  %v2671_v12 = vor.u32 %v3094_v1, %v2668_v2 }
 0x1a2   : > { %3553 = vst [vmem:[%s3801_s10 + $0x170] sm:$0xff] %v3421_v14   ;;  %v1510_v19 = vadd.f32 %v1509_v17, %v1180_v3  ;;  %v1850_v30 = vmul.f32 %v4010_v16, %v1668_v18  ;;  %v2927_v17 = vor.u32 %v3158_v4, %v2924_v5 }
 0x1a4   : > { %v1787_v24 = vmul.f32 %v4010_v16, %v1510_v19  ;;  %v1982_v43 = vadd.f32 %v4004_v15, %v1850_v30 }
 0x1a6   : > { %v1919_v31 = vadd.f32 %v4004_v15, %v1787_v24  ;;  %v1340_v32 = vpop.f32.mrf.mxu2  ;;  %v2110_v48 = vmax.f32 %v1982_v43, 0.0  ;;  %v2932_v43 = vld [vmem:[%s3691_s22 + $0x3a8] sm:$0xf0] }
 0x1a7   : > { %v1669_v33 = vpop.f32.mrf.mxu3 }
 0x1a8   : > { %v2047_v38 = vmax.f32 %v1919_v31, 0.0  ;;  %v1670_v39 = vadd.f32 %v1669_v33, %v1340_v32  ;;  %v1183_v40 = vpop.f32.mrf.mxu0 }
 0x1a9   : > { %v1512_v42 = vpop.f32.mrf.mxu1 }
 0x1aa   : > { %v3266_v44 = vpack.c.bf16 %v2047_v38, %v2046_v37  ;;  %v1851_v45 = vmul.f32 %v4010_v16, %v1670_v39  ;;  %v1513_v47 = vadd.f32 %v1512_v42, %v1183_v40  ;;  %v3161_v39 = vld [vmem:[%s3691_s22 + $0x3a4] sm:$0xf0]  ;;  %v3096_v40 = vld [vmem:[%s3691_s22 + $0x1a4] sm:$0xf] }
 0x1ab   : > { %1222 = vmatmul.bf16.gmra.mxu0 %v2659_v34  ;;  %1382 = vmatmul.bf16.gmra.mxu2 %v2915_v35  ;;  %v2674_v34 = vld [vmem:[%s3691_s22 + $0x1a0] sm:$0xf]  ;;  %v3097_v35 = vld [vmem:[%s3691_s22 + $0x1a4] sm:$0xf0]  ;;  %v3160_v42 = vld [vmem:[%s3691_s22 + $0x3a4] sm:$0xf] }
 0x1ac   : > { %3522 = vst [vmem:[%s3801_s10 + $0x78] sm:$0xff] %v3266_v44   ;;  %v1983_v46 = vadd.f32 %v4004_v15, %v1851_v45  ;;  %1551 = vmatmul.bf16.gmra.mxu1 %v2663_v36  ;;  %1711 = vmatmul.bf16.gmra.mxu3 %v2919_v41  ;;  %v1788_v53 = vmul.f32 %v4010_v16, %v1513_v47  ;;  %v2930_v36 = vld [vmem:[%s3691_s22 + $0x3a0] sm:$0xf]  ;;  %v2676_v41 = vld [vmem:[%s3691_s22 + $0x1a8] sm:$0xf0] }
 0x1ae   : > { %v2111_v49 = vmax.f32 %v1983_v46, 0.0  ;;  %v1343_v50 = vpop.f32.mrf.mxu2  ;;  %v1920_v61 = vadd.f32 %v4004_v15, %v1788_v53 }
 0x1af   : > { %v1672_v51 = vpop.f32.mrf.mxu3 }
 0x1b0   : > { %v3426_v52 = vpack.c.bf16 %v2111_v49, %v2110_v48  ;;  %v1185_v54 = vpop.f32.mrf.mxu0  ;;  %v1673_v56 = vadd.f32 %v1672_v51, %v1343_v50  ;;  %v2048_v13 = vmax.f32 %v1920_v61, 0.0  ;;  %v2675_v48 = vor.u32 %v3097_v35, %v2674_v34 }
 0x1b1   : > { %v1514_v55 = vpop.f32.mrf.mxu1  ;;  %v2931_v49 = vor.u32 %v3161_v39, %v2930_v36  ;;  %v2679_v50 = vor.u32 %v3096_v40, %v2676_v41 }
 0x1b2   : > { %3554 = vst [vmem:[%s3801_s10 + $0x178] sm:$0xff] %v3426_v52   ;;  %v1515_v57 = vadd.f32 %v1514_v55, %v1185_v54  ;;  %v1852_v6 = vmul.f32 %v4010_v16, %v1673_v56  ;;  %v2935_v55 = vor.u32 %v3160_v42, %v2932_v43 }
 0x1b4   : > { %v1789_v62 = vmul.f32 %v4010_v16, %v1515_v57  ;;  %v1984_v19 = vadd.f32 %v4004_v15, %v1852_v6 }
 0x1b6   : > { %v1921_v7 = vadd.f32 %v4004_v15, %v1789_v62  ;;  %v1345_v8 = vpop.f32.mrf.mxu2  ;;  %v2112_v24 = vmax.f32 %v1984_v19, 0.0  ;;  %v2940_v19 = vld [vmem:[%s3691_s22 + $0x3b8] sm:$0xf0] }
 0x1b7   : > { %v1674_v9 = vpop.f32.mrf.mxu3 }
 0x1b8   : > { %v2049_v14 = vmax.f32 %v1921_v7, 0.0  ;;  %v1675_v63 = vadd.f32 %v1674_v9, %v1345_v8  ;;  %v1188_v3 = vpop.f32.mrf.mxu0 }
 0x1b9   : > { %v1517_v18 = vpop.f32.mrf.mxu1 }
 0x1ba   : > { %v3271_v20 = vpack.c.bf16 %v2049_v14, %v2048_v13  ;;  %v1853_v21 = vmul.f32 %v4010_v16, %v1675_v63  ;;  %v1518_v23 = vadd.f32 %v1517_v18, %v1188_v3  ;;  %v3163_v63 = vld [vmem:[%s3691_s22 + $0x3b4] sm:$0xf0]  ;;  %v3098_v3 = vld [vmem:[%s3691_s22 + $0x1b4] sm:$0xf] }
 0x1bb   : > { %1227 = vmatmul.bf16.gmra.mxu0 %v2667_v10  ;;  %1387 = vmatmul.bf16.gmra.mxu2 %v2923_v11  ;;  %v2682_v10 = vld [vmem:[%s3691_s22 + $0x1b0] sm:$0xf]  ;;  %v3099_v11 = vld [vmem:[%s3691_s22 + $0x1b4] sm:$0xf0]  ;;  %v3162_v18 = vld [vmem:[%s3691_s22 + $0x3b4] sm:$0xf] }
 0x1bc   : > { %3523 = vst [vmem:[%s3801_s10 + $0x80] sm:$0xff] %v3271_v20   ;;  %v1985_v22 = vadd.f32 %v4004_v15, %v1853_v21  ;;  %1556 = vmatmul.bf16.gmra.mxu1 %v2671_v12  ;;  %1716 = vmatmul.bf16.gmra.mxu3 %v2927_v17  ;;  %v1790_v29 = vmul.f32 %v4010_v16, %v1518_v23  ;;  %v2938_v12 = vld [vmem:[%s3691_s22 + $0x3b0] sm:$0xf]  ;;  %v2684_v17 = vld [vmem:[%s3691_s22 + $0x1b8] sm:$0xf0] }
 0x1be   : > { %v2113_v25 = vmax.f32 %v1985_v22, 0.0  ;;  %v1348_v26 = vpop.f32.mrf.mxu2  ;;  %v1922_v37 = vadd.f32 %v4004_v15, %v1790_v29 }
 0x1bf   : > { %v1677_v27 = vpop.f32.mrf.mxu3 }
 0x1c0   : > { %v3431_v28 = vpack.c.bf16 %v2113_v25, %v2112_v24  ;;  %v1190_v30 = vpop.f32.mrf.mxu0  ;;  %v1678_v32 = vadd.f32 %v1677_v27, %v1348_v26  ;;  %v2050_v51 = vmax.f32 %v1922_v37, 0.0  ;;  %v2683_v24 = vor.u32 %v3099_v11, %v2682_v10 }
 0x1c1   : > { %v1519_v31 = vpop.f32.mrf.mxu1  ;;  %v2939_v25 = vor.u32 %v3163_v63, %v2938_v12  ;;  %v2687_v26 = vor.u32 %v3098_v3, %v2684_v17 }
 0x1c2   : > { %3555 = vst [vmem:[%s3801_s10 + $0x180] sm:$0xff] %v3431_v28   ;;  %v1520_v33 = vadd.f32 %v1519_v31, %v1190_v30  ;;  %v1854_v44 = vmul.f32 %v4010_v16, %v1678_v32  ;;  %v2943_v31 = vor.u32 %v3162_v18, %v2940_v19 }
 0x1c4   : > { %v1791_v38 = vmul.f32 %v4010_v16, %v1520_v33  ;;  %v1986_v57 = vadd.f32 %v4004_v15, %v1854_v44 }
 0x1c6   : > { %v1923_v45 = vadd.f32 %v4004_v15, %v1791_v38  ;;  %v1350_v46 = vpop.f32.mrf.mxu2  ;;  %v2114_v62 = vmax.f32 %v1986_v57, 0.0  ;;  %v2948_v57 = vld [vmem:[%s3691_s22 + $0x3c8] sm:$0xf0] }
 0x1c7   : > { %v1679_v47 = vpop.f32.mrf.mxu3 }
 0x1c8   : > { %v2051_v52 = vmax.f32 %v1923_v45, 0.0  ;;  %v1680_v53 = vadd.f32 %v1679_v47, %v1350_v46  ;;  %v1193_v54 = vpop.f32.mrf.mxu0 }
 0x1c9   : > { %v1522_v56 = vpop.f32.mrf.mxu1 }
 0x1ca   : > { %v3276_v58 = vpack.c.bf16 %v2051_v52, %v2050_v51  ;;  %v1855_v59 = vmul.f32 %v4010_v16, %v1680_v53  ;;  %v1523_v61 = vadd.f32 %v1522_v56, %v1193_v54  ;;  %v3165_v53 = vld [vmem:[%s3691_s22 + $0x3c4] sm:$0xf0]  ;;  %v3100_v54 = vld [vmem:[%s3691_s22 + $0x1c4] sm:$0xf] }
 0x1cb   : > { %1232 = vmatmul.bf16.gmra.mxu0 %v2675_v48  ;;  %1392 = vmatmul.bf16.gmra.mxu2 %v2931_v49  ;;  %v2690_v48 = vld [vmem:[%s3691_s22 + $0x1c0] sm:$0xf]  ;;  %v3101_v49 = vld [vmem:[%s3691_s22 + $0x1c4] sm:$0xf0]  ;;  %v3164_v56 = vld [vmem:[%s3691_s22 + $0x3c4] sm:$0xf] }
 0x1cc   : > { %3524 = vst [vmem:[%s3801_s10 + $0x88] sm:$0xff] %v3276_v58   ;;  %v1987_v60 = vadd.f32 %v4004_v15, %v1855_v59  ;;  %1561 = vmatmul.bf16.gmra.mxu1 %v2679_v50  ;;  %1721 = vmatmul.bf16.gmra.mxu3 %v2935_v55  ;;  %v1792_v5 = vmul.f32 %v4010_v16, %v1523_v61  ;;  %v2946_v50 = vld [vmem:[%s3691_s22 + $0x3c0] sm:$0xf]  ;;  %v2692_v55 = vld [vmem:[%s3691_s22 + $0x1c8] sm:$0xf0] }
 0x1ce   : > { %v2115_v0 = vmax.f32 %v1987_v60, 0.0  ;;  %v1353_v1 = vpop.f32.mrf.mxu2  ;;  %v1924_v13 = vadd.f32 %v4004_v15, %v1792_v5 }
 0x1cf   : > { %v1682_v2 = vpop.f32.mrf.mxu3 }
 0x1d0   : > { %v3436_v4 = vpack.c.bf16 %v2115_v0, %v2114_v62  ;;  %v1195_v6 = vpop.f32.mrf.mxu0  ;;  %v1683_v8 = vadd.f32 %v1682_v2, %v1353_v1  ;;  %v2052_v27 = vmax.f32 %v1924_v13, 0.0  ;;  %v2691_v62 = vor.u32 %v3101_v49, %v2690_v48 }
 0x1d1   : > { %v1524_v7 = vpop.f32.mrf.mxu1  ;;  %v2947_v0 = vor.u32 %v3165_v53, %v2946_v50  ;;  %v2695_v1 = vor.u32 %v3100_v54, %v2692_v55 }
 0x1d2   : > { %3556 = vst [vmem:[%s3801_s10 + $0x188] sm:$0xff] %v3436_v4   ;;  %v1525_v9 = vadd.f32 %v1524_v7, %v1195_v6  ;;  %v1856_v20 = vmul.f32 %v4010_v16, %v1683_v8  ;;  %v2951_v7 = vor.u32 %v3164_v56, %v2948_v57 }
 0x1d4   : > { %v1793_v14 = vmul.f32 %v4010_v16, %v1525_v9  ;;  %v1988_v33 = vadd.f32 %v4004_v15, %v1856_v20 }
 0x1d6   : > { %v1925_v21 = vadd.f32 %v4004_v15, %v1793_v14  ;;  %v1355_v22 = vpop.f32.mrf.mxu2  ;;  %v2116_v38 = vmax.f32 %v1988_v33, 0.0  ;;  %v2956_v33 = vld [vmem:[%s3691_s22 + $0x3d8] sm:$0xf0] }
 0x1d7   : > { %v1684_v23 = vpop.f32.mrf.mxu3 }
 0x1d8   : > { %v2053_v28 = vmax.f32 %v1925_v21, 0.0  ;;  %v1685_v29 = vadd.f32 %v1684_v23, %v1355_v22  ;;  %v1198_v30 = vpop.f32.mrf.mxu0 }
 0x1d9   : > { %v1527_v32 = vpop.f32.mrf.mxu1 }
 0x1da   : > { %v3281_v34 = vpack.c.bf16 %v2053_v28, %v2052_v27  ;;  %v1857_v35 = vmul.f32 %v4010_v16, %v1685_v29  ;;  %v1528_v37 = vadd.f32 %v1527_v32, %v1198_v30  ;;  %v3167_v29 = vld [vmem:[%s3691_s22 + $0x3d4] sm:$0xf0]  ;;  %v3102_v30 = vld [vmem:[%s3691_s22 + $0x1d4] sm:$0xf] }
 0x1db   : > { %1237 = vmatmul.bf16.gmra.mxu0 %v2683_v24  ;;  %1397 = vmatmul.bf16.gmra.mxu2 %v2939_v25  ;;  %v2698_v24 = vld [vmem:[%s3691_s22 + $0x1d0] sm:$0xf]  ;;  %v3103_v25 = vld [vmem:[%s3691_s22 + $0x1d4] sm:$0xf0]  ;;  %v3166_v32 = vld [vmem:[%s3691_s22 + $0x3d4] sm:$0xf] }
 0x1dc   : > { %3525 = vst [vmem:[%s3801_s10 + $0x90] sm:$0xff] %v3281_v34   ;;  %v1989_v36 = vadd.f32 %v4004_v15, %v1857_v35  ;;  %1566 = vmatmul.bf16.gmra.mxu1 %v2687_v26  ;;  %1726 = vmatmul.bf16.gmra.mxu3 %v2943_v31  ;;  %v1794_v43 = vmul.f32 %v4010_v16, %v1528_v37  ;;  %v2954_v26 = vld [vmem:[%s3691_s22 + $0x3d0] sm:$0xf]  ;;  %v2700_v31 = vld [vmem:[%s3691_s22 + $0x1d8] sm:$0xf0] }
 0x1de   : > { %v2117_v39 = vmax.f32 %v1989_v36, 0.0  ;;  %v1358_v40 = vpop.f32.mrf.mxu2  ;;  %v1926_v51 = vadd.f32 %v4004_v15, %v1794_v43 }
 0x1df   : > { %v1687_v41 = vpop.f32.mrf.mxu3 }
 0x1e0   : > { %v3441_v42 = vpack.c.bf16 %v2117_v39, %v2116_v38  ;;  %v1200_v44 = vpop.f32.mrf.mxu0  ;;  %v1688_v46 = vadd.f32 %v1687_v41, %v1358_v40  ;;  %v2054_v2 = vmax.f32 %v1926_v51, 0.0  ;;  %v2699_v38 = vor.u32 %v3103_v25, %v2698_v24 }
 0x1e1   : > { %v1529_v45 = vpop.f32.mrf.mxu1  ;;  %v2955_v39 = vor.u32 %v3167_v29, %v2954_v26  ;;  %v2703_v40 = vor.u32 %v3102_v30, %v2700_v31 }
 0x1e2   : > { %3557 = vst [vmem:[%s3801_s10 + $0x190] sm:$0xff] %v3441_v42   ;;  %v1530_v47 = vadd.f32 %v1529_v45, %v1200_v44  ;;  %v1858_v58 = vmul.f32 %v4010_v16, %v1688_v46  ;;  %v2959_v45 = vor.u32 %v3166_v32, %v2956_v33 }
 0x1e4   : > { %v1795_v52 = vmul.f32 %v4010_v16, %v1530_v47  ;;  %v1990_v9 = vadd.f32 %v4004_v15, %v1858_v58 }
 0x1e6   : > { %v1927_v59 = vadd.f32 %v4004_v15, %v1795_v52  ;;  %v1360_v60 = vpop.f32.mrf.mxu2  ;;  %v2118_v14 = vmax.f32 %v1990_v9, 0.0  ;;  %v2964_v9 = vld [vmem:[%s3691_s22 + $0x3e8] sm:$0xf0] }
 0x1e7   : > { %v1689_v61 = vpop.f32.mrf.mxu3 }
 0x1e8   : > { %v2055_v4 = vmax.f32 %v1927_v59, 0.0  ;;  %v1690_v5 = vadd.f32 %v1689_v61, %v1360_v60  ;;  %v1203_v6 = vpop.f32.mrf.mxu0 }
 0x1e9   : > { %v1532_v8 = vpop.f32.mrf.mxu1 }
 0x1ea   : > { %v3286_v10 = vpack.c.bf16 %v2055_v4, %v2054_v2  ;;  %v1859_v11 = vmul.f32 %v4010_v16, %v1690_v5  ;;  %v1533_v13 = vadd.f32 %v1532_v8, %v1203_v6  ;;  %v3169_v5 = vld [vmem:[%s3691_s22 + $0x3e4] sm:$0xf0]  ;;  %v3104_v6 = vld [vmem:[%s3691_s22 + $0x1e4] sm:$0xf] }
 0x1eb   : > { %1242 = vmatmul.bf16.gmra.mxu0 %v2691_v62  ;;  %1402 = vmatmul.bf16.gmra.mxu2 %v2947_v0  ;;  %v2706_v62 = vld [vmem:[%s3691_s22 + $0x1e0] sm:$0xf]  ;;  %v3105_v0 = vld [vmem:[%s3691_s22 + $0x1e4] sm:$0xf0]  ;;  %v3168_v8 = vld [vmem:[%s3691_s22 + $0x3e4] sm:$0xf] }
 0x1ec   : > { %3526 = vst [vmem:[%s3801_s10 + $0x98] sm:$0xff] %v3286_v10   ;;  %v1991_v12 = vadd.f32 %v4004_v15, %v1859_v11  ;;  %1571 = vmatmul.bf16.gmra.mxu1 %v2695_v1  ;;  %1731 = vmatmul.bf16.gmra.mxu3 %v2951_v7  ;;  %v1796_v19 = vmul.f32 %v4010_v16, %v1533_v13  ;;  %v2962_v1 = vld [vmem:[%s3691_s22 + $0x3e0] sm:$0xf]  ;;  %v2708_v7 = vld [vmem:[%s3691_s22 + $0x1e8] sm:$0xf0] }
 0x1ee   : > { %v2119_v63 = vmax.f32 %v1991_v12, 0.0  ;;  %v1363_v3 = vpop.f32.mrf.mxu2  ;;  %v1928_v27 = vadd.f32 %v4004_v15, %v1796_v19 }
 0x1ef   : > { %v1692_v17 = vpop.f32.mrf.mxu3 }
 0x1f0   : > { %v3446_v18 = vpack.c.bf16 %v2119_v63, %v2118_v14  ;;  %v1205_v20 = vpop.f32.mrf.mxu0  ;;  %v1693_v22 = vadd.f32 %v1692_v17, %v1363_v3  ;;  %v2056_v41 = vmax.f32 %v1928_v27, 0.0  ;;  %v2707_v14 = vor.u32 %v3105_v0, %v2706_v62 }
 0x1f1   : > { %v1534_v21 = vpop.f32.mrf.mxu1  ;;  %v2963_v63 = vor.u32 %v3169_v5, %v2962_v1  ;;  %v2711_v3 = vor.u32 %v3104_v6, %v2708_v7 }
 0x1f2   : > { %3558 = vst [vmem:[%s3801_s10 + $0x198] sm:$0xff] %v3446_v18   ;;  %v1535_v23 = vadd.f32 %v1534_v21, %v1205_v20  ;;  %v1860_v34 = vmul.f32 %v4010_v16, %v1693_v22  ;;  %v2967_v21 = vor.u32 %v3168_v8, %v2964_v9 }
 0x1f4   : > { %v1797_v28 = vmul.f32 %v4010_v16, %v1535_v23  ;;  %v1992_v47 = vadd.f32 %v4004_v15, %v1860_v34 }
 0x1f6   : > { %v1929_v35 = vadd.f32 %v4004_v15, %v1797_v28  ;;  %v1365_v36 = vpop.f32.mrf.mxu2  ;;  %v2120_v52 = vmax.f32 %v1992_v47, 0.0  ;;  %v2972_v47 = vld [vmem:[%s3691_s22 + $0x3f8] sm:$0xf0] }
 0x1f7   : > { %v1694_v37 = vpop.f32.mrf.mxu3 }
 0x1f8   : > { %v2057_v42 = vmax.f32 %v1929_v35, 0.0  ;;  %v1695_v43 = vadd.f32 %v1694_v37, %v1365_v36  ;;  %v1208_v44 = vpop.f32.mrf.mxu0 }
 0x1f9   : > { %v1537_v46 = vpop.f32.mrf.mxu1 }
 0x1fa   : > { %v3291_v48 = vpack.c.bf16 %v2057_v42, %v2056_v41  ;;  %v1861_v49 = vmul.f32 %v4010_v16, %v1695_v43  ;;  %v1538_v51 = vadd.f32 %v1537_v46, %v1208_v44  ;;  %v3171_v43 = vld [vmem:[%s3691_s22 + $0x3f4] sm:$0xf0]  ;;  %v3106_v44 = vld [vmem:[%s3691_s22 + $0x1f4] sm:$0xf] }
 0x1fb   : > { %1247 = vmatmul.bf16.gmra.mxu0 %v2699_v38  ;;  %1407 = vmatmul.bf16.gmra.mxu2 %v2955_v39  ;;  %v2714_v38 = vld [vmem:[%s3691_s22 + $0x1f0] sm:$0xf]  ;;  %v3107_v39 = vld [vmem:[%s3691_s22 + $0x1f4] sm:$0xf0]  ;;  %v3170_v46 = vld [vmem:[%s3691_s22 + $0x3f4] sm:$0xf] }
 0x1fc   : > { %3527 = vst [vmem:[%s3801_s10 + $0xa0] sm:$0xff] %v3291_v48   ;;  %v1993_v50 = vadd.f32 %v4004_v15, %v1861_v49  ;;  %1576 = vmatmul.bf16.gmra.mxu1 %v2703_v40  ;;  %1736 = vmatmul.bf16.gmra.mxu3 %v2959_v45  ;;  %v1798_v57 = vmul.f32 %v4010_v16, %v1538_v51  ;;  %v2970_v40 = vld [vmem:[%s3691_s22 + $0x3f0] sm:$0xf]  ;;  %v2716_v45 = vld [vmem:[%s3691_s22 + $0x1f8] sm:$0xf0] }
 0x1fe   : > { %v2121_v53 = vmax.f32 %v1993_v50, 0.0  ;;  %v1368_v54 = vpop.f32.mrf.mxu2  ;;  %v1930_v2 = vadd.f32 %v4004_v15, %v1798_v57 }
 0x1ff   : > { %v1697_v55 = vpop.f32.mrf.mxu3 }
 0x200   : > { %v3451_v56 = vpack.c.bf16 %v2121_v53, %v2120_v52  ;;  %v1210_v58 = vpop.f32.mrf.mxu0  ;;  %v1698_v60 = vadd.f32 %v1697_v55, %v1368_v54  ;;  %v2058_v17 = vmax.f32 %v1930_v2, 0.0  ;;  %v2715_v52 = vor.u32 %v3107_v39, %v2714_v38 }
 0x201   : > { %v1539_v59 = vpop.f32.mrf.mxu1  ;;  %v2971_v53 = vor.u32 %v3171_v43, %v2970_v40  ;;  %v2719_v54 = vor.u32 %v3106_v44, %v2716_v45 }
 0x202   : > { %3559 = vst [vmem:[%s3801_s10 + $0x1a0] sm:$0xff] %v3451_v56   ;;  %v1540_v61 = vadd.f32 %v1539_v59, %v1210_v58  ;;  %v1862_v10 = vmul.f32 %v4010_v16, %v1698_v60  ;;  %v2975_v59 = vor.u32 %v3170_v46, %v2972_v47 }
 0x204   : > { %v1799_v4 = vmul.f32 %v4010_v16, %v1540_v61  ;;  %v1994_v23 = vadd.f32 %v4004_v15, %v1862_v10 }
 0x206   : > { %v1931_v11 = vadd.f32 %v4004_v15, %v1799_v4  ;;  %v1370_v12 = vpop.f32.mrf.mxu2  ;;  %v2122_v28 = vmax.f32 %v1994_v23, 0.0 }
 0x207   : > { %v1699_v13 = vpop.f32.mrf.mxu3 }
 0x208   : > { %v2059_v18 = vmax.f32 %v1931_v11, 0.0  ;;  %v1700_v19 = vadd.f32 %v1699_v13, %v1370_v12  ;;  %v1213_v20 = vpop.f32.mrf.mxu0 }
 0x209   : > { %v1542_v22 = vpop.f32.mrf.mxu1 }
 0x20a   : > { %v3296_v24 = vpack.c.bf16 %v2059_v18, %v2058_v17  ;;  %v1863_v25 = vmul.f32 %v4010_v16, %v1700_v19  ;;  %v1543_v27 = vadd.f32 %v1542_v22, %v1213_v20 }
 0x20b   : > { %1252 = vmatmul.bf16.gmra.mxu0 %v2707_v14  ;;  %1412 = vmatmul.bf16.gmra.mxu2 %v2963_v63 }
 0x20c   : > { %3528 = vst [vmem:[%s3801_s10 + $0xa8] sm:$0xff] %v3296_v24   ;;  %v1995_v26 = vadd.f32 %v4004_v15, %v1863_v25  ;;  %1581 = vmatmul.bf16.gmra.mxu1 %v2711_v3  ;;  %1741 = vmatmul.bf16.gmra.mxu3 %v2967_v21  ;;  %v1800_v33 = vmul.f32 %v4010_v16, %v1543_v27  ;;  %v4222_v25 = vld [vmem:[%s4320_s3] ss:$0 sm:$0xff] }
 0x20e   : > { %v2123_v29 = vmax.f32 %v1995_v26, 0.0  ;;  %v1373_v30 = vpop.f32.mrf.mxu2  ;;  %v1932_v41 = vadd.f32 %v4004_v15, %v1800_v33 }
 0x20f   : > { %v1702_v31 = vpop.f32.mrf.mxu3 }
 0x210   : > { %v3456_v32 = vpack.c.bf16 %v2123_v29, %v2122_v28  ;;  %v1215_v34 = vpop.f32.mrf.mxu0  ;;  %v1703_v36 = vadd.f32 %v1702_v31, %v1373_v30  ;;  %v2060_v55 = vmax.f32 %v1932_v41, 0.0 }
 0x211   : > { %v1544_v35 = vpop.f32.mrf.mxu1 }
 0x212   : > { %3560 = vst [vmem:[%s3801_s10 + $0x1a8] sm:$0xff] %v3456_v32   ;;  %v1545_v37 = vadd.f32 %v1544_v35, %v1215_v34  ;;  %v1864_v48 = vmul.f32 %v4010_v16, %v1703_v36 }
 0x214   : > { %v1801_v42 = vmul.f32 %v4010_v16, %v1545_v37  ;;  %v1996_v61 = vadd.f32 %v4004_v15, %v1864_v48 }
 0x216   : > { %v1933_v49 = vadd.f32 %v4004_v15, %v1801_v42  ;;  %v1375_v50 = vpop.f32.mrf.mxu2  ;;  %v2124_v4 = vmax.f32 %v1996_v61, 0.0 }
 0x217   : > { %v1704_v51 = vpop.f32.mrf.mxu3 }
 0x218   : > { %v2061_v56 = vmax.f32 %v1933_v49, 0.0  ;;  %v1705_v57 = vadd.f32 %v1704_v51, %v1375_v50  ;;  %v1218_v58 = vpop.f32.mrf.mxu0 }
 0x219   : > { %v1547_v60 = vpop.f32.mrf.mxu1 }
 0x21a   : > { %v3301_v62 = vpack.c.bf16 %v2061_v56, %v2060_v55  ;;  %v1865_v0 = vmul.f32 %v4010_v16, %v1705_v57  ;;  %v1548_v2 = vadd.f32 %v1547_v60, %v1218_v58 }
 0x21b   : > { %1257 = vmatmul.bf16.gmra.mxu0 %v2715_v52  ;;  %1417 = vmatmul.bf16.gmra.mxu2 %v2971_v53 }
 0x21c   : > { %3529 = vst [vmem:[%s3801_s10 + $0xb0] sm:$0xff] %v3301_v62   ;;  %v1997_v1 = vadd.f32 %v4004_v15, %v1865_v0  ;;  %1586 = vmatmul.bf16.gmra.mxu1 %v2719_v54  ;;  %1746 = vmatmul.bf16.gmra.mxu3 %v2975_v59  ;;  %v1802_v9 = vmul.f32 %v4010_v16, %v1548_v2 }
 0x21e   : > { %v2125_v5 = vmax.f32 %v1997_v1, 0.0  ;;  %v1378_v6 = vpop.f32.mrf.mxu2  ;;  %v1934_v14 = vadd.f32 %v4004_v15, %v1802_v9 }
 0x21f   : > { %v1707_v7 = vpop.f32.mrf.mxu3 }
 0x220   : > { %v3461_v8 = vpack.c.bf16 %v2125_v5, %v2124_v4  ;;  %v1220_v10 = vpop.f32.mrf.mxu0  ;;  %v1708_v12 = vadd.f32 %v1707_v7, %v1378_v6  ;;  %v2062_v20 = vmax.f32 %v1934_v14, 0.0 }
 0x221   : > { %v1549_v11 = vpop.f32.mrf.mxu1 }
 0x222   : > { %3561 = vst [vmem:[%s3801_s10 + $0x1b0] sm:$0xff] %v3461_v8   ;;  %v1550_v13 = vadd.f32 %v1549_v11, %v1220_v10  ;;  %v1866_v3 = vmul.f32 %v4010_v16, %v1708_v12 }
 0x224   : > { %v1803_v63 = vmul.f32 %v4010_v16, %v1550_v13  ;;  %v1998_v26 = vadd.f32 %v4222_v25, %v1866_v3 }
 0x226   : > { %v1935_v17 = vadd.f32 %v4004_v15, %v1803_v63  ;;  %v1380_v18 = vpop.f32.mrf.mxu2  ;;  %v4228_v15 = vld [vmem:[%s4319_s2] ss:$0 sm:$0xff]  ;;  %v2126_v30 = vmax.f32 %v1998_v26, 0.0 }
 0x227   : > { %v1709_v19 = vpop.f32.mrf.mxu3 }
 0x228   : > { %v2063_v21 = vmax.f32 %v1935_v17, 0.0  ;;  %v1710_v22 = vadd.f32 %v1709_v19, %v1380_v18  ;;  %v1223_v23 = vpop.f32.mrf.mxu0 }
 0x229   : > { %v1552_v24 = vpop.f32.mrf.mxu1 }
 0x22a   : > { %v3306_v27 = vpack.c.bf16 %v2063_v21, %v2062_v20  ;;  %v1867_v16 = vmul.f32 %v4228_v15, %v1710_v22  ;;  %v1553_v29 = vadd.f32 %v1552_v24, %v1223_v23 }
 0x22c   : > { %3530 = vst [vmem:[%s3801_s10 + $0xb8] sm:$0xff] %v3306_v27   ;;  %v1999_v28 = vadd.f32 %v4222_v25, %v1867_v16  ;;  %v1804_v35 = vmul.f32 %v4228_v15, %v1553_v29 }
 0x22e   : > { %v2127_v31 = vmax.f32 %v1999_v28, 0.0  ;;  %v1383_v32 = vpop.f32.mrf.mxu2  ;;  %v1936_v40 = vadd.f32 %v4222_v25, %v1804_v35 }
 0x22f   : > { %v1712_v33 = vpop.f32.mrf.mxu3 }
 0x230   : > { %v3466_v34 = vpack.c.bf16 %v2127_v31, %v2126_v30  ;;  %v1225_v36 = vpop.f32.mrf.mxu0  ;;  %v1713_v38 = vadd.f32 %v1712_v33, %v1383_v32  ;;  %v2064_v46 = vmax.f32 %v1936_v40, 0.0 }
 0x231   : > { %v1554_v37 = vpop.f32.mrf.mxu1 }
 0x232   : > { %3562 = vst [vmem:[%s3801_s10 + $0x1b8] sm:$0xff] %v3466_v34   ;;  %v1555_v39 = vadd.f32 %v1554_v37, %v1225_v36  ;;  %v1868_v42 = vmul.f32 %v4228_v15, %v1713_v38 }
 0x234   : > { %v1805_v41 = vmul.f32 %v4228_v15, %v1555_v39  ;;  %v2000_v51 = vadd.f32 %v4222_v25, %v1868_v42 }
 0x236   : > { %v1937_v43 = vadd.f32 %v4222_v25, %v1805_v41  ;;  %v1385_v44 = vpop.f32.mrf.mxu2  ;;  %v2128_v56 = vmax.f32 %v2000_v51, 0.0 }
 0x237   : > { %v1714_v45 = vpop.f32.mrf.mxu3 }
 0x238   : > { %v2065_v47 = vmax.f32 %v1937_v43, 0.0  ;;  %v1715_v48 = vadd.f32 %v1714_v45, %v1385_v44  ;;  %v1228_v49 = vpop.f32.mrf.mxu0 }
 0x239   : > { %v1557_v50 = vpop.f32.mrf.mxu1 }
 0x23a   : > { %v3311_v52 = vpack.c.bf16 %v2065_v47, %v2064_v46  ;;  %v1869_v53 = vmul.f32 %v4228_v15, %v1715_v48  ;;  %v1558_v55 = vadd.f32 %v1557_v50, %v1228_v49 }
 0x23c   : > { %3531 = vst [vmem:[%s3801_s10 + $0xc0] sm:$0xff] %v3311_v52   ;;  %v2001_v54 = vadd.f32 %v4222_v25, %v1869_v53  ;;  %v1806_v61 = vmul.f32 %v4228_v15, %v1558_v55 }
 0x23e   : > { %v2129_v57 = vmax.f32 %v2001_v54, 0.0  ;;  %v1388_v58 = vpop.f32.mrf.mxu2  ;;  %v1938_v4 = vadd.f32 %v4222_v25, %v1806_v61 }
 0x23f   : > { %v1717_v59 = vpop.f32.mrf.mxu3 }
 0x240   : > { %v3471_v60 = vpack.c.bf16 %v2129_v57, %v2128_v56  ;;  %v1230_v62 = vpop.f32.mrf.mxu0  ;;  %v1718_v1 = vadd.f32 %v1717_v59, %v1388_v58  ;;  %v2066_v10 = vmax.f32 %v1938_v4, 0.0 }
 0x241   : > { %v1559_v0 = vpop.f32.mrf.mxu1 }
 0x242   : > { %3563 = vst [vmem:[%s3801_s10 + $0x1c0] sm:$0xff] %v3471_v60   ;;  %v1560_v2 = vadd.f32 %v1559_v0, %v1230_v62  ;;  %v1870_v6 = vmul.f32 %v4228_v15, %v1718_v1 }
 0x244   : > { %v1807_v5 = vmul.f32 %v4228_v15, %v1560_v2  ;;  %v2002_v63 = vadd.f32 %v4222_v25, %v1870_v6 }
 0x246   : > { %v1939_v7 = vadd.f32 %v4222_v25, %v1807_v5  ;;  %v1390_v8 = vpop.f32.mrf.mxu2  ;;  %v2130_v20 = vmax.f32 %v2002_v63, 0.0 }
 0x247   : > { %v1719_v9 = vpop.f32.mrf.mxu3 }
 0x248   : > { %v2067_v11 = vmax.f32 %v1939_v7, 0.0  ;;  %v1720_v12 = vadd.f32 %v1719_v9, %v1390_v8  ;;  %v1233_v13 = vpop.f32.mrf.mxu0 }
 0x249   : > { %v1562_v14 = vpop.f32.mrf.mxu1 }
 0x24a   : > { %v3316_v3 = vpack.c.bf16 %v2067_v11, %v2066_v10  ;;  %v1871_v17 = vmul.f32 %v4228_v15, %v1720_v12  ;;  %v1563_v19 = vadd.f32 %v1562_v14, %v1233_v13 }
 0x24c   : > { %3532 = vst [vmem:[%s3801_s10 + $0xc8] sm:$0xff] %v3316_v3   ;;  %v2003_v18 = vadd.f32 %v4222_v25, %v1871_v17  ;;  %v1808_v26 = vmul.f32 %v4228_v15, %v1563_v19 }
 0x24e   : > { %v2131_v21 = vmax.f32 %v2003_v18, 0.0  ;;  %v1393_v22 = vpop.f32.mrf.mxu2  ;;  %v1940_v30 = vadd.f32 %v4222_v25, %v1808_v26 }
 0x24f   : > { %v1722_v23 = vpop.f32.mrf.mxu3 }
 0x250   : > { %v3476_v24 = vpack.c.bf16 %v2131_v21, %v2130_v20  ;;  %v1235_v27 = vpop.f32.mrf.mxu0  ;;  %v1723_v28 = vadd.f32 %v1722_v23, %v1393_v22  ;;  %v2068_v36 = vmax.f32 %v1940_v30, 0.0 }
 0x251   : > { %v1564_v16 = vpop.f32.mrf.mxu1 }
 0x252   : > { %3564 = vst [vmem:[%s3801_s10 + $0x1c8] sm:$0xff] %v3476_v24   ;;  %v1565_v29 = vadd.f32 %v1564_v16, %v1235_v27  ;;  %v1872_v32 = vmul.f32 %v4228_v15, %v1723_v28 }
 0x254   : > { %v1809_v31 = vmul.f32 %v4228_v15, %v1565_v29  ;;  %v2004_v41 = vadd.f32 %v4222_v25, %v1872_v32 }
 0x256   : > { %v1941_v33 = vadd.f32 %v4222_v25, %v1809_v31  ;;  %v1395_v34 = vpop.f32.mrf.mxu2  ;;  %v2132_v46 = vmax.f32 %v2004_v41, 0.0 }
 0x257   : > { %v1724_v35 = vpop.f32.mrf.mxu3 }
 0x258   : > { %v2069_v37 = vmax.f32 %v1941_v33, 0.0  ;;  %v1725_v38 = vadd.f32 %v1724_v35, %v1395_v34  ;;  %v1238_v39 = vpop.f32.mrf.mxu0 }
 0x259   : > { %v1567_v40 = vpop.f32.mrf.mxu1 }
 0x25a   : > { %v3321_v42 = vpack.c.bf16 %v2069_v37, %v2068_v36  ;;  %v1873_v43 = vmul.f32 %v4228_v15, %v1725_v38  ;;  %v1568_v45 = vadd.f32 %v1567_v40, %v1238_v39 }
 0x25c   : > { %3533 = vst [vmem:[%s3801_s10 + $0xd0] sm:$0xff] %v3321_v42   ;;  %v2005_v44 = vadd.f32 %v4222_v25, %v1873_v43  ;;  %v1810_v51 = vmul.f32 %v4228_v15, %v1568_v45 }
 0x25e   : > { %v2133_v47 = vmax.f32 %v2005_v44, 0.0  ;;  %v1398_v48 = vpop.f32.mrf.mxu2  ;;  %v1942_v56 = vadd.f32 %v4222_v25, %v1810_v51 }
 0x25f   : > { %v1727_v49 = vpop.f32.mrf.mxu3 }
 0x260   : > { %v3481_v50 = vpack.c.bf16 %v2133_v47, %v2132_v46  ;;  %v1240_v52 = vpop.f32.mrf.mxu0  ;;  %v1728_v54 = vadd.f32 %v1727_v49, %v1398_v48  ;;  %v2070_v62 = vmax.f32 %v1942_v56, 0.0 }
 0x261   : > { %v1569_v53 = vpop.f32.mrf.mxu1 }
 0x262   : > { %3565 = vst [vmem:[%s3801_s10 + $0x1d0] sm:$0xff] %v3481_v50   ;;  %v1570_v55 = vadd.f32 %v1569_v53, %v1240_v52  ;;  %v1874_v58 = vmul.f32 %v4228_v15, %v1728_v54 }
 0x264   : > { %v1811_v57 = vmul.f32 %v4228_v15, %v1570_v55  ;;  %v2006_v5 = vadd.f32 %v4222_v25, %v1874_v58 }
 0x266   : > { %v1943_v59 = vadd.f32 %v4222_v25, %v1811_v57  ;;  %v1400_v60 = vpop.f32.mrf.mxu2  ;;  %v2134_v10 = vmax.f32 %v2006_v5, 0.0 }
 0x267   : > { %v1729_v61 = vpop.f32.mrf.mxu3 }
 0x268   : > { %v2071_v0 = vmax.f32 %v1943_v59, 0.0  ;;  %v1730_v1 = vadd.f32 %v1729_v61, %v1400_v60  ;;  %v1243_v2 = vpop.f32.mrf.mxu0 }
 0x269   : > { %v1572_v4 = vpop.f32.mrf.mxu1 }
 0x26a   : > { %v3326_v6 = vpack.c.bf16 %v2071_v0, %v2070_v62  ;;  %v1875_v7 = vmul.f32 %v4228_v15, %v1730_v1  ;;  %v1573_v9 = vadd.f32 %v1572_v4, %v1243_v2 }
 0x26c   : > { %3534 = vst [vmem:[%s3801_s10 + $0xd8] sm:$0xff] %v3326_v6   ;;  %v2007_v8 = vadd.f32 %v4222_v25, %v1875_v7  ;;  %v1812_v63 = vmul.f32 %v4228_v15, %v1573_v9 }
 0x26e   : > { %v2135_v11 = vmax.f32 %v2007_v8, 0.0  ;;  %v1403_v12 = vpop.f32.mrf.mxu2  ;;  %v1944_v20 = vadd.f32 %v4222_v25, %v1812_v63 }
 0x26f   : > { %v1732_v13 = vpop.f32.mrf.mxu3 }
 0x270   : > { %v3486_v14 = vpack.c.bf16 %v2135_v11, %v2134_v10  ;;  %v1245_v3 = vpop.f32.mrf.mxu0  ;;  %v1733_v18 = vadd.f32 %v1732_v13, %v1403_v12  ;;  %v2072_v27 = vmax.f32 %v1944_v20, 0.0 }
 0x271   : > { %v1574_v17 = vpop.f32.mrf.mxu1 }
 0x272   : > { %3566 = vst [vmem:[%s3801_s10 + $0x1d8] sm:$0xff] %v3486_v14   ;;  %v1575_v19 = vadd.f32 %v1574_v17, %v1245_v3  ;;  %v1876_v22 = vmul.f32 %v4228_v15, %v1733_v18 }
 0x274   : > { %v1813_v21 = vmul.f32 %v4228_v15, %v1575_v19  ;;  %v2008_v31 = vadd.f32 %v4222_v25, %v1876_v22 }
 0x276   : > { %v1945_v23 = vadd.f32 %v4222_v25, %v1813_v21  ;;  %v1405_v24 = vpop.f32.mrf.mxu2  ;;  %v2136_v36 = vmax.f32 %v2008_v31, 0.0 }
 0x277   : > { %v1734_v26 = vpop.f32.mrf.mxu3 }
 0x278   : > { %v2073_v16 = vmax.f32 %v1945_v23, 0.0  ;;  %v1735_v28 = vadd.f32 %v1734_v26, %v1405_v24  ;;  %v1248_v29 = vpop.f32.mrf.mxu0 }
 0x279   : > { %v1577_v30 = vpop.f32.mrf.mxu1 }
 0x27a   : > { %v3331_v32 = vpack.c.bf16 %v2073_v16, %v2072_v27  ;;  %v1877_v33 = vmul.f32 %v4228_v15, %v1735_v28  ;;  %v1578_v35 = vadd.f32 %v1577_v30, %v1248_v29 }
 0x27c   : > { %3535 = vst [vmem:[%s3801_s10 + $0xe0] sm:$0xff] %v3331_v32   ;;  %v2009_v34 = vadd.f32 %v4222_v25, %v1877_v33  ;;  %v1814_v41 = vmul.f32 %v4228_v15, %v1578_v35 }
 0x27e   : > { %v2137_v37 = vmax.f32 %v2009_v34, 0.0  ;;  %v1408_v38 = vpop.f32.mrf.mxu2  ;;  %v1946_v46 = vadd.f32 %v4222_v25, %v1814_v41 }
 0x27f   : > { %v1737_v39 = vpop.f32.mrf.mxu3 }
 0x280   : > { %v3491_v40 = vpack.c.bf16 %v2137_v37, %v2136_v36  ;;  %v1250_v42 = vpop.f32.mrf.mxu0  ;;  %v1738_v44 = vadd.f32 %v1737_v39, %v1408_v38  ;;  %v2074_v52 = vmax.f32 %v1946_v46, 0.0 }
 0x281   : > { %v1579_v43 = vpop.f32.mrf.mxu1 }
 0x282   : > { %3567 = vst [vmem:[%s3801_s10 + $0x1e0] sm:$0xff] %v3491_v40   ;;  %v1580_v45 = vadd.f32 %v1579_v43, %v1250_v42  ;;  %v1878_v48 = vmul.f32 %v4228_v15, %v1738_v44 }
 0x284   : > { %v1815_v47 = vmul.f32 %v4228_v15, %v1580_v45  ;;  %v2010_v57 = vadd.f32 %v4222_v25, %v1878_v48 }
 0x286   : > { %v1947_v49 = vadd.f32 %v4222_v25, %v1815_v47  ;;  %v1410_v50 = vpop.f32.mrf.mxu2  ;;  %v2138_v62 = vmax.f32 %v2010_v57, 0.0 }
 0x287   : > { %v1739_v51 = vpop.f32.mrf.mxu3 }
 0x288   : > { %v2075_v53 = vmax.f32 %v1947_v49, 0.0  ;;  %v1740_v54 = vadd.f32 %v1739_v51, %v1410_v50  ;;  %v1253_v55 = vpop.f32.mrf.mxu0 }
 0x289   : > { %v1582_v56 = vpop.f32.mrf.mxu1 }
 0x28a   : > { %v3336_v58 = vpack.c.bf16 %v2075_v53, %v2074_v52  ;;  %v1879_v59 = vmul.f32 %v4228_v15, %v1740_v54  ;;  %v1583_v61 = vadd.f32 %v1582_v56, %v1253_v55 }
 0x28c   : > { %3536 = vst [vmem:[%s3801_s10 + $0xe8] sm:$0xff] %v3336_v58   ;;  %v2011_v60 = vadd.f32 %v4222_v25, %v1879_v59  ;;  %v1816_v5 = vmul.f32 %v4228_v15, %v1583_v61 }
 0x28e   : > { %v2139_v0 = vmax.f32 %v2011_v60, 0.0  ;;  %v1413_v1 = vpop.f32.mrf.mxu2  ;;  %v1948_v10 = vadd.f32 %v4222_v25, %v1816_v5 }
 0x28f   : > { %v1742_v2 = vpop.f32.mrf.mxu3 }
 0x290   : > { %v3496_v4 = vpack.c.bf16 %v2139_v0, %v2138_v62  ;;  %v1255_v6 = vpop.f32.mrf.mxu0  ;;  %v1743_v8 = vadd.f32 %v1742_v2, %v1413_v1  ;;  %v2076_v3 = vmax.f32 %v1948_v10, 0.0 }
 0x291   : > { %v1584_v7 = vpop.f32.mrf.mxu1 }
 0x292   : > { %3568 = vst [vmem:[%s3801_s10 + $0x1e8] sm:$0xff] %v3496_v4   ;;  %v1585_v9 = vadd.f32 %v1584_v7, %v1255_v6  ;;  %v1880_v12 = vmul.f32 %v4228_v15, %v1743_v8 }
 0x294   : > { %v1817_v11 = vmul.f32 %v4228_v15, %v1585_v9  ;;  %v2012_v21 = vadd.f32 %v4222_v25, %v1880_v12 }
 0x296   : > { %v1949_v13 = vadd.f32 %v4222_v25, %v1817_v11  ;;  %v1415_v14 = vpop.f32.mrf.mxu2  ;;  %v2140_v27 = vmax.f32 %v2012_v21, 0.0 }
 0x297   : > { %v1744_v63 = vpop.f32.mrf.mxu3 }
 0x298   : > { %v2077_v17 = vmax.f32 %v1949_v13, 0.0  ;;  %v1745_v18 = vadd.f32 %v1744_v63, %v1415_v14  ;;  %v1258_v19 = vpop.f32.mrf.mxu0 }
 0x299   : > { %v1587_v20 = vpop.f32.mrf.mxu1 }
 0x29a   : > { %v3341_v22 = vpack.c.bf16 %v2077_v17, %v2076_v3  ;;  %v1881_v23 = vmul.f32 %v4228_v15, %v1745_v18  ;;  %v1588_v26 = vadd.f32 %v1587_v20, %v1258_v19 }
 0x29c   : > { %3537 = vst [vmem:[%s3801_s10 + $0xf0] sm:$0xff] %v3341_v22   ;;  %v2013_v24 = vadd.f32 %v4222_v25, %v1881_v23  ;;  %v1818_v31 = vmul.f32 %v4228_v15, %v1588_v26 }
 0x29e   : > { %v2141_v16 = vmax.f32 %v2013_v24, 0.0  ;;  %v1418_v28 = vpop.f32.mrf.mxu2  ;;  %v1950_v36 = vadd.f32 %v4222_v25, %v1818_v31 }
 0x29f   : > { %v1747_v29 = vpop.f32.mrf.mxu3 }
 0x2a0   : > { %v3501_v30 = vpack.c.bf16 %v2141_v16, %v2140_v27  ;;  %v1260_v32 = vpop.f32.mrf.mxu0  ;;  %v1748_v34 = vadd.f32 %v1747_v29, %v1418_v28  ;;  %v2078_v42 = vmax.f32 %v1950_v36, 0.0 }
 0x2a1   : > { %v1589_v33 = vpop.f32.mrf.mxu1 }
 0x2a2   : > { %3569 = vst [vmem:[%s3801_s10 + $0x1f0] sm:$0xff] %v3501_v30   ;;  %v1590_v35 = vadd.f32 %v1589_v33, %v1260_v32  ;;  %v1882_v38 = vmul.f32 %v4228_v15, %v1748_v34 }
 0x2a4   : > { %v1819_v37 = vmul.f32 %v4228_v15, %v1590_v35  ;;  %v2014_v45 = vadd.f32 %v4222_v25, %v1882_v38 }
 0x2a6   : > { %v1951_v39 = vadd.f32 %v4222_v25, %v1819_v37  ;;  %v1420_v40 = vpop.f32.mrf.mxu2  ;;  %v2142_v49 = vmax.f32 %v2014_v45, 0.0 }
 0x2a7   : > { %v1749_v41 = vpop.f32.mrf.mxu3 }
 0x2a8   : > { %v2079_v43 = vmax.f32 %v1951_v39, 0.0  ;;  %v1750_v44 = vadd.f32 %v1749_v41, %v1420_v40 }
 0x2aa   : > { %v3346_v46 = vpack.c.bf16 %v2079_v43, %v2078_v42  ;;  %v1883_v47 = vmul.f32 %v4228_v15, %v1750_v44 }
 0x2ac   : > { %3538 = vst [vmem:[%s3801_s10 + $0xf8] sm:$0xff] %v3346_v46   ;;  %v2015_v48 = vadd.f32 %v4222_v25, %v1883_v47 }
 0x2ae   : > { %v2143_v50 = vmax.f32 %v2015_v48, 0.0 }
 0x2b0   : > { %v3506_v51 = vpack.c.bf16 %v2143_v50, %v2142_v49 }
 0x2b2   : > { %3570 = vst [vmem:[%s3801_s10 + $0x1f8] sm:$0xff] %v3506_v51  }
 0x2b3 PF: > { %s14_s15 = sadd.s32 1, %s3607_s15  }
 0x2b4   : > { %p11_p4 = scmp.ge.s32.totalorder %s14_s15, 4  }
 0x2b6   :  { %13 = sbr.rel (!%p11_p4) target bundleno = 1 (0x1), region = 66 }

// kernel: landmarks_model_forward.7
= control target key start
LH: loop header
LB: loop body
LE: loop exit
PB: predicated region body
PF: predicated region fallthrough
CT: control target
= control target key end

     0   :  { %s4081_s0 = inlined_call_operand.vmem [shape: bf16[2,64,128], index: 0, kind: input, shape index: {}]   ;;  %s4082_s1 = inlined_call_operand.vmem [shape: bf16[128,128], index: 1, kind: input, shape index: {}]   ;;  %s4083_s2 = inlined_call_operand.vmem [shape: f32[1,128], index: 2, kind: input, shape index: {}]   ;;  %s4084_s3 = inlined_call_operand.vmem [shape: f32[1,128], index: 3, kind: input, shape index: {}]   ;;  %s4085_s4 = inlined_call_operand.vmem [shape: bf16[1152,128], index: 4, kind: input, shape index: {}]   ;;  %s4086_s5 = inlined_call_operand.vmem [shape: f32[1,128], index: 5, kind: input, shape index: {}]   ;;  %s4087_s6 = inlined_call_operand.vmem [shape: f32[1,128], index: 6, kind: input, shape index: {}]   ;;  %s4088_s7 = inlined_call_operand.vmem [shape: bf16[128,128], index: 7, kind: input, shape index: {}]   ;;  %s4089_s8 = inlined_call_operand.vmem [shape: f32[1,128], index: 8, kind: input, shape index: {}]   ;;  %s4090_s9 = inlined_call_operand.hbm [shape: f32[1,128], index: 9, kind: input, shape index: {}]   ;;  %s4091_s10 = inlined_call_operand.vmem [shape: bf16[128,128], index: 10, kind: input, shape index: {}]   ;;  %s4092_s11 = inlined_call_operand.hbm [shape: f32[1,128], index: 11, kind: input, shape index: {}]   ;;  %s4093_s12 = inlined_call_operand.vmem [shape: bf16[128,128], index: 12, kind: input, shape index: {}]   ;;  %s4094_s13 = inlined_call_operand.hbm [shape: f32[1,128], index: 13, kind: input, shape index: {}]   ;;  %s4095_s14 = inlined_call_operand.vmem [shape: bf16[128,128], index: 14, kind: input, shape index: {}]   ;;  %s4096_s15 = inlined_call_operand.hbm [shape: f32[1,128], index: 15, kind: input, shape index: {}]   ;;  %s4097_s16 = inlined_call_operand.hbm [shape: f32[1,128], index: 16, kind: input, shape index: {}]   ;;  %s4098_s17 = inlined_call_operand.vmem [shape: bf16[2,64,128], index: 17, kind: output, shape index: {}]  }
   0x1   :  { %4101 = sst [smem:[#allocation15_spill]] %s4081_s0 }
   0x2   :  { %4102 = sst [smem:[#allocation16_spill]] %s4082_s1 }
   0x3   :  { %4103 = sst [smem:[#allocation17_spill]] %s4090_s9 }
   0x4   :  { %4104 = sst [smem:[#allocation18_spill]] %s4092_s11 }
   0x5   :  { %4105 = sst [smem:[#allocation19_spill]] %s4096_s15 }
   0x6   :  { %22 = vsyncpa [#allocation4], 0 }
   0x7   :  { %23 = vsyncpa [#allocation6], 0 }
   0x8   :  { %24 = vsyncpa [#allocation9], 0  ;;  %s3424_s24 = smov 0  }
   0x9 LB: > { %4106 = sst [smem:[#allocation14_spill]] %s3325_s24  ;;  %s3433_s28 = sadd.s32 4294967295, %s3325_s24   ;;  %s3325_s24 = sphi %s3424_s24, %s30_s24  }
   0xa   : > { %s4107_s11 = sld [smem:[#allocation18_spill]]  ;;  %p2437_p0 = scmp.ge.s32.totalorder %s3325_s24, 1 }
   0xb   : > { %p423_p1 = scmp.lt.s32.totalorder %s3325_s24, 3  ;;  %p3114_p2 = scmp.eq.s32.totalorder %s3433_s28, 0 }
   0xc   : > { %s3327_s0 = smov [#allocation5]   ;;  %s4109_s15 = sld [smem:[#allocation19_spill]] }
   0xd   : > { %p3438_p3 = pnand %p2437_p0, %p423_p1  ;;  %s476_s30 = sshll.u32 %s3327_s0, 4  ;;  %s477_s30 = int_to_ptr.vmem [resolvable:$true] %s476_s30 }
   0xe   : > { %s4110_s9 = sld [smem:[#allocation17_spill]]  ;;  %s3328_s25 = smov [#allocation8]  }
   0xf   : > { %p3098_p4 = pneg %p3438_p3  ;;  %s506_s26 = sshll.u32 %s3328_s25, 4  ;;  %s507_s26 = int_to_ptr.vmem [resolvable:$true] %s506_s26 }
  0x10   : > { %s474_s27 = sshll.u32 %s4107_s11, 4  ;;  %s3329_s0 = smov [#allocation3]   ;;  %s475_s27 = int_to_ptr.hbm [resolvable:$true] %s474_s27 }
  0x11   : > { %p3452_p5 = pnand %p3114_p2, %p3098_p4  ;;  %s461_s18 = sshll.u32 %s3329_s0, 4  ;;  %s462_s18 = int_to_ptr.vmem [resolvable:$true] %s461_s18 }
  0x12   : > { %s504_s1 = sshll.u32 %s4109_s15, 4  ;;  %s489_s21 = sshll.u32 %s4094_s13, 4  ;;  %s505_s1 = int_to_ptr.hbm [resolvable:$true] %s504_s1  ;;  %s490_s21 = int_to_ptr.hbm [resolvable:$true] %s489_s21 }
  0x13   : > { %3104 = dma.hbm_to_vmem [thread:$0]  (!%p3452_p5), %s475_s27, 16, %s477_s30, [#allocation6]  }
  0x14   : > { %s459_s22 = sshll.u32 %s4110_s9, 4  ;;  %s516_s11 = sshll.u32 %s4097_s16, 4  ;;  %s460_s22 = int_to_ptr.hbm [resolvable:$true] %s459_s22  ;;  %s517_s11 = int_to_ptr.hbm [resolvable:$true] %s516_s11 }
  0x15   : > { %3110 = dma.hbm_to_vmem [thread:$0]  (!%p3452_p5), %s505_s1, 16, %s507_s26, [#allocation9]  }
  0x16   : > { %3101 = dma.hbm_to_vmem [thread:$0]  (!%p3452_p5), %s460_s22, 16, %s462_s18, [#allocation4]  }
  0x17   : > { %s3330_s15 = smov [#allocation7]   ;;  %s3331_s27 = smov [#allocation10]  }
  0x18   : > { %s491_s24 = sshll.u32 %s3330_s15, 4  ;;  %s518_s30 = sshll.u32 %s3331_s27, 4  ;;  %s492_s24 = int_to_ptr.vmem [resolvable:$true] %s491_s24  ;;  %s519_s30 = int_to_ptr.vmem [resolvable:$true] %s518_s30 }
  0x19   : > { %3107 = dma.hbm_to_vmem [thread:$0]  (!%p3452_p5), %s490_s21, 16, %s492_s24, [#allocation6]  }
  0x1a   : > { %3113 = dma.hbm_to_vmem [thread:$0]  (!%p3452_p5), %s517_s11, 16, %s519_s30, [#allocation9]  }
  0x1b   : > { %539 = sbr.rel (%p3438_p3) target bundleno = 1005 (0x3ed), region = 88 }
  0x20   : > { %3312 = dma.done.wait (%p3114_p2), [#allocation4], 16  }
  0x21   : > { %3314 = vsyncadd (%p3114_p2), [#allocation4], 4294967280 }
  0x22   : > { %3316 = dma.done.wait (%p3114_p2), [#allocation6], 32  }
  0x23   : > { %3318 = vsyncadd (%p3114_p2), [#allocation6], 4294967264 }
  0x24   : > { %3320 = dma.done.wait (%p3114_p2), [#allocation9], 32  }
  0x25   : > { %3322 = vsyncadd (%p3114_p2), [#allocation9], 4294967264  ;;  %s4112_s15 = sld [smem:[#allocation16_spill]]  ;;  %p612_p6 = scmp.lt.s32.totalorder %s3433_s28, 1  ;;  %v2950_v5 = vld [vmem:[%s4085_s4 + $0x78] sm:$0xff]  ;;  %v2949_v8 = vld [vmem:[%s4085_s4 + $0x70] sm:$0xff] }
  0x26   : > { %v2942_v6 = vld [vmem:[%s4085_s4 + $0x38] sm:$0xff]  ;;  %922 = vmatpush.bf16.msra.mxu1 %v2950_v5  ;;  %v2941_v9 = vld [vmem:[%s4085_s4 + $0x30] sm:$0xff]  ;;  %v2948_v11 = vld [vmem:[%s4085_s4 + $0x68] sm:$0xff]  ;;  %s4113_s30 = sld [smem:[#allocation15_spill]]  ;;  %v3332_v36 = vmov 0.0  }
  0x27   : > { %s4116_s28 = smov (!%p612_p6, %s3433_s28), 1  ;;  %999 = vmatpush.bf16.msra.mxu2 %v2942_v6  ;;  %v2940_v12 = vld [vmem:[%s4085_s4 + $0x28] sm:$0xff]  ;;  %v2958_v14 = vld [vmem:[%s4085_s4 + $0xb8] sm:$0xff]  ;;  %v2947_v16 = vld [vmem:[%s4085_s4 + $0x60] sm:$0xff]  ;;  %779 = vst [vmem:[#allocation2] sm:$0xff] %v3332_v36 }
  0x28   : > { %s2921_s23 = sshll.u32 %s4116_s28, 5  ;;  %v2966_v15 = vld [vmem:[%s4085_s4 + $0xf8] sm:$0xff]  ;;  %v2939_v17 = vld [vmem:[%s4085_s4 + $0x20] sm:$0xff]  ;;  %v2957_v20 = vld [vmem:[%s4085_s4 + $0xb0] sm:$0xff]  ;;  %780 = vst [vmem:[#allocation2 + $0x8] sm:$0xff] %v3332_v36 }
  0x29   : > { %v2965_v21 = vld [vmem:[%s4085_s4 + $0xf0] sm:$0xff]  ;;  %v2956_v22 = vld [vmem:[%s4085_s4 + $0xa8] sm:$0xff]  ;;  %v2955_v23 = vld [vmem:[%s4085_s4 + $0xa0] sm:$0xff]  ;;  %781 = vst [vmem:[#allocation2 + $0x10] sm:$0xff] %v3332_v36  ;;  %s621_s25 = scalar_lea.vmem %s4098_s17, %s2921_s23 }
  0x2a   : > { %923 = vmatpush.bf16.msra.mxu1 %v2949_v8  ;;  %v2946_v26 = vld [vmem:[%s4085_s4 + $0x58] sm:$0xff]  ;;  %v2945_v27 = vld [vmem:[%s4085_s4 + $0x50] sm:$0xff]  ;;  %v2964_v30 = vld [vmem:[%s4085_s4 + $0xe8] sm:$0xff]  ;;  %782 = vst [vmem:[#allocation2 + $0x18] sm:$0xff] %v3332_v36 }
  0x2b   : > { %v2934_v0 = vld [vmem:[%s4112_s15 + $0x38] sm:$0xff]  ;;  %v2933_v1 = vld [vmem:[%s4112_s15 + $0x30] sm:$0xff]  ;;  %v2932_v2 = vld [vmem:[%s4112_s15 + $0x28] sm:$0xff]  ;;  %1000 = vmatpush.bf16.msra.mxu2 %v2941_v9  ;;  %784 = vst [vmem:[#allocation2 + $0x28] sm:$0xff] %v3332_v36 }
  0x2c   : > { %718 = vmatpush.bf16.msra.mxu0 %v2934_v0  ;;  %3062 = vmatpush.bf16.msra.mxu3 %v2934_v0  ;;  %v2931_v3 = vld [vmem:[%s4112_s15 + $0x20] sm:$0xff]  ;;  %v2930_v4 = vld [vmem:[%s4112_s15 + $0x18] sm:$0xff]  ;;  %v2929_v7 = vld [vmem:[%s4112_s15 + $0x10] sm:$0xff]  ;;  %s3538_s9 = scalar_lea.vmem %s4113_s30, %s2921_s23  ;;  %785 = vst [vmem:[#allocation2 + $0x30] sm:$0xff] %v3332_v36 }
  0x2d   : > { %v2928_v10 = vld [vmem:[%s4112_s15 + $0x8] sm:$0xff]  ;;  %v2927_v13 = vld [vmem:[%s4112_s15] sm:$0xff]  ;;  %v2925_v19 = vld [vmem:[%s3538_s9 + $0x10] sm:$0xff]  ;;  %787 = vst [vmem:[#allocation2 + $0x40] sm:$0xff] %v3332_v36 }
  0x2e   : > { %924 = vmatpush.bf16.msra.mxu1 %v2948_v11  ;;  %v2923_v18 = vld [vmem:[%s3538_s9] sm:$0xff]  ;;  %v2924_v24 = vld [vmem:[%s3538_s9 + $0x8] sm:$0xff]  ;;  %v2926_v25 = vld [vmem:[%s3538_s9 + $0x18] sm:$0xff]  ;;  %788 = vst [vmem:[#allocation2 + $0x48] sm:$0xff] %v3332_v36 }
  0x2f   : > { %1001 = vmatpush.bf16.msra.mxu2 %v2940_v12  ;;  %v2938_v28 = vld [vmem:[%s4085_s4 + $0x18] sm:$0xff]  ;;  %v2944_v31 = vld [vmem:[%s4085_s4 + $0x48] sm:$0xff]  ;;  %v2937_v32 = vld [vmem:[%s4085_s4 + $0x10] sm:$0xff]  ;;  %790 = vst [vmem:[#allocation2 + $0x58] sm:$0xff] %v3332_v36 }
  0x30   : > { %719 = vmatpush.bf16.msra.mxu0 %v2933_v1  ;;  %3063 = vmatpush.bf16.msra.mxu3 %v2933_v1  ;;  %v2954_v29 = vld [vmem:[%s4085_s4 + $0x98] sm:$0xff]  ;;  %v2953_v33 = vld [vmem:[%s4085_s4 + $0x90] sm:$0xff]  ;;  %v2963_v34 = vld [vmem:[%s4085_s4 + $0xe0] sm:$0xff]  ;;  %791 = vst [vmem:[#allocation2 + $0x60] sm:$0xff] %v3332_v36 }
  0x31   : > { %v2943_v35 = vld [vmem:[%s4085_s4 + $0x40] sm:$0xff]  ;;  %v2936_v37 = vld [vmem:[%s4085_s4 + $0x8] sm:$0xff]  ;;  %v2962_v39 = vld [vmem:[%s4085_s4 + $0xd8] sm:$0xff]  ;;  %793 = vst [vmem:[#allocation2 + $0x70] sm:$0xff] %v3332_v36 }
  0x32   : > { %925 = vmatpush.bf16.msra.mxu1 %v2947_v16  ;;  %v2952_v38 = vld [vmem:[%s4085_s4 + $0x88] sm:$0xff]  ;;  %v2935_v40 = vld [vmem:[%s4085_s4] sm:$0xff]  ;;  %v2961_v42 = vld [vmem:[%s4085_s4 + $0xd0] sm:$0xff]  ;;  %794 = vst [vmem:[#allocation2 + $0x78] sm:$0xff] %v3332_v36 }
  0x33   : > { %1002 = vmatpush.bf16.msra.mxu2 %v2939_v17  ;;  %v2951_v41 = vld [vmem:[%s4085_s4 + $0x80] sm:$0xff]  ;;  %v2960_v43 = vld [vmem:[%s4085_s4 + $0xc8] sm:$0xff]  ;;  %796 = vst [vmem:[#allocation2 + $0x88] sm:$0xff] %v3332_v36  ;;  %v2974_v45 = vld [vmem:[%s4085_s4 + $0x138] sm:$0xff] }
  0x34   : > { %720 = vmatpush.bf16.msra.mxu0 %v2932_v2  ;;  %3064 = vmatpush.bf16.msra.mxu3 %v2932_v2  ;;  %797 = vst [vmem:[#allocation2 + $0x90] sm:$0xff] %v3332_v36  ;;  %v2959_v44 = vld [vmem:[%s4085_s4 + $0xc0] sm:$0xff]  ;;  %v2973_v48 = vld [vmem:[%s4085_s4 + $0x130] sm:$0xff]  ;;  %v2972_v51 = vld [vmem:[%s4085_s4 + $0x128] sm:$0xff] }
  0x35   : > { %799 = vst [vmem:[#allocation2 + $0xa0] sm:$0xff] %v3332_v36  ;;  %v3628_v46 = vld [vmem:[%s4083_s2] ss:$0 sm:$0xff]  ;;  %v818_v63 = vld [vmem:[#allocation2 + $0x7] sm:$0xff]  ;;  %v2982_v9 = vld [vmem:[%s4085_s4 + $0x178] sm:$0xff] }
  0x36   : > { %926 = vmatpush.bf16.msra.mxu1 %v2946_v26  ;;  %800 = vst [vmem:[#allocation2 + $0xa8] sm:$0xff] %v3332_v36  ;;  %v3633_v47 = vld [vmem:[%s4084_s3] ss:$0 sm:$0xff]  ;;  %v1028_v0 = vld [vmem:[#allocation2 + $0x9] sm:$0xff] }
  0x37   : > { %1003 = vmatpush.bf16.msra.mxu2 %v2938_v28  ;;  %802 = vst [vmem:[#allocation2 + $0xb8] sm:$0xff] %v3332_v36  ;;  %v2971_v60 = vld [vmem:[%s4085_s4 + $0x120] sm:$0xff]  ;;  %v2980_v26 = vld [vmem:[%s4085_s4 + $0x168] sm:$0xff]  ;;  %v2998_v28 = vld [vmem:[%s4085_s4 + $0x1f8] sm:$0xff] }
  0x38   : > { %721 = vmatpush.bf16.msra.mxu0 %v2931_v3  ;;  %3065 = vmatpush.bf16.msra.mxu3 %v2931_v3  ;;  %803 = vst [vmem:[#allocation2 + $0xc0] sm:$0xff] %v3332_v36 }
  0x39   : > { %805 = vst [vmem:[#allocation2 + $0xd0] sm:$0xff] %v3332_v36 }
  0x3a   : > { %927 = vmatpush.bf16.msra.mxu1 %v2945_v27  ;;  %806 = vst [vmem:[#allocation2 + $0xd8] sm:$0xff] %v3332_v36  ;;  %v2988_v27 = vld [vmem:[%s4085_s4 + $0x1a8] sm:$0xff] }
  0x3b   : > { %1004 = vmatpush.bf16.msra.mxu2 %v2937_v32  ;;  %807 = vst [vmem:[#allocation2 + $0xe0] sm:$0xff] %v3332_v36  ;;  %v2979_v32 = vld [vmem:[%s4085_s4 + $0x160] sm:$0xff] }
  0x3c   : > { %722 = vmatpush.bf16.msra.mxu0 %v2930_v4  ;;  %3066 = vmatpush.bf16.msra.mxu3 %v2930_v4  ;;  %808 = vst [vmem:[#allocation2 + $0xe8] sm:$0xff] %v3332_v36 }
  0x3e   : > { %928 = vmatpush.bf16.msra.mxu1 %v2944_v31  ;;  %v2969_v31 = vld [vmem:[%s4085_s4 + $0x110] sm:$0xff] }
  0x3f   : > { %1005 = vmatpush.bf16.msra.mxu2 %v2936_v37 }
  0x40   : > { %723 = vmatpush.bf16.msra.mxu0 %v2929_v7  ;;  %3067 = vmatpush.bf16.msra.mxu3 %v2929_v7 }
  0x42   : > { %929 = vmatpush.bf16.msra.mxu1 %v2943_v35 }
  0x43   : > { %1006 = vmatpush.bf16.msra.mxu2 %v2935_v40 }
  0x44   : > { %724 = vmatpush.bf16.msra.mxu0 %v2928_v10  ;;  %3068 = vmatpush.bf16.msra.mxu3 %v2928_v10  ;;  %v2990_v10 = vld [vmem:[%s4085_s4 + $0x1b8] sm:$0xff] }
  0x46   : > { %1330 = vmatpush.bf16.msrb.mxu1 %v2974_v45  ;;  %v2968_v45 = vld [vmem:[%s4085_s4 + $0x108] sm:$0xff] }
  0x47   : > { %1443 = vmatpush.bf16.msrb.mxu2 %v2982_v9 }
  0x48   : > { %725 = vmatpush.bf16.msra.mxu0 %v2927_v13  ;;  %3069 = vmatpush.bf16.msra.mxu3 %v2927_v13  ;;  %v2970_v13 = vld [vmem:[%s4085_s4 + $0x118] sm:$0xff] }
  0x4a   : > { %1331 = vmatpush.bf16.msrb.mxu1 %v2973_v48  ;;  %v2978_v48 = vld [vmem:[%s4085_s4 + $0x158] sm:$0xff] }
  0x4b   : > { %726 = vmatmul.bf16.vlgmr.msra.gmra.mxu0 %v2923_v18  ;;  %736 = vmatmul.bf16.vlgmr.msra.gmra.mxu3 %v2925_v19 }
  0x4c   : > { %1104 = vmatpush.bf16.msrb.mxu3 %v2958_v14  ;;  %1217 = vmatpush.bf16.msrb.mxu0 %v2966_v15  ;;  %v2981_v14 = vld [vmem:[%s4085_s4 + $0x170] sm:$0xff] }
  0x4d   : > { %v2989_v15 = vld [vmem:[%s4085_s4 + $0x1b0] sm:$0xff]  ;;  %1444 = vmatpush.bf16.msrb.mxu2 %v2981_v14  ;;  %v2991_v14 = vld [vmem:[%s4085_s4 + $0x1c0] sm:$0xff] }
  0x4e   : > { %1332 = vmatpush.bf16.msrb.mxu1 %v2972_v51  ;;  %v2977_v51 = vld [vmem:[%s4085_s4 + $0x150] sm:$0xff] }
  0x50   : > { %1105 = vmatpush.bf16.msrb.mxu3 %v2957_v20  ;;  %1218 = vmatpush.bf16.msrb.mxu0 %v2965_v21 }
  0x51   : > { %1445 = vmatpush.bf16.msrb.mxu2 %v2980_v26 }
  0x52   : > { %1333 = vmatpush.bf16.msrb.mxu1 %v2971_v60 }
  0x54   : > { %1106 = vmatpush.bf16.msrb.mxu3 %v2956_v22  ;;  %1219 = vmatpush.bf16.msrb.mxu0 %v2964_v30 }
  0x55   : > { %1446 = vmatpush.bf16.msrb.mxu2 %v2979_v32 }
  0x56   : > { %1334 = vmatpush.bf16.msrb.mxu1 %v2970_v13 }
  0x58   : > { %1107 = vmatpush.bf16.msrb.mxu3 %v2955_v23  ;;  %1220 = vmatpush.bf16.msrb.mxu0 %v2963_v34 }
  0x59   : > { %1447 = vmatpush.bf16.msrb.mxu2 %v2978_v48 }
  0x5a   : > { %1335 = vmatpush.bf16.msrb.mxu1 %v2969_v31  ;;  %v3003_v31 = vld [vmem:[%s4085_s4 + $0x220] sm:$0xff] }
  0x5b   : > { %731 = vmatmul.bf16.gmra.mxu0 %v2924_v24  ;;  %741 = vmatmul.bf16.gmra.mxu3 %v2926_v25 }
  0x5c   : > { %1108 = vmatpush.bf16.msrb.mxu3 %v2954_v29  ;;  %1221 = vmatpush.bf16.msrb.mxu0 %v2962_v39 }
  0x5d   : > { %1448 = vmatpush.bf16.msrb.mxu2 %v2977_v51 }
  0x5e   : > { %1336 = vmatpush.bf16.msrb.mxu1 %v2968_v45 }
  0x60   : > { %1109 = vmatpush.bf16.msrb.mxu3 %v2953_v33  ;;  %1222 = vmatpush.bf16.msrb.mxu0 %v2961_v42  ;;  %v2987_v33 = vld [vmem:[%s4085_s4 + $0x1a0] sm:$0xff] }
  0x64   : > { %1110 = vmatpush.bf16.msrb.mxu3 %v2952_v38  ;;  %1223 = vmatpush.bf16.msrb.mxu0 %v2960_v43 }
  0x68   : > { %1111 = vmatpush.bf16.msrb.mxu3 %v2951_v41  ;;  %1224 = vmatpush.bf16.msrb.mxu0 %v2959_v44 }
  0x6c   : > { %1557 = vmatpush.bf16.msra.mxu3 %v2990_v10  ;;  %1670 = vmatpush.bf16.msra.mxu0 %v2998_v28 }
  0x70   : > { %1558 = vmatpush.bf16.msra.mxu3 %v2989_v15 }
  0x74   : > { %1559 = vmatpush.bf16.msra.mxu3 %v2988_v27  ;;  %v3004_v27 = vld [vmem:[%s4085_s4 + $0x228] sm:$0xff] }
  0x78   : > { %1560 = vmatpush.bf16.msra.mxu3 %v2987_v33  ;;  %v3002_v33 = vld [vmem:[%s4085_s4 + $0x218] sm:$0xff] }
  0xc8   : > { %v727_v49 = vpop.f32.mrf.mxu0 }
  0xc9   : > { %v751_v50 = vmul.f32 %v3628_v46, %v727_v49  ;;  %v2986_v49 = vld [vmem:[%s4085_s4 + $0x198] sm:$0xff] }
  0xca   : > { %1561 = vmatpush.bf16.msra.mxu3 %v2986_v49 }
  0xcb   : > { %v763_v52 = vadd.f32 %v3633_v47, %v751_v50 }
  0xcd   : > { %v3643_v53 = vmax.f32 %v763_v52, 0.0 }
  0xce   : > { %v737_v54 = vpop.f32.mrf.mxu3 }
  0xcf   : > { %810 = vst [vmem:[#allocation2 + $0x20] sm:$0xff] %v3643_v53  ;;  %v755_v55 = vmul.f32 %v3628_v46, %v737_v54  ;;  %v854_v56 = vpack.c.bf16 %v3643_v53, %v3332_v36  ;;  %v2997_v36 = vld [vmem:[%s4085_s4 + $0x1f0] sm:$0xff] }
  0xd0   : > { %v729_v57 = vpop.f32.mrf.mxu0  ;;  %1671 = vmatpush.bf16.msra.mxu0 %v2997_v36  ;;  %v2985_v54 = vld [vmem:[%s4085_s4 + $0x190] sm:$0xff] }
  0xd1   : > { %v752_v58 = vmul.f32 %v3628_v46, %v729_v57  ;;  %v767_v59 = vadd.f32 %v3633_v47, %v755_v55  ;;  %930 = vmatmul.bf16.vlgmr.msra.gmra.mxu1 %v854_v56  ;;  %v2967_v55 = vld [vmem:[%s4085_s4 + $0x100] sm:$0xff]  ;;  %1562 = vmatpush.bf16.msra.mxu3 %v2985_v54 }
  0xd2   : > { %1337 = vmatpush.bf16.msrb.mxu1 %v2967_v55 }
  0xd3   : > { %v764_v61 = vadd.f32 %v3633_v47, %v752_v58  ;;  %v3654_v62 = vmax.f32 %v767_v59, 0.0 }
  0xd5   : > { %v3656_v1 = vmax.f32 %v764_v61, 0.0  ;;  %814 = vst [vmem:[#allocation2 + $0x80] sm:$0xff] %v3654_v62  ;;  %v2976_v61 = vld [vmem:[%s4085_s4 + $0x148] sm:$0xff] }
  0xd6   : > { %v819_v2 = vld [vmem:[#allocation2 + $0x1f] sm:$0xff]  ;;  %v739_v4 = vpop.f32.mrf.mxu3  ;;  %1449 = vmatpush.bf16.msrb.mxu2 %v2976_v61 }
  0xd7   : > { %v3659_v3 = vld [vmem:[#allocation2 + $0x21] sm:$0xff]  ;;  %811 = vst [vmem:[#allocation2 + $0x38] sm:$0xff] %v3656_v1  ;;  %v826_v5 = vpack.c.bf16 %v819_v2, %v818_v63  ;;  %v756_v7 = vmul.f32 %v3628_v46, %v739_v4 }
  0xd8   : > { %v1036_v6 = vpack.c.bf16 %v3659_v3, %v1028_v0  ;;  %v732_v8 = vpop.f32.mrf.mxu0  ;;  %v2984_v63 = vld [vmem:[%s4085_s4 + $0x188] sm:$0xff]  ;;  %v2994_v0 = vld [vmem:[%s4085_s4 + $0x1d8] sm:$0xff] }
  0xd9   : > { %v753_v11 = vmul.f32 %v3628_v46, %v732_v8  ;;  %1007 = vmatmul.bf16.vlgmr.msra.gmra.mxu2 %v826_v5  ;;  %v768_v12 = vadd.f32 %v3633_v47, %v756_v7  ;;  %1563 = vmatpush.bf16.msra.mxu3 %v2984_v63  ;;  %v2983_v5 = vld [vmem:[%s4085_s4 + $0x180] sm:$0xff]  ;;  %v2993_v8 = vld [vmem:[%s4085_s4 + $0x1d0] sm:$0xff] }
  0xda   : > { %1112 = vmatmul.bf16.vlgmr.msrb.gmra.mxu3 %v1036_v6 }
  0xdb   : > { %v765_v16 = vadd.f32 %v3633_v47, %v753_v11  ;;  %v3682_v17 = vmax.f32 %v768_v12, 0.0  ;;  %v2992_v11 = vld [vmem:[%s4085_s4 + $0x1c8] sm:$0xff]  ;;  %v3006_v12 = vld [vmem:[%s4085_s4 + $0x238] sm:$0xff] }
  0xdc   : > { %v823_v4 = vld [vmem:[#allocation2 + $0x7f] sm:$0xff]  ;;  %1783 = vmatpush.bf16.msra.mxu1 %v3006_v12 }
  0xdd   : > { %v3684_v18 = vmax.f32 %v765_v16, 0.0  ;;  %815 = vst [vmem:[#allocation2 + $0x98] sm:$0xff] %v3682_v17  ;;  %v1264_v19 = vpack.c.bf16 %v3682_v17, %v3654_v62  ;;  %v1033_v7 = vld [vmem:[#allocation2 + $0x81] sm:$0xff]  ;;  %1564 = vmatpush.bf16.msra.mxu3 %v2983_v5 }
  0xde   : > { %v1142_v20 = vld [vmem:[#allocation2 + $0x37] sm:$0xff]  ;;  %v742_v21 = vpop.f32.mrf.mxu3 }
  0xdf   : > { %812 = vst [vmem:[#allocation2 + $0x50] sm:$0xff] %v3684_v18  ;;  %v1149_v22 = vpack.c.bf16 %v1142_v20, %v819_v2  ;;  %v757_v23 = vmul.f32 %v3628_v46, %v742_v21  ;;  %v3693_v24 = vpack.c.bf16 %v3684_v18, %v3656_v1  ;;  %v3725_v39 = vld [vmem:[#allocation2 + $0x39] sm:$0xff] }
  0xe0   : > { %v734_v25 = vpop.f32.mrf.mxu0  ;;  %v2975_v2 = vld [vmem:[%s4085_s4 + $0x140] sm:$0xff]  ;;  %v1375_v32 = vpack.c.bf16 %v3725_v39, %v3659_v3 }
  0xe1   : > { %v754_v29 = vmul.f32 %v3628_v46, %v734_v25  ;;  %1225 = vmatmul.bf16.vlgmr.msrb.gmra.mxu0 %v1149_v22  ;;  %v769_v30 = vadd.f32 %v3633_v47, %v757_v23  ;;  %935 = vmatmul.bf16.gmra.mxu1 %v3693_v24 }
  0xe2   : > { %1450 = vmatpush.bf16.msrb.mxu2 %v2975_v2 }
  0xe3   : > { %v766_v34 = vadd.f32 %v3633_v47, %v754_v29  ;;  %v3717_v35 = vmax.f32 %v769_v30, 0.0  ;;  %v1262_v30 = vpack.c.bf16 %v3656_v1, %v3643_v53  ;;  %v3001_v1 = vld [vmem:[%s4085_s4 + $0x210] sm:$0xff] }
  0xe4   : > { %v1146_v13 = vld [vmem:[#allocation2 + $0x97] sm:$0xff] }
  0xe5   : > { %v3722_v37 = vmax.f32 %v766_v34, 0.0  ;;  %816 = vst [vmem:[#allocation2 + $0xb0] sm:$0xff] %v3717_v35  ;;  %v1151_v15 = vpack.c.bf16 %v1146_v13, %v823_v4  ;;  %v857_v16 = vpack.c.bf16 %v3717_v35, %v3682_v17  ;;  %v1034_v22 = vld [vmem:[#allocation2 + $0x99] sm:$0xff]  ;;  %v3000_v34 = vld [vmem:[%s4085_s4 + $0x208] sm:$0xff] }
  0xe6   : > { %v821_v38 = vld [vmem:[#allocation2 + $0x4f] sm:$0xff]  ;;  %v744_v41 = vpop.f32.mrf.mxu3 }
  0xe7   : > { %v3727_v40 = vld [vmem:[#allocation2 + $0x51] sm:$0xff]  ;;  %813 = vst [vmem:[#allocation2 + $0x68] sm:$0xff] %v3722_v37  ;;  %v3730_v42 = vpack.c.bf16 %v821_v38, %v1142_v20  ;;  %v758_v44 = vmul.f32 %v3628_v46, %v744_v41  ;;  %v2996_v46 = vld [vmem:[%s4085_s4 + $0x1e8] sm:$0xff]  ;;  %v3772_v60 = vpack.c.bf16 %v3654_v62, %v3722_v37  ;;  %v1263_v53 = vpack.c.bf16 %v3722_v37, %v3684_v18  ;;  %v2999_v18 = vld [vmem:[%s4085_s4 + $0x200] sm:$0xff] }
  0xe8   : > { %v3734_v43 = vpack.c.bf16 %v3727_v40, %v3725_v39  ;;  %1672 = vmatpush.bf16.msra.mxu0 %v2996_v46  ;;  %v3005_v20 = vld [vmem:[%s4085_s4 + $0x230] sm:$0xff]  ;;  %v1488_v37 = vld [vmem:[#allocation2 + $0xdf] sm:$0xff] }
  0xe9   : > { %1012 = vmatmul.bf16.gmra.mxu2 %v3730_v42  ;;  %v770_v50 = vadd.f32 %v3633_v47, %v758_v44  ;;  %v2995_v47 = vld [vmem:[%s4085_s4 + $0x1e0] sm:$0xff]  ;;  %1784 = vmatpush.bf16.msra.mxu1 %v3005_v20 }
  0xea   : > { %1117 = vmatmul.bf16.gmra.mxu3 %v3734_v43 }
  0xeb   : > { %v3755_v52 = vmax.f32 %v770_v50, 0.0 }
  0xec   : > { %1673 = vmatpush.bf16.msra.mxu0 %v2995_v47  ;;  %v825_v21 = vld [vmem:[#allocation2 + $0xaf] sm:$0xff] }
  0xed   : > { %817 = vst [vmem:[#allocation2 + $0xc8] sm:$0xff] %v3755_v52  ;;  %v1265_v56 = vpack.c.bf16 %v3755_v52, %v3717_v35  ;;  %v1605_v57 = vpack.c.bf16 0.0, %v3755_v52  ;;  %v1035_v23 = vld [vmem:[#allocation2 + $0xb1] sm:$0xff]  ;;  %v829_v25 = vpack.c.bf16 %v825_v21, %v1146_v13  ;;  %1785 = vmatpush.bf16.msra.mxu1 %v3004_v27 }
  0xee   : > { %v1144_v58 = vld [vmem:[#allocation2 + $0x67] sm:$0xff]  ;;  %v3810_v26 = vpack.c.bf16 %v1035_v23, %v1034_v22  ;;  %v3014_v13 = vld [vmem:[%s4088_s7 + $0x38] sm:$0xff] }
  0xef   : > { %v1150_v59 = vpack.c.bf16 %v1144_v58, %v821_v38  ;;  %v1032_v6 = vld [vmem:[#allocation2 + $0x69] sm:$0xff]  ;;  %v828_v9 = vpack.c.bf16 %v823_v4, %v1144_v58  ;;  %1920 = vmatpush.bf16.msra.mxu2 %v3014_v13  ;;  %v3932_v13 = vld [vmem:[%s4087_s6] ss:$0 sm:$0xff] }
  0xf0   : > { %1674 = vmatpush.bf16.msra.mxu0 %v2994_v0  ;;  %v3793_v10 = vpack.c.bf16 %v1033_v7, %v1032_v6  ;;  %v1376_v3 = vpack.c.bf16 %v1032_v6, %v3727_v40  ;;  %v1714_v0 = vld [vmem:[#allocation2 + $0xe1] sm:$0xff] }
  0xf1   : > { %1230 = vmatmul.bf16.gmra.mxu0 %v1150_v59  ;;  %940 = vmatmul.bf16.gmra.mxu1 %v3772_v60 }
  0xf2   : > { %1786 = vmatpush.bf16.msra.mxu1 %v3003_v31  ;;  %v3011_v31 = vld [vmem:[%s4088_s7 + $0x20] sm:$0xff] }
  0xf4   : > { %1675 = vmatpush.bf16.msra.mxu0 %v2993_v8  ;;  %v1148_v28 = vld [vmem:[#allocation2 + $0xc7] sm:$0xff] }
  0xf5   : > { %v1152_v29 = vpack.c.bf16 %v1148_v28, %v825_v21  ;;  %v1374_v36 = vld [vmem:[#allocation2 + $0xc9] sm:$0xff]  ;;  %v1492_v39 = vpack.c.bf16 %v1488_v37, %v1148_v28 }
  0xf6   : > { %1787 = vmatpush.bf16.msra.mxu1 %v3002_v33  ;;  %v1378_v38 = vpack.c.bf16 %v1374_v36, %v1035_v23  ;;  %v3012_v28 = vld [vmem:[%s4088_s7 + $0x28] sm:$0xff]  ;;  %v3010_v33 = vld [vmem:[%s4088_s7 + $0x18] sm:$0xff] }
  0xf8   : > { %1676 = vmatpush.bf16.msra.mxu0 %v2992_v11 }
  0xf9   : > { %1017 = vmatmul.bf16.gmra.mxu2 %v828_v9 }
  0xfa   : > { %1122 = vmatmul.bf16.gmra.mxu3 %v3793_v10  ;;  %1788 = vmatpush.bf16.msra.mxu1 %v3001_v1 }
  0xfc   : > { %1677 = vmatpush.bf16.msra.mxu0 %v2991_v14 }
  0xfe   : > { %1789 = vmatpush.bf16.msra.mxu1 %v3000_v34 }
 0x101   : > { %1235 = vmatmul.bf16.gmra.mxu0 %v1151_v15  ;;  %945 = vmatmul.bf16.gmra.mxu1 %v857_v16 }
 0x102   : > { %1790 = vmatpush.bf16.msra.mxu1 %v2999_v18  ;;  %v3009_v18 = vld [vmem:[%s4088_s7 + $0x10] sm:$0xff] }
 0x109   : > { %1022 = vmatmul.bf16.gmra.mxu2 %v829_v25 }
 0x10a   : > { %1127 = vmatmul.bf16.gmra.mxu3 %v3810_v26 }
 0x111   : > { %1240 = vmatmul.bf16.gmra.mxu0 %v1152_v29  ;;  %1338 = vmatmul.bf16.vlgmr.msrb.gmra.mxu1 %v1262_v30 }
 0x119   : > { %1451 = vmatmul.bf16.vlgmr.msrb.gmra.mxu2 %v1375_v32 }
 0x11a   : > { %1565 = vmatmul.bf16.vlgmr.msra.gmra.mxu3 %v3730_v42 }
 0x121   : > { %1678 = vmatmul.bf16.vlgmr.msra.gmra.mxu0 %v3693_v24  ;;  %1343 = vmatmul.bf16.gmra.mxu1 %v1263_v53  ;;  %v1377_v24 = vpack.c.bf16 %v1034_v22, %v1033_v7  ;;  %v1718_v7 = vpack.c.bf16 %v1714_v0, %v1374_v36 }
 0x129   : > { %1456 = vmatmul.bf16.gmra.mxu2 %v1376_v3 }
 0x12a   : > { %1570 = vmatmul.bf16.gmra.mxu3 %v828_v9 }
 0x131   : > { %1683 = vmatmul.bf16.gmra.mxu0 %v3772_v60  ;;  %1348 = vmatmul.bf16.gmra.mxu1 %v1264_v19 }
 0x139   : > { %1461 = vmatmul.bf16.gmra.mxu2 %v1377_v24 }
 0x13a   : > { %1575 = vmatmul.bf16.gmra.mxu3 %v829_v25 }
 0x141   : > { %1688 = vmatmul.bf16.gmra.mxu0 %v857_v16  ;;  %1353 = vmatmul.bf16.gmra.mxu1 %v1265_v56 }
 0x149   : > { %1466 = vmatmul.bf16.gmra.mxu2 %v1378_v38  ;;  %v3008_v38 = vld [vmem:[%s4088_s7 + $0x8] sm:$0xff] }
 0x14a   : > { %1580 = vmatmul.bf16.gmra.mxu3 %v1492_v39 }
 0x14e   : > { %v931_v40 = vpop.f32.mrf.mxu1 }
 0x151   : > { %1693 = vmatmul.bf16.gmra.mxu0 %v1605_v57  ;;  %1791 = vmatmul.bf16.vlgmr.msra.gmra.mxu1 %v3734_v43 }
 0x156   : > { %v3850_v62 = vpop.f32.mrf.mxu1 }
 0x15c   : > { %v1008_v17 = vpop.f32.mrf.mxu2 }
 0x15d   : > { %v1113_v19 = vpop.f32.mrf.mxu3  ;;  %v1009_v41 = vadd.f32 %v1008_v17, %v931_v40  ;;  %v3007_v17 = vld [vmem:[%s4088_s7] sm:$0xff] }
 0x15e   : > { %v1226_v42 = vpop.f32.mrf.mxu0  ;;  %v936_v35 = vpop.f32.mrf.mxu1 }
 0x15f   : > { %v1133_v44 = vadd.f32 %v1113_v19, %v1009_v41 }
 0x161   : > { %v1246_v45 = vadd.f32 %v1226_v42, %v1133_v44  ;;  %1796 = vmatmul.bf16.gmra.mxu1 %v3793_v10 }
 0x164   : > { %v3853_v48 = vpop.f32.mrf.mxu2 }
 0x165   : > { %v3855_v49 = vpop.f32.mrf.mxu3 }
 0x166   : > { %v3857_v50 = vpop.f32.mrf.mxu0  ;;  %v3859_v46 = vpop.f32.mrf.mxu1 }
 0x16c   : > { %v1013_v43 = vpop.f32.mrf.mxu2 }
 0x16d   : > { %v1118_v51 = vpop.f32.mrf.mxu3  ;;  %v1014_v52 = vadd.f32 %v1013_v43, %v936_v35  ;;  %v1011_v35 = vadd.f32 %v3853_v48, %v3850_v62 }
 0x16e   : > { %v1231_v54 = vpop.f32.mrf.mxu0  ;;  %v941_v47 = vpop.f32.mrf.mxu1 }
 0x16f   : > { %v1135_v55 = vadd.f32 %v1118_v51, %v1014_v52 }
 0x171   : > { %v1248_v56 = vadd.f32 %v1231_v54, %v1135_v55  ;;  %1801 = vmatmul.bf16.gmra.mxu1 %v3810_v26  ;;  %v3013_v26 = vld [vmem:[%s4088_s7 + $0x30] sm:$0xff] }
 0x172   : > { %1921 = vmatpush.bf16.msra.mxu2 %v3013_v26 }
 0x174   : > { %v3862_v57 = vpop.f32.mrf.mxu2 }
 0x175   : > { %v3864_v58 = vpop.f32.mrf.mxu3 }
 0x176   : > { %v3866_v59 = vpop.f32.mrf.mxu0  ;;  %v3868_v60 = vpop.f32.mrf.mxu1  ;;  %1922 = vmatpush.bf16.msra.mxu2 %v3012_v28 }
 0x17a   : > { %1923 = vmatpush.bf16.msra.mxu2 %v3011_v31 }
 0x17c   : > { %v1018_v61 = vpop.f32.mrf.mxu2 }
 0x17d   : > { %v1123_v63 = vpop.f32.mrf.mxu3  ;;  %v1019_v2 = vadd.f32 %v1018_v61, %v941_v47 }
 0x17e   : > { %v1236_v4 = vpop.f32.mrf.mxu0  ;;  %v946_v5 = vpop.f32.mrf.mxu1  ;;  %1924 = vmatpush.bf16.msra.mxu2 %v3010_v33 }
 0x17f   : > { %v1137_v6 = vadd.f32 %v1123_v63, %v1019_v2 }
 0x181   : > { %v1250_v8 = vadd.f32 %v1236_v4, %v1137_v6  ;;  %1806 = vmatmul.bf16.gmra.mxu1 %v1718_v7  ;;  %v1016_v4 = vadd.f32 %v3862_v57, %v3859_v46 }
 0x182   : > { %1925 = vmatpush.bf16.msra.mxu2 %v3009_v18 }
 0x184   : > { %v3870_v9 = vpop.f32.mrf.mxu2 }
 0x185   : > { %v3872_v10 = vpop.f32.mrf.mxu3 }
 0x186   : > { %v3874_v11 = vpop.f32.mrf.mxu0  ;;  %v3876_v12 = vpop.f32.mrf.mxu1  ;;  %1926 = vmatpush.bf16.msra.mxu2 %v3008_v38 }
 0x18a   : > { %1927 = vmatpush.bf16.msra.mxu2 %v3007_v17 }
 0x18c   : > { %v1023_v14 = vpop.f32.mrf.mxu2 }
 0x18d   : > { %v1024_v15 = vadd.f32 %v1023_v14, %v946_v5  ;;  %v1128_v16 = vpop.f32.mrf.mxu3 }
 0x18e   : > { %v1339_v20 = vpop.f32.mrf.mxu1  ;;  %v1241_v23 = vpop.f32.mrf.mxu0 }
 0x18f   : > { %v1139_v21 = vadd.f32 %v1128_v16, %v1024_v15  ;;  %v1359_v22 = vadd.f32 %v1339_v20, %v1246_v45  ;;  %v1134_v45 = vadd.f32 %v3855_v49, %v1011_v35  ;;  %v3925_v49 = vld [vmem:[%s4086_s5] ss:$0 sm:$0xff] }
 0x191   : > { %v1252_v25 = vadd.f32 %v1241_v23, %v1139_v21  ;;  %v1247_v47 = vadd.f32 %v3857_v50, %v1134_v45  ;;  %v1136_v50 = vadd.f32 %v3864_v58, %v1016_v4 }
 0x193   : > { %v1249_v16 = vadd.f32 %v3866_v59, %v1136_v50 }
 0x194   : > { %v3893_v53 = vpop.f32.mrf.mxu2 }
 0x195   : > { %v3897_v34 = vpop.f32.mrf.mxu3 }
 0x196   : > { %v1341_v27 = vpop.f32.mrf.mxu1  ;;  %v3902_v24 = vpop.f32.mrf.mxu0 }
 0x19c   : > { %v1452_v36 = vpop.f32.mrf.mxu2 }
 0x19d   : > { %v1566_v39 = vpop.f32.mrf.mxu3  ;;  %v1472_v51 = vadd.f32 %v1452_v36, %v1359_v22 }
 0x19e   : > { %v1344_v29 = vpop.f32.mrf.mxu1  ;;  %v1679_v40 = vpop.f32.mrf.mxu0 }
 0x19f   : > { %v1361_v30 = vadd.f32 %v1344_v29, %v1248_v56  ;;  %v1586_v55 = vadd.f32 %v1566_v39, %v1472_v51  ;;  %v1360_v56 = vadd.f32 %v1341_v27, %v1247_v47 }
 0x1a1   : > { %v1699_v2 = vadd.f32 %v1679_v40, %v1586_v55 }
 0x1a4   : > { %v1454_v19 = vpop.f32.mrf.mxu2 }
 0x1a5   : > { %v1568_v44 = vpop.f32.mrf.mxu3  ;;  %v1473_v61 = vadd.f32 %v1454_v19, %v1360_v56 }
 0x1a6   : > { %v1346_v32 = vpop.f32.mrf.mxu1  ;;  %v1681_v52 = vpop.f32.mrf.mxu0 }
 0x1a7   : > { %v1587_v62 = vadd.f32 %v1568_v44, %v1473_v61  ;;  %v1362_v58 = vadd.f32 %v1346_v32, %v1249_v16 }
 0x1a9   : > { %v1700_v7 = vadd.f32 %v1681_v52, %v1587_v62 }
 0x1ac   : > { %v1457_v54 = vpop.f32.mrf.mxu2 }
 0x1ad   : > { %v1571_v63 = vpop.f32.mrf.mxu3  ;;  %v1474_v57 = vadd.f32 %v1457_v54, %v1361_v30 }
 0x1ae   : > { %v1349_v1 = vpop.f32.mrf.mxu1  ;;  %v1684_v48 = vpop.f32.mrf.mxu0 }
 0x1af   : > { %v3895_v3 = vadd.f32 %v1349_v1, %v1250_v8  ;;  %v1588_v22 = vadd.f32 %v1571_v63, %v1474_v57  ;;  %v1021_v1 = vadd.f32 %v3870_v9, %v3868_v60 }
 0x1b1   : > { %v1701_v33 = vadd.f32 %v1684_v48, %v1588_v22  ;;  %v1138_v38 = vadd.f32 %v3872_v10, %v1021_v1 }
 0x1b3   : > { %v1251_v44 = vadd.f32 %v3874_v11, %v1138_v38  ;;  %v1026_v11 = vadd.f32 %v3893_v53, %v3876_v12  ;;  %v3021_v38 = vld [vmem:[%s4091_s10 + $0x30] sm:$0xff] }
 0x1b4   : > { %v1459_v6 = vpop.f32.mrf.mxu2 }
 0x1b5   : > { %v1573_v15 = vpop.f32.mrf.mxu3  ;;  %v1475_v27 = vadd.f32 %v1459_v6, %v1362_v58  ;;  %v1140_v62 = vadd.f32 %v3897_v34, %v1026_v11 }
 0x1b6   : > { %v3904_v37 = vpop.f32.mrf.mxu1  ;;  %v1686_v23 = vpop.f32.mrf.mxu0 }
 0x1b7   : > { %v1589_v59 = vadd.f32 %v1573_v15, %v1475_v27  ;;  %v1364_v51 = vadd.f32 %v3904_v37, %v1251_v44  ;;  %v3143_v44 = vld [vmem:[%s4089_s8] ss:$0 sm:$0xff] }
 0x1b9   : > { %v1702_v32 = vadd.f32 %v1686_v23, %v1589_v59 }
 0x1bc   : > { %v1462_v26 = vpop.f32.mrf.mxu2 }
 0x1bd   : > { %v1576_v36 = vpop.f32.mrf.mxu3 }
 0x1be   : > { %v1354_v41 = vpop.f32.mrf.mxu1  ;;  %v1689_v39 = vpop.f32.mrf.mxu0 }
 0x1bf   : > { %v3912_v42 = vadd.f32 %v1354_v41, %v1252_v25  ;;  %v1476_v41 = vadd.f32 %v1462_v26, %v3895_v3 }
 0x1c1   : > { %v1590_v9 = vadd.f32 %v1576_v36, %v1476_v41  ;;  %v3022_v36 = vld [vmem:[%s4091_s10 + $0x38] sm:$0xff] }
 0x1c2   : > { %2060 = vmatpush.bf16.msrb.mxu3 %v3022_v36 }
 0x1c3   : > { %v1703_v61 = vadd.f32 %v1689_v39, %v1590_v9 }
 0x1c4   : > { %v1464_v17 = vpop.f32.mrf.mxu2 }
 0x1c5   : > { %v1578_v52 = vpop.f32.mrf.mxu3  ;;  %v1477_v54 = vadd.f32 %v1464_v17, %v1364_v51  ;;  %v3015_v51 = vld [vmem:[%s4091_s10] sm:$0xff] }
 0x1c6   : > { %v3917_v43 = vpop.f32.mrf.mxu1  ;;  %v1691_v3 = vpop.f32.mrf.mxu0  ;;  %2061 = vmatpush.bf16.msrb.mxu3 %v3021_v38 }
 0x1ce   : > { %v1792_v0 = vpop.f32.mrf.mxu1  ;;  %v1694_v12 = vpop.f32.mrf.mxu0 }
 0x1cf   : > { %v1812_v5 = vadd.f32 %v1792_v0, %v1699_v2  ;;  %v1467_v0 = vpop.f32.mrf.mxu2  ;;  %v1591_v2 = vadd.f32 %v1578_v52, %v1477_v54  ;;  %v3144_v52 = vld [vmem:[#allocation3] ss:$0 sm:$0xff] }
 0x1d0   : > { %v1478_v50 = vadd.f32 %v1467_v0, %v3912_v42  ;;  %v3038_v0 = vld [vmem:[%s4095_s14 + $0x38] sm:$0xff] }
 0x1d1   : > { %v1824_v8 = vmul.f32 %v3925_v49, %v1812_v5  ;;  %v1704_v37 = vadd.f32 %v1691_v3, %v1591_v2  ;;  %v1581_v5 = vpop.f32.mrf.mxu3  ;;  %v3333_v3 = vmov 64.0   ;;  %v3030_v2 = vld [vmem:[%s4093_s12 + $0x38] sm:$0xff]  ;;  %2236 = vmatpush.bf16.msrb.mxu0 %v3038_v0  ;;  %3070 = vmatpush.bf16.msrb.mxu1 %v3038_v0 }
 0x1d2   : > { %3147 = vrcp.f32 %v3333_v3  ;;  %v2091_v3 = vld [vmem:[#allocation7] sm:$0x1] }
 0x1d3   : > { %v1836_v20 = vadd.f32 %v3932_v13, %v1824_v8  ;;  %v1253_v8 = vadd.f32 %v3902_v24, %v1140_v62 }
 0x1d5   : > { %v1844_v28 = vmax.f32 %v1836_v20, 0.0  ;;  %v1366_v15 = vadd.f32 %v3917_v43, %v1253_v8 }
 0x1d6   : > { %v1794_v46 = vpop.f32.mrf.mxu1  ;;  %v1696_v26 = vpop.f32.mrf.mxu0 }
 0x1d7   : > { %v1813_v14 = vadd.f32 %v1794_v46, %v1700_v7  ;;  %v1469_v53 = vpop.f32.mrf.mxu2 }
 0x1d8   : > { %v1479_v16 = vadd.f32 %v1469_v53, %v1366_v15  ;;  %v3148_v8 = vpop.eup %3147  ;;  %v3028_v53 = vld [vmem:[%s4093_s12 + $0x28] sm:$0xff] }
 0x1d9   : > { %v1825_v21 = vmul.f32 %v3925_v49, %v1813_v14  ;;  %v1592_v14 = vadd.f32 %v1581_v5, %v1478_v50  ;;  %v1583_v23 = vpop.f32.mrf.mxu3  ;;  %v3029_v5 = vld [vmem:[%s4093_s12 + $0x30] sm:$0xff]  ;;  %vm1991_vm0 = vweird.f32 %v3148_v8 }
 0x1db   : > { %v1837_v25 = vadd.f32 %v3932_v13, %v1825_v21  ;;  %v1705_v58 = vadd.f32 %v1694_v12, %v1592_v14  ;;  %v3036_v12 = vld [vmem:[%s4095_s14 + $0x28] sm:$0xff] }
 0x1dd   : > { %v1845_v29 = vmax.f32 %v1837_v25, 0.0  ;;  %v1593_v25 = vadd.f32 %v1583_v23, %v1479_v16  ;;  %v1987_v16 = vmul.f32 64.0, %v3148_v8 }
 0x1de   : > { %v1797_v31 = vpop.f32.mrf.mxu1 }
 0x1df   : > { %v1852_v30 = vpack.c.bf16 %v1845_v29, %v1844_v28  ;;  %v1814_v18 = vadd.f32 %v1797_v31, %v1701_v33  ;;  %v1706_v27 = vadd.f32 %v1696_v26, %v1593_v25  ;;  %v1988_v25 = vsub.f32 1.0, %v1987_v16  ;;  %v3034_v26 = vld [vmem:[%s4095_s14 + $0x18] sm:$0xff] }
 0x1e1   : > { %1928 = vmatmul.bf16.vlgmr.msra.gmra.mxu2 %v1852_v30  ;;  %v1826_v40 = vmul.f32 %v3925_v49, %v1814_v18 }
 0x1e3   : > { %v1838_v60 = vadd.f32 %v3932_v13, %v1826_v40  ;;  %v3018_v40 = vld [vmem:[%s4091_s10 + $0x18] sm:$0xff] }
 0x1e5   : > { %v1846_v47 = vmax.f32 %v1838_v60, 0.0 }
 0x1e6   : > { %v1799_v19 = vpop.f32.mrf.mxu1 }
 0x1e7   : > { %v1815_v35 = vadd.f32 %v1799_v19, %v1702_v32  ;;  %v3019_v32 = vld [vmem:[%s4091_s10 + $0x20] sm:$0xff]  ;;  %v3017_v19 = vld [vmem:[%s4091_s10 + $0x10] sm:$0xff] }
 0x1e9   : > { %v1827_v45 = vmul.f32 %v3925_v49, %v1815_v35 }
 0x1eb   : > { %v1839_v10 = vadd.f32 %v3932_v13, %v1827_v45  ;;  %v3016_v45 = vld [vmem:[%s4091_s10 + $0x8] sm:$0xff] }
 0x1ed   : > { %v1847_v55 = vmax.f32 %v1839_v10, 0.0 }
 0x1ee   : > { %v1802_v56 = vpop.f32.mrf.mxu1 }
 0x1ef   : > { %v1853_v63 = vpack.c.bf16 %v1847_v55, %v1846_v47  ;;  %v1816_v4 = vadd.f32 %v1802_v56, %v1703_v61 }
 0x1f1   : > { %1933 = vmatmul.bf16.gmra.mxu2 %v1853_v63  ;;  %v1828_v48 = vmul.f32 %v3925_v49, %v1816_v4 }
 0x1f3   : > { %v1840_v57 = vadd.f32 %v3932_v13, %v1828_v48  ;;  %v3037_v48 = vld [vmem:[%s4095_s14 + $0x30] sm:$0xff] }
 0x1f4   : > { %2237 = vmatpush.bf16.msrb.mxu0 %v3037_v48  ;;  %3071 = vmatpush.bf16.msrb.mxu1 %v3037_v48 }
 0x1f5   : > { %v1848_v20 = vmax.f32 %v1840_v57, 0.0 }
 0x1f6   : > { %v1804_v6 = vpop.f32.mrf.mxu1 }
 0x1f7   : > { %v1817_v7 = vadd.f32 %v1804_v6, %v1704_v37 }
 0x1f8   : > { %2238 = vmatpush.bf16.msrb.mxu0 %v3036_v12  ;;  %3072 = vmatpush.bf16.msrb.mxu1 %v3036_v12  ;;  %v3145_v12 = vld [vmem:[#allocation8] ss:$0 sm:$0xff] }
 0x1f9   : > { %v1829_v46 = vmul.f32 %v3925_v49, %v1817_v7 }
 0x1fb   : > { %v1841_v34 = vadd.f32 %v3932_v13, %v1829_v46 }
 0x1fd   : > { %v1849_v21 = vmax.f32 %v1841_v34, 0.0 }
 0x1fe   : > { %v1807_v22 = vpop.f32.mrf.mxu1 }
 0x1ff   : > { %v1854_v42 = vpack.c.bf16 %v1849_v21, %v1848_v20  ;;  %v1818_v24 = vadd.f32 %v1807_v22, %v1705_v58  ;;  %v3035_v22 = vld [vmem:[%s4095_s14 + $0x20] sm:$0xff] }
 0x200   : > { %v3027_v58 = vld [vmem:[%s4093_s12 + $0x20] sm:$0xff]  ;;  %2239 = vmatpush.bf16.msrb.mxu0 %v3035_v22  ;;  %3073 = vmatpush.bf16.msrb.mxu1 %v3035_v22 }
 0x201   : > { %1938 = vmatmul.bf16.gmra.mxu2 %v1854_v42  ;;  %v1830_v28 = vmul.f32 %v3925_v49, %v1818_v24 }
 0x203   : > { %v1842_v33 = vadd.f32 %v3932_v13, %v1830_v28 }
 0x204   : > { %2240 = vmatpush.bf16.msrb.mxu0 %v3034_v26  ;;  %3074 = vmatpush.bf16.msrb.mxu1 %v3034_v26 }
 0x205   : > { %v1850_v1 = vmax.f32 %v1842_v33, 0.0  ;;  %v3025_v33 = vld [vmem:[%s4093_s12 + $0x10] sm:$0xff] }
 0x206   : > { %v1809_v29 = vpop.f32.mrf.mxu1 }
 0x207   : > { %v1819_v31 = vadd.f32 %v1809_v29, %v1706_v27  ;;  %v3026_v27 = vld [vmem:[%s4093_s12 + $0x18] sm:$0xff]  ;;  %v1989_v29 = vmul.f32 %v3148_v8, %v1988_v25 }
 0x209   : > { %v1831_v43 = vmul.f32 %v3925_v49, %v1819_v31  ;;  %v3020_v49 = vld [vmem:[%s4091_s10 + $0x28] sm:$0xff] }
 0x20a   : > { %2062 = vmatpush.bf16.msrb.mxu3 %v3020_v49 }
 0x20b   : > { %v1843_v30 = vadd.f32 %v3932_v13, %v1831_v43  ;;  %v3033_v43 = vld [vmem:[%s4095_s14 + $0x10] sm:$0xff] }
 0x20c   : > { %2241 = vmatpush.bf16.msrb.mxu0 %v3033_v43  ;;  %3075 = vmatpush.bf16.msrb.mxu1 %v3033_v43 }
 0x20d   : > { %v1851_v59 = vmax.f32 %v1843_v30, 0.0 }
 0x20e   : > { %2063 = vmatpush.bf16.msrb.mxu3 %v3019_v32 }
 0x20f   : > { %v1855_v18 = vpack.c.bf16 %v1851_v59, %v1850_v1  ;;  %v1990_v1 = vadd.f32 %v3148_v8, %v1989_v29 }
 0x211   : > { %1943 = vmatmul.bf16.gmra.mxu2 %v1855_v18  ;;  %v3032_v18 = vld [vmem:[%s4095_s14 + $0x8] sm:$0xff]  ;;  %v1992_v38 = vsel %vm1991_vm0, %v3148_v8, %v1990_v1 }
 0x212   : > { %2064 = vmatpush.bf16.msrb.mxu3 %v3018_v40  ;;  %2242 = vmatpush.bf16.msrb.mxu0 %v3032_v18  ;;  %v3153_v40 = vld [vmem:[%s3538_s9] sm:$0xff] }
 0x213   : > { %3076 = vmatpush.bf16.msrb.mxu1 %v3032_v18 }
 0x216   : > { %2065 = vmatpush.bf16.msrb.mxu3 %v3017_v19  ;;  %v3155_v19 = vld [vmem:[%s3538_s9 + $0x8] sm:$0xff] }
 0x21a   : > { %2066 = vmatpush.bf16.msrb.mxu3 %v3016_v45  ;;  %v2011_v45 = vld [vmem:[#allocation5] sm:$0x1] }
 0x21e   : > { %2067 = vmatpush.bf16.msrb.mxu3 %v3015_v51 }
 0x222   : > { %2140 = vmatpush.bf16.msra.mxu3 %v3030_v2 }
 0x226   : > { %2141 = vmatpush.bf16.msra.mxu3 %v3029_v5 }
 0x22a   : > { %2142 = vmatpush.bf16.msra.mxu3 %v3028_v53 }
 0x22e   : > { %2143 = vmatpush.bf16.msra.mxu3 %v3027_v58  ;;  %v3146_v58 = vld [vmem:[#allocation10] ss:$0 sm:$0xff] }
 0x232   : > { %2144 = vmatpush.bf16.msra.mxu3 %v3026_v27 }
 0x236   : > { %2145 = vmatpush.bf16.msra.mxu3 %v3025_v33 }
 0x264   : > { %v1929_v13 = vpop.f32.mrf.mxu2 }
 0x265   : > { %v1953_v10 = vmul.f32 %v3143_v44, %v1929_v13  ;;  %v3031_v13 = vld [vmem:[%s4095_s14] sm:$0xff] }
 0x266   : > { %2243 = vmatpush.bf16.msrb.mxu0 %v3031_v13  ;;  %3077 = vmatpush.bf16.msrb.mxu1 %v3031_v13 }
 0x267   : > { %v3991_v56 = vadd.f32 %v3144_v52, %v1953_v10 }
 0x269   : > { %2244 = vmatmul.bf16.vlgmr.msrb.gmra.mxu0 %v3153_v40 }
 0x26c   : > { %v1931_v39 = vpop.f32.mrf.mxu2 }
 0x26d   : > { %v1954_v9 = vmul.f32 %v3143_v44, %v1931_v39 }
 0x26f   : > { %v3989_v47 = vadd.f32 %v3144_v52, %v1954_v9 }
 0x271   : > { %v1973_v4 = vadd.f32 %v3989_v47, %v3991_v56 }
 0x274   : > { %v1934_v17 = vpop.f32.mrf.mxu2 }
 0x275   : > { %v1955_v54 = vmul.f32 %v3143_v44, %v1934_v17  ;;  %v3154_v17 = vld [vmem:[%s3538_s9 + $0x18] sm:$0xff] }
 0x276   : > { %2259 = vmatmul.bf16.vlgmr.msrb.gmra.mxu1 %v3154_v17 }
 0x277   : > { %v3993_v61 = vadd.f32 %v3144_v52, %v1955_v54 }
 0x279   : > { %v1974_v6 = vadd.f32 %v1973_v4, %v3993_v61  ;;  %2249 = vmatmul.bf16.gmra.mxu0 %v3155_v19 }
 0x27c   : > { %v1936_v41 = vpop.f32.mrf.mxu2 }
 0x27d   : > { %v1956_v55 = vmul.f32 %v3143_v44, %v1936_v41  ;;  %v3156_v41 = vld [vmem:[%s3538_s9 + $0x10] sm:$0xff] }
 0x27f   : > { %v4003_v62 = vadd.f32 %v3144_v52, %v1956_v55 }
 0x281   : > { %v1975_v46 = vadd.f32 %v1974_v6, %v4003_v62 }
 0x284   : > { %v1939_v35 = vpop.f32.mrf.mxu2 }
 0x285   : > { %v1957_v63 = vmul.f32 %v3143_v44, %v1939_v35  ;;  %v3024_v35 = vld [vmem:[%s4093_s12 + $0x8] sm:$0xff] }
 0x286   : > { %2146 = vmatpush.bf16.msra.mxu3 %v3024_v35 }
 0x287   : > { %v4012_v50 = vadd.f32 %v3144_v52, %v1957_v63 }
 0x289   : > { %v1976_v14 = vadd.f32 %v1975_v46, %v4012_v50  ;;  %2254 = vmatmul.bf16.gmra.mxu0 %v3156_v41 }
 0x28c   : > { %v1941_v60 = vpop.f32.mrf.mxu2 }
 0x28d   : > { %v1958_v37 = vmul.f32 %v3143_v44, %v1941_v60 }
 0x28f   : > { %v4015_v57 = vadd.f32 %v3144_v52, %v1958_v37 }
 0x291   : > { %v1977_v20 = vadd.f32 %v1976_v14, %v4015_v57 }
 0x294   : > { %v1944_v11 = vpop.f32.mrf.mxu2 }
 0x295   : > { %v1959_v7 = vmul.f32 %v3143_v44, %v1944_v11 }
 0x297   : > { %v4024_v15 = vadd.f32 %v3144_v52, %v1959_v7 }
 0x299   : > { %v1978_v42 = vadd.f32 %v1977_v20, %v4024_v15 }
 0x29c   : > { %v1946_v34 = vpop.f32.mrf.mxu2 }
 0x29d   : > { %v1960_v21 = vmul.f32 %v3143_v44, %v1946_v34  ;;  %v3023_v44 = vld [vmem:[%s4093_s12] sm:$0xff] }
 0x29e   : > { %2147 = vmatpush.bf16.msra.mxu3 %v3023_v44 }
 0x29f   : > { %v4034_v23 = vadd.f32 %v3144_v52, %v1960_v21 }
 0x2a1   : > { %v1979_v24 = vadd.f32 %v1978_v42, %v4034_v23 }
 0x2a3   : > { %v1980_v28 = vrot.slane %v1979_v24, 4 }
 0x2a5   : > { %v1981_v31 = vadd.f32 %v1980_v28, %v1979_v24 }
 0x2a7   : > { %v1982_v30 = vrot.slane %v1981_v31, 2 }
 0x2a9   : > { %v1983_v59 = vadd.f32 %v1982_v30, %v1981_v31 }
 0x2ab   : > { %v1984_v36 = vrot.slane %v1983_v59, 1 }
 0x2ad   : > { %v1985_v49 = vadd.f32 %v1984_v36, %v1983_v59 }
 0x2af   : > { %v1993_v32 = vmul.f32 %v1992_v38, %v1985_v49 }
 0x2b1   : > { %v1994_v39 = vpack.c.bf16 %v1993_v32, %v1993_v32 }
 0x2b3   : > { %2068 = vmatmul.bf16.vlgmr.msrb.gmra.mxu3 %v1994_v39 }
 0x2e6   : > { %v2245_v54 = vpop.f32.mrf.mxu0 }
 0x2e7   : > { %v2269_v22 = vmul.f32 %v3145_v12, %v2245_v54 }
 0x2e9   : > { %v2281_v30 = vadd.f32 %v3146_v58, %v2269_v22 }
 0x2ee   : > { %v2247_v55 = vpop.f32.mrf.mxu0 }
 0x2ef   : > { %v2270_v42 = vmul.f32 %v3145_v12, %v2247_v55 }
 0x2f1   : > { %v2282_v59 = vadd.f32 %v3146_v58, %v2270_v42 }
 0x2f3   : > { %v2260_v7 = vpop.f32.mrf.mxu1 }
 0x2f4   : > { %v2275_v29 = vmul.f32 %v3145_v12, %v2260_v7 }
 0x2f6   : > { %v2250_v63 = vpop.f32.mrf.mxu0  ;;  %v2287_v13 = vadd.f32 %v3146_v58, %v2275_v29 }
 0x2f7   : > { %v2271_v25 = vmul.f32 %v3145_v12, %v2250_v63 }
 0x2f9   : > { %v2283_v18 = vadd.f32 %v3146_v58, %v2271_v25 }
 0x2fb   : > { %v2262_v21 = vpop.f32.mrf.mxu1 }
 0x2fc   : > { %v2276_v43 = vmul.f32 %v3145_v12, %v2262_v21 }
 0x2fe   : > { %v2252_v4 = vpop.f32.mrf.mxu0  ;;  %v2288_v39 = vadd.f32 %v3146_v58, %v2276_v43 }
 0x2ff   : > { %v2272_v26 = vmul.f32 %v3145_v12, %v2252_v4 }
 0x301   : > { %v2284_v38 = vadd.f32 %v3146_v58, %v2272_v26 }
 0x306   : > { %v2255_v6 = vpop.f32.mrf.mxu0 }
 0x307   : > { %v2273_v27 = vmul.f32 %v3145_v12, %v2255_v6 }
 0x309   : > { %v2285_v49 = vadd.f32 %v3146_v58, %v2273_v27 }
 0x30e   : > { %v2257_v20 = vpop.f32.mrf.mxu0 }
 0x30f   : > { %v2274_v31 = vmul.f32 %v3145_v12, %v2257_v20 }
 0x311   : > { %v2286_v32 = vadd.f32 %v3146_v58, %v2274_v31 }
 0x336   : > { %v2069_v60 = vpop.f32.mrf.mxu3 }
 0x337   : > { %v2070_v9 = vadd.f32 %v2069_v60, %v2011_v45 }
 0x339   : > { %v2073_v51 = vmax.f32 %v2070_v9, 0.0 }
 0x33b   : > { %v2074_v10 = vpack.c.bf16 %v2073_v51, %v2073_v51 }
 0x33d   : > { %2148 = vmatmul.bf16.vlgmr.msra.gmra.mxu3 %v2074_v10 }
 0x33e   : > { %v2071_v52 = vpop.f32.mrf.mxu3 }
 0x3c0   : > { %v2149_v0 = vpop.f32.mrf.mxu3 }
 0x3c1   : > { %v2150_v11 = vadd.f32 %v2149_v0, %v2091_v3 }
 0x3c3   : > { %v2886_v2 = vmul.f32 -1.442695, %v2150_v11 }
 0x3c5   : > { %3149 = vpow2.f32 %v2886_v2 }
 0x3c8   : > { %v2151_v37 = vpop.f32.mrf.mxu3 }
 0x3cb   : > { %v3150_v48 = vpop.eup %3149 }
 0x3cc   : > { %v2156_v5 = vadd.f32 1.0, %v3150_v48 }
 0x3ce   : > { %3151 = vrcp.f32 %v2156_v5  ;;  %v2168_v14 = vand.u32 2147483648, %v2156_v5  ;;  %v2166_v16 = vand.u32 2147483647, %v2156_v5  ;;  %vm2162_vm2 = vweird.f32 %v2156_v5 }
 0x3d0   : > { %v2169_v28 = vor.u32 1.1754944e-38, %v2168_v14  ;;  %vm2167_vm4 = vcmp.eq.f32.partialorder %v2166_v16, 8.507059e+37 }
 0x3d4   : > { %v3152_v8 = vpop.eup %3151 }
 0x3d5   : > { %v2158_v46 = vmul.f32 %v3152_v8, %v2156_v5  ;;  %vm2163_vm1 = vweird.f32 %v3152_v8 }
 0x3d6   : > { %vm2164_vm3 = vmor %vm2162_vm2, %vm2163_vm1 }
 0x3d7   : > { %v2159_v53 = vsub.f32 1.0, %v2158_v46 }
 0x3d9   : > { %v2160_v34 = vmul.f32 %v3152_v8, %v2159_v53 }
 0x3db   : > { %v2161_v24 = vadd.f32 %v3152_v8, %v2160_v34 }
 0x3dd   : > { %v2165_v33 = vsel %vm2164_vm3, %v3152_v8, %v2161_v24 }
 0x3de   : > { %v2170_v1 = vsel %vm2167_vm4, %v2169_v28, %v2165_v33 }
 0x3df   : > { %v2289_v36 = vperm.slane %v2170_v1, 0 }
 0x3e1   : > { %v2290_v40 = vmul.f32 %v2289_v36, %v3991_v56  ;;  %v2291_v17 = vmul.f32 %v2289_v36, %v3989_v47  ;;  %v2292_v19 = vmul.f32 %v2289_v36, %v3993_v61  ;;  %v2293_v41 = vmul.f32 %v2289_v36, %v4003_v62 }
 0x3e2   : > { %v2294_v35 = vmul.f32 %v2289_v36, %v4012_v50  ;;  %v2296_v44 = vmul.f32 %v2289_v36, %v4024_v15  ;;  %v2295_v45 = vmul.f32 %v2289_v36, %v4015_v57  ;;  %v2297_v60 = vmul.f32 %v2289_v36, %v4034_v23 }
 0x3e3   : > { %v2298_v9 = vadd.f32 %v2290_v40, %v2281_v30  ;;  %v2299_v51 = vadd.f32 %v2291_v17, %v2282_v59  ;;  %v2300_v10 = vadd.f32 %v2292_v19, %v2283_v18  ;;  %v2301_v52 = vadd.f32 %v2293_v41, %v2284_v38 }
 0x3e4   : > { %v2302_v56 = vadd.f32 %v2294_v35, %v2285_v49  ;;  %v2304_v54 = vadd.f32 %v2296_v44, %v2287_v13  ;;  %v2303_v47 = vadd.f32 %v2295_v45, %v2286_v32  ;;  %v2305_v55 = vadd.f32 %v2297_v60, %v2288_v39 }
 0x3e5   : > { %v2306_v61 = vmax.f32 %v2298_v9, 0.0  ;;  %v2307_v63 = vmax.f32 %v2299_v51, 0.0  ;;  %v2308_v62 = vmax.f32 %v2300_v10, 0.0  ;;  %v2309_v3 = vmax.f32 %v2301_v52, 0.0 }
 0x3e6   : > { %v2310_v50 = vmax.f32 %v2302_v56, 0.0  ;;  %v2312_v57 = vmax.f32 %v2304_v54, 0.0  ;;  %v2311_v15 = vmax.f32 %v2303_v47, 0.0  ;;  %v2313_v23 = vmax.f32 %v2305_v55, 0.0 }
 0x3e7   : > { %v3042_v0 = vpack.c.bf16 %v2307_v63, %v2306_v61  ;;  %v3047_v11 = vpack.c.bf16 %v2309_v3, %v2308_v62 }
 0x3e8   : > { %v3052_v2 = vpack.c.bf16 %v2311_v15, %v2310_v50  ;;  %v3057_v4 = vpack.c.bf16 %v2313_v23, %v2312_v57 }
 0x3e9   : > { %3043 = vst [vmem:[%s621_s25] sm:$0xff] %v3042_v0  }
 0x3ea   : > { %3059 = vst [vmem:[%s621_s25 + $0x8] sm:$0xff] %v3047_v11  }
 0x3eb   : > { %3060 = vst [vmem:[%s621_s25 + $0x10] sm:$0xff] %v3052_v2  }
 0x3ec   : > { %3061 = vst [vmem:[%s621_s25 + $0x18] sm:$0xff] %v3057_v4  }
 0x3ed PF: > { %s4114_s27 = sld [smem:[#allocation14_spill]] }
 0x3f3   : > { %s30_s24 = sadd.s32 1, %s4114_s27  }
 0x3f4   : > { %p27_p7 = scmp.ge.s32.totalorder %s30_s24, 4  }
 0x3f6   :  { %29 = sbr.rel (!%p27_p7) target bundleno = 9 (0x9), region = 141 }
 0x3fb   :  { %2351 = vsyncpa [#allocation4], 1 }
 0x3fc   :  { %2353 = vsyncpa [#allocation4 + $0x1], 1 }
 0x3fd   :  { %2354 = vsyncpa [#allocation6], 1 }
 0x3fe   :  { %2355 = vsyncpa [#allocation9], 1 }

// kernel: landmarks_model_forward.8
= control target key start
LH: loop header
LB: loop body
LE: loop exit
PB: predicated region body
PF: predicated region fallthrough
CT: control target
= control target key end

     0   :  { %s2737_s24 = smov 0   ;;  %s3139_s0 = inlined_call_operand.vmem [shape: bf16[2,16,128], index: 0, kind: input, shape index: {}]   ;;  %s3140_s1 = inlined_call_operand.vmem [shape: bf16[128,128], index: 1, kind: input, shape index: {}]   ;;  %s3141_s2 = inlined_call_operand.vmem [shape: f32[1,128], index: 2, kind: input, shape index: {}]   ;;  %s3142_s3 = inlined_call_operand.vmem [shape: f32[1,128], index: 3, kind: input, shape index: {}]   ;;  %s3143_s4 = inlined_call_operand.vmem [shape: bf16[1152,128], index: 4, kind: input, shape index: {}]   ;;  %s3144_s5 = inlined_call_operand.vmem [shape: f32[1,128], index: 5, kind: input, shape index: {}]   ;;  %s3145_s6 = inlined_call_operand.vmem [shape: f32[1,128], index: 6, kind: input, shape index: {}]   ;;  %s3146_s7 = inlined_call_operand.vmem [shape: bf16[128,128], index: 7, kind: input, shape index: {}]   ;;  %s3147_s8 = inlined_call_operand.vmem [shape: f32[1,128], index: 8, kind: input, shape index: {}]   ;;  %s3148_s9 = inlined_call_operand.vmem [shape: f32[1,128], index: 9, kind: input, shape index: {}]   ;;  %s3149_s10 = inlined_call_operand.vmem [shape: bf16[128,128], index: 10, kind: input, shape index: {}]   ;;  %s3150_s11 = inlined_call_operand.vmem [shape: f32[1,128], index: 11, kind: input, shape index: {}]   ;;  %s3151_s12 = inlined_call_operand.vmem [shape: bf16[128,128], index: 12, kind: input, shape index: {}]   ;;  %s3152_s13 = inlined_call_operand.vmem [shape: f32[1,128], index: 13, kind: input, shape index: {}]   ;;  %s3153_s14 = inlined_call_operand.vmem [shape: bf16[128,128], index: 14, kind: input, shape index: {}]   ;;  %s3154_s15 = inlined_call_operand.vmem [shape: f32[1,128], index: 15, kind: input, shape index: {}]   ;;  %s3155_s16 = inlined_call_operand.vmem [shape: f32[1,128], index: 16, kind: input, shape index: {}]   ;;  %s3156_s17 = inlined_call_operand.vmem [shape: bf16[2,16,128], index: 17, kind: output, shape index: {}]  }
   0x1   :  { %3158 = sst [smem:[#allocation3_spill]] %s3139_s0 }
   0x2   :  { %3159 = sst [smem:[#allocation4_spill]] %s3140_s1 }
   0x3 LB: > { %s2029_s25 = sadd.s32 4294967295, %s2643_s24   ;;  %p2033_p0 = scmp.ge.s32.totalorder %s2643_s24, 1  ;;  %s2643_s24 = sphi %s2737_s24, %s27_s24  }
   0x4   : > { %p487_p1 = scmp.lt.s32.totalorder %s2643_s24, 3 }
   0x6   : > { %p488_p2 = pnand %p2033_p0, %p487_p1 }
   0x7   : > { %s3160_s28 = sld [smem:[#allocation4_spill]] (!%p488_p2)  ;;  %p539_p3 = scmp.lt.s32.totalorder (!%p488_p2), %s2029_s25, 1 }
   0x8   : > { %491 = sbr.rel (%p488_p2) target bundleno = 889 (0x379), region = 88  ;;  %s3161_s1 = sld [smem:[#allocation3_spill]] (!%p488_p2) }
   0xd   : > { %v2503_v0 = vld [vmem:[%s3160_s28 + $0x38] sm:$0xff]  ;;  %v2502_v1 = vld [vmem:[%s3160_s28 + $0x30] sm:$0xff]  ;;  %v2501_v2 = vld [vmem:[%s3160_s28 + $0x28] sm:$0xff]  ;;  %s3163_s25 = smov (!%p539_p3, %s2029_s25), 1  ;;  %v2645_v10 = vmov 0.0  }
   0xe   : > { %621 = vmatpush.bf16.msra.mxu0 %v2503_v0  ;;  %v2500_v3 = vld [vmem:[%s3160_s28 + $0x20] sm:$0xff]  ;;  %v2499_v4 = vld [vmem:[%s3160_s28 + $0x18] sm:$0xff]  ;;  %v2498_v5 = vld [vmem:[%s3160_s28 + $0x10] sm:$0xff]  ;;  %s2493_s29 = sshll.u32 %s3163_s25, 3  ;;  %649 = vst [vmem:[#allocation2] sm:$0xff] %v2645_v10 }
   0xf   : > { %v2497_v6 = vld [vmem:[%s3160_s28 + $0x8] sm:$0xff]  ;;  %v2496_v7 = vld [vmem:[%s3160_s28] sm:$0xff]  ;;  %s543_s20 = scalar_lea.vmem %s3161_s1, %s2493_s29  ;;  %v2511_v9 = vld [vmem:[%s3143_s4 + $0x38] sm:$0xff]  ;;  %650 = vst [vmem:[#allocation2 + $0x8] sm:$0xff] %v2645_v10 }
  0x10   : > { %v2777_v8 = vld [vmem:[%s543_s20] sm:$0xff]  ;;  %860 = vmatpush.bf16.msra.mxu2 %v2511_v9  ;;  %v2519_v11 = vld [vmem:[%s3143_s4 + $0x78] sm:$0xff]  ;;  %v2510_v12 = vld [vmem:[%s3143_s4 + $0x30] sm:$0xff]  ;;  %652 = vst [vmem:[#allocation2 + $0x18] sm:$0xff] %v2645_v10  ;;  %s548_s20 = scalar_lea.vmem %s3156_s17, %s2493_s29 }
  0x11   : > { %798 = vmatpush.bf16.msra.mxu1 %v2519_v11  ;;  %653 = vst [vmem:[#allocation2 + $0x20] sm:$0xff] %v2645_v10  ;;  %v2518_v14 = vld [vmem:[%s3143_s4 + $0x70] sm:$0xff]  ;;  %v2509_v15 = vld [vmem:[%s3143_s4 + $0x28] sm:$0xff]  ;;  %v2508_v17 = vld [vmem:[%s3143_s4 + $0x20] sm:$0xff] }
  0x12   : > { %622 = vmatpush.bf16.msra.mxu0 %v2502_v1  ;;  %655 = vst [vmem:[#allocation2 + $0x30] sm:$0xff] %v2645_v10  ;;  %v2517_v16 = vld [vmem:[%s3143_s4 + $0x68] sm:$0xff]  ;;  %v2516_v18 = vld [vmem:[%s3143_s4 + $0x60] sm:$0xff]  ;;  %v2507_v19 = vld [vmem:[%s3143_s4 + $0x18] sm:$0xff] }
  0x13   : > { %656 = vst [vmem:[#allocation2 + $0x38] sm:$0xff] %v2645_v10  ;;  %v2527_v20 = vld [vmem:[%s3143_s4 + $0xb8] sm:$0xff]  ;;  %v2623_v21 = vld [vmem:[%s3141_s2] ss:$0 sm:$0xff]  ;;  %v2506_v23 = vld [vmem:[%s3143_s4 + $0x10] sm:$0xff] }
  0x14   : > { %861 = vmatpush.bf16.msra.mxu2 %v2510_v12  ;;  %658 = vst [vmem:[#allocation2 + $0x48] sm:$0xff] %v2645_v10  ;;  %958 = vmatpush.bf16.msra.mxu3 %v2527_v20  ;;  %v2515_v22 = vld [vmem:[%s3143_s4 + $0x58] sm:$0xff]  ;;  %v2526_v24 = vld [vmem:[%s3143_s4 + $0xb0] sm:$0xff]  ;;  %v2624_v25 = vld [vmem:[%s3142_s3] ss:$0 sm:$0xff] }
  0x15   : > { %799 = vmatpush.bf16.msra.mxu1 %v2518_v14  ;;  %659 = vst [vmem:[#allocation2 + $0x50] sm:$0xff] %v2645_v10  ;;  %v2514_v28 = vld [vmem:[%s3143_s4 + $0x50] sm:$0xff]  ;;  %v2505_v29 = vld [vmem:[%s3143_s4 + $0x8] sm:$0xff]  ;;  %v2535_v31 = vld [vmem:[%s3143_s4 + $0xf8] sm:$0xff] }
  0x16   : > { %623 = vmatpush.bf16.msra.mxu0 %v2501_v2  ;;  %v678_v13 = vld [vmem:[#allocation2 + $0x7] sm:$0xf]  ;;  %661 = vst [vmem:[#allocation2 + $0x60] sm:$0xff] %v2645_v10  ;;  %v2504_v35 = vld [vmem:[%s3143_s4] sm:$0xff]  ;;  %v2523_v42 = vld [vmem:[%s3143_s4 + $0x98] sm:$0xff] }
  0x17   : > { %686 = vst [vmem:[#allocation1] ss:$2 sm:$0xff] %v678_v13  ;;  %v2525_v30 = vld [vmem:[%s3143_s4 + $0xa8] sm:$0xff]  ;;  %v2524_v36 = vld [vmem:[%s3143_s4 + $0xa0] sm:$0xff]  ;;  %v2534_v37 = vld [vmem:[%s3143_s4 + $0xf0] sm:$0xff] }
  0x18   : > { %862 = vmatpush.bf16.msra.mxu2 %v2509_v15  ;;  %662 = vst [vmem:[#allocation2 + $0x68] sm:$0xff] %v2645_v10  ;;  %959 = vmatpush.bf16.msra.mxu3 %v2526_v24  ;;  %v2513_v34 = vld [vmem:[%s3143_s4 + $0x48] sm:$0xff]  ;;  %v2512_v41 = vld [vmem:[%s3143_s4 + $0x40] sm:$0xff]  ;;  %v2543_v44 = vld [vmem:[%s3143_s4 + $0x138] sm:$0xff] }
  0x19   : > { %664 = vst [vmem:[#allocation2 + $0x78] sm:$0xff] %v2645_v10  ;;  %800 = vmatpush.bf16.msra.mxu1 %v2517_v16  ;;  %v2533_v43 = vld [vmem:[%s3143_s4 + $0xe8] sm:$0xff]  ;;  %v2522_v50 = vld [vmem:[%s3143_s4 + $0x90] sm:$0xff]  ;;  %v2532_v52 = vld [vmem:[%s3143_s4 + $0xe0] sm:$0xff] }
  0x1a   : > { %624 = vmatpush.bf16.msra.mxu0 %v2500_v3  ;;  %665 = vst [vmem:[#allocation2 + $0x80] sm:$0xff] %v2645_v10  ;;  %v714_v51 = vld [vmem:[#allocation2 + $0x8] sm:$0xf]  ;;  %v2521_v54 = vld [vmem:[%s3143_s4 + $0x88] sm:$0xff]  ;;  %v2551_v55 = vld [vmem:[%s3143_s4 + $0x178] sm:$0xff] }
  0x1b   : > { %v2542_v53 = vld [vmem:[%s3143_s4 + $0x130] sm:$0xff]  ;;  %v2531_v57 = vld [vmem:[%s3143_s4 + $0xd8] sm:$0xff]  ;;  %v2541_v58 = vld [vmem:[%s3143_s4 + $0x128] sm:$0xff] }
  0x1c   : > { %863 = vmatpush.bf16.msra.mxu2 %v2508_v17  ;;  %960 = vmatpush.bf16.msra.mxu3 %v2525_v30  ;;  %v2550_v60 = vld [vmem:[%s3143_s4 + $0x170] sm:$0xff]  ;;  %v2520_v61 = vld [vmem:[%s3143_s4 + $0x80] sm:$0xff]  ;;  %v2549_v1 = vld [vmem:[%s3143_s4 + $0x168] sm:$0xff] }
  0x1d   : > { %801 = vmatpush.bf16.msra.mxu1 %v2516_v18  ;;  %v2530_v62 = vld [vmem:[%s3143_s4 + $0xd0] sm:$0xff]  ;;  %v2540_v63 = vld [vmem:[%s3143_s4 + $0x120] sm:$0xff]  ;;  %v2559_v2 = vld [vmem:[%s3143_s4 + $0x1b8] sm:$0xff] }
  0x1e   : > { %625 = vmatpush.bf16.msra.mxu0 %v2499_v4  ;;  %v874_v3 = vld [vmem:[#allocation2 + $0x9] sm:$0xf]  ;;  %v2529_v4 = vld [vmem:[%s3143_s4 + $0xc8] sm:$0xff]  ;;  %v2528_v12 = vld [vmem:[%s3143_s4 + $0xc0] sm:$0xff] }
  0x1f   : > { %v2558_v9 = vld [vmem:[%s3143_s4 + $0x1b0] sm:$0xff]  ;;  %v2547_v15 = vld [vmem:[%s3143_s4 + $0x158] sm:$0xff]  ;;  %v2557_v18 = vld [vmem:[%s3143_s4 + $0x1a8] sm:$0xff] }
  0x20   : > { %864 = vmatpush.bf16.msra.mxu2 %v2507_v19  ;;  %961 = vmatpush.bf16.msra.mxu3 %v2524_v36  ;;  %v2538_v14 = vld [vmem:[%s3143_s4 + $0x110] sm:$0xff]  ;;  %v2567_v19 = vld [vmem:[%s3143_s4 + $0x1f8] sm:$0xff]  ;;  %v2556_v24 = vld [vmem:[%s3143_s4 + $0x1a0] sm:$0xff] }
  0x21   : > { %802 = vmatpush.bf16.msra.mxu1 %v2515_v22  ;;  %v2546_v22 = vld [vmem:[%s3143_s4 + $0x150] sm:$0xff]  ;;  %v2536_v30 = vld [vmem:[%s3143_s4 + $0x100] sm:$0xff] }
  0x22   : > { %626 = vmatpush.bf16.msra.mxu0 %v2498_v5  ;;  %v2539_v5 = vld [vmem:[%s3143_s4 + $0x118] sm:$0xff]  ;;  %v2544_v36 = vld [vmem:[%s3143_s4 + $0x140] sm:$0xff] }
  0x24   : > { %865 = vmatpush.bf16.msra.mxu2 %v2506_v23  ;;  %962 = vmatpush.bf16.msra.mxu3 %v2523_v42 }
  0x25   : > { %803 = vmatpush.bf16.msra.mxu1 %v2514_v28  ;;  %v2545_v28 = vld [vmem:[%s3143_s4 + $0x148] sm:$0xff] }
  0x26   : > { %627 = vmatpush.bf16.msra.mxu0 %v2497_v6 }
  0x28   : > { %866 = vmatpush.bf16.msra.mxu2 %v2505_v29  ;;  %963 = vmatpush.bf16.msra.mxu3 %v2522_v50  ;;  %v2552_v50 = vld [vmem:[%s3143_s4 + $0x180] sm:$0xff] }
  0x29   : > { %804 = vmatpush.bf16.msra.mxu1 %v2513_v34  ;;  %v2565_v34 = vld [vmem:[%s3143_s4 + $0x1e8] sm:$0xff] }
  0x2a   : > { %628 = vmatpush.bf16.msra.mxu0 %v2496_v7  ;;  %v2548_v7 = vld [vmem:[%s3143_s4 + $0x160] sm:$0xff] }
  0x2c   : > { %867 = vmatpush.bf16.msra.mxu2 %v2504_v35  ;;  %964 = vmatpush.bf16.msra.mxu3 %v2521_v54  ;;  %v2575_v35 = vld [vmem:[%s3143_s4 + $0x238] sm:$0xff]  ;;  %v2572_v54 = vld [vmem:[%s3143_s4 + $0x220] sm:$0xff] }
  0x2d   : > { %629 = vmatmul.bf16.vlgmr.msra.gmra.mxu0 %v2777_v8  ;;  %805 = vmatpush.bf16.msra.mxu1 %v2512_v41  ;;  %v2574_v41 = vld [vmem:[%s3143_s4 + $0x230] sm:$0xff] }
  0x2e   : > { %1058 = vmatpush.bf16.msrb.mxu0 %v2535_v31  ;;  %v2555_v31 = vld [vmem:[%s3143_s4 + $0x198] sm:$0xff] }
  0x30   : > { %1258 = vmatpush.bf16.msrb.mxu2 %v2551_v55  ;;  %965 = vmatpush.bf16.msra.mxu3 %v2520_v61 }
  0x31   : > { %1158 = vmatpush.bf16.msrb.mxu1 %v2543_v44 }
  0x32   : > { %1059 = vmatpush.bf16.msrb.mxu0 %v2534_v37 }
  0x34   : > { %1259 = vmatpush.bf16.msrb.mxu2 %v2550_v60  ;;  %1359 = vmatpush.bf16.msrb.mxu3 %v2559_v2 }
  0x35   : > { %1159 = vmatpush.bf16.msrb.mxu1 %v2542_v53 }
  0x36   : > { %1060 = vmatpush.bf16.msrb.mxu0 %v2533_v43 }
  0x38   : > { %1260 = vmatpush.bf16.msrb.mxu2 %v2549_v1  ;;  %1360 = vmatpush.bf16.msrb.mxu3 %v2558_v9  ;;  %v2568_v9 = vld [vmem:[%s3143_s4 + $0x200] sm:$0xff] }
  0x39   : > { %1160 = vmatpush.bf16.msrb.mxu1 %v2541_v58  ;;  %v2561_v58 = vld [vmem:[%s3143_s4 + $0x1c8] sm:$0xff] }
  0x3a   : > { %1061 = vmatpush.bf16.msrb.mxu0 %v2532_v52 }
  0x3c   : > { %1261 = vmatpush.bf16.msrb.mxu2 %v2548_v7  ;;  %1361 = vmatpush.bf16.msrb.mxu3 %v2557_v18 }
  0x3d   : > { %1161 = vmatpush.bf16.msrb.mxu1 %v2540_v63  ;;  %v2570_v63 = vld [vmem:[%s3143_s4 + $0x210] sm:$0xff] }
  0x3e   : > { %1062 = vmatpush.bf16.msrb.mxu0 %v2531_v57 }
  0x40   : > { %1262 = vmatpush.bf16.msrb.mxu2 %v2547_v15  ;;  %1362 = vmatpush.bf16.msrb.mxu3 %v2556_v24  ;;  %v1478_v24 = vld [vmem:[#allocation2 + $0x81] sm:$0xf] }
  0x41   : > { %1162 = vmatpush.bf16.msrb.mxu1 %v2539_v5  ;;  %v2569_v5 = vld [vmem:[%s3143_s4 + $0x208] sm:$0xff] }
  0x42   : > { %1063 = vmatpush.bf16.msrb.mxu0 %v2530_v62  ;;  %v2560_v62 = vld [vmem:[%s3143_s4 + $0x1c0] sm:$0xff] }
  0x44   : > { %1263 = vmatpush.bf16.msrb.mxu2 %v2546_v22  ;;  %1363 = vmatpush.bf16.msrb.mxu3 %v2555_v31  ;;  %v2583_v31 = vld [vmem:[%s3146_s7 + $0x38] sm:$0xff] }
  0x45   : > { %1163 = vmatpush.bf16.msrb.mxu1 %v2538_v14 }
  0x46   : > { %1064 = vmatpush.bf16.msrb.mxu0 %v2529_v4 }
  0x48   : > { %1264 = vmatpush.bf16.msrb.mxu2 %v2545_v28 }
  0x4a   : > { %1065 = vmatpush.bf16.msrb.mxu0 %v2528_v12 }
  0x4c   : > { %1265 = vmatpush.bf16.msrb.mxu2 %v2544_v36 }
  0x4e   : > { %1459 = vmatpush.bf16.msra.mxu0 %v2567_v19 }
  0xaa   : > { %v630_v26 = vpop.f32.mrf.mxu0 }
  0xab   : > { %v639_v27 = vmul.f32 %v2623_v21, %v630_v26 }
  0xad   : > { %v645_v32 = vadd.f32 %v2624_v25, %v639_v27 }
  0xaf   : > { %v647_v33 = vmax.f32 %v645_v32, 0.0 }
  0xb1   : > { %v669_v38 = vrot.slane %v647_v33, 4  ;;  %674 = vst [vmem:[#allocation2 + $0x20] sm:$0xf] %v647_v33 }
  0xb2   : > { %v632_v39 = vpop.f32.mrf.mxu0 }
  0xb3   : > { %675 = vst [vmem:[#allocation2 + $0x38] sm:$0xf] %v669_v38  ;;  %v640_v40 = vmul.f32 %v2623_v21, %v632_v39  ;;  %v2537_v21 = vld [vmem:[%s3143_s4 + $0x108] sm:$0xff]  ;;  %v2554_v38 = vld [vmem:[%s3143_s4 + $0x190] sm:$0xff] }
  0xb4   : > { %1164 = vmatpush.bf16.msrb.mxu1 %v2537_v21  ;;  %1364 = vmatpush.bf16.msrb.mxu3 %v2554_v38 }
  0xb5   : > { %v646_v45 = vadd.f32 %v2624_v25, %v640_v40  ;;  %v2566_v25 = vld [vmem:[%s3143_s4 + $0x1f0] sm:$0xff]  ;;  %v2564_v40 = vld [vmem:[%s3143_s4 + $0x1e0] sm:$0xff] }
  0xb6   : > { %1460 = vmatpush.bf16.msra.mxu0 %v2566_v25 }
  0xb7   : > { %v648_v47 = vmax.f32 %v646_v45, 0.0  ;;  %v2553_v45 = vld [vmem:[%s3143_s4 + $0x188] sm:$0xff] }
  0xb8   : > { %v679_v46 = vld [vmem:[#allocation2 + $0x1f] sm:$0xf]  ;;  %1165 = vmatpush.bf16.msrb.mxu1 %v2536_v30  ;;  %1365 = vmatpush.bf16.msrb.mxu3 %v2553_v45 }
  0xb9   : > { %688 = vst [vmem:[#allocation1 + $0x1] ss:$2 sm:$0xff] %v679_v46  ;;  %v670_v49 = vrot.slane %v648_v47, 4  ;;  %v715_v59 = vld [vmem:[#allocation2 + $0x20] sm:$0xf]  ;;  %v2563_v46 = vld [vmem:[%s3143_s4 + $0x1d8] sm:$0xff] }
  0xba   : > { %v680_v48 = vld [vmem:[#allocation2 + $0x37] sm:$0xf]  ;;  %676 = vst [vmem:[#allocation2 + $0x50] sm:$0xf] %v648_v47  ;;  %v875_v10 = vld [vmem:[#allocation2 + $0x21] sm:$0xf]  ;;  %1461 = vmatpush.bf16.msra.mxu0 %v2565_v34 }
  0xbb   : > { %690 = vst [vmem:[#allocation1 + $0x10] ss:$2 sm:$0xff] %v680_v48  ;;  %v716_v11 = vld [vmem:[#allocation2 + $0x38] sm:$0xf]  ;;  %v974_v20 = vld [vmem:[#allocation2 + $0x1f] sm:$0xf] }
  0xbc   : > { %677 = vst [vmem:[#allocation2 + $0x68] sm:$0xf] %v670_v49  ;;  %v975_v26 = vld [vmem:[#allocation2 + $0x37] sm:$0xf]  ;;  %v1074_v37 = vld [vmem:[#allocation2 + $0x20] sm:$0xf]  ;;  %1366 = vmatpush.bf16.msrb.mxu3 %v2552_v50 }
  0xbd   : > { %v876_v27 = vld [vmem:[#allocation2 + $0x39] sm:$0xf]  ;;  %v2573_v49 = vld [vmem:[%s3143_s4 + $0x228] sm:$0xff] }
  0xbe   : > { %v1075_v42 = vld [vmem:[#allocation2 + $0x38] sm:$0xf]  ;;  %1462 = vmatpush.bf16.msra.mxu0 %v2564_v40  ;;  %v1174_v52 = vld [vmem:[#allocation2 + $0x21] sm:$0xf]  ;;  %v2578_v40 = vld [vmem:[%s3146_s7 + $0x10] sm:$0xff] }
  0xbf   : > { %v1175_v55 = vld [vmem:[#allocation2 + $0x39] sm:$0xf] }
  0xc0   : > { %v693_v56 = vld.sshfl [vmem:[#allocation1] sm:$0xff pattern:$0x75316420] }
  0xc1   : > { %722 = vst [vmem:[#allocation1] ss:$2 sm:$0xff] %v714_v51  ;;  %v681_v0 = vld [vmem:[#allocation2 + $0x4f] sm:$0xf] }
  0xc2   : > { %724 = vst [vmem:[#allocation1 + $0x1] ss:$2 sm:$0xff] %v715_v59  ;;  %v717_v16 = vld [vmem:[#allocation2 + $0x50] sm:$0xf]  ;;  %1463 = vmatpush.bf16.msra.mxu0 %v2563_v46  ;;  %v2562_v51 = vld [vmem:[%s3143_s4 + $0x1d0] sm:$0xff]  ;;  %v2576_v46 = vld [vmem:[%s3146_s7] sm:$0xff] }
  0xc3   : > { %692 = vst [vmem:[#allocation1 + $0x11] ss:$2 sm:$0xff] %v681_v0  ;;  %v877_v32 = vld [vmem:[#allocation2 + $0x51] sm:$0xf]  ;;  %v977_v47 = vld [vmem:[#allocation2 + $0x67] sm:$0xf] }
  0xc4   : > { %v976_v43 = vld [vmem:[#allocation2 + $0x4f] sm:$0xf]  ;;  %v1077_v60 = vld [vmem:[#allocation2 + $0x68] sm:$0xf]  ;;  %v1275_v0 = vld [vmem:[#allocation2 + $0x37] sm:$0xf] }
  0xc5   : > { %v2571_v59 = vld [vmem:[%s3143_s4 + $0x218] sm:$0xff]  ;;  %v1277_v14 = vld [vmem:[#allocation2 + $0x67] sm:$0xf] }
  0xc6   : > { %1464 = vmatpush.bf16.msra.mxu0 %v2562_v51  ;;  %v1276_v2 = vld [vmem:[#allocation2 + $0x4f] sm:$0xf]  ;;  %v1377_v21 = vld [vmem:[#allocation2 + $0x68] sm:$0xf] }
  0xc7   : > { %v1376_v12 = vld [vmem:[#allocation2 + $0x50] sm:$0xf]  ;;  %v1477_v25 = vld [vmem:[#allocation2 + $0x69] sm:$0xf] }
  0xc8   : > { %v1476_v19 = vld [vmem:[#allocation2 + $0x51] sm:$0xf] }
  0xc9   : > { %v729_v6 = vld.sshfl [vmem:[#allocation1] sm:$0xff pattern:$0x75316420] }
  0xca   : > { %882 = vst [vmem:[#allocation1] ss:$2 sm:$0xff] %v874_v3  ;;  %v694_v13 = vld.sshfl [vmem:[#allocation1 + $0x10] sm:$0xff pattern:$0x75316420]  ;;  %1465 = vmatpush.bf16.msra.mxu0 %v2561_v58 }
  0xcb   : > { %884 = vst [vmem:[#allocation1 + $0x1] ss:$2 sm:$0xff] %v875_v10  ;;  %v697_v17 = vpack.c.bf16 %v694_v13, %v693_v56  ;;  %v1076_v56 = vld [vmem:[#allocation2 + $0x50] sm:$0xf]  ;;  %v1375_v10 = vld [vmem:[#allocation2 + $0x38] sm:$0xf] }
  0xcc   : > { %726 = vst [vmem:[#allocation1 + $0x10] ss:$2 sm:$0xff] %v716_v11  ;;  %v1176_v3 = vld [vmem:[#allocation2 + $0x51] sm:$0xf]  ;;  %v1278_v13 = vld [vmem:[#allocation2 + $0x7f] sm:$0xf] }
  0xcd   : > { %728 = vst [vmem:[#allocation1 + $0x11] ss:$2 sm:$0xff] %v717_v16  ;;  %868 = vmatmul.bf16.vlgmr.msra.gmra.mxu2 %v697_v17  ;;  %v1475_v17 = vld [vmem:[#allocation2 + $0x39] sm:$0xf] }
  0xce   : > { %1466 = vmatpush.bf16.msra.mxu0 %v2560_v62  ;;  %1654 = vmatpush.bf16.msra.mxu2 %v2583_v31  ;;  %v2598_v31 = vld [vmem:[%s3151_s12 + $0x30] sm:$0xff] }
  0xd2   : > { %v889_v23 = vld.sshfl [vmem:[#allocation1] sm:$0xff pattern:$0x75316420] }
  0xd3   : > { %982 = vst [vmem:[#allocation1] ss:$2 sm:$0xff] %v974_v20  ;;  %v1378_v20 = vld [vmem:[#allocation2 + $0x80] sm:$0xf] }
  0xd4   : > { %984 = vst [vmem:[#allocation1 + $0x1] ss:$2 sm:$0xff] %v975_v26  ;;  %v730_v29 = vld.sshfl [vmem:[#allocation1 + $0x10] sm:$0xff pattern:$0x75316420] }
  0xd5   : > { %886 = vst [vmem:[#allocation1 + $0x10] ss:$2 sm:$0xff] %v876_v27  ;;  %v733_v33 = vpack.c.bf16 %v730_v29, %v729_v6  ;;  %v1177_v6 = vld [vmem:[#allocation2 + $0x69] sm:$0xf] }
  0xd6   : > { %888 = vst [vmem:[#allocation1 + $0x11] ss:$2 sm:$0xff] %v877_v32  ;;  %v2582_v32 = vld [vmem:[%s3146_s7 + $0x30] sm:$0xff] }
  0xd7   : > { %806 = vmatmul.bf16.vlgmr.msra.gmra.mxu1 %v733_v33  ;;  %1655 = vmatpush.bf16.msra.mxu2 %v2582_v32  ;;  %v2581_v33 = vld [vmem:[%s3146_s7 + $0x28] sm:$0xff]  ;;  %v2606_v32 = vld [vmem:[%s3153_s14 + $0x30] sm:$0xff] }
  0xd8   : > { %1559 = vmatpush.bf16.msra.mxu1 %v2575_v35  ;;  %v2580_v35 = vld [vmem:[%s3146_s7 + $0x20] sm:$0xff] }
  0xdb   : > { %v989_v39 = vld.sshfl [vmem:[#allocation1] sm:$0xff pattern:$0x75316420]  ;;  %1656 = vmatpush.bf16.msra.mxu2 %v2581_v33 }
  0xdc   : > { %1082 = vst [vmem:[#allocation1] ss:$2 sm:$0xff] %v1074_v37  ;;  %1560 = vmatpush.bf16.msra.mxu1 %v2574_v41  ;;  %v2579_v37 = vld [vmem:[%s3146_s7 + $0x18] sm:$0xff]  ;;  %v2627_v33 = vld [vmem:[%s3147_s8] ss:$0 sm:$0xff] }
  0xdd   : > { %1084 = vst [vmem:[#allocation1 + $0x1] ss:$2 sm:$0xff] %v1075_v42  ;;  %v890_v44 = vld.sshfl [vmem:[#allocation1 + $0x10] sm:$0xff pattern:$0x75316420]  ;;  %v2577_v42 = vld [vmem:[%s3146_s7 + $0x8] sm:$0xff] }
  0xde   : > { %986 = vst [vmem:[#allocation1 + $0x10] ss:$2 sm:$0xff] %v976_v43  ;;  %v893_v48 = vpack.c.bf16 %v890_v44, %v889_v23 }
  0xdf   : > { %988 = vst [vmem:[#allocation1 + $0x11] ss:$2 sm:$0xff] %v977_v47  ;;  %1657 = vmatpush.bf16.msra.mxu2 %v2580_v35  ;;  %v2597_v35 = vld [vmem:[%s3151_s12 + $0x28] sm:$0xff] }
  0xe0   : > { %966 = vmatmul.bf16.vlgmr.msra.gmra.mxu3 %v893_v48  ;;  %1561 = vmatpush.bf16.msra.mxu1 %v2573_v49 }
  0xe3   : > { %1658 = vmatpush.bf16.msra.mxu2 %v2579_v37 }
  0xe4   : > { %v1089_v53 = vld.sshfl [vmem:[#allocation1] sm:$0xff pattern:$0x75316420]  ;;  %1562 = vmatpush.bf16.msra.mxu1 %v2572_v54 }
  0xe5   : > { %1182 = vst [vmem:[#allocation1] ss:$2 sm:$0xff] %v1174_v52 }
  0xe6   : > { %1184 = vst [vmem:[#allocation1 + $0x1] ss:$2 sm:$0xff] %v1175_v55  ;;  %v990_v57 = vld.sshfl [vmem:[#allocation1 + $0x10] sm:$0xff pattern:$0x75316420] }
  0xe7   : > { %v993_v61 = vpack.c.bf16 %v990_v57, %v989_v39  ;;  %1086 = vst [vmem:[#allocation1 + $0x10] ss:$2 sm:$0xff] %v1076_v56  ;;  %1659 = vmatpush.bf16.msra.mxu2 %v2578_v40 }
  0xe8   : > { %1088 = vst [vmem:[#allocation1 + $0x11] ss:$2 sm:$0xff] %v1077_v60  ;;  %1563 = vmatpush.bf16.msra.mxu1 %v2571_v59 }
  0xe9   : > { %1066 = vmatmul.bf16.vlgmr.msrb.gmra.mxu0 %v993_v61 }
  0xeb   : > { %1660 = vmatpush.bf16.msra.mxu2 %v2577_v42  ;;  %v2596_v42 = vld [vmem:[%s3151_s12 + $0x20] sm:$0xff] }
  0xec   : > { %1564 = vmatpush.bf16.msra.mxu1 %v2570_v63 }
  0xed   : > { %v1189_v1 = vld.sshfl [vmem:[#allocation1] sm:$0xff pattern:$0x75316420] }
  0xee   : > { %1283 = vst [vmem:[#allocation1] ss:$2 sm:$0xff] %v1275_v0 }
  0xef   : > { %1285 = vst [vmem:[#allocation1 + $0x1] ss:$2 sm:$0xff] %v1276_v2  ;;  %v1090_v4 = vld.sshfl [vmem:[#allocation1 + $0x10] sm:$0xff pattern:$0x75316420]  ;;  %1661 = vmatpush.bf16.msra.mxu2 %v2576_v46 }
  0xf0   : > { %v1093_v7 = vpack.c.bf16 %v1090_v4, %v1089_v53  ;;  %1186 = vst [vmem:[#allocation1 + $0x10] ss:$2 sm:$0xff] %v1176_v3  ;;  %1565 = vmatpush.bf16.msra.mxu1 %v2569_v5  ;;  %v2625_v5 = vld [vmem:[%s3144_s5] ss:$0 sm:$0xff] }
  0xf1   : > { %1188 = vst [vmem:[#allocation1 + $0x11] ss:$2 sm:$0xff] %v1177_v6 }
  0xf2   : > { %1166 = vmatmul.bf16.vlgmr.msrb.gmra.mxu1 %v1093_v7 }
  0xf4   : > { %1566 = vmatpush.bf16.msra.mxu1 %v2568_v9 }
  0xf6   : > { %v1290_v11 = vld.sshfl [vmem:[#allocation1] sm:$0xff pattern:$0x75316420] }
  0xf7   : > { %1383 = vst [vmem:[#allocation1] ss:$2 sm:$0xff] %v1375_v10  ;;  %v2626_v10 = vld [vmem:[%s3145_s6] ss:$0 sm:$0xff] }
  0xf8   : > { %1385 = vst [vmem:[#allocation1 + $0x1] ss:$2 sm:$0xff] %v1376_v12  ;;  %v1190_v15 = vld.sshfl [vmem:[#allocation1 + $0x10] sm:$0xff pattern:$0x75316420] }
  0xf9   : > { %v1193_v16 = vpack.c.bf16 %v1190_v15, %v1189_v1  ;;  %1287 = vst [vmem:[#allocation1 + $0x10] ss:$2 sm:$0xff] %v1277_v14 }
  0xfa   : > { %1289 = vst [vmem:[#allocation1 + $0x11] ss:$2 sm:$0xff] %v1278_v13 }
  0xfb   : > { %1266 = vmatmul.bf16.vlgmr.msrb.gmra.mxu2 %v1193_v16 }
  0xff   : > { %v1390_v18 = vld.sshfl [vmem:[#allocation1] sm:$0xff pattern:$0x75316420] }
 0x100   : > { %1483 = vst [vmem:[#allocation1] ss:$2 sm:$0xff] %v1475_v17 }
 0x101   : > { %1485 = vst [vmem:[#allocation1 + $0x1] ss:$2 sm:$0xff] %v1476_v19  ;;  %v1291_v22 = vld.sshfl [vmem:[#allocation1 + $0x10] sm:$0xff pattern:$0x75316420]  ;;  %v2591_v19 = vld [vmem:[%s3149_s10 + $0x38] sm:$0xff] }
 0x102   : > { %v1294_v23 = vpack.c.bf16 %v1291_v22, %v1290_v11  ;;  %1387 = vst [vmem:[#allocation1 + $0x10] ss:$2 sm:$0xff] %v1377_v21  ;;  %1761 = vmatpush.bf16.msra.mxu3 %v2591_v19  ;;  %v2589_v21 = vld [vmem:[%s3149_s10 + $0x28] sm:$0xff]  ;;  %v2588_v22 = vld [vmem:[%s3149_s10 + $0x20] sm:$0xff] }
 0x103   : > { %1389 = vst [vmem:[#allocation1 + $0x11] ss:$2 sm:$0xff] %v1378_v20  ;;  %v2590_v20 = vld [vmem:[%s3149_s10 + $0x30] sm:$0xff] }
 0x104   : > { %1367 = vmatmul.bf16.vlgmr.msrb.gmra.mxu3 %v1294_v23  ;;  %v2587_v23 = vld [vmem:[%s3149_s10 + $0x18] sm:$0xff] }
 0x106   : > { %1762 = vmatpush.bf16.msra.mxu3 %v2590_v20 }
 0x108   : > { %v1490_v28 = vld.sshfl [vmem:[#allocation1] sm:$0xff pattern:$0x75316420] }
 0x10a   : > { %v1391_v26 = vld.sshfl [vmem:[#allocation1 + $0x10] sm:$0xff pattern:$0x75316420]  ;;  %1763 = vmatpush.bf16.msra.mxu3 %v2589_v21 }
 0x10b   : > { %v1394_v27 = vpack.c.bf16 %v1391_v26, %v1390_v18  ;;  %1487 = vst [vmem:[#allocation1 + $0x10] ss:$2 sm:$0xff] %v1477_v25  ;;  %v2585_v25 = vld [vmem:[%s3149_s10 + $0x8] sm:$0xff]  ;;  %v2584_v26 = vld [vmem:[%s3149_s10] sm:$0xff] }
 0x10c   : > { %1489 = vst [vmem:[#allocation1 + $0x11] ss:$2 sm:$0xff] %v1478_v24  ;;  %v2586_v24 = vld [vmem:[%s3149_s10 + $0x10] sm:$0xff] }
 0x10d   : > { %1467 = vmatmul.bf16.vlgmr.msra.gmra.mxu0 %v1394_v27  ;;  %v2646_v27 = vmov 16.0  }
 0x10e   : > { %1764 = vmatpush.bf16.msra.mxu3 %v2588_v22  ;;  %2631 = vrcp.f32 %v2646_v27 }
 0x112   : > { %1765 = vmatpush.bf16.msra.mxu3 %v2587_v23  ;;  %v2629_v23 = vld [vmem:[%s3154_s15] ss:$0 sm:$0xff] }
 0x113   : > { %v1491_v29 = vld.sshfl [vmem:[#allocation1 + $0x10] sm:$0xff pattern:$0x75316420] }
 0x114   : > { %v1494_v30 = vpack.c.bf16 %v1491_v29, %v1490_v28  ;;  %v2599_v28 = vld [vmem:[%s3151_s12 + $0x38] sm:$0xff] }
 0x115   : > { %1841 = vmatpush.bf16.msrb.mxu0 %v2599_v28 }
 0x116   : > { %1567 = vmatmul.bf16.vlgmr.msra.gmra.mxu1 %v1494_v30  ;;  %1766 = vmatpush.bf16.msra.mxu3 %v2586_v24  ;;  %v2607_v30 = vld [vmem:[%s3153_s14 + $0x38] sm:$0xff] }
 0x117   : > { %1937 = vmatpush.bf16.msrb.mxu1 %v2607_v30 }
 0x119   : > { %1842 = vmatpush.bf16.msrb.mxu0 %v2598_v31 }
 0x11a   : > { %1767 = vmatpush.bf16.msra.mxu3 %v2585_v25 }
 0x11b   : > { %1938 = vmatpush.bf16.msrb.mxu1 %v2606_v32 }
 0x11d   : > { %1843 = vmatpush.bf16.msrb.mxu0 %v2597_v35 }
 0x11e   : > { %1768 = vmatpush.bf16.msra.mxu3 %v2584_v26 }
 0x121   : > { %1844 = vmatpush.bf16.msrb.mxu0 %v2596_v42 }
 0x150   : > { %v869_v36 = vpop.f32.mrf.mxu2 }
 0x154   : > { %v807_v34 = vpop.f32.mrf.mxu1 }
 0x155   : > { %v870_v47 = vadd.f32 %v869_v36, %v807_v34  ;;  %v2632_v34 = vpop.eup %2631  ;;  %v2605_v36 = vld [vmem:[%s3153_s14 + $0x28] sm:$0xff] }
 0x156   : > { %v1688_v40 = vmul.f32 16.0, %v2632_v34  ;;  %1939 = vmatpush.bf16.msrb.mxu1 %v2605_v36  ;;  %vm1692_vm0 = vweird.f32 %v2632_v34 }
 0x158   : > { %v871_v43 = vpop.f32.mrf.mxu2 }
 0x15c   : > { %v809_v39 = vpop.f32.mrf.mxu1 }
 0x15d   : > { %v872_v52 = vadd.f32 %v871_v43, %v809_v39 }
 0x163   : > { %v967_v38 = vpop.f32.mrf.mxu3 }
 0x164   : > { %v972_v49 = vadd.f32 %v967_v38, %v870_v47  ;;  %v2628_v38 = vld [vmem:[%s3148_s9] ss:$0 sm:$0xff]  ;;  %v2595_v47 = vld [vmem:[%s3151_s12 + $0x18] sm:$0xff] }
 0x165   : > { %1845 = vmatpush.bf16.msrb.mxu0 %v2595_v47 }
 0x166   : > { %v1067_v41 = vpop.f32.mrf.mxu0 }
 0x167   : > { %v1072_v53 = vadd.f32 %v1067_v41, %v972_v49 }
 0x16b   : > { %v969_v44 = vpop.f32.mrf.mxu3 }
 0x16c   : > { %v973_v55 = vadd.f32 %v969_v44, %v872_v52 }
 0x16e   : > { %v1069_v48 = vpop.f32.mrf.mxu0 }
 0x16f   : > { %v1167_v45 = vpop.f32.mrf.mxu1  ;;  %v1073_v59 = vadd.f32 %v1069_v48, %v973_v55 }
 0x170   : > { %v1172_v56 = vadd.f32 %v1167_v45, %v1072_v53  ;;  %v1689_v45 = vsub.f32 1.0, %v1688_v40 }
 0x172   : > { %v1690_v49 = vmul.f32 %v2632_v34, %v1689_v45 }
 0x174   : > { %v1691_v53 = vadd.f32 %v2632_v34, %v1690_v49 }
 0x177   : > { %v1169_v54 = vpop.f32.mrf.mxu1 }
 0x178   : > { %v1173_v62 = vadd.f32 %v1169_v54, %v1073_v59 }
 0x17e   : > { %v1267_v50 = vpop.f32.mrf.mxu2 }
 0x17f   : > { %v1272_v58 = vadd.f32 %v1267_v50, %v1172_v56  ;;  %v1693_v56 = vsel %vm1692_vm0, %v2632_v34, %v1691_v53 }
 0x186   : > { %v1269_v61 = vpop.f32.mrf.mxu2 }
 0x187   : > { %v1368_v51 = vpop.f32.mrf.mxu3  ;;  %v1273_v1 = vadd.f32 %v1269_v61, %v1173_v62  ;;  %v2604_v61 = vld [vmem:[%s3153_s14 + $0x20] sm:$0xff] }
 0x188   : > { %v1373_v60 = vadd.f32 %v1368_v51, %v1272_v58  ;;  %v2594_v51 = vld [vmem:[%s3151_s12 + $0x10] sm:$0xff]  ;;  %1940 = vmatpush.bf16.msrb.mxu1 %v2604_v61  ;;  %v2592_v62 = vld [vmem:[%s3151_s12] sm:$0xff] }
 0x189   : > { %1846 = vmatpush.bf16.msrb.mxu0 %v2594_v51 }
 0x18a   : > { %v1468_v57 = vpop.f32.mrf.mxu0 }
 0x18b   : > { %v1473_v2 = vadd.f32 %v1468_v57, %v1373_v60  ;;  %v2593_v60 = vld [vmem:[%s3151_s12 + $0x8] sm:$0xff] }
 0x18d   : > { %1847 = vmatpush.bf16.msrb.mxu0 %v2593_v60 }
 0x18f   : > { %v1370_v63 = vpop.f32.mrf.mxu3 }
 0x190   : > { %v1374_v3 = vadd.f32 %v1370_v63, %v1273_v1  ;;  %v2603_v63 = vld [vmem:[%s3153_s14 + $0x18] sm:$0xff]  ;;  %v2601_v1 = vld [vmem:[%s3153_s14 + $0x8] sm:$0xff] }
 0x191   : > { %1848 = vmatpush.bf16.msrb.mxu0 %v2592_v62  ;;  %1941 = vmatpush.bf16.msrb.mxu1 %v2603_v63 }
 0x192   : > { %v1470_v6 = vpop.f32.mrf.mxu0 }
 0x193   : > { %v1568_v0 = vpop.f32.mrf.mxu1  ;;  %v1474_v7 = vadd.f32 %v1470_v6, %v1374_v3  ;;  %v1712_v3 = vld [vmem:[%s3150_s11] sm:$0x1] }
 0x194   : > { %v1573_v4 = vadd.f32 %v1568_v0, %v1473_v2  ;;  %v2602_v0 = vld [vmem:[%s3153_s14 + $0x10] sm:$0xff]  ;;  %v2600_v2 = vld [vmem:[%s3153_s14] sm:$0xff] }
 0x195   : > { %1942 = vmatpush.bf16.msrb.mxu1 %v2602_v0 }
 0x196   : > { %v1579_v9 = vmul.f32 %v2625_v5, %v1573_v4 }
 0x198   : > { %v1585_v13 = vadd.f32 %v2626_v10, %v1579_v9 }
 0x199   : > { %1943 = vmatpush.bf16.msrb.mxu1 %v2601_v1 }
 0x19a   : > { %v1587_v16 = vmax.f32 %v1585_v13, 0.0 }
 0x19b   : > { %v1570_v11 = vpop.f32.mrf.mxu1 }
 0x19c   : > { %v1574_v12 = vadd.f32 %v1570_v11, %v1474_v7 }
 0x19d   : > { %1944 = vmatpush.bf16.msrb.mxu1 %v2600_v2 }
 0x19e   : > { %v1580_v14 = vmul.f32 %v2625_v5, %v1574_v12 }
 0x1a0   : > { %v1586_v15 = vadd.f32 %v2626_v10, %v1580_v14  ;;  %1945 = vmatmul.bf16.vlgmr.msrb.gmra.mxu1 %v2777_v8  ;;  %v1792_v10 = vld [vmem:[%s3152_s13] sm:$0x1] }
 0x1a2   : > { %v1588_v17 = vmax.f32 %v1586_v15, 0.0 }
 0x1a4   : > { %v1589_v18 = vpack.c.bf16 %v1588_v17, %v1587_v16 }
 0x1a6   : > { %1662 = vmatmul.bf16.vlgmr.msra.gmra.mxu2 %v1589_v18 }
 0x21d   : > { %v1946_v16 = vpop.f32.mrf.mxu1 }
 0x21e   : > { %v1955_v28 = vmul.f32 %v2629_v23, %v1946_v16 }
 0x225   : > { %v1948_v24 = vpop.f32.mrf.mxu1 }
 0x226   : > { %v1956_v30 = vmul.f32 %v2629_v23, %v1948_v24 }
 0x229   : > { %v1663_v29 = vpop.f32.mrf.mxu2 }
 0x22a   : > { %v1672_v37 = vmul.f32 %v2627_v33, %v1663_v29  ;;  %v2630_v29 = vld [vmem:[%s3155_s16] ss:$0 sm:$0xff] }
 0x22b   : > { %v1962_v35 = vadd.f32 %v2630_v29, %v1956_v30 }
 0x22c   : > { %v3083_v43 = vadd.f32 %v2628_v38, %v1672_v37 }
 0x231   : > { %v1665_v39 = vpop.f32.mrf.mxu2 }
 0x232   : > { %v1673_v41 = vmul.f32 %v2627_v33, %v1665_v39  ;;  %v1961_v33 = vadd.f32 %v2630_v29, %v1955_v28 }
 0x234   : > { %v3085_v44 = vadd.f32 %v2628_v38, %v1673_v41 }
 0x236   : > { %v1680_v46 = vadd.f32 %v3085_v44, %v3083_v43 }
 0x238   : > { %v1681_v48 = vrot.slane %v1680_v46, 4 }
 0x23a   : > { %v1682_v50 = vadd.f32 %v1681_v48, %v1680_v46 }
 0x23c   : > { %v1683_v52 = vrot.slane %v1682_v50, 2 }
 0x23e   : > { %v1684_v54 = vadd.f32 %v1683_v52, %v1682_v50 }
 0x240   : > { %v1685_v55 = vrot.slane %v1684_v54, 1 }
 0x242   : > { %v1686_v57 = vadd.f32 %v1685_v55, %v1684_v54 }
 0x244   : > { %v1694_v58 = vmul.f32 %v1693_v56, %v1686_v57 }
 0x246   : > { %v1695_v59 = vpack.c.bf16 %v1694_v58, %v1694_v58 }
 0x248   : > { %1769 = vmatmul.bf16.vlgmr.msra.gmra.mxu3 %v1695_v59 }
 0x2cb   : > { %v1770_v4 = vpop.f32.mrf.mxu3 }
 0x2cc   : > { %v1771_v5 = vadd.f32 %v1770_v4, %v1712_v3 }
 0x2ce   : > { %v1774_v6 = vmax.f32 %v1771_v5, 0.0 }
 0x2d0   : > { %v1775_v7 = vpack.c.bf16 %v1774_v6, %v1774_v6 }
 0x2d2   : > { %1849 = vmatmul.bf16.vlgmr.msrb.gmra.mxu0 %v1775_v7 }
 0x2d3   : > { %v1772_v9 = vpop.f32.mrf.mxu3 }
 0x34f   : > { %v1850_v11 = vpop.f32.mrf.mxu0 }
 0x350   : > { %v1851_v12 = vadd.f32 %v1850_v11, %v1792_v10 }
 0x352   : > { %v2458_v13 = vmul.f32 -1.442695, %v1851_v12 }
 0x354   : > { %2633 = vpow2.f32 %v2458_v13 }
 0x357   : > { %v1852_v14 = vpop.f32.mrf.mxu0 }
 0x35a   : > { %v2634_v8 = vpop.eup %2633 }
 0x35b   : > { %v1857_v15 = vadd.f32 1.0, %v2634_v8 }
 0x35d   : > { %2635 = vrcp.f32 %v1857_v15  ;;  %v1869_v20 = vand.u32 2147483648, %v1857_v15  ;;  %v1867_v22 = vand.u32 2147483647, %v1857_v15  ;;  %vm1863_vm2 = vweird.f32 %v1857_v15 }
 0x35f   : > { %v1870_v26 = vor.u32 1.1754944e-38, %v1869_v20  ;;  %vm1868_vm4 = vcmp.eq.f32.partialorder %v1867_v22, 8.507059e+37 }
 0x363   : > { %v2636_v17 = vpop.eup %2635 }
 0x364   : > { %v1859_v18 = vmul.f32 %v2636_v17, %v1857_v15  ;;  %vm1864_vm1 = vweird.f32 %v2636_v17 }
 0x365   : > { %vm1865_vm3 = vmor %vm1863_vm2, %vm1864_vm1 }
 0x366   : > { %v1860_v19 = vsub.f32 1.0, %v1859_v18 }
 0x368   : > { %v1861_v21 = vmul.f32 %v2636_v17, %v1860_v19 }
 0x36a   : > { %v1862_v25 = vadd.f32 %v2636_v17, %v1861_v21 }
 0x36c   : > { %v1866_v27 = vsel %vm1865_vm3, %v2636_v17, %v1862_v25 }
 0x36d   : > { %v1871_v31 = vsel %vm1868_vm4, %v1870_v26, %v1866_v27 }
 0x36e   : > { %v1963_v32 = vperm.slane %v1871_v31, 0 }
 0x370   : > { %v1964_v34 = vmul.f32 %v1963_v32, %v3083_v43  ;;  %v1965_v36 = vmul.f32 %v1963_v32, %v3085_v44 }
 0x372   : > { %v1966_v37 = vadd.f32 %v1964_v34, %v1961_v33  ;;  %v1967_v38 = vadd.f32 %v1965_v36, %v1962_v35 }
 0x374   : > { %v1968_v39 = vmax.f32 %v1966_v37, 0.0  ;;  %v1969_v40 = vmax.f32 %v1967_v38, 0.0 }
 0x376   : > { %v2611_v41 = vpack.c.bf16 %v1969_v40, %v1968_v39 }
 0x378   : > { %2612 = vst [vmem:[%s548_s20] sm:$0xff] %v2611_v41  }
 0x379 PF: > { %s27_s24 = sadd.s32 1, %s2643_s24  }
 0x37a   : > { %p24_p4 = scmp.ge.s32.totalorder %s27_s24, 4  }
 0x37c   :  { %26 = sbr.rel (!%p24_p4) target bundleno = 3 (0x3), region = 147 }

// kernel: landmarks_model_forward.6
= control target key start
LH: loop header
LB: loop body
LE: loop exit
PB: predicated region body
PF: predicated region fallthrough
CT: control target
= control target key end

     0   :  { %s4650_s29 = smov 0   ;;  %s6452_s0 = inlined_call_operand.vmem [shape: bf16[2,256,128], index: 0, kind: input, shape index: {}]   ;;  %s6453_s1 = inlined_call_operand.vmem [shape: bf16[128,128], index: 1, kind: input, shape index: {}]   ;;  %s6454_s2 = inlined_call_operand.vmem [shape: f32[1,128], index: 2, kind: input, shape index: {}]   ;;  %s6455_s3 = inlined_call_operand.vmem [shape: f32[1,128], index: 3, kind: input, shape index: {}]   ;;  %s6456_s4 = inlined_call_operand.vmem [shape: bf16[1152,128], index: 4, kind: input, shape index: {}]   ;;  %s6457_s5 = inlined_call_operand.vmem [shape: f32[1,128], index: 5, kind: input, shape index: {}]   ;;  %s6458_s6 = inlined_call_operand.vmem [shape: f32[1,128], index: 6, kind: input, shape index: {}]   ;;  %s6459_s7 = inlined_call_operand.vmem [shape: bf16[128,128], index: 7, kind: input, shape index: {}]   ;;  %s6460_s8 = inlined_call_operand.vmem [shape: f32[1,128], index: 8, kind: input, shape index: {}]   ;;  %s6461_s9 = inlined_call_operand.vmem [shape: f32[1,128], index: 9, kind: input, shape index: {}]   ;;  %s6462_s10 = inlined_call_operand.vmem [shape: bf16[128,128], index: 10, kind: input, shape index: {}]   ;;  %s6463_s11 = inlined_call_operand.vmem [shape: f32[1,128], index: 11, kind: input, shape index: {}]   ;;  %s6464_s12 = inlined_call_operand.vmem [shape: bf16[128,128], index: 12, kind: input, shape index: {}]   ;;  %s6465_s13 = inlined_call_operand.vmem [shape: f32[1,128], index: 13, kind: input, shape index: {}]   ;;  %s6466_s14 = inlined_call_operand.vmem [shape: bf16[2,256,128], index: 14, kind: output, shape index: {}]  }
   0x1 LB: > { %s3808_s30 = sadd.s32 4294967295, %s4570_s29   ;;  %p3812_p0 = scmp.ge.s32.totalorder %s4570_s29, 1  ;;  %s4570_s29 = sphi %s4650_s29, %s24_s29  }
   0x2   : > { %p412_p1 = scmp.lt.s32.totalorder %s4570_s29, 3 }
   0x4   : > { %p413_p2 = pnand %p3812_p0, %p412_p1 }
   0x6   : > { %416 = sbr.rel (%p413_p2) target bundleno = 1628 (0x65c), region = 76 }
   0xb   : > { %v4325_v0 = vld [vmem:[%s6453_s1 + $0x38] sm:$0xff]  ;;  %v4324_v1 = vld [vmem:[%s6453_s1 + $0x30] sm:$0xff]  ;;  %v4323_v2 = vld [vmem:[%s6453_s1 + $0x28] sm:$0xff]  ;;  %p458_p3 = scmp.lt.s32.totalorder %s3808_s30, 1  ;;  %v4572_v29 = vmov 0.0   ;;  %v4573_v31 = vmov 0.0|0.0  }
   0xc   : > { %660 = vmatpush.bf16.msra.mxu0 %v4325_v0  ;;  %4517 = vmatpush.bf16.msra.mxu3 %v4325_v0  ;;  %v4322_v3 = vld [vmem:[%s6453_s1 + $0x20] sm:$0xff]  ;;  %v4321_v4 = vld [vmem:[%s6453_s1 + $0x18] sm:$0xff]  ;;  %v4320_v5 = vld [vmem:[%s6453_s1 + $0x10] sm:$0xff]  ;;  %853 = vst [vmem:[#allocation2] sm:$0xff] %v4572_v29 }
   0xd   : > { %s6659_s30 = smov (!%p458_p3, %s3808_s30), 1  ;;  %v4319_v6 = vld [vmem:[%s6453_s1 + $0x8] sm:$0xff]  ;;  %v4318_v7 = vld [vmem:[%s6453_s1] sm:$0xff]  ;;  %v4341_v13 = vld [vmem:[%s6456_s4 + $0x78] sm:$0xff]  ;;  %854 = vst [vmem:[#allocation2 + $0x8] sm:$0xff] %v4572_v29 }
   0xe   : > { %s4300_s15 = sshll.u32 %s6659_s30, 7  ;;  %1134 = vmatpush.bf16.msra.mxu1 %v4341_v13  ;;  %v4703_v14 = vld [vmem:[%s6456_s4 + $0x38] sm:$0xff]  ;;  %v4340_v15 = vld [vmem:[%s6456_s4 + $0x70] sm:$0xff]  ;;  %v4339_v17 = vld [vmem:[%s6456_s4 + $0x68] sm:$0xff]  ;;  %855 = vst [vmem:[#allocation2 + $0x10] sm:$0xff] %v4572_v29 }
   0xf   : > { %s4690_s20 = scalar_lea.vmem %s6452_s0, %s4300_s15  ;;  %1271 = vmatpush.bf16.msra.mxu2 %v4703_v14  ;;  %v4712_v16 = vld [vmem:[%s6456_s4 + $0x30] sm:$0xff]  ;;  %v4721_v18 = vld [vmem:[%s6456_s4 + $0x28] sm:$0xff]  ;;  %v4338_v19 = vld [vmem:[%s6456_s4 + $0x60] sm:$0xff]  ;;  %856 = vst [vmem:[#allocation2 + $0x18] sm:$0xff] %v4572_v29  ;;  %s6418_s26 = scalar_lea.vmem %s6466_s14, %s4300_s15 }
  0x10   : > { %661 = vmatpush.bf16.msra.mxu0 %v4324_v1  ;;  %4518 = vmatpush.bf16.msra.mxu3 %v4324_v1  ;;  %v4302_v8 = vld [vmem:[%s4690_s20] sm:$0xff]  ;;  %v4303_v9 = vld [vmem:[%s4690_s20 + $0x8] sm:$0xff]  ;;  %v4304_v10 = vld [vmem:[%s4690_s20 + $0x10] sm:$0xff]  ;;  %857 = vst [vmem:[#allocation2 + $0x20] sm:$0xff] %v4572_v29 }
  0x11   : > { %v4305_v11 = vld [vmem:[%s4690_s20 + $0x18] sm:$0xff]  ;;  %v4306_v12 = vld [vmem:[%s4690_s20 + $0x20] sm:$0xff]  ;;  %v4307_v20 = vld [vmem:[%s4690_s20 + $0x28] sm:$0xff]  ;;  %860 = vst [vmem:[#allocation2 + $0x38] sm:$0xff] %v4572_v29 }
  0x12   : > { %1135 = vmatpush.bf16.msra.mxu1 %v4340_v15  ;;  %v4337_v21 = vld [vmem:[%s6456_s4 + $0x58] sm:$0xff]  ;;  %v4734_v22 = vld [vmem:[%s6456_s4 + $0x20] sm:$0xff]  ;;  %v4336_v23 = vld [vmem:[%s6456_s4 + $0x50] sm:$0xff]  ;;  %861 = vst [vmem:[#allocation2 + $0x40] sm:$0xff] %v4572_v29 }
  0x13   : > { %1272 = vmatpush.bf16.msra.mxu2 %v4712_v16  ;;  %v4743_v24 = vld [vmem:[%s6456_s4 + $0x18] sm:$0xff]  ;;  %v4335_v25 = vld [vmem:[%s6456_s4 + $0x48] sm:$0xff]  ;;  %v4752_v26 = vld [vmem:[%s6456_s4 + $0x10] sm:$0xff]  ;;  %864 = vst [vmem:[#allocation2 + $0x58] sm:$0xff] %v4572_v29 }
  0x14   : > { %662 = vmatpush.bf16.msra.mxu0 %v4323_v2  ;;  %4519 = vmatpush.bf16.msra.mxu3 %v4323_v2  ;;  %v4334_v27 = vld [vmem:[%s6456_s4 + $0x40] sm:$0xff]  ;;  %v4308_v28 = vld [vmem:[%s4690_s20 + $0x30] sm:$0xff]  ;;  %v4762_v30 = vld [vmem:[%s6456_s4 + $0x8] sm:$0xff]  ;;  %865 = vst [vmem:[#allocation2 + $0x60] sm:$0xff] %v4572_v29 }
  0x15   : > { %v4768_v32 = vld [vmem:[%s6456_s4] sm:$0xff]  ;;  %868 = vst [vmem:[#allocation2 + $0x78] sm:$0xff] %v4572_v29  ;;  %v959_v34 = vld [vmem:[#allocation2 + $0xf] sm:$0xff]  ;;  %v4309_v36 = vld [vmem:[%s4690_s20 + $0x38] sm:$0xff] }
  0x16   : > { %1136 = vmatpush.bf16.msra.mxu1 %v4339_v17  ;;  %v958_v33 = vld [vmem:[#allocation2 + $0x7] sm:$0xff]  ;;  %869 = vst [vmem:[#allocation2 + $0x80] sm:$0xff] %v4572_v29  ;;  %v4775_v37 = vld [vmem:[%s6454_s2] ss:$0 sm:$0xff]  ;;  %v4357_v52 = vld [vmem:[%s6456_s4 + $0xf8] sm:$0xff] }
  0x17   : > { %1273 = vmatpush.bf16.msra.mxu2 %v4721_v18  ;;  %v990_v35 = vpack.c.bf16 %v959_v34, %v958_v33  ;;  %872 = vst [vmem:[#allocation2 + $0x98] sm:$0xff] %v4572_v29  ;;  %v4780_v38 = vld [vmem:[%s6455_s3] ss:$0 sm:$0xff]  ;;  %v4311_v48 = vld [vmem:[%s4690_s20 + $0x48] sm:$0xff]  ;;  %v4356_v57 = vld [vmem:[%s6456_s4 + $0xf0] sm:$0xff] }
  0x18   : > { %663 = vmatpush.bf16.msra.mxu0 %v4322_v3  ;;  %4520 = vmatpush.bf16.msra.mxu3 %v4322_v3  ;;  %873 = vst [vmem:[#allocation2 + $0xa0] sm:$0xff] %v4572_v29  ;;  %v4310_v39 = vld [vmem:[%s4690_s20 + $0x40] sm:$0xff]  ;;  %v4355_v61 = vld [vmem:[%s6456_s4 + $0xe8] sm:$0xff]  ;;  %v4312_v1 = vld [vmem:[%s4690_s20 + $0x50] sm:$0xff] }
  0x19   : > { %876 = vst [vmem:[#allocation2 + $0xb8] sm:$0xff] %v4572_v29  ;;  %v4354_v0 = vld [vmem:[%s6456_s4 + $0xe0] sm:$0xff] }
  0x1a   : > { %1137 = vmatpush.bf16.msra.mxu1 %v4338_v19  ;;  %877 = vst [vmem:[#allocation2 + $0xc0] sm:$0xff] %v4572_v29 }
  0x1b   : > { %1274 = vmatpush.bf16.msra.mxu2 %v4734_v22  ;;  %880 = vst [vmem:[#allocation2 + $0xd8] sm:$0xff] %v4572_v29 }
  0x1c   : > { %664 = vmatpush.bf16.msra.mxu0 %v4321_v4  ;;  %4521 = vmatpush.bf16.msra.mxu3 %v4321_v4  ;;  %881 = vst [vmem:[#allocation2 + $0xe0] sm:$0xff] %v4572_v29 }
  0x1d   : > { %884 = vst [vmem:[#allocation2 + $0xf8] sm:$0xff] %v4572_v29 }
  0x1e   : > { %1138 = vmatpush.bf16.msra.mxu1 %v4337_v21  ;;  %885 = vst [vmem:[#allocation2 + $0x100] sm:$0xff] %v4572_v29 }
  0x1f   : > { %1275 = vmatpush.bf16.msra.mxu2 %v4743_v24  ;;  %888 = vst [vmem:[#allocation2 + $0x118] sm:$0xff] %v4572_v29 }
  0x20   : > { %665 = vmatpush.bf16.msra.mxu0 %v4320_v5  ;;  %4522 = vmatpush.bf16.msra.mxu3 %v4320_v5  ;;  %889 = vst [vmem:[#allocation2 + $0x120] sm:$0xff] %v4572_v29  ;;  %v4353_v5 = vld [vmem:[%s6456_s4 + $0xd8] sm:$0xff] }
  0x21   : > { %892 = vst [vmem:[#allocation2 + $0x138] sm:$0xff] %v4572_v29 }
  0x22   : > { %1139 = vmatpush.bf16.msra.mxu1 %v4336_v23  ;;  %893 = vst [vmem:[#allocation2 + $0x140] sm:$0xff] %v4572_v29 }
  0x23   : > { %1276 = vmatpush.bf16.msra.mxu2 %v4752_v26  ;;  %896 = vst [vmem:[#allocation2 + $0x158] sm:$0xff] %v4572_v29 }
  0x24   : > { %666 = vmatpush.bf16.msra.mxu0 %v4319_v6  ;;  %4523 = vmatpush.bf16.msra.mxu3 %v4319_v6  ;;  %897 = vst [vmem:[#allocation2 + $0x160] sm:$0xff] %v4572_v29 }
  0x25   : > { %900 = vst [vmem:[#allocation2 + $0x178] sm:$0xff] %v4572_v29 }
  0x26   : > { %1140 = vmatpush.bf16.msra.mxu1 %v4335_v25  ;;  %901 = vst [vmem:[#allocation2 + $0x180] sm:$0xff] %v4572_v29 }
  0x27   : > { %1277 = vmatpush.bf16.msra.mxu2 %v4762_v30  ;;  %904 = vst [vmem:[#allocation2 + $0x198] sm:$0xff] %v4572_v29 }
  0x28   : > { %667 = vmatpush.bf16.msra.mxu0 %v4318_v7  ;;  %4524 = vmatpush.bf16.msra.mxu3 %v4318_v7  ;;  %905 = vst [vmem:[#allocation2 + $0x1a0] sm:$0xff] %v4572_v29  ;;  %v4315_v7 = vld [vmem:[%s4690_s20 + $0x68] sm:$0xff] }
  0x29   : > { %908 = vst [vmem:[#allocation2 + $0x1b8] sm:$0xff] %v4572_v29 }
  0x2a   : > { %1141 = vmatpush.bf16.msra.mxu1 %v4334_v27  ;;  %909 = vst [vmem:[#allocation2 + $0x1c0] sm:$0xff] %v4572_v29 }
  0x2b   : > { %668 = vmatmul.bf16.vlgmr.msra.gmra.mxu0 %v4302_v8  ;;  %1278 = vmatpush.bf16.msra.mxu2 %v4768_v32  ;;  %912 = vst [vmem:[#allocation2 + $0x1d8] sm:$0xff] %v4572_v29 }
  0x2c   : > { %4525 = vmatpush.bf16.msrb.mxu3 %v4341_v13  ;;  %913 = vst [vmem:[#allocation2 + $0x1e0] sm:$0xff] %v4572_v29  ;;  %1705 = vmatpush.bf16.msrb.mxu0 %v4357_v52 }
  0x2d   : > { %1142 = vmatmul.bf16.vlgmr.msra.gmra.mxu1 %v4573_v31  ;;  %916 = vst [vmem:[#allocation2 + $0x1f8] sm:$0xff] %v4572_v29  ;;  %733 = vmatmul.bf16.vlgmr.msra.gmra.mxu3 %v4315_v7 }
  0x2e   : > { %1279 = vmatmul.bf16.vlgmr.msra.gmra.mxu2 %v990_v35  ;;  %917 = vst [vmem:[#allocation2 + $0x200] sm:$0xff] %v4572_v29 }
  0x2f   : > { %920 = vst [vmem:[#allocation2 + $0x218] sm:$0xff] %v4572_v29 }
  0x30   : > { %4526 = vmatpush.bf16.msrb.mxu3 %v4340_v15  ;;  %921 = vst [vmem:[#allocation2 + $0x220] sm:$0xff] %v4572_v29  ;;  %1706 = vmatpush.bf16.msrb.mxu0 %v4356_v57  ;;  %v4365_v57 = vld [vmem:[%s6456_s4 + $0x138] sm:$0xff] }
  0x31   : > { %922 = vst [vmem:[#allocation2 + $0x228] sm:$0xff] %v4572_v29  ;;  %1938 = vmatpush.bf16.msrb.mxu1 %v4365_v57 }
  0x32   : > { %923 = vst [vmem:[#allocation2 + $0x230] sm:$0xff] %v4572_v29 }
  0x33   : > { %924 = vst [vmem:[#allocation2 + $0x238] sm:$0xff] %v4572_v29 }
  0x34   : > { %4527 = vmatpush.bf16.msrb.mxu3 %v4339_v17  ;;  %1707 = vmatpush.bf16.msrb.mxu0 %v4355_v61  ;;  %v4351_v17 = vld [vmem:[%s6456_s4 + $0xc8] sm:$0xff] }
  0x38   : > { %4528 = vmatpush.bf16.msrb.mxu3 %v4338_v19  ;;  %1708 = vmatpush.bf16.msrb.mxu0 %v4354_v0 }
  0x3b   : > { %673 = vmatmul.bf16.gmra.mxu0 %v4303_v9 }
  0x3c   : > { %4529 = vmatpush.bf16.msrb.mxu3 %v4337_v21  ;;  %1709 = vmatpush.bf16.msrb.mxu0 %v4353_v5  ;;  %v4313_v21 = vld [vmem:[%s4690_s20 + $0x58] sm:$0xff] }
  0x40   : > { %4530 = vmatpush.bf16.msrb.mxu3 %v4336_v23 }
  0x44   : > { %4531 = vmatpush.bf16.msrb.mxu3 %v4335_v25 }
  0x48   : > { %4532 = vmatpush.bf16.msrb.mxu3 %v4334_v27 }
  0x4b   : > { %678 = vmatmul.bf16.gmra.mxu0 %v4304_v10 }
  0x4c   : > { %4533 = vmatpush.bf16.msra.mxu3 %v4703_v14 }
  0x50   : > { %4534 = vmatpush.bf16.msra.mxu3 %v4712_v16 }
  0x54   : > { %4535 = vmatpush.bf16.msra.mxu3 %v4721_v18 }
  0x58   : > { %4536 = vmatpush.bf16.msra.mxu3 %v4734_v22 }
  0x5b   : > { %683 = vmatmul.bf16.gmra.mxu0 %v4305_v11  ;;  %v4352_v11 = vld [vmem:[%s6456_s4 + $0xd0] sm:$0xff] }
  0x5c   : > { %1710 = vmatpush.bf16.msrb.mxu0 %v4352_v11  ;;  %4537 = vmatpush.bf16.msra.mxu3 %v4743_v24 }
  0x60   : > { %1711 = vmatpush.bf16.msrb.mxu0 %v4351_v17  ;;  %4538 = vmatpush.bf16.msra.mxu3 %v4752_v26  ;;  %v4364_v17 = vld [vmem:[%s6456_s4 + $0x130] sm:$0xff] }
  0x61   : > { %1939 = vmatpush.bf16.msrb.mxu1 %v4364_v17 }
  0x64   : > { %4539 = vmatpush.bf16.msra.mxu3 %v4762_v30 }
  0x68   : > { %4540 = vmatpush.bf16.msra.mxu3 %v4768_v32 }
  0x6b   : > { %688 = vmatmul.bf16.gmra.mxu0 %v4306_v12 }
  0x7b   : > { %693 = vmatmul.bf16.gmra.mxu0 %v4307_v20  ;;  %v4350_v20 = vld [vmem:[%s6456_s4 + $0xc0] sm:$0xff] }
  0x7c   : > { %1712 = vmatpush.bf16.msrb.mxu0 %v4350_v20 }
  0x8b   : > { %698 = vmatmul.bf16.gmra.mxu0 %v4308_v28  ;;  %v4316_v28 = vld [vmem:[%s4690_s20 + $0x70] sm:$0xff] }
  0x8c   : > { %738 = vmatmul.bf16.gmra.mxu3 %v4316_v28 }
  0x9b   : > { %703 = vmatmul.bf16.gmra.mxu0 %v4309_v36 }
  0xa8   : > { %v669_v40 = vpop.f32.mrf.mxu0 }
  0xa9   : > { %v753_v41 = vmul.f32 %v4775_v37, %v669_v40 }
  0xaa   : > { %v1143_v11 = vpop.f32.mrf.mxu1 }
  0xab   : > { %v789_v42 = vadd.f32 %v4780_v38, %v753_v41  ;;  %708 = vmatmul.bf16.gmra.mxu0 %v4310_v39  ;;  %v4314_v39 = vld [vmem:[%s4690_s20 + $0x60] sm:$0xff] }
  0xad   : > { %v821_v43 = vmax.f32 %v789_v42, 0.0 }
  0xaf   : > { %926 = vst [vmem:[#allocation2 + $0x28] sm:$0xff] %v821_v43 }
  0xb0   : > { %v671_v44 = vpop.f32.mrf.mxu0 }
  0xb1   : > { %v754_v45 = vmul.f32 %v4775_v37, %v671_v44 }
  0xb3   : > { %v790_v46 = vadd.f32 %v4780_v38, %v754_v45 }
  0xb5   : > { %v4787_v47 = vmax.f32 %v790_v46, 0.0 }
  0xb6   : > { %v960_v55 = vld [vmem:[#allocation2 + $0x27] sm:$0xff] }
  0xb7   : > { %927 = vst [vmem:[#allocation2 + $0x30] sm:$0xff] %v4787_v47  ;;  %v1055_v49 = vpack.c.bf16 %v4787_v47, %v821_v43 }
  0xb8   : > { %v674_v50 = vpop.f32.mrf.mxu0 }
  0xb9   : > { %v755_v51 = vmul.f32 %v4775_v37, %v674_v50  ;;  %1147 = vmatmul.bf16.gmra.mxu1 %v1055_v49 }
  0xbb   : > { %v791_v53 = vadd.f32 %v4780_v38, %v755_v51  ;;  %713 = vmatmul.bf16.gmra.mxu0 %v4311_v48 }
  0xbd   : > { %v823_v54 = vmax.f32 %v791_v53, 0.0 }
  0xbe   : > { %v961_v56 = vld [vmem:[#allocation2 + $0x2f] sm:$0xff] }
  0xbf   : > { %928 = vst [vmem:[#allocation2 + $0x48] sm:$0xff] %v823_v54  ;;  %v4800_v58 = vpack.c.bf16 %v961_v56, %v960_v55 }
  0xc0   : > { %v676_v59 = vpop.f32.mrf.mxu0 }
  0xc1   : > { %v756_v60 = vmul.f32 %v4775_v37, %v676_v59  ;;  %1284 = vmatmul.bf16.gmra.mxu2 %v4800_v58 }
  0xc3   : > { %v792_v62 = vadd.f32 %v4780_v38, %v756_v60 }
  0xc5   : > { %v824_v63 = vmax.f32 %v792_v62, 0.0 }
  0xc6   : > { %v962_v9 = vld [vmem:[#allocation2 + $0x47] sm:$0xff] }
  0xc7   : > { %929 = vst [vmem:[#allocation2 + $0x50] sm:$0xff] %v824_v63  ;;  %v4812_v2 = vpack.c.bf16 %v824_v63, %v823_v54 }
  0xc8   : > { %v679_v3 = vpop.f32.mrf.mxu0 }
  0xc9   : > { %v757_v4 = vmul.f32 %v4775_v37, %v679_v3  ;;  %1152 = vmatmul.bf16.gmra.mxu1 %v4812_v2 }
  0xcb   : > { %v793_v6 = vadd.f32 %v4780_v38, %v757_v4  ;;  %718 = vmatmul.bf16.gmra.mxu0 %v4312_v1 }
  0xcd   : > { %v825_v8 = vmax.f32 %v793_v6, 0.0 }
  0xce   : > { %v963_v10 = vld [vmem:[#allocation2 + $0x4f] sm:$0xff] }
  0xcf   : > { %930 = vst [vmem:[#allocation2 + $0x68] sm:$0xff] %v825_v8  ;;  %v4825_v12 = vpack.c.bf16 %v963_v10, %v962_v9 }
  0xd0   : > { %v681_v13 = vpop.f32.mrf.mxu0 }
  0xd1   : > { %v758_v15 = vmul.f32 %v4775_v37, %v681_v13  ;;  %1289 = vmatmul.bf16.gmra.mxu2 %v4825_v12  ;;  %v1280_v13 = vpop.f32.mrf.mxu2 }
  0xd3   : > { %v794_v19 = vadd.f32 %v4780_v38, %v758_v15 }
  0xd5   : > { %v826_v14 = vmax.f32 %v794_v19, 0.0 }
  0xd6   : > { %v964_v18 = vld [vmem:[#allocation2 + $0x67] sm:$0xff] }
  0xd7   : > { %931 = vst [vmem:[#allocation2 + $0x70] sm:$0xff] %v826_v14  ;;  %v4839_v23 = vpack.c.bf16 %v826_v14, %v825_v8 }
  0xd8   : > { %v684_v25 = vpop.f32.mrf.mxu0 }
  0xd9   : > { %v759_v27 = vmul.f32 %v4775_v37, %v684_v25  ;;  %1157 = vmatmul.bf16.gmra.mxu1 %v4839_v23 }
  0xdb   : > { %v795_v16 = vadd.f32 %v4780_v38, %v759_v27  ;;  %723 = vmatmul.bf16.gmra.mxu0 %v4313_v21 }
  0xdd   : > { %v827_v29 = vmax.f32 %v795_v16, 0.0 }
  0xde   : > { %v965_v31 = vld [vmem:[#allocation2 + $0x6f] sm:$0xff] }
  0xdf   : > { %932 = vst [vmem:[#allocation2 + $0x88] sm:$0xff] %v827_v29  ;;  %v4847_v33 = vpack.c.bf16 %v965_v31, %v964_v18 }
  0xe0   : > { %v686_v34 = vpop.f32.mrf.mxu0 }
  0xe1   : > { %v760_v35 = vmul.f32 %v4775_v37, %v686_v34  ;;  %1294 = vmatmul.bf16.gmra.mxu2 %v4847_v33 }
  0xe3   : > { %v796_v22 = vadd.f32 %v4780_v38, %v760_v35 }
  0xe5   : > { %v828_v36 = vmax.f32 %v796_v22, 0.0 }
  0xe6   : > { %v966_v43 = vld [vmem:[#allocation2 + $0x87] sm:$0xff] }
  0xe7   : > { %933 = vst [vmem:[#allocation2 + $0x90] sm:$0xff] %v828_v36  ;;  %v4855_v40 = vpack.c.bf16 %v828_v36, %v827_v29  ;;  %v4914_v36 = vpop.f32.mrf.mxu1 }
  0xe8   : > { %v689_v24 = vpop.f32.mrf.mxu0  ;;  %6467 = vst [vmem:[#allocation3_spill] sm:$0xff] %v4914_v36 }
  0xe9   : > { %v761_v41 = vmul.f32 %v4775_v37, %v689_v24  ;;  %1162 = vmatmul.bf16.gmra.mxu1 %v4855_v40  ;;  %v4317_v24 = vld [vmem:[%s4690_s20 + $0x78] sm:$0xff] }
  0xea   : > { %743 = vmatmul.bf16.gmra.mxu3 %v4317_v24 }
  0xeb   : > { %v797_v42 = vadd.f32 %v4780_v38, %v761_v41  ;;  %728 = vmatmul.bf16.gmra.mxu0 %v4314_v39 }
  0xed   : > { %v829_v26 = vmax.f32 %v797_v42, 0.0 }
  0xee   : > { %v967_v44 = vld [vmem:[#allocation2 + $0x8f] sm:$0xff] }
  0xef   : > { %934 = vst [vmem:[#allocation2 + $0xa8] sm:$0xff] %v829_v26  ;;  %v4861_v45 = vpack.c.bf16 %v967_v44, %v966_v43  ;;  %v4363_v43 = vld [vmem:[%s6456_s4 + $0x128] sm:$0xff] }
  0xf0   : > { %v691_v30 = vpop.f32.mrf.mxu0  ;;  %1940 = vmatpush.bf16.msrb.mxu1 %v4363_v43 }
  0xf1   : > { %v762_v46 = vmul.f32 %v4775_v37, %v691_v30  ;;  %1299 = vmatmul.bf16.gmra.mxu2 %v4861_v45 }
  0xf3   : > { %v798_v48 = vadd.f32 %v4780_v38, %v762_v46 }
  0xf5   : > { %v830_v49 = vmax.f32 %v798_v48, 0.0 }
  0xf6   : > { %v968_v54 = vld [vmem:[#allocation2 + $0xa7] sm:$0xff] }
  0xf7   : > { %935 = vst [vmem:[#allocation2 + $0xb0] sm:$0xff] %v830_v49  ;;  %v4866_v50 = vpack.c.bf16 %v830_v49, %v829_v26 }
  0xf8   : > { %v694_v32 = vpop.f32.mrf.mxu0 }
  0xf9   : > { %v763_v51 = vmul.f32 %v4775_v37, %v694_v32  ;;  %1167 = vmatmul.bf16.gmra.mxu1 %v4866_v50 }
  0xfb   : > { %v799_v52 = vadd.f32 %v4780_v38, %v763_v51  ;;  %1713 = vmatmul.bf16.vlgmr.msrb.gmra.mxu0 %v4800_v58 }
  0xfd   : > { %v831_v53 = vmax.f32 %v799_v52, 0.0  ;;  %v4930_v52 = vpop.f32.mrf.mxu2 }
  0xfe   : > { %v969_v55 = vld [vmem:[#allocation2 + $0xaf] sm:$0xff]  ;;  %6468 = vst [vmem:[#allocation4_spill] sm:$0xff] %v4930_v52 }
  0xff   : > { %936 = vst [vmem:[#allocation2 + $0xc8] sm:$0xff] %v831_v53  ;;  %v4872_v56 = vpack.c.bf16 %v969_v55, %v968_v54 }
 0x100   : > { %v696_v59 = vpop.f32.mrf.mxu0 }
 0x101   : > { %v764_v60 = vmul.f32 %v4775_v37, %v696_v59  ;;  %1304 = vmatmul.bf16.gmra.mxu2 %v4872_v56 }
 0x103   : > { %v800_v61 = vadd.f32 %v4780_v38, %v764_v60 }
 0x105   : > { %v832_v62 = vmax.f32 %v800_v61, 0.0 }
 0x106   : > { %v970_v4 = vld [vmem:[#allocation2 + $0xc7] sm:$0xff] }
 0x107   : > { %937 = vst [vmem:[#allocation2 + $0xd0] sm:$0xff] %v832_v62  ;;  %v4880_v58 = vpack.c.bf16 %v832_v62, %v831_v53  ;;  %v4373_v62 = vld [vmem:[%s6456_s4 + $0x178] sm:$0xff] }
 0x108   : > { %v699_v63 = vpop.f32.mrf.mxu0  ;;  %2171 = vmatpush.bf16.msrb.mxu2 %v4373_v62 }
 0x109   : > { %v765_v0 = vmul.f32 %v4775_v37, %v699_v63  ;;  %1172 = vmatmul.bf16.gmra.mxu1 %v4880_v58 }
 0x10b   : > { %v801_v1 = vadd.f32 %v4780_v38, %v765_v0  ;;  %1718 = vmatmul.bf16.gmra.mxu0 %v4825_v12  ;;  %v4893_v12 = vadd.f32 %v1280_v13, %v1143_v11  ;;  %v4361_v11 = vld [vmem:[%s6456_s4 + $0x118] sm:$0xff] }
 0x10d   : > { %v833_v3 = vmax.f32 %v801_v1, 0.0  ;;  %v4372_v1 = vld [vmem:[%s6456_s4 + $0x170] sm:$0xff] }
 0x10e   : > { %v971_v5 = vld [vmem:[#allocation2 + $0xcf] sm:$0xff]  ;;  %2172 = vmatpush.bf16.msrb.mxu2 %v4372_v1 }
 0x10f   : > { %938 = vst [vmem:[#allocation2 + $0xe8] sm:$0xff] %v833_v3  ;;  %v4886_v6 = vpack.c.bf16 %v971_v5, %v970_v4  ;;  %v2535_v36 = vld [vmem:[#allocation2 + $0xd0] sm:$0xff] }
 0x110   : > { %v701_v7 = vpop.f32.mrf.mxu0 }
 0x111   : > { %v766_v8 = vmul.f32 %v4775_v37, %v701_v7  ;;  %1309 = vmatmul.bf16.gmra.mxu2 %v4886_v6 }
 0x113   : > { %v802_v9 = vadd.f32 %v4780_v38, %v766_v8 }
 0x115   : > { %v834_v10 = vmax.f32 %v802_v9, 0.0 }
 0x116   : > { %v972_v25 = vld [vmem:[#allocation2 + $0xe7] sm:$0xff] }
 0x117   : > { %939 = vst [vmem:[#allocation2 + $0xf0] sm:$0xff] %v834_v10  ;;  %v4891_v15 = vpack.c.bf16 %v834_v10, %v833_v3  ;;  %v4362_v3 = vld [vmem:[%s6456_s4 + $0x120] sm:$0xff]  ;;  %v4371_v10 = vld [vmem:[%s6456_s4 + $0x168] sm:$0xff] }
 0x118   : > { %v704_v19 = vpop.f32.mrf.mxu0  ;;  %1941 = vmatpush.bf16.msrb.mxu1 %v4362_v3  ;;  %2173 = vmatpush.bf16.msrb.mxu2 %v4371_v10 }
 0x119   : > { %v767_v14 = vmul.f32 %v4775_v37, %v704_v19  ;;  %1177 = vmatmul.bf16.gmra.mxu1 %v4891_v15 }
 0x11b   : > { %v803_v20 = vadd.f32 %v4780_v38, %v767_v14  ;;  %1723 = vmatmul.bf16.gmra.mxu0 %v4847_v33  ;;  %v4370_v14 = vld [vmem:[%s6456_s4 + $0x160] sm:$0xff] }
 0x11c   : > { %1942 = vmatpush.bf16.msrb.mxu1 %v4361_v11  ;;  %2174 = vmatpush.bf16.msrb.mxu2 %v4370_v14 }
 0x11d   : > { %v835_v21 = vmax.f32 %v803_v20, 0.0  ;;  %v4360_v20 = vld [vmem:[%s6456_s4 + $0x110] sm:$0xff] }
 0x11e   : > { %v973_v27 = vld [vmem:[#allocation2 + $0xef] sm:$0xff] }
 0x11f   : > { %940 = vst [vmem:[#allocation2 + $0x108] sm:$0xff] %v835_v21  ;;  %v4902_v16 = vpack.c.bf16 %v973_v27, %v972_v25 }
 0x120   : > { %v706_v28 = vpop.f32.mrf.mxu0  ;;  %1943 = vmatpush.bf16.msrb.mxu1 %v4360_v20 }
 0x121   : > { %v768_v29 = vmul.f32 %v4775_v37, %v706_v28  ;;  %1314 = vmatmul.bf16.gmra.mxu2 %v4902_v16 }
 0x123   : > { %v804_v18 = vadd.f32 %v4780_v38, %v768_v29 }
 0x125   : > { %v4907_v31 = vmax.f32 %v804_v18, 0.0 }
 0x126   : > { %v974_v41 = vld [vmem:[#allocation2 + $0x107] sm:$0xff] }
 0x127   : > { %941 = vst [vmem:[#allocation2 + $0x110] sm:$0xff] %v4907_v31  ;;  %v1062_v33 = vpack.c.bf16 %v4907_v31, %v835_v21 }
 0x128   : > { %v709_v34 = vpop.f32.mrf.mxu0 }
 0x129   : > { %v769_v35 = vmul.f32 %v4775_v37, %v709_v34  ;;  %1182 = vmatmul.bf16.gmra.mxu1 %v1062_v33  ;;  %v734_v33 = vpop.f32.mrf.mxu3  ;;  %v4369_v34 = vld [vmem:[%s6456_s4 + $0x158] sm:$0xff] }
 0x12a   : > { %2175 = vmatpush.bf16.msrb.mxu2 %v4369_v34 }
 0x12b   : > { %v805_v22 = vadd.f32 %v4780_v38, %v769_v35  ;;  %1728 = vmatmul.bf16.gmra.mxu0 %v4861_v45  ;;  %v4359_v35 = vld [vmem:[%s6456_s4 + $0x108] sm:$0xff] }
 0x12c   : > { %1944 = vmatpush.bf16.msrb.mxu1 %v4359_v35 }
 0x12d   : > { %v837_v39 = vmax.f32 %v805_v22, 0.0 }
 0x12e   : > { %v975_v42 = vld [vmem:[#allocation2 + $0x10f] sm:$0xff] }
 0x12f   : > { %942 = vst [vmem:[#allocation2 + $0x128] sm:$0xff] %v837_v39  ;;  %v4917_v26 = vpack.c.bf16 %v975_v42, %v974_v41  ;;  %v4368_v41 = vld [vmem:[%s6456_s4 + $0x150] sm:$0xff]  ;;  %v4358_v42 = vld [vmem:[%s6456_s4 + $0x100] sm:$0xff] }
 0x130   : > { %v711_v44 = vpop.f32.mrf.mxu0  ;;  %2176 = vmatpush.bf16.msrb.mxu2 %v4368_v41  ;;  %1945 = vmatpush.bf16.msrb.mxu1 %v4358_v42 }
 0x131   : > { %v770_v30 = vmul.f32 %v4775_v37, %v711_v44  ;;  %1319 = vmatmul.bf16.gmra.mxu2 %v4917_v26 }
 0x133   : > { %v806_v45 = vadd.f32 %v4780_v38, %v770_v30 }
 0x135   : > { %v4925_v46 = vmax.f32 %v806_v45, 0.0 }
 0x136   : > { %v1148_v48 = vpop.f32.mrf.mxu1  ;;  %v976_v55 = vld [vmem:[#allocation2 + $0x127] sm:$0xff] }
 0x137   : > { %943 = vst [vmem:[#allocation2 + $0x130] sm:$0xff] %v4925_v46  ;;  %v1063_v49 = vpack.c.bf16 %v4925_v46, %v837_v39 }
 0x138   : > { %v714_v32 = vpop.f32.mrf.mxu0 }
 0x139   : > { %v771_v51 = vmul.f32 %v4775_v37, %v714_v32  ;;  %1187 = vmatmul.bf16.gmra.mxu1 %v1063_v49  ;;  %v736_v32 = vpop.f32.mrf.mxu3 }
 0x13b   : > { %v807_v53 = vadd.f32 %v4780_v38, %v771_v51  ;;  %1733 = vmatmul.bf16.gmra.mxu0 %v4872_v56  ;;  %v4367_v51 = vld [vmem:[%s6456_s4 + $0x148] sm:$0xff] }
 0x13c   : > { %2177 = vmatpush.bf16.msrb.mxu2 %v4367_v51 }
 0x13d   : > { %v839_v54 = vmax.f32 %v807_v53, 0.0 }
 0x13e   : > { %v977_v57 = vld [vmem:[#allocation2 + $0x12f] sm:$0xff]  ;;  %v1150_v59 = vpop.f32.mrf.mxu1 }
 0x13f   : > { %944 = vst [vmem:[#allocation2 + $0x148] sm:$0xff] %v839_v54  ;;  %v4934_v60 = vpack.c.bf16 %v977_v57, %v976_v55  ;;  %v780_v55 = vmul.f32 %v4775_v37, %v736_v32 }
 0x140   : > { %v716_v61 = vpop.f32.mrf.mxu0 }
 0x141   : > { %v772_v63 = vmul.f32 %v4775_v37, %v716_v61  ;;  %1324 = vmatmul.bf16.gmra.mxu2 %v4934_v60  ;;  %v5007_v61 = vadd.f32 %v4780_v38, %v780_v55  ;;  %v739_v10 = vpop.f32.mrf.mxu3 }
 0x143   : > { %v808_v0 = vadd.f32 %v4780_v38, %v772_v63  ;;  %v4366_v63 = vld [vmem:[%s6456_s4 + $0x140] sm:$0xff]  ;;  %v848_v1 = vmax.f32 %v5007_v61, 0.0 }
 0x144   : > { %v1285_v56 = vpop.f32.mrf.mxu2  ;;  %2178 = vmatpush.bf16.msrb.mxu2 %v4366_v63 }
 0x145   : > { %v4948_v4 = vmax.f32 %v808_v0, 0.0  ;;  %v4950_v5 = vadd.f32 %v1285_v56, %v1148_v48  ;;  %v779_v48 = vmul.f32 %v4775_v37, %v734_v33  ;;  %953 = vst [vmem:[#allocation2 + $0x1d0] sm:$0xff] %v848_v1 }
 0x146   : > { %v1153_v7 = vpop.f32.mrf.mxu1  ;;  %v978_v27 = vld [vmem:[#allocation2 + $0x147] sm:$0xff] }
 0x147   : > { %945 = vst [vmem:[#allocation2 + $0x150] sm:$0xff] %v4948_v4  ;;  %v1064_v8 = vpack.c.bf16 %v4948_v4, %v839_v54  ;;  %v5000_v54 = vadd.f32 %v4780_v38, %v779_v48 }
 0x148   : > { %v719_v9 = vpop.f32.mrf.mxu0 }
 0x149   : > { %v773_v13 = vmul.f32 %v4775_v37, %v719_v9  ;;  %1192 = vmatmul.bf16.gmra.mxu1 %v1064_v8  ;;  %v741_v33 = vpop.f32.mrf.mxu3 }
 0x14a   : > { %v782_v35 = vmul.f32 %v4775_v37, %v741_v33 }
 0x14b   : > { %v809_v17 = vadd.f32 %v4780_v38, %v773_v13  ;;  %1738 = vmatmul.bf16.gmra.mxu0 %v4886_v6  ;;  %v781_v13 = vmul.f32 %v4775_v37, %v739_v10  ;;  %v2059_v10 = vld [vmem:[#allocation2 + $0x29] sm:$0xff] }
 0x14c   : > { %v1287_v19 = vpop.f32.mrf.mxu2 }
 0x14d   : > { %v841_v21 = vmax.f32 %v809_v17, 0.0  ;;  %v4969_v25 = vadd.f32 %v1287_v19, %v1150_v59  ;;  %v847_v59 = vmax.f32 %v5000_v54, 0.0  ;;  %v5026_v19 = vadd.f32 %v4780_v38, %v781_v13 }
 0x14e   : > { %v979_v28 = vld [vmem:[#allocation2 + $0x14f] sm:$0xff]  ;;  %v1155_v29 = vpop.f32.mrf.mxu1 }
 0x14f   : > { %946 = vst [vmem:[#allocation2 + $0x168] sm:$0xff] %v841_v21  ;;  %v4971_v18 = vpack.c.bf16 %v979_v28, %v978_v27  ;;  %v849_v27 = vmax.f32 %v5026_v19, 0.0  ;;  %v4347_v19 = vld [vmem:[%s6456_s4 + $0xa8] sm:$0xff] }
 0x150   : > { %v721_v6 = vpop.f32.mrf.mxu0  ;;  %952 = vst [vmem:[#allocation2 + $0x1c8] sm:$0xff] %v847_v59 }
 0x151   : > { %v774_v22 = vmul.f32 %v4775_v37, %v721_v6  ;;  %1329 = vmatmul.bf16.gmra.mxu2 %v4971_v18  ;;  %954 = vst [vmem:[#allocation2 + $0x1e8] sm:$0xff] %v849_v27 }
 0x153   : > { %v810_v39 = vadd.f32 %v4780_v38, %v774_v22 }
 0x154   : > { %v1290_v24 = vpop.f32.mrf.mxu2 }
 0x155   : > { %v4988_v43 = vmax.f32 %v810_v39, 0.0  ;;  %v4990_v44 = vadd.f32 %v1290_v24, %v1153_v7  ;;  %v818_v39 = vadd.f32 %v4780_v38, %v782_v35  ;;  %v2061_v35 = vld [vmem:[#allocation2 + $0x49] sm:$0xff] }
 0x156   : > { %v1158_v30 = vpop.f32.mrf.mxu1  ;;  %v980_v3 = vld [vmem:[#allocation2 + $0x167] sm:$0xff] }
 0x157   : > { %947 = vst [vmem:[#allocation2 + $0x170] sm:$0xff] %v4988_v43  ;;  %v1065_v45 = vpack.c.bf16 %v4988_v43, %v841_v21 }
 0x158   : > { %v724_v49 = vpop.f32.mrf.mxu0 }
 0x159   : > { %v775_v53 = vmul.f32 %v4775_v37, %v724_v49  ;;  %1197 = vmatmul.bf16.gmra.mxu1 %v1065_v45 }
 0x15b   : > { %v811_v57 = vadd.f32 %v4780_v38, %v775_v53  ;;  %1743 = vmatmul.bf16.gmra.mxu0 %v4902_v16 }
 0x15c   : > { %v1292_v62 = vpop.f32.mrf.mxu2 }
 0x15d   : > { %v843_v0 = vmax.f32 %v811_v57, 0.0  ;;  %v5012_v56 = vadd.f32 %v1292_v62, %v1155_v29  ;;  %v1826_v57 = vld [vmem:[#allocation2 + $0x28] sm:$0xff] }
 0x15e   : > { %v981_v16 = vld [vmem:[#allocation2 + $0x16f] sm:$0xff]  ;;  %v1160_v7 = vpop.f32.mrf.mxu1 }
 0x15f   : > { %948 = vst [vmem:[#allocation2 + $0x188] sm:$0xff] %v843_v0  ;;  %v5017_v8 = vpack.c.bf16 %v981_v16, %v980_v3  ;;  %v1858_v16 = vpack.c.bf16 %v4787_v47, %v1826_v57 }
 0x160   : > { %v726_v9 = vpop.f32.mrf.mxu0 }
 0x161   : > { %v776_v11 = vmul.f32 %v4775_v37, %v726_v9  ;;  %1334 = vmatmul.bf16.gmra.mxu2 %v5017_v8 }
 0x163   : > { %v812_v17 = vadd.f32 %v4780_v38, %v776_v11  ;;  %v2060_v11 = vld [vmem:[#allocation2 + $0x31] sm:$0xff] }
 0x164   : > { %v1295_v14 = vpop.f32.mrf.mxu2 }
 0x165   : > { %v5028_v20 = vmax.f32 %v812_v17, 0.0  ;;  %v5030_v21 = vadd.f32 %v1295_v14, %v1158_v30  ;;  %v850_v30 = vmax.f32 %v818_v39, 0.0  ;;  %v5060_v14 = vpack.c.bf16 %v2060_v11, %v2059_v10  ;;  %v4345_v11 = vld [vmem:[%s6456_s4 + $0x98] sm:$0xff] }
 0x166   : > { %v1163_v28 = vpop.f32.mrf.mxu1  ;;  %v982_v45 = vld [vmem:[#allocation2 + $0x187] sm:$0xff] }
 0x167   : > { %949 = vst [vmem:[#allocation2 + $0x190] sm:$0xff] %v5028_v20  ;;  %v1066_v29 = vpack.c.bf16 %v5028_v20, %v843_v0 }
 0x168   : > { %v729_v6 = vpop.f32.mrf.mxu0  ;;  %955 = vst [vmem:[#allocation2 + $0x1f0] sm:$0xff] %v850_v30 }
 0x169   : > { %v777_v34 = vmul.f32 %v4775_v37, %v729_v6  ;;  %1202 = vmatmul.bf16.gmra.mxu1 %v1066_v29 }
 0x16b   : > { %v813_v22 = vadd.f32 %v4780_v38, %v777_v34  ;;  %1748 = vmatmul.bf16.gmra.mxu0 %v4917_v26 }
 0x16c   : > { %v1297_v24 = vpop.f32.mrf.mxu2 }
 0x16d   : > { %v845_v41 = vmax.f32 %v813_v22, 0.0  ;;  %v5042_v42 = vadd.f32 %v1297_v24, %v1160_v7  ;;  %v2062_v22 = vld [vmem:[#allocation2 + $0x51] sm:$0xff] }
 0x16e   : > { %v983_v48 = vld [vmem:[#allocation2 + $0x18f] sm:$0xff]  ;;  %v1165_v49 = vpop.f32.mrf.mxu1 }
 0x16f   : > { %950 = vst [vmem:[#allocation2 + $0x1a8] sm:$0xff] %v845_v41  ;;  %v5044_v32 = vpack.c.bf16 %v983_v48, %v982_v45  ;;  %v5095_v45 = vpack.c.bf16 %v850_v30, %v849_v27  ;;  %v2082_v52 = vld [vmem:[#allocation2 + $0x191] sm:$0xff] }
 0x170   : > { %v731_v51 = vpop.f32.mrf.mxu0 }
 0x171   : > { %v778_v53 = vmul.f32 %v4775_v37, %v731_v51  ;;  %1339 = vmatmul.bf16.gmra.mxu2 %v5044_v32  ;;  %v2063_v51 = vld [vmem:[#allocation2 + $0x69] sm:$0xff] }
 0x173   : > { %v814_v26 = vadd.f32 %v4780_v38, %v778_v53  ;;  %v2064_v53 = vld [vmem:[#allocation2 + $0x71] sm:$0xff] }
 0x174   : > { %v1300_v55 = vpop.f32.mrf.mxu2  ;;  %v5107_v30 = vpack.c.bf16 %v2064_v53, %v2063_v51 }
 0x175   : > { %v846_v62 = vmax.f32 %v814_v26, 0.0  ;;  %v5049_v63 = vadd.f32 %v1300_v55, %v1163_v28 }
 0x176   : > { %v1168_v0 = vpop.f32.mrf.mxu1 }
 0x177   : > { %951 = vst [vmem:[#allocation2 + $0x1b0] sm:$0xff] %v846_v62  ;;  %v5051_v3 = vpack.c.bf16 %v846_v62, %v845_v41  ;;  %v5080_v41 = vpack.c.bf16 %v2062_v22, %v2061_v35  ;;  %v4344_v35 = vld [vmem:[%s6456_s4 + $0x90] sm:$0xff] }
 0x178   : > { %v5054_v7 = vpop.f32.mrf.mxu0 }
 0x179   : > { %6469 = vst [vmem:[#allocation5_spill] sm:$0xff] %v5054_v7  ;;  %1207 = vmatmul.bf16.vlgmr.msrb.gmra.mxu3 %v5051_v3  ;;  %1946 = vmatmul.bf16.vlgmr.msrb.gmra.mxu1 %v1858_v16  ;;  %v984_v16 = vld [vmem:[#allocation2 + $0x1a7] sm:$0xff] }
 0x17b   : > { %1753 = vmatmul.bf16.gmra.mxu0 %v4934_v60  ;;  %v5071_v60 = vpack.c.bf16 %v848_v1, %v847_v59  ;;  %v4349_v59 = vld [vmem:[%s6456_s4 + $0xb8] sm:$0xff] }
 0x17c   : > { %v1302_v9 = vpop.f32.mrf.mxu2  ;;  %1472 = vmatpush.bf16.msrb.mxu3 %v4349_v59 }
 0x17d   : > { %v5058_v13 = vadd.f32 %v1302_v9, %v1165_v49 }
 0x17e   : > { %v1170_v17 = vpop.f32.mrf.mxu1  ;;  %v985_v57 = vld [vmem:[#allocation2 + $0x1af] sm:$0xff] }
 0x17f   : > { %v1003_v9 = vpack.c.bf16 %v985_v57, %v984_v16 }
 0x180   : > { %v5062_v28 = vpop.f32.mrf.mxu0 }
 0x181   : > { %6470 = vst [vmem:[#allocation6_spill] sm:$0xff] %v5062_v28  ;;  %2179 = vmatmul.bf16.vlgmr.msrb.gmra.mxu2 %v5060_v14 }
 0x184   : > { %v1305_v47 = vpop.f32.mrf.mxu2 }
 0x185   : > { %v5065_v29 = vadd.f32 %v1305_v47, %v1168_v0  ;;  %v2065_v47 = vld [vmem:[#allocation2 + $0x89] sm:$0xff] }
 0x186   : > { %v1173_v6 = vpop.f32.mrf.mxu1 }
 0x188   : > { %v5073_v33 = vpop.f32.mrf.mxu0 }
 0x189   : > { %6471 = vst [vmem:[#allocation7_spill] sm:$0xff] %v5073_v33  ;;  %1212 = vmatmul.bf16.gmra.mxu3 %v5071_v60  ;;  %1951 = vmatmul.bf16.gmra.mxu1 %v4812_v2  ;;  %v2530_v33 = vld [vmem:[#allocation2 + $0x88] sm:$0xff] }
 0x18b   : > { %1758 = vmatmul.bf16.gmra.mxu0 %v4971_v18  ;;  %v4348_v18 = vld [vmem:[%s6456_s4 + $0xb0] sm:$0xff] }
 0x18c   : > { %v1307_v34 = vpop.f32.mrf.mxu2  ;;  %1473 = vmatpush.bf16.msrb.mxu3 %v4348_v18 }
 0x18d   : > { %v5078_v39 = vadd.f32 %v1307_v34, %v1170_v17 }
 0x18e   : > { %v1175_v24 = vpop.f32.mrf.mxu1 }
 0x190   : > { %v5082_v54 = vpop.f32.mrf.mxu0  ;;  %1474 = vmatpush.bf16.msrb.mxu3 %v4347_v19  ;;  %v4342_v19 = vld [vmem:[%s6456_s4 + $0x80] sm:$0xff] }
 0x191   : > { %6472 = vst [vmem:[#allocation8_spill] sm:$0xff] %v5082_v54  ;;  %2184 = vmatmul.bf16.gmra.mxu2 %v5080_v41 }
 0x194   : > { %v1310_v2 = vpop.f32.mrf.mxu2 }
 0x195   : > { %v5088_v61 = vadd.f32 %v1310_v2, %v1173_v6  ;;  %v2066_v6 = vld [vmem:[#allocation2 + $0x91] sm:$0xff] }
 0x196   : > { %v1178_v1 = vpop.f32.mrf.mxu1 }
 0x198   : > { %v5097_v48 = vpop.f32.mrf.mxu0 }
 0x199   : > { %6473 = vst [vmem:[#allocation9_spill] sm:$0xff] %v5097_v48  ;;  %1217 = vmatmul.bf16.gmra.mxu3 %v5095_v45  ;;  %1956 = vmatmul.bf16.gmra.mxu1 %v4839_v23  ;;  %v4346_v23 = vld [vmem:[%s6456_s4 + $0xa0] sm:$0xff] }
 0x19a   : > { %1475 = vmatpush.bf16.msrb.mxu3 %v4346_v23 }
 0x19b   : > { %1763 = vmatmul.bf16.gmra.mxu0 %v5017_v8 }
 0x19c   : > { %v1312_v49 = vpop.f32.mrf.mxu2 }
 0x19d   : > { %v5102_v26 = vadd.f32 %v1312_v49, %v1175_v24  ;;  %v5129_v24 = vpack.c.bf16 %v2066_v6, %v2065_v47  ;;  %v987_v49 = vld [vmem:[#allocation2 + $0x1cf] sm:$0xff] }
 0x19e   : > { %v1180_v27 = vpop.f32.mrf.mxu1  ;;  %1476 = vmatpush.bf16.msrb.mxu3 %v4345_v11  ;;  %v4389_v11 = vld [vmem:[%s6456_s4 + $0x1f8] sm:$0xff]  ;;  %v2067_v47 = vld [vmem:[#allocation2 + $0xa9] sm:$0xff] }
 0x19f   : > { %v2068_v6 = vld [vmem:[#allocation2 + $0xb1] sm:$0xff]  ;;  %2638 = vmatpush.bf16.msra.mxu0 %v4389_v11 }
 0x1a0   : > { %v5109_v55 = vpop.f32.mrf.mxu0  ;;  %v4397_v11 = vld [vmem:[%s6456_s4 + $0x238] sm:$0xff] }
 0x1a1   : > { %6474 = vst [vmem:[#allocation10_spill] sm:$0xff] %v5109_v55  ;;  %2189 = vmatmul.bf16.gmra.mxu2 %v5107_v30  ;;  %2871 = vmatpush.bf16.msra.mxu1 %v4397_v11  ;;  %v2078_v55 = vld [vmem:[#allocation2 + $0x151] sm:$0xff] }
 0x1a2   : > { %1477 = vmatpush.bf16.msrb.mxu3 %v4344_v35 }
 0x1a4   : > { %v1315_v8 = vpop.f32.mrf.mxu2 }
 0x1a5   : > { %v5115_v62 = vadd.f32 %v1315_v8, %v1178_v1  ;;  %v986_v1 = vld [vmem:[#allocation2 + $0x1c7] sm:$0xff] }
 0x1a6   : > { %v1183_v0 = vpop.f32.mrf.mxu1  ;;  %v1004_v23 = vpack.c.bf16 %v987_v49, %v986_v1  ;;  %v988_v1 = vld [vmem:[#allocation2 + $0x1e7] sm:$0xff]  ;;  %v989_v49 = vld [vmem:[#allocation2 + $0x1ef] sm:$0xff] }
 0x1a8   : > { %v5117_v10 = vpop.f32.mrf.mxu0 }
 0x1a9   : > { %6475 = vst [vmem:[#allocation11_spill] sm:$0xff] %v5117_v10  ;;  %1344 = vmatmul.bf16.vlgmr.msra.gmra.mxu3 %v1003_v9  ;;  %1961 = vmatmul.bf16.gmra.mxu1 %v4855_v40  ;;  %v4343_v40 = vld [vmem:[%s6456_s4 + $0x88] sm:$0xff] }
 0x1aa   : > { %1478 = vmatpush.bf16.msrb.mxu3 %v4343_v40 }
 0x1ab   : > { %1768 = vmatmul.bf16.gmra.mxu0 %v5044_v32  ;;  %v744_v32 = vpop.f32.mrf.mxu3 }
 0x1ac   : > { %v1317_v17 = vpop.f32.mrf.mxu2  ;;  %v783_v2 = vmul.f32 %v4775_v37, %v744_v32 }
 0x1ad   : > { %v5124_v34 = vadd.f32 %v1317_v17, %v1180_v27 }
 0x1ae   : > { %v1185_v22 = vpop.f32.mrf.mxu1  ;;  %v819_v53 = vadd.f32 %v4780_v38, %v783_v2  ;;  %1479 = vmatpush.bf16.msrb.mxu3 %v4342_v19  ;;  %v5154_v2 = vpack.c.bf16 %v2068_v6, %v2067_v47  ;;  %v2069_v47 = vld [vmem:[#allocation2 + $0xc9] sm:$0xff]  ;;  %v2070_v6 = vld [vmem:[#allocation2 + $0xd1] sm:$0xff] }
 0x1b0   : > { %v5131_v59 = vpop.f32.mrf.mxu0  ;;  %v851_v8 = vmax.f32 %v819_v53, 0.0 }
 0x1b1   : > { %6476 = vst [vmem:[#allocation12_spill] sm:$0xff] %v5131_v59  ;;  %2194 = vmatmul.bf16.gmra.mxu2 %v5129_v24 }
 0x1b2   : > { %956 = vst [vmem:[#allocation2 + $0x208] sm:$0xff] %v851_v8 }
 0x1b3   : > { %v746_v16 = vpop.f32.mrf.mxu3 }
 0x1b4   : > { %v1320_v18 = vpop.f32.mrf.mxu2 }
 0x1b5   : > { %v5138_v51 = vadd.f32 %v1320_v18, %v1183_v0  ;;  %v784_v0 = vmul.f32 %v4775_v37, %v746_v16  ;;  %v4388_v37 = vld [vmem:[%s6456_s4 + $0x1f0] sm:$0xff]  ;;  %v1005_v16 = vpack.c.bf16 %v989_v49, %v988_v1  ;;  %v4383_v1 = vld [vmem:[%s6456_s4 + $0x1c8] sm:$0xff] }
 0x1b6   : > { %v1188_v27 = vpop.f32.mrf.mxu1  ;;  %2639 = vmatpush.bf16.msra.mxu0 %v4388_v37 }
 0x1b7   : > { %v820_v40 = vadd.f32 %v4780_v38, %v784_v0  ;;  %v4386_v0 = vld [vmem:[%s6456_s4 + $0x1e0] sm:$0xff] }
 0x1b8   : > { %v5144_v57 = vpop.f32.mrf.mxu0 }
 0x1b9   : > { %6477 = vst [vmem:[#allocation13_spill] sm:$0xff] %v5144_v57  ;;  %1349 = vmatmul.bf16.gmra.mxu3 %v1004_v23  ;;  %1966 = vmatmul.bf16.gmra.mxu1 %v4866_v50  ;;  %v5156_v50 = vmax.f32 %v820_v40, 0.0  ;;  %v2076_v57 = vld [vmem:[#allocation2 + $0x131] sm:$0xff] }
 0x1bb   : > { %1773 = vmatmul.bf16.gmra.mxu0 %v1003_v9  ;;  %957 = vst [vmem:[#allocation2 + $0x210] sm:$0xff] %v5156_v50  ;;  %v4381_v9 = vld [vmem:[%s6456_s4 + $0x1b8] sm:$0xff]  ;;  %v5197_v49 = vpack.c.bf16 %v5156_v50, %v851_v8 }
 0x1bc   : > { %v1322_v17 = vpop.f32.mrf.mxu2  ;;  %2405 = vmatpush.bf16.msra.mxu3 %v4381_v9  ;;  %v2072_v8 = vld [vmem:[#allocation2 + $0xf1] sm:$0xff] }
 0x1bd   : > { %v5151_v35 = vadd.f32 %v1322_v17, %v1185_v22  ;;  %v4387_v22 = vld [vmem:[%s6456_s4 + $0x1e8] sm:$0xff] }
 0x1be   : > { %v1190_v32 = vpop.f32.mrf.mxu1  ;;  %2640 = vmatpush.bf16.msra.mxu0 %v4387_v22  ;;  %v1360_v22 = vld [vmem:[#allocation2 + $0x9] sm:$0xff] }
 0x1c0   : > { %v5166_v38 = vpop.f32.mrf.mxu0 }
 0x1c1   : > { %2199 = vmatmul.bf16.gmra.mxu2 %v5154_v2  ;;  %6478 = vst [vmem:[#allocation14_spill] sm:$0xff] %v5166_v38  ;;  %v2074_v38 = vld [vmem:[#allocation2 + $0x111] sm:$0xff] }
 0x1c2   : > { %2641 = vmatpush.bf16.msra.mxu0 %v4386_v0 }
 0x1c4   : > { %v1325_v18 = vpop.f32.mrf.mxu2 }
 0x1c5   : > { %v5171_v53 = vadd.f32 %v1325_v18, %v1188_v27  ;;  %v4385_v27 = vld [vmem:[%s6456_s4 + $0x1d8] sm:$0xff] }
 0x1c6   : > { %v1193_v19 = vpop.f32.mrf.mxu1  ;;  %2642 = vmatpush.bf16.msra.mxu0 %v4385_v27  ;;  %v1361_v18 = vld [vmem:[#allocation2 + $0x11] sm:$0xff] }
 0x1c7   : > { %v1392_v11 = vpack.c.bf16 %v1361_v18, %v1360_v22 }
 0x1c8   : > { %v5183_v40 = vpop.f32.mrf.mxu0 }
 0x1c9   : > { %1354 = vmatmul.bf16.gmra.mxu3 %v1005_v16  ;;  %1971 = vmatmul.bf16.gmra.mxu1 %v4880_v58  ;;  %6479 = vst [vmem:[#allocation15_spill] sm:$0xff] %v5183_v40  ;;  %v5187_v58 = vpack.c.bf16 %v2070_v6, %v2069_v47  ;;  %v4382_v47 = vld [vmem:[%s6456_s4 + $0x1c0] sm:$0xff] }
 0x1cb   : > { %1778 = vmatmul.bf16.gmra.mxu0 %v1004_v23  ;;  %v4384_v23 = vld [vmem:[%s6456_s4 + $0x1d0] sm:$0xff] }
 0x1cc   : > { %v1327_v17 = vpop.f32.mrf.mxu2  ;;  %2643 = vmatpush.bf16.msra.mxu0 %v4384_v23  ;;  %v2071_v23 = vld [vmem:[#allocation2 + $0xe9] sm:$0xff] }
 0x1cd   : > { %v5185_v37 = vadd.f32 %v1327_v17, %v1190_v32  ;;  %v5209_v22 = vpack.c.bf16 %v2072_v8, %v2071_v23 }
 0x1ce   : > { %v1195_v9 = vpop.f32.mrf.mxu1 }
 0x1d0   : > { %2644 = vmatpush.bf16.msra.mxu0 %v4383_v1  ;;  %v5201_v17 = vpop.f32.mrf.mxu0  ;;  %v4380_v1 = vld [vmem:[%s6456_s4 + $0x1b0] sm:$0xff] }
 0x1d1   : > { %2204 = vmatmul.bf16.gmra.mxu2 %v5187_v58  ;;  %6480 = vst [vmem:[#allocation16_spill] sm:$0xff] %v5201_v17  ;;  %2406 = vmatpush.bf16.msra.mxu3 %v4380_v1  ;;  %v4396_v1 = vld [vmem:[%s6456_s4 + $0x230] sm:$0xff] }
 0x1d2   : > { %v2073_v17 = vld [vmem:[#allocation2 + $0x109] sm:$0xff]  ;;  %2872 = vmatpush.bf16.msra.mxu1 %v4396_v1 }
 0x1d4   : > { %v1330_v32 = vpop.f32.mrf.mxu2  ;;  %2645 = vmatpush.bf16.msra.mxu0 %v4382_v47 }
 0x1d5   : > { %v5199_v0 = vadd.f32 %v1330_v32, %v1193_v19  ;;  %v1623_v32 = vld [vmem:[#allocation2 + $0x207] sm:$0xff] }
 0x1d6   : > { %v1198_v27 = vpop.f32.mrf.mxu1 }
 0x1d8   : > { %v5211_v18 = vpop.f32.mrf.mxu0 }
 0x1d9   : > { %1480 = vmatmul.bf16.vlgmr.msrb.gmra.mxu3 %v1392_v11  ;;  %1976 = vmatmul.bf16.gmra.mxu1 %v4891_v15  ;;  %6481 = vst [vmem:[#allocation17_spill] sm:$0xff] %v5211_v18  ;;  %v5217_v11 = vld [vmem:[#allocation2 + $0x108] sm:$0xff] }
 0x1da   : > { %v1865_v23 = vpack.c.bf16 %v4907_v31, %v5217_v11 }
 0x1db   : > { %1783 = vmatmul.bf16.gmra.mxu0 %v1005_v16  ;;  %v1624_v16 = vld [vmem:[#allocation2 + $0x20f] sm:$0xff] }
 0x1dc   : > { %v1332_v6 = vpop.f32.mrf.mxu2 }
 0x1dd   : > { %v5207_v40 = vadd.f32 %v1332_v6, %v1195_v9  ;;  %v1640_v6 = vpack.c.bf16 %v1624_v16, %v1623_v32  ;;  %v5231_v32 = vpack.c.bf16 %v2074_v38, %v2073_v17  ;;  %v2075_v17 = vld [vmem:[#allocation2 + $0x129] sm:$0xff] }
 0x1de   : > { %v1200_v19 = vpop.f32.mrf.mxu1  ;;  %v5253_v10 = vpack.c.bf16 %v2076_v57, %v2075_v17 }
 0x1e0   : > { %v5224_v8 = vpop.f32.mrf.mxu0 }
 0x1e1   : > { %2209 = vmatmul.bf16.gmra.mxu2 %v5209_v22  ;;  %6482 = vst [vmem:[#allocation18_spill] sm:$0xff] %v5224_v8 }
 0x1e4   : > { %v1335_v15 = vpop.f32.mrf.mxu2 }
 0x1e5   : > { %v5219_v47 = vadd.f32 %v1335_v15, %v1198_v27 }
 0x1e6   : > { %v1203_v9 = vpop.f32.mrf.mxu1 }
 0x1e8   : > { %v5236_v16 = vpop.f32.mrf.mxu0 }
 0x1e9   : > { %1485 = vmatmul.bf16.gmra.mxu3 %v5060_v14  ;;  %1981 = vmatmul.bf16.gmra.mxu1 %v1865_v23  ;;  %v5234_v14 = vld [vmem:[#allocation2 + $0x128] sm:$0xff]  ;;  %6483 = vst [vmem:[#allocation19_spill] sm:$0xff] %v5236_v16  ;;  %v2527_v23 = vld [vmem:[#allocation2 + $0x50] sm:$0xff] }
 0x1eb   : > { %1788 = vmatmul.bf16.gmra.mxu0 %v1640_v6 }
 0x1ec   : > { %v1337_v18 = vpop.f32.mrf.mxu2 }
 0x1ed   : > { %v5229_v27 = vadd.f32 %v1337_v18, %v1200_v19  ;;  %v1866_v19 = vpack.c.bf16 %v4925_v46, %v5234_v14  ;;  %v2526_v18 = vld [vmem:[#allocation2 + $0x48] sm:$0xff] }
 0x1ee   : > { %v1205_v15 = vpop.f32.mrf.mxu1  ;;  %v2558_v1 = vpack.c.bf16 %v2527_v23, %v2526_v18  ;;  %v4379_v46 = vld [vmem:[%s6456_s4 + $0x1a8] sm:$0xff]  ;;  %v2529_v18 = vld [vmem:[#allocation2 + $0x70] sm:$0xff] }
 0x1ef   : > { %2407 = vmatpush.bf16.msra.mxu3 %v4379_v46  ;;  %v4395_v46 = vld [vmem:[%s6456_s4 + $0x228] sm:$0xff] }
 0x1f0   : > { %2873 = vmatpush.bf16.msra.mxu1 %v4395_v46 }
 0x1f1   : > { %2214 = vmatmul.bf16.gmra.mxu2 %v5231_v32 }
 0x1f4   : > { %v1340_v31 = vpop.f32.mrf.mxu2 }
 0x1f5   : > { %v5238_v6 = vadd.f32 %v1340_v31, %v1203_v9  ;;  %v5251_v31 = vpop.f32.mrf.mxu0 }
 0x1f6   : > { %v5240_v8 = vpop.f32.mrf.mxu1  ;;  %6486 = vst [vmem:[#allocation22_spill] sm:$0xff] %v5251_v31  ;;  %v2077_v31 = vld [vmem:[#allocation2 + $0x149] sm:$0xff] }
 0x1f7   : > { %6484 = vst [vmem:[#allocation20_spill] sm:$0xff] %v5240_v8  ;;  %v2081_v8 = vld [vmem:[#allocation2 + $0x189] sm:$0xff] }
 0x1f9   : > { %1490 = vmatmul.bf16.gmra.mxu3 %v5080_v41  ;;  %1986 = vmatmul.bf16.gmra.mxu1 %v1866_v19  ;;  %v5261_v19 = vld [vmem:[#allocation2 + $0x148] sm:$0xff] }
 0x1fb   : > { %2646 = vmatmul.bf16.vlgmr.msra.gmra.mxu0 %v2558_v1  ;;  %v1867_v1 = vpack.c.bf16 %v4948_v4, %v5261_v19 }
 0x1fc   : > { %v1342_v38 = vpop.f32.mrf.mxu2  ;;  %v5245_v59 = vpop.f32.mrf.mxu3 }
 0x1fd   : > { %v5247_v16 = vadd.f32 %v1342_v38, %v1205_v15  ;;  %v2528_v38 = vld [vmem:[#allocation2 + $0x68] sm:$0xff]  ;;  %v5267_v57 = vpop.f32.mrf.mxu0 }
 0x1fe   : > { %v5249_v9 = vpop.f32.mrf.mxu1  ;;  %6488 = vst [vmem:[#allocation24_spill] sm:$0xff] %v5267_v57  ;;  %v2559_v17 = vpack.c.bf16 %v2529_v18, %v2528_v38  ;;  %v2531_v38 = vld [vmem:[#allocation2 + $0x90] sm:$0xff] }
 0x1ff   : > { %6485 = vst [vmem:[#allocation21_spill] sm:$0xff] %v5249_v9  ;;  %v2560_v46 = vpack.c.bf16 %v2531_v38, %v2530_v33  ;;  %v2533_v38 = vld [vmem:[#allocation2 + $0xb0] sm:$0xff] }
 0x201   : > { %2219 = vmatmul.bf16.gmra.mxu2 %v5253_v10 }
 0x204   : > { %v5259_v23 = vpop.f32.mrf.mxu3 }
 0x205   : > { %v5278_v4 = vpop.f32.mrf.mxu0 }
 0x206   : > { %v5263_v15 = vpop.f32.mrf.mxu1  ;;  %6490 = vst [vmem:[#allocation26_spill] sm:$0xff] %v5278_v4 }
 0x207   : > { %6487 = vst [vmem:[#allocation23_spill] sm:$0xff] %v5263_v15  ;;  %v5275_v15 = vpack.c.bf16 %v2078_v55, %v2077_v31  ;;  %v2079_v55 = vld [vmem:[#allocation2 + $0x169] sm:$0xff]  ;;  %v2080_v31 = vld [vmem:[#allocation2 + $0x171] sm:$0xff] }
 0x208   : > { %v5295_v28 = vpack.c.bf16 %v2080_v31, %v2079_v55  ;;  %v2532_v31 = vld [vmem:[#allocation2 + $0xa8] sm:$0xff] }
 0x209   : > { %1495 = vmatmul.bf16.gmra.mxu3 %v5107_v30  ;;  %1991 = vmatmul.bf16.gmra.mxu1 %v1867_v1  ;;  %v5282_v1 = vld [vmem:[#allocation2 + $0x168] sm:$0xff] }
 0x20a   : > { %v1868_v57 = vpack.c.bf16 %v4988_v43, %v5282_v1  ;;  %v4378_v43 = vld [vmem:[%s6456_s4 + $0x1a0] sm:$0xff] }
 0x20b   : > { %2651 = vmatmul.bf16.gmra.mxu0 %v2559_v17  ;;  %2408 = vmatpush.bf16.msra.mxu3 %v4378_v43  ;;  %v4394_v43 = vld [vmem:[%s6456_s4 + $0x220] sm:$0xff] }
 0x20c   : > { %v1213_v48 = vpop.f32.mrf.mxu3  ;;  %2874 = vmatpush.bf16.msra.mxu1 %v4394_v43  ;;  %v2084_v43 = vld [vmem:[#allocation2 + $0x1b1] sm:$0xff] }
 0x20d   : > { %v5291_v4 = vpop.f32.mrf.mxu0 }
 0x20e   : > { %v5273_v54 = vpop.f32.mrf.mxu1  ;;  %6492 = vst [vmem:[#allocation28_spill] sm:$0xff] %v5291_v4  ;;  %v2561_v4 = vpack.c.bf16 %v2533_v38, %v2532_v31  ;;  %v5322_v38 = vpack.c.bf16 %v2082_v52, %v2081_v8  ;;  %v2083_v8 = vld [vmem:[#allocation2 + $0x1a9] sm:$0xff] }
 0x20f   : > { %6489 = vst [vmem:[#allocation25_spill] sm:$0xff] %v5273_v54 }
 0x211   : > { %2224 = vmatmul.bf16.gmra.mxu2 %v5275_v15 }
 0x214   : > { %v5280_v18 = vpop.f32.mrf.mxu3 }
 0x216   : > { %v5284_v17 = vpop.f32.mrf.mxu1 }
 0x217   : > { %6491 = vst [vmem:[#allocation27_spill] sm:$0xff] %v5284_v17  ;;  %v5307_v17 = vpop.f32.mrf.mxu0 }
 0x218   : > { %6495 = vst [vmem:[#allocation31_spill] sm:$0xff] %v5307_v17 }
 0x219   : > { %1500 = vmatmul.bf16.gmra.mxu3 %v5129_v24  ;;  %1996 = vmatmul.bf16.gmra.mxu1 %v1868_v57  ;;  %v5303_v57 = vld [vmem:[#allocation2 + $0x188] sm:$0xff] }
 0x21a   : > { %v1869_v55 = vpack.c.bf16 %v5028_v20, %v5303_v57 }
 0x21b   : > { %2656 = vmatmul.bf16.gmra.mxu0 %v2560_v46 }
 0x21c   : > { %v5289_v54 = vpop.f32.mrf.mxu3 }
 0x21e   : > { %v5293_v9 = vpop.f32.mrf.mxu1 }
 0x21f   : > { %6493 = vst [vmem:[#allocation29_spill] sm:$0xff] %v5293_v9  ;;  %v5312_v9 = vpop.f32.mrf.mxu2  ;;  %v5324_v31 = vpop.f32.mrf.mxu0 }
 0x220   : > { %6496 = vst [vmem:[#allocation32_spill] sm:$0xff] %v5312_v9 }
 0x221   : > { %2229 = vmatmul.bf16.gmra.mxu2 %v5295_v28  ;;  %6498 = vst [vmem:[#allocation34_spill] sm:$0xff] %v5324_v31 }
 0x224   : > { %v5301_v33 = vpop.f32.mrf.mxu3 }
 0x226   : > { %v5305_v46 = vpop.f32.mrf.mxu1 }
 0x227   : > { %6494 = vst [vmem:[#allocation30_spill] sm:$0xff] %v5305_v46  ;;  %v5336_v52 = vpop.f32.mrf.mxu0 }
 0x228   : > { %6501 = vst [vmem:[#allocation37_spill] sm:$0xff] %v5336_v52 }
 0x229   : > { %1505 = vmatmul.bf16.gmra.mxu3 %v5154_v2  ;;  %2001 = vmatmul.bf16.gmra.mxu1 %v1869_v55  ;;  %v5327_v55 = vpop.f32.mrf.mxu2 }
 0x22a   : > { %6499 = vst [vmem:[#allocation35_spill] sm:$0xff] %v5327_v55 }
 0x22b   : > { %2661 = vmatmul.bf16.gmra.mxu0 %v2561_v4 }
 0x22c   : > { %v1345_v46 = vpop.f32.mrf.mxu3 }
 0x22d   : > { %v5318_v17 = vadd.f32 %v1345_v46, %v5245_v59  ;;  %v2534_v59 = vld [vmem:[#allocation2 + $0xc8] sm:$0xff] }
 0x22e   : > { %v5320_v20 = vpop.f32.mrf.mxu1  ;;  %v2562_v46 = vpack.c.bf16 %v2535_v36, %v2534_v59  ;;  %v4377_v36 = vld [vmem:[%s6456_s4 + $0x198] sm:$0xff] }
 0x22f   : > { %6497 = vst [vmem:[#allocation33_spill] sm:$0xff] %v5320_v20  ;;  %2409 = vmatpush.bf16.msra.mxu3 %v4377_v36  ;;  %v5350_v59 = vpop.f32.mrf.mxu0  ;;  %v2085_v36 = vld [vmem:[#allocation2 + $0x1c9] sm:$0xff] }
 0x230   : > { %6503 = vst [vmem:[#allocation39_spill] sm:$0xff] %v5350_v59 }
 0x231   : > { %2234 = vmatmul.bf16.gmra.mxu2 %v5322_v38 }
 0x234   : > { %v1347_v4 = vpop.f32.mrf.mxu3 }
 0x235   : > { %v5330_v9 = vadd.f32 %v1347_v4, %v5259_v23  ;;  %v5342_v23 = vpop.f32.mrf.mxu2  ;;  %v5344_v4 = vpack.c.bf16 %v2084_v43, %v2083_v8  ;;  %v4393_v43 = vld [vmem:[%s6456_s4 + $0x218] sm:$0xff] }
 0x236   : > { %v5332_v7 = vpop.f32.mrf.mxu1  ;;  %2875 = vmatpush.bf16.msra.mxu1 %v4393_v43 }
 0x237   : > { %6500 = vst [vmem:[#allocation36_spill] sm:$0xff] %v5332_v7 }
 0x239   : > { %1510 = vmatmul.bf16.gmra.mxu3 %v5187_v58  ;;  %2006 = vmatmul.bf16.gmra.mxu1 %v5051_v3 }
 0x23b   : > { %2666 = vmatmul.bf16.gmra.mxu0 %v2562_v46 }
 0x23c   : > { %v1350_v31 = vpop.f32.mrf.mxu3 }
 0x23d   : > { %v5338_v20 = vadd.f32 %v1350_v31, %v1213_v48  ;;  %v2537_v48 = vld [vmem:[#allocation2 + $0xf0] sm:$0xff]  ;;  %v2536_v31 = vld [vmem:[#allocation2 + $0xe8] sm:$0xff] }
 0x23e   : > { %v5340_v55 = vpop.f32.mrf.mxu1  ;;  %v2563_v8 = vpack.c.bf16 %v2537_v48, %v2536_v31  ;;  %v4392_v48 = vld [vmem:[%s6456_s4 + $0x210] sm:$0xff]  ;;  %v5370_v31 = vpop.f32.mrf.mxu0 }
 0x23f   : > { %6502 = vst [vmem:[#allocation38_spill] sm:$0xff] %v5340_v55  ;;  %v5357_v55 = vpop.f32.mrf.mxu2  ;;  %2876 = vmatpush.bf16.msra.mxu1 %v4392_v48 }
 0x240   : > { %6505 = vst [vmem:[#allocation41_spill] sm:$0xff] %v5370_v31 }
 0x241   : > { %2239 = vmatmul.bf16.gmra.mxu2 %v5344_v4 }
 0x244   : > { %v1352_v3 = vpop.f32.mrf.mxu3 }
 0x245   : > { %v5353_v46 = vadd.f32 %v1352_v3, %v5280_v18  ;;  %v2086_v18 = vld [vmem:[#allocation2 + $0x1d1] sm:$0xff] }
 0x246   : > { %v5355_v52 = vpop.f32.mrf.mxu1  ;;  %v5388_v48 = vpop.f32.mrf.mxu0 }
 0x247   : > { %6504 = vst [vmem:[#allocation40_spill] sm:$0xff] %v5355_v52  ;;  %v5372_v52 = vpack.c.bf16 %v2086_v18, %v2085_v36  ;;  %v5380_v43 = vpop.f32.mrf.mxu2  ;;  %v4390_v36 = vld [vmem:[%s6456_s4 + $0x200] sm:$0xff]  ;;  %v2539_v18 = vld [vmem:[#allocation2 + $0x110] sm:$0xff] }
 0x248   : > { %6507 = vst [vmem:[#allocation43_spill] sm:$0xff] %v5380_v43  ;;  %v2564_v31 = vpack.c.bf16 %v2539_v18, %v5217_v11 }
 0x249   : > { %1515 = vmatmul.bf16.gmra.mxu3 %v5209_v22  ;;  %2011 = vmatmul.bf16.gmra.mxu1 %v5071_v60  ;;  %v4391_v60 = vld [vmem:[%s6456_s4 + $0x208] sm:$0xff]  ;;  %6508 = vst [vmem:[#allocation44_spill] sm:$0xff] %v5388_v48 }
 0x24a   : > { %2877 = vmatpush.bf16.msra.mxu1 %v4391_v60 }
 0x24b   : > { %2671 = vmatmul.bf16.gmra.mxu0 %v2563_v8 }
 0x24c   : > { %v1355_v3 = vpop.f32.mrf.mxu3 }
 0x24d   : > { %v5365_v59 = vadd.f32 %v1355_v3, %v5289_v54 }
 0x24e   : > { %v5378_v8 = vpop.f32.mrf.mxu1  ;;  %2878 = vmatpush.bf16.msra.mxu1 %v4390_v36 }
 0x24f   : > { %6506 = vst [vmem:[#allocation42_spill] sm:$0xff] %v5378_v8  ;;  %v2088_v8 = vld [vmem:[#allocation2 + $0x1f1] sm:$0xff]  ;;  %v5398_v43 = vpop.f32.mrf.mxu2 }
 0x250   : > { %6510 = vst [vmem:[#allocation46_spill] sm:$0xff] %v5398_v43 }
 0x251   : > { %2244 = vmatmul.bf16.gmra.mxu2 %v5372_v52 }
 0x254   : > { %v1357_v54 = vpop.f32.mrf.mxu3 }
 0x255   : > { %v5383_v3 = vadd.f32 %v1357_v54, %v5301_v33  ;;  %v4405_v33 = vld [vmem:[%s6459_s7 + $0x38] sm:$0xff]  ;;  %v2087_v54 = vld [vmem:[#allocation2 + $0x1e9] sm:$0xff] }
 0x256   : > { %v5396_v60 = vpop.f32.mrf.mxu1  ;;  %3176 = vmatpush.bf16.msra.mxu2 %v4405_v33  ;;  %v5403_v11 = vpack.c.bf16 %v2088_v8, %v2087_v54  ;;  %v2090_v8 = vld [vmem:[#allocation2 + $0x211] sm:$0xff] }
 0x257   : > { %6509 = vst [vmem:[#allocation45_spill] sm:$0xff] %v5396_v60  ;;  %v2541_v60 = vld [vmem:[#allocation2 + $0x130] sm:$0xff]  ;;  %v5415_v43 = vpop.f32.mrf.mxu2 }
 0x258   : > { %6513 = vst [vmem:[#allocation49_spill] sm:$0xff] %v5415_v43 }
 0x259   : > { %1520 = vmatmul.bf16.gmra.mxu3 %v5231_v32  ;;  %2016 = vmatmul.bf16.gmra.mxu1 %v5095_v45  ;;  %v4376_v45 = vld [vmem:[%s6456_s4 + $0x190] sm:$0xff] }
 0x25a   : > { %2410 = vmatpush.bf16.msra.mxu3 %v4376_v45 }
 0x25b   : > { %2676 = vmatmul.bf16.gmra.mxu0 %v2564_v31  ;;  %v5409_v31 = vpop.f32.mrf.mxu0 }
 0x25c   : > { %v1481_v7 = vpop.f32.mrf.mxu3  ;;  %6511 = vst [vmem:[#allocation47_spill] sm:$0xff] %v5409_v31 }
 0x25d   : > { %v5401_v36 = vadd.f32 %v1481_v7, %v4893_v12  ;;  %v2565_v12 = vpack.c.bf16 %v2541_v60, %v5234_v14  ;;  %v2089_v7 = vld [vmem:[#allocation2 + $0x209] sm:$0xff] }
 0x25e   : > { %v5413_v48 = vpop.f32.mrf.mxu1  ;;  %v5425_v31 = vpack.c.bf16 %v2090_v8, %v2089_v7  ;;  %v2543_v60 = vld [vmem:[#allocation2 + $0x150] sm:$0xff] }
 0x25f   : > { %6512 = vst [vmem:[#allocation48_spill] sm:$0xff] %v5413_v48  ;;  %v5429_v43 = vpop.f32.mrf.mxu2  ;;  %v4404_v7 = vld [vmem:[%s6459_s7 + $0x30] sm:$0xff] }
 0x260   : > { %3177 = vmatpush.bf16.msra.mxu2 %v4404_v7 }
 0x261   : > { %2249 = vmatmul.bf16.gmra.mxu2 %v5403_v11 }
 0x263   : > { %v5420_v54 = vpop.f32.mrf.mxu0 }
 0x264   : > { %v5411_v18 = vpop.f32.mrf.mxu3  ;;  %6514 = vst [vmem:[#allocation50_spill] sm:$0xff] %v5420_v54  ;;  %v2566_v54 = vpack.c.bf16 %v2543_v60, %v5261_v19  ;;  %v4375_v19 = vld [vmem:[%s6456_s4 + $0x188] sm:$0xff]  ;;  %v2545_v60 = vld [vmem:[#allocation2 + $0x170] sm:$0xff] }
 0x265   : > { %2411 = vmatpush.bf16.msra.mxu3 %v4375_v19 }
 0x266   : > { %v5427_v48 = vpop.f32.mrf.mxu1 }
 0x269   : > { %1525 = vmatmul.bf16.gmra.mxu3 %v5253_v10  ;;  %2021 = vmatmul.bf16.gmra.mxu1 %v5197_v49 }
 0x26b   : > { %2681 = vmatmul.bf16.gmra.mxu0 %v2565_v12  ;;  %v5435_v12 = vpop.f32.mrf.mxu0 }
 0x26c   : > { %v1486_v33 = vpop.f32.mrf.mxu3  ;;  %6515 = vst [vmem:[#allocation51_spill] sm:$0xff] %v5435_v12  ;;  %v2567_v12 = vpack.c.bf16 %v2545_v60, %v5282_v1  ;;  %v2547_v1 = vld [vmem:[#allocation2 + $0x190] sm:$0xff] }
 0x26d   : > { %v5423_v45 = vadd.f32 %v1486_v33, %v4950_v5 }
 0x26e   : > { %v5440_v5 = vpop.f32.mrf.mxu1 }
 0x271   : > { %2254 = vmatmul.bf16.gmra.mxu2 %v5425_v31 }
 0x273   : > { %v5451_v33 = vpop.f32.mrf.mxu0 }
 0x274   : > { %v1488_v14 = vpop.f32.mrf.mxu3  ;;  %6516 = vst [vmem:[#allocation52_spill] sm:$0xff] %v5451_v33 }
 0x275   : > { %v5433_v49 = vadd.f32 %v1488_v14, %v4969_v25 }
 0x279   : > { %1530 = vmatmul.bf16.gmra.mxu3 %v5275_v15  ;;  %2879 = vmatmul.bf16.vlgmr.msra.gmra.mxu1 %v5080_v41  ;;  %v5453_v41 = vpop.f32.mrf.mxu1 }
 0x27a   : > { %6517 = vst [vmem:[#allocation53_spill] sm:$0xff] %v5453_v41 }
 0x27b   : > { %2686 = vmatmul.bf16.gmra.mxu0 %v2566_v54 }
 0x27c   : > { %v1491_v8 = vpop.f32.mrf.mxu3 }
 0x27d   : > { %v5446_v25 = vadd.f32 %v1491_v8, %v4990_v44  ;;  %v5461_v44 = vpop.f32.mrf.mxu0 }
 0x27e   : > { %6518 = vst [vmem:[#allocation54_spill] sm:$0xff] %v5461_v44 }
 0x281   : > { %v5466_v19 = vpop.f32.mrf.mxu1 }
 0x282   : > { %6519 = vst [vmem:[#allocation55_spill] sm:$0xff] %v5466_v19 }
 0x284   : > { %v1493_v14 = vpop.f32.mrf.mxu3 }
 0x285   : > { %v5456_v54 = vadd.f32 %v1493_v14, %v5012_v56  ;;  %v5468_v41 = vpop.f32.mrf.mxu0 }
 0x286   : > { %6520 = vst [vmem:[#allocation56_spill] sm:$0xff] %v5468_v41 }
 0x289   : > { %1535 = vmatmul.bf16.gmra.mxu3 %v5295_v28  ;;  %2884 = vmatmul.bf16.gmra.mxu1 %v5107_v30  ;;  %v5473_v14 = vpop.f32.mrf.mxu1  ;;  %v2568_v30 = vpack.c.bf16 %v2547_v1, %v5303_v57  ;;  %v4374_v57 = vld [vmem:[%s6456_s4 + $0x180] sm:$0xff]  ;;  %v2549_v1 = vld [vmem:[#allocation2 + $0x1b0] sm:$0xff] }
 0x28a   : > { %6521 = vst [vmem:[#allocation57_spill] sm:$0xff] %v5473_v14  ;;  %2412 = vmatpush.bf16.msra.mxu3 %v4374_v57 }
 0x28b   : > { %2691 = vmatmul.bf16.gmra.mxu0 %v2567_v12 }
 0x28c   : > { %v1496_v7 = vpop.f32.mrf.mxu3 }
 0x28d   : > { %v5464_v8 = vadd.f32 %v1496_v7, %v5030_v21  ;;  %v4403_v21 = vld [vmem:[%s6459_s7 + $0x28] sm:$0xff] }
 0x28e   : > { %3178 = vmatpush.bf16.msra.mxu2 %v4403_v21 }
 0x294   : > { %v1498_v33 = vpop.f32.mrf.mxu3 }
 0x295   : > { %v5471_v56 = vadd.f32 %v1498_v33, %v5042_v42  ;;  %v5484_v42 = vpop.f32.mrf.mxu0  ;;  %v5489_v33 = vpop.f32.mrf.mxu1 }
 0x296   : > { %6522 = vst [vmem:[#allocation58_spill] sm:$0xff] %v5484_v42 }
 0x297   : > { %6523 = vst [vmem:[#allocation59_spill] sm:$0xff] %v5489_v33 }
 0x299   : > { %1540 = vmatmul.bf16.gmra.mxu3 %v5322_v38  ;;  %2889 = vmatmul.bf16.gmra.mxu1 %v5129_v24 }
 0x29b   : > { %2696 = vmatmul.bf16.gmra.mxu0 %v2568_v30  ;;  %v2548_v30 = vld [vmem:[#allocation2 + $0x1a8] sm:$0xff] }
 0x29c   : > { %v1501_v12 = vpop.f32.mrf.mxu3 }
 0x29d   : > { %v5482_v60 = vadd.f32 %v1501_v12, %v5049_v63  ;;  %v5494_v41 = vpop.f32.mrf.mxu0  ;;  %v2569_v63 = vpack.c.bf16 %v2549_v1, %v2548_v30  ;;  %v5498_v21 = vpop.f32.mrf.mxu1  ;;  %v2550_v1 = vld [vmem:[#allocation2 + $0x1c8] sm:$0xff]  ;;  %v2551_v30 = vld [vmem:[#allocation2 + $0x1d0] sm:$0xff] }
 0x29e   : > { %6524 = vst [vmem:[#allocation60_spill] sm:$0xff] %v5498_v21  ;;  %v2570_v33 = vpack.c.bf16 %v2551_v30, %v2550_v1  ;;  %v2552_v30 = vld [vmem:[#allocation2 + $0x1e8] sm:$0xff] }
 0x2a4   : > { %v1503_v24 = vpop.f32.mrf.mxu3 }
 0x2a5   : > { %v5492_v7 = vadd.f32 %v1503_v24, %v5058_v13  ;;  %v5503_v57 = vpop.f32.mrf.mxu0  ;;  %v5508_v44 = vpop.f32.mrf.mxu1 }
 0x2a6   : > { %6525 = vst [vmem:[#allocation61_spill] sm:$0xff] %v5508_v44 }
 0x2a9   : > { %1545 = vmatmul.bf16.gmra.mxu3 %v5344_v4  ;;  %2894 = vmatmul.bf16.gmra.mxu1 %v5154_v2 }
 0x2ab   : > { %2701 = vmatmul.bf16.gmra.mxu0 %v2569_v63 }
 0x2ac   : > { %v1506_v12 = vpop.f32.mrf.mxu3 }
 0x2ad   : > { %v5501_v42 = vadd.f32 %v1506_v12, %v5065_v29  ;;  %v4402_v29 = vld [vmem:[%s6459_s7 + $0x20] sm:$0xff]  ;;  %v5515_v63 = vpop.f32.mrf.mxu0  ;;  %v5520_v12 = vpop.f32.mrf.mxu1 }
 0x2ae   : > { %3179 = vmatpush.bf16.msra.mxu2 %v4402_v29  ;;  %6526 = vst [vmem:[#allocation62_spill] sm:$0xff] %v5520_v12  ;;  %v2294_v12 = vld [vmem:[#allocation2 + $0x4f] sm:$0xff] }
 0x2b4   : > { %v1508_v13 = vpop.f32.mrf.mxu3 }
 0x2b5   : > { %v5506_v24 = vadd.f32 %v1508_v13, %v5078_v39  ;;  %v5529_v21 = vpop.f32.mrf.mxu1 }
 0x2b6   : > { %6527 = vst [vmem:[#allocation63_spill] sm:$0xff] %v5529_v21  ;;  %v2295_v21 = vld [vmem:[#allocation2 + $0x67] sm:$0xff] }
 0x2b9   : > { %1550 = vmatmul.bf16.gmra.mxu3 %v5372_v52  ;;  %2899 = vmatmul.bf16.gmra.mxu1 %v5187_v58  ;;  %v2553_v58 = vld [vmem:[#allocation2 + $0x1f0] sm:$0xff] }
 0x2ba   : > { %v2571_v44 = vpack.c.bf16 %v2553_v58, %v2552_v30  ;;  %v2554_v30 = vld [vmem:[#allocation2 + $0x208] sm:$0xff] }
 0x2bb   : > { %2706 = vmatmul.bf16.gmra.mxu0 %v2570_v33  ;;  %v5525_v33 = vpop.f32.mrf.mxu0  ;;  %v2293_v58 = vld [vmem:[#allocation2 + $0x47] sm:$0xff] }
 0x2bc   : > { %v1511_v2 = vpop.f32.mrf.mxu3  ;;  %v2325_v19 = vpack.c.bf16 %v2294_v12, %v2293_v58  ;;  %v2296_v58 = vld [vmem:[#allocation2 + $0x6f] sm:$0xff] }
 0x2bd   : > { %v5518_v39 = vadd.f32 %v1511_v2, %v5088_v61 }
 0x2c3   : > { %v5534_v2 = vpop.f32.mrf.mxu0 }
 0x2c4   : > { %v1513_v13 = vpop.f32.mrf.mxu3 }
 0x2c5   : > { %v5523_v1 = vadd.f32 %v1513_v13, %v5102_v26  ;;  %v5536_v26 = vpop.f32.mrf.mxu1 }
 0x2c6   : > { %6528 = vst [vmem:[#allocation64_spill] sm:$0xff] %v5536_v26 }
 0x2c9   : > { %1555 = vmatmul.bf16.gmra.mxu3 %v5403_v11  ;;  %2904 = vmatmul.bf16.gmra.mxu1 %v5209_v22  ;;  %v4401_v22 = vld [vmem:[%s6459_s7 + $0x18] sm:$0xff] }
 0x2ca   : > { %3180 = vmatpush.bf16.msra.mxu2 %v4401_v22 }
 0x2cb   : > { %2711 = vmatmul.bf16.gmra.mxu0 %v2571_v44  ;;  %v2572_v44 = vpack.c.bf16 %v5156_v50, %v2554_v30  ;;  %v2326_v50 = vpack.c.bf16 %v2296_v58, %v2295_v21  ;;  %v4400_v21 = vld [vmem:[%s6459_s7 + $0x10] sm:$0xff] }
 0x2cc   : > { %v1516_v61 = vpop.f32.mrf.mxu3 }
 0x2cd   : > { %v5532_v29 = vadd.f32 %v1516_v61, %v5115_v62  ;;  %v5546_v62 = vpop.f32.mrf.mxu0 }
 0x2ce   : > { %3181 = vmatpush.bf16.msra.mxu2 %v4400_v21 }
 0x2d4   : > { %v1518_v13 = vpop.f32.mrf.mxu3 }
 0x2d5   : > { %v5539_v14 = vadd.f32 %v1518_v13, %v5124_v34  ;;  %v5551_v13 = vpop.f32.mrf.mxu1 }
 0x2d6   : > { %6529 = vst [vmem:[#allocation65_spill] sm:$0xff] %v5551_v13 }
 0x2d9   : > { %2413 = vmatmul.bf16.vlgmr.msra.gmra.mxu3 %v2325_v19  ;;  %2909 = vmatmul.bf16.gmra.mxu1 %v5231_v32 }
 0x2db   : > { %2716 = vmatmul.bf16.gmra.mxu0 %v2572_v44  ;;  %v2298_v44 = vld [vmem:[#allocation2 + $0x8f] sm:$0xff] }
 0x2dc   : > { %v1521_v61 = vpop.f32.mrf.mxu3 }
 0x2dd   : > { %v5549_v34 = vadd.f32 %v1521_v61, %v5138_v51  ;;  %v5556_v19 = vpop.f32.mrf.mxu1 }
 0x2de   : > { %6530 = vst [vmem:[#allocation66_spill] sm:$0xff] %v5556_v19  ;;  %v2306_v19 = vld [vmem:[#allocation2 + $0x10f] sm:$0xff] }
 0x2e4   : > { %v1523_v12 = vpop.f32.mrf.mxu3 }
 0x2e5   : > { %v5554_v26 = vadd.f32 %v1523_v12, %v5151_v35  ;;  %v5562_v51 = vpop.f32.mrf.mxu1  ;;  %v2297_v35 = vld [vmem:[#allocation2 + $0x87] sm:$0xff] }
 0x2e6   : > { %6531 = vst [vmem:[#allocation67_spill] sm:$0xff] %v5562_v51  ;;  %v2327_v12 = vpack.c.bf16 %v2298_v44, %v2297_v35  ;;  %v2299_v44 = vld [vmem:[#allocation2 + $0xa7] sm:$0xff]  ;;  %v5581_v51 = vpop.f32.mrf.mxu2 }
 0x2e9   : > { %2418 = vmatmul.bf16.gmra.mxu3 %v2326_v50  ;;  %2914 = vmatmul.bf16.gmra.mxu1 %v5253_v10 }
 0x2ec   : > { %v1526_v32 = vpop.f32.mrf.mxu3 }
 0x2ed   : > { %v5560_v30 = vadd.f32 %v1526_v32, %v5171_v53  ;;  %v5571_v10 = vpop.f32.mrf.mxu1  ;;  %v2300_v32 = vld [vmem:[#allocation2 + $0xaf] sm:$0xff] }
 0x2ee   : > { %6532 = vst [vmem:[#allocation68_spill] sm:$0xff] %v5571_v10  ;;  %v2328_v35 = vpack.c.bf16 %v2300_v32, %v2299_v44  ;;  %v5589_v21 = vpop.f32.mrf.mxu2  ;;  %v4399_v44 = vld [vmem:[%s6459_s7 + $0x8] sm:$0xff] }
 0x2ef   : > { %3182 = vmatpush.bf16.msra.mxu2 %v4399_v44 }
 0x2f4   : > { %v1528_v22 = vpop.f32.mrf.mxu3 }
 0x2f5   : > { %v5565_v61 = vadd.f32 %v1528_v22, %v5185_v37  ;;  %v5579_v22 = vpop.f32.mrf.mxu1 }
 0x2f6   : > { %6535 = vst [vmem:[#allocation71_spill] sm:$0xff] %v5579_v22  ;;  %v2301_v22 = vld [vmem:[#allocation2 + $0xc7] sm:$0xff] }
 0x2f9   : > { %2423 = vmatmul.bf16.gmra.mxu3 %v2327_v12  ;;  %2919 = vmatmul.bf16.gmra.mxu1 %v5275_v15 }
 0x2fc   : > { %v1531_v53 = vpop.f32.mrf.mxu3 }
 0x2fd   : > { %v5574_v58 = vadd.f32 %v1531_v53, %v5199_v0  ;;  %v5587_v0 = vpop.f32.mrf.mxu1 }
 0x2fe   : > { %6537 = vst [vmem:[#allocation73_spill] sm:$0xff] %v5587_v0  ;;  %v2304_v0 = vld [vmem:[#allocation2 + $0xef] sm:$0xff] }
 0x2ff   : > { %6533 = vst [vmem:[#allocation69_spill] sm:$0xff] %v5574_v58 }
 0x304   : > { %v1533_v50 = vpop.f32.mrf.mxu3 }
 0x305   : > { %v5577_v37 = vadd.f32 %v1533_v50, %v5207_v40  ;;  %v2302_v40 = vld [vmem:[#allocation2 + $0xcf] sm:$0xff] }
 0x306   : > { %v2329_v32 = vpack.c.bf16 %v2302_v40, %v2301_v22 }
 0x307   : > { %6534 = vst [vmem:[#allocation70_spill] sm:$0xff] %v5577_v37  ;;  %v6554_v37 = vld [vmem:[#allocation21_spill] sm:$0xff] }
 0x309   : > { %2428 = vmatmul.bf16.gmra.mxu3 %v2328_v35  ;;  %2924 = vmatmul.bf16.gmra.mxu1 %v5295_v28  ;;  %v5598_v28 = vpop.f32.mrf.mxu1 }
 0x30a   : > { %6539 = vst [vmem:[#allocation75_spill] sm:$0xff] %v5598_v28 }
 0x30c   : > { %v1536_v15 = vpop.f32.mrf.mxu3 }
 0x30d   : > { %v5585_v12 = vadd.f32 %v1536_v15, %v5219_v47  ;;  %v5600_v47 = vpop.f32.mrf.mxu2 }
 0x30f   : > { %6536 = vst [vmem:[#allocation72_spill] sm:$0xff] %v5585_v12  ;;  %v6553_v12 = vld [vmem:[#allocation32_spill] sm:$0xff] }
 0x314   : > { %v1538_v53 = vpop.f32.mrf.mxu3 }
 0x315   : > { %v5592_v50 = vadd.f32 %v1538_v53, %v5229_v27  ;;  %v2880_v27 = vpop.f32.mrf.mxu1  ;;  %v5608_v40 = vpop.f32.mrf.mxu2 }
 0x317   : > { %6538 = vst [vmem:[#allocation74_spill] sm:$0xff] %v5592_v50 }
 0x319   : > { %2433 = vmatmul.bf16.gmra.mxu3 %v2329_v32  ;;  %2929 = vmatmul.bf16.gmra.mxu1 %v5322_v38  ;;  %v2303_v32 = vld [vmem:[#allocation2 + $0xe7] sm:$0xff] }
 0x31a   : > { %v2330_v10 = vpack.c.bf16 %v2304_v0, %v2303_v32 }
 0x31c   : > { %v1541_v35 = vpop.f32.mrf.mxu3 }
 0x31d   : > { %v5603_v15 = vadd.f32 %v1541_v35, %v5238_v6  ;;  %v5614_v28 = vpop.f32.mrf.mxu1  ;;  %v5616_v6 = vpop.f32.mrf.mxu2 }
 0x31f   : > { %6540 = vst [vmem:[#allocation76_spill] sm:$0xff] %v5603_v15  ;;  %v2310_v15 = vld [vmem:[#allocation2 + $0x14f] sm:$0xff] }
 0x324   : > { %v1543_v53 = vpop.f32.mrf.mxu3 }
 0x325   : > { %v5606_v22 = vadd.f32 %v1543_v53, %v5247_v16  ;;  %v2305_v53 = vld [vmem:[#allocation2 + $0x107] sm:$0xff] }
 0x326   : > { %v2331_v13 = vpack.c.bf16 %v2306_v19, %v2305_v53  ;;  %v2307_v53 = vld [vmem:[#allocation2 + $0x127] sm:$0xff] }
 0x327   : > { %6541 = vst [vmem:[#allocation77_spill] sm:$0xff] %v5606_v22  ;;  %v5621_v22 = vpop.f32.mrf.mxu1 }
 0x329   : > { %2438 = vmatmul.bf16.gmra.mxu3 %v2330_v10  ;;  %2934 = vmatmul.bf16.gmra.mxu1 %v5344_v4  ;;  %v4398_v4 = vld [vmem:[%s6459_s7] sm:$0xff] }
 0x32a   : > { %3183 = vmatpush.bf16.msra.mxu2 %v4398_v4 }
 0x32c   : > { %v1546_v38 = vpop.f32.mrf.mxu3 }
 0x32d   : > { %v5612_v44 = vadd.f32 %v1546_v38, %v5318_v17  ;;  %v5627_v17 = vpop.f32.mrf.mxu2  ;;  %v2308_v38 = vld [vmem:[#allocation2 + $0x12f] sm:$0xff] }
 0x32f   : > { %6542 = vst [vmem:[#allocation78_spill] sm:$0xff] %v5612_v44 }
 0x334   : > { %v1548_v35 = vpop.f32.mrf.mxu3 }
 0x335   : > { %v5619_v16 = vadd.f32 %v1548_v35, %v5330_v9  ;;  %v5632_v9 = vpop.f32.mrf.mxu1  ;;  %v5634_v32 = vpop.f32.mrf.mxu2 }
 0x337   : > { %6543 = vst [vmem:[#allocation79_spill] sm:$0xff] %v5619_v16 }
 0x339   : > { %2443 = vmatmul.bf16.gmra.mxu3 %v2331_v13  ;;  %2939 = vmatmul.bf16.gmra.mxu1 %v5372_v52  ;;  %v2332_v13 = vpack.c.bf16 %v2308_v38, %v2307_v53  ;;  %v2309_v53 = vld [vmem:[#allocation2 + $0x147] sm:$0xff] }
 0x33c   : > { %v1551_v10 = vpop.f32.mrf.mxu3 }
 0x33d   : > { %v5630_v0 = vadd.f32 %v1551_v10, %v5338_v20  ;;  %v5640_v52 = vpop.f32.mrf.mxu1  ;;  %v5645_v10 = vpop.f32.mrf.mxu2 }
 0x33f   : > { %6544 = vst [vmem:[#allocation80_spill] sm:$0xff] %v5630_v0  ;;  %v6547_v0 = vld [vmem:[#allocation5_spill] sm:$0xff] }
 0x340   : > { %v1794_v16 = vadd.f32 %v6547_v0, %v5401_v36  ;;  %v6552_v36 = vld [vmem:[#allocation6_spill] sm:$0xff] }
 0x344   : > { %v1553_v19 = vpop.f32.mrf.mxu3 }
 0x345   : > { %v5637_v35 = vadd.f32 %v1553_v19, %v5353_v46  ;;  %v6548_v46 = vld [vmem:[#allocation3_spill] sm:$0xff]  ;;  %v6549_v19 = vld [vmem:[#allocation4_spill] sm:$0xff]  ;;  %v5658_v50 = vpop.f32.mrf.mxu2 }
 0x347   : > { %6545 = vst [vmem:[#allocation81_spill] sm:$0xff] %v5637_v35  ;;  %v1283_v35 = vadd.f32 %v6549_v19, %v6548_v46 }
 0x349   : > { %2448 = vmatmul.bf16.gmra.mxu3 %v2332_v13  ;;  %2944 = vmatmul.bf16.gmra.mxu1 %v5403_v11  ;;  %v5654_v11 = vpop.f32.mrf.mxu1  ;;  %v1562_v13 = vadd.f32 %v5411_v18, %v1283_v35  ;;  %v6555_v35 = vld [vmem:[#allocation7_spill] sm:$0xff] }
 0x34b   : > { %v1795_v0 = vadd.f32 %v6552_v36, %v1562_v13  ;;  %v2311_v36 = vld [vmem:[#allocation2 + $0x167] sm:$0xff] }
 0x34c   : > { %v1556_v4 = vpop.f32.mrf.mxu3 }
 0x34d   : > { %v5643_v20 = vadd.f32 %v1556_v4, %v5365_v59  ;;  %v2333_v59 = vpack.c.bf16 %v2310_v15, %v2309_v53  ;;  %v6551_v4 = vld [vmem:[#allocation20_spill] sm:$0xff]  ;;  %v2028_v18 = vadd.f32 %v6554_v37, %v1795_v0  ;;  %v1796_v53 = vadd.f32 %v6555_v35, %v5423_v45  ;;  %v5683_v0 = vld [vmem:[%s6458_s6] ss:$0 sm:$0xff] }
 0x34e   : > { %v6558_v35 = vld [vmem:[#allocation8_spill] sm:$0xff] }
 0x34f   : > { %6546 = vst [vmem:[#allocation82_spill] sm:$0xff] %v5643_v20  ;;  %v2027_v20 = vadd.f32 %v6551_v4, %v1794_v16  ;;  %v5669_v16 = vpop.f32.mrf.mxu2  ;;  %v2312_v4 = vld [vmem:[#allocation2 + $0x16f] sm:$0xff] }
 0x351   : > { %v2260_v46 = vadd.f32 %v6553_v12, %v2027_v20  ;;  %v5667_v15 = vpop.f32.mrf.mxu1  ;;  %v5676_v12 = vld [vmem:[%s6457_s5] ss:$0 sm:$0xff] }
 0x352   : > { %v6556_v20 = vld [vmem:[#allocation35_spill] sm:$0xff] }
 0x353   : > { %v2261_v13 = vadd.f32 %v6556_v20, %v2028_v18 }
 0x354   : > { %v1558_v44 = vpop.f32.mrf.mxu3 }
 0x355   : > { %v5652_v38 = vadd.f32 %v1558_v44, %v5383_v3  ;;  %v5663_v44 = vpop.f32.mrf.mxu0 }
 0x357   : > { %6550 = vst [vmem:[#allocation5_spill] sm:$0xff] %v5652_v38 }
 0x359   : > { %2453 = vmatmul.bf16.gmra.mxu3 %v2333_v59  ;;  %2949 = vmatmul.bf16.gmra.mxu1 %v5425_v31  ;;  %v5690_v18 = vpop.f32.mrf.mxu1 }
 0x35c   : > { %v2414_v19 = vpop.f32.mrf.mxu3 }
 0x35d   : > { %v2494_v3 = vadd.f32 %v2414_v19, %v2260_v46  ;;  %v5687_v19 = vpop.f32.mrf.mxu0 }
 0x35f   : > { %v2727_v38 = vadd.f32 %v5494_v41, %v2494_v3 }
 0x361   : > { %v2960_v31 = vadd.f32 %v2880_v27, %v2727_v38  ;;  %v2334_v27 = vpack.c.bf16 %v2312_v4, %v2311_v36  ;;  %v6557_v38 = vld [vmem:[#allocation23_spill] sm:$0xff] }
 0x362   : > { %v2029_v46 = vadd.f32 %v6557_v38, %v1796_v53 }
 0x363   : > { %v2996_v37 = vmul.f32 %v5676_v12, %v2960_v31  ;;  %v1797_v31 = vadd.f32 %v6558_v35, %v5433_v49  ;;  %v5708_v35 = vpop.f32.mrf.mxu1 }
 0x364   : > { %v2416_v59 = vpop.f32.mrf.mxu3 }
 0x365   : > { %v2495_v41 = vadd.f32 %v2416_v59, %v2261_v13  ;;  %v3032_v20 = vadd.f32 %v5683_v0, %v2996_v37  ;;  %v2262_v59 = vadd.f32 %v5342_v23, %v2029_v46  ;;  %v5702_v49 = vpop.f32.mrf.mxu0  ;;  %v6560_v37 = vld [vmem:[#allocation9_spill] sm:$0xff] }
 0x367   : > { %v2728_v45 = vadd.f32 %v5503_v57, %v2495_v41  ;;  %v5697_v57 = vpop.f32.mrf.mxu2  ;;  %v3064_v36 = vmax.f32 %v3032_v20, 0.0  ;;  %v2314_v20 = vld [vmem:[#allocation2 + $0x18f] sm:$0xff] }
 0x369   : > { %v2961_v3 = vadd.f32 %v5614_v28, %v2728_v45  ;;  %2458 = vmatmul.bf16.gmra.mxu3 %v2334_v27  ;;  %v6559_v27 = vld [vmem:[#allocation25_spill] sm:$0xff] }
 0x36a   : > { %v2030_v38 = vadd.f32 %v6559_v27, %v1797_v31 }
 0x36b   : > { %v2997_v13 = vmul.f32 %v5676_v12, %v2961_v3  ;;  %v1798_v3 = vadd.f32 %v6560_v37, %v5446_v25 }
 0x36c   : > { %v2419_v4 = vpop.f32.mrf.mxu3  ;;  %v2263_v46 = vadd.f32 %v5357_v55, %v2030_v38  ;;  %v6562_v55 = vld [vmem:[#allocation10_spill] sm:$0xff] }
 0x36d   : > { %v3033_v53 = vadd.f32 %v5683_v0, %v2997_v13  ;;  %v2496_v41 = vadd.f32 %v2419_v4, %v2262_v59  ;;  %v5721_v37 = vpop.f32.mrf.mxu0 }
 0x36f   : > { %v3065_v28 = vmax.f32 %v3033_v53, 0.0  ;;  %v2729_v45 = vadd.f32 %v5515_v63, %v2496_v41  ;;  %v5710_v4 = vpop.f32.mrf.mxu2  ;;  %v2313_v63 = vld [vmem:[#allocation2 + $0x187] sm:$0xff] }
 0x370   : > { %v2335_v41 = vpack.c.bf16 %v2314_v20, %v2313_v63 }
 0x371   : > { %v3096_v58 = vpack.c.bf16 %v3065_v28, %v3064_v36  ;;  %v2962_v23 = vadd.f32 %v5621_v22, %v2729_v45  ;;  %v6561_v36 = vld [vmem:[#allocation27_spill] sm:$0xff] }
 0x372   : > { %v2031_v25 = vadd.f32 %v6561_v36, %v1798_v3  ;;  %v6563_v45 = vld [vmem:[#allocation43_spill] sm:$0xff] }
 0x373   : > { %3184 = vmatmul.bf16.vlgmr.msra.gmra.mxu2 %v3096_v58  ;;  %v2998_v31 = vmul.f32 %v5676_v12, %v2962_v23  ;;  %v1799_v58 = vadd.f32 %v6562_v55, %v5456_v54 }
 0x374   : > { %v2421_v13 = vpop.f32.mrf.mxu3  ;;  %v2264_v27 = vadd.f32 %v6563_v45, %v2031_v25  ;;  %v6566_v25 = vld [vmem:[#allocation46_spill] sm:$0xff] }
 0x375   : > { %v2497_v59 = vadd.f32 %v2421_v13, %v2263_v46  ;;  %v3034_v38 = vadd.f32 %v5683_v0, %v2998_v31  ;;  %v5724_v13 = vpop.f32.mrf.mxu1 }
 0x377   : > { %v2730_v53 = vadd.f32 %v5525_v33, %v2497_v59  ;;  %v3066_v3 = vmax.f32 %v3034_v38, 0.0  ;;  %v6564_v59 = vld [vmem:[#allocation29_spill] sm:$0xff]  ;;  %v5728_v63 = vpop.f32.mrf.mxu2 }
 0x378   : > { %v2032_v54 = vadd.f32 %v6564_v59, %v1799_v58 }
 0x379   : > { %v2963_v22 = vadd.f32 %v5632_v9, %v2730_v53  ;;  %2463 = vmatmul.bf16.gmra.mxu3 %v2335_v41  ;;  %v6565_v41 = vld [vmem:[#allocation11_spill] sm:$0xff] }
 0x37a   : > { %v1800_v31 = vadd.f32 %v6565_v41, %v5464_v8 }
 0x37b   : > { %v2999_v28 = vmul.f32 %v5676_v12, %v2963_v22  ;;  %v2265_v22 = vadd.f32 %v6566_v25, %v2032_v54  ;;  %v6569_v54 = vld [vmem:[#allocation49_spill] sm:$0xff] }
 0x37c   : > { %v2424_v23 = vpop.f32.mrf.mxu3 }
 0x37d   : > { %v2498_v46 = vadd.f32 %v2424_v23, %v2264_v27  ;;  %v3035_v33 = vadd.f32 %v5683_v0, %v2999_v28  ;;  %v2316_v28 = vld [vmem:[#allocation2 + $0x1af] sm:$0xff]  ;;  %v5734_v27 = vpop.f32.mrf.mxu0 }
 0x37f   : > { %v2731_v9 = vadd.f32 %v5534_v2, %v2498_v46  ;;  %v3067_v20 = vmax.f32 %v3035_v33, 0.0  ;;  %v2315_v2 = vld [vmem:[#allocation2 + $0x1a7] sm:$0xff]  ;;  %v6567_v46 = vld [vmem:[#allocation30_spill] sm:$0xff] }
 0x380   : > { %v2336_v23 = vpack.c.bf16 %v2316_v28, %v2315_v2  ;;  %v2033_v33 = vadd.f32 %v6567_v46, %v1800_v31 }
 0x381   : > { %v3097_v53 = vpack.c.bf16 %v3067_v20, %v3066_v3  ;;  %v2964_v36 = vadd.f32 %v5640_v52, %v2731_v9  ;;  %v5739_v3 = vpop.f32.mrf.mxu1  ;;  %v5742_v52 = vpop.f32.mrf.mxu2  ;;  %v6568_v9 = vld [vmem:[#allocation12_spill] sm:$0xff] }
 0x382   : > { %v1801_v20 = vadd.f32 %v6568_v9, %v5471_v56  ;;  %v2318_v9 = vld [vmem:[#allocation2 + $0x1cf] sm:$0xff] }
 0x383   : > { %3189 = vmatmul.bf16.gmra.mxu2 %v3097_v53  ;;  %v3000_v38 = vmul.f32 %v5676_v12, %v2964_v36  ;;  %v2266_v53 = vadd.f32 %v6569_v54, %v2033_v33 }
 0x384   : > { %v2426_v55 = vpop.f32.mrf.mxu3 }
 0x385   : > { %v2499_v45 = vadd.f32 %v2426_v55, %v2265_v22  ;;  %v3036_v41 = vadd.f32 %v5683_v0, %v3000_v38  ;;  %v6570_v55 = vld [vmem:[#allocation33_spill] sm:$0xff] }
 0x386   : > { %v2034_v28 = vadd.f32 %v6570_v55, %v1801_v20 }
 0x387   : > { %v2732_v58 = vadd.f32 %v5546_v62, %v2499_v45  ;;  %v3068_v22 = vmax.f32 %v3036_v41, 0.0  ;;  %v5752_v45 = vpop.f32.mrf.mxu0  ;;  %v6572_v41 = vld [vmem:[#allocation36_spill] sm:$0xff] }
 0x388   : > { %v2267_v46 = vadd.f32 %v5429_v43, %v2034_v28  ;;  %v6573_v43 = vld [vmem:[#allocation14_spill] sm:$0xff] }
 0x389   : > { %v2965_v8 = vadd.f32 %v5654_v11, %v2732_v58  ;;  %2468 = vmatmul.bf16.gmra.mxu3 %v2336_v23  ;;  %v5754_v56 = vpop.f32.mrf.mxu1  ;;  %v6571_v58 = vld [vmem:[#allocation13_spill] sm:$0xff]  ;;  %v5760_v33 = vpop.f32.mrf.mxu2 }
 0x38a   : > { %v1802_v23 = vadd.f32 %v6571_v58, %v5482_v60 }
 0x38b   : > { %v3001_v59 = vmul.f32 %v5676_v12, %v2965_v8  ;;  %v2317_v8 = vld [vmem:[#allocation2 + $0x1c7] sm:$0xff] }
 0x38c   : > { %v2429_v62 = vpop.f32.mrf.mxu3 }
 0x38d   : > { %v2500_v36 = vadd.f32 %v2429_v62, %v2266_v53  ;;  %v3037_v31 = vadd.f32 %v5683_v0, %v3001_v59  ;;  %v2337_v53 = vpack.c.bf16 %v2318_v9, %v2317_v8  ;;  %v2035_v62 = vadd.f32 %v6572_v41, %v1802_v23 }
 0x38f   : > { %v2733_v25 = vadd.f32 %v5663_v44, %v2500_v36  ;;  %v3069_v11 = vmax.f32 %v3037_v31, 0.0  ;;  %v1803_v36 = vadd.f32 %v6573_v43, %v5492_v7 }
 0x391   : > { %v3098_v2 = vpack.c.bf16 %v3069_v11, %v3068_v22  ;;  %v2966_v38 = vadd.f32 %v5667_v15, %v2733_v25  ;;  %v5766_v15 = vpop.f32.mrf.mxu0  ;;  %v2268_v25 = vadd.f32 %v5581_v51, %v2035_v62  ;;  %v5773_v11 = vpop.f32.mrf.mxu1 }
 0x393   : > { %3194 = vmatmul.bf16.gmra.mxu2 %v3098_v2  ;;  %v3002_v20 = vmul.f32 %v5676_v12, %v2966_v38  ;;  %v5776_v2 = vpop.f32.mrf.mxu2  ;;  %v6574_v38 = vld [vmem:[#allocation38_spill] sm:$0xff] }
 0x394   : > { %v2431_v44 = vpop.f32.mrf.mxu3  ;;  %v2036_v7 = vadd.f32 %v6574_v38, %v1803_v36  ;;  %v6576_v36 = vld [vmem:[#allocation40_spill] sm:$0xff] }
 0x395   : > { %v2501_v59 = vadd.f32 %v2431_v44, %v2267_v46  ;;  %v3038_v22 = vadd.f32 %v5683_v0, %v3002_v20  ;;  %v6575_v44 = vld [vmem:[#allocation15_spill] sm:$0xff] }
 0x396   : > { %v1804_v51 = vadd.f32 %v6575_v44, %v5501_v42  ;;  %v2269_v9 = vadd.f32 %v5589_v21, %v2036_v7 }
 0x397   : > { %v2734_v54 = vadd.f32 %v5687_v19, %v2501_v59  ;;  %v3070_v58 = vmax.f32 %v3038_v22, 0.0  ;;  %v2789_v22 = vld [vmem:[#allocation2 + $0x229] sm:$0xff] }
 0x398   : > { %v2037_v42 = vadd.f32 %v6576_v36, %v1804_v51  ;;  %v2321_v36 = vld [vmem:[#allocation2 + $0x207] sm:$0xff] }
 0x399   : > { %v2967_v60 = vadd.f32 %v5690_v18, %v2734_v54  ;;  %2473 = vmatmul.bf16.gmra.mxu3 %v2337_v53  ;;  %v5784_v59 = vpop.f32.mrf.mxu0  ;;  %v2319_v54 = vld [vmem:[#allocation2 + $0x1e7] sm:$0xff]  ;;  %v2320_v53 = vld [vmem:[#allocation2 + $0x1ef] sm:$0xff] }
 0x39a   : > { %v2338_v43 = vpack.c.bf16 %v2320_v53, %v2319_v54 }
 0x39b   : > { %v3003_v31 = vmul.f32 %v5676_v12, %v2967_v60 }
 0x39c   : > { %v2434_v19 = vpop.f32.mrf.mxu3 }
 0x39d   : > { %v2502_v55 = vadd.f32 %v2434_v19, %v2268_v25  ;;  %v3039_v28 = vadd.f32 %v5683_v0, %v3003_v31  ;;  %v5791_v31 = vpop.f32.mrf.mxu2  ;;  %v2790_v19 = vld [vmem:[#allocation2 + $0x231] sm:$0xff] }
 0x39f   : > { %v2735_v18 = vadd.f32 %v5702_v49, %v2502_v55  ;;  %v3071_v23 = vmax.f32 %v3039_v28, 0.0  ;;  %v5786_v49 = vpop.f32.mrf.mxu1  ;;  %v2806_v55 = vpack.c.bf16 %v2790_v19, %v2789_v22  ;;  %v6577_v28 = vld [vmem:[#allocation16_spill] sm:$0xff]  ;;  %v6580_v22 = vld [vmem:[#allocation45_spill] sm:$0xff] }
 0x3a1   : > { %v3099_v46 = vpack.c.bf16 %v3071_v23, %v3070_v58  ;;  %v2968_v8 = vadd.f32 %v5708_v35, %v2735_v18  ;;  %v4563_v35 = vld [vmem:[#allocation2] sm:$0xff]  ;;  %v1805_v18 = vadd.f32 %v6577_v28, %v5506_v24  ;;  %2954 = vmatmul.bf16.gmra.mxu1 %v2806_v55 }
 0x3a2   : > { %v2573_v25 = vpack.c.bf16 %v4563_v35, %v4563_v35 }
 0x3a3   : > { %3199 = vmatmul.bf16.gmra.mxu2 %v3099_v46  ;;  %v3004_v62 = vmul.f32 %v5676_v12, %v2968_v8 }
 0x3a4   : > { %v2436_v20 = vpop.f32.mrf.mxu3  ;;  %2721 = vmatmul.bf16.gmra.mxu0 %v2573_v25 }
 0x3a5   : > { %v2503_v41 = vadd.f32 %v2436_v20, %v2269_v9  ;;  %v3040_v23 = vadd.f32 %v5683_v0, %v3004_v62  ;;  %v6578_v9 = vld [vmem:[#allocation42_spill] sm:$0xff]  ;;  %v5806_v53 = vpop.f32.mrf.mxu2 }
 0x3a6   : > { %v2038_v20 = vadd.f32 %v6578_v9, %v1805_v18 }
 0x3a7   : > { %v2736_v60 = vadd.f32 %v5721_v37, %v2503_v41  ;;  %v2270_v37 = vadd.f32 %v5600_v47, %v2037_v42  ;;  %v3072_v51 = vmax.f32 %v3040_v23, 0.0  ;;  %v5804_v24 = vpop.f32.mrf.mxu1  ;;  %v6579_v47 = vld [vmem:[#allocation17_spill] sm:$0xff] }
 0x3a8   : > { %v1806_v41 = vadd.f32 %v6579_v47, %v5518_v39 }
 0x3a9   : > { %v2969_v21 = vadd.f32 %v5724_v13, %v2736_v60  ;;  %2478 = vmatmul.bf16.gmra.mxu3 %v2338_v43  ;;  %v5800_v13 = vpop.f32.mrf.mxu0  ;;  %v2271_v60 = vadd.f32 %v5608_v40, %v2038_v20  ;;  %v2323_v20 = vld [vmem:[#allocation2 + $0x227] sm:$0xff] }
 0x3aa   : > { %v2039_v19 = vadd.f32 %v6580_v22, %v1806_v41 }
 0x3ab   : > { %v3005_v58 = vmul.f32 %v5676_v12, %v2969_v21 }
 0x3ac   : > { %v2439_v38 = vpop.f32.mrf.mxu3 }
 0x3ad   : > { %v2504_v7 = vadd.f32 %v2439_v38, %v2270_v37  ;;  %v3041_v46 = vadd.f32 %v5683_v0, %v3005_v58  ;;  %v2272_v58 = vadd.f32 %v5616_v6, %v2039_v19  ;;  %v5821_v23 = vpop.f32.mrf.mxu2  ;;  %v6583_v6 = vld [vmem:[#allocation19_spill] sm:$0xff] }
 0x3ae   : > { %v1808_v47 = vadd.f32 %v6583_v6, %v5532_v29  ;;  %v6584_v29 = vld [vmem:[#allocation22_spill] sm:$0xff] }
 0x3af   : > { %v2737_v44 = vadd.f32 %v5734_v27, %v2504_v7  ;;  %v3073_v8 = vmax.f32 %v3041_v46, 0.0  ;;  %v2322_v27 = vld [vmem:[#allocation2 + $0x20f] sm:$0xff]  ;;  %v2917_v39 = vpop.f32.mrf.mxu1 }
 0x3b0   : > { %v2339_v21 = vpack.c.bf16 %v2322_v27, %v2321_v36 }
 0x3b1   : > { %v3100_v54 = vpack.c.bf16 %v3073_v8, %v3072_v51  ;;  %v2970_v62 = vadd.f32 %v5739_v3, %v2737_v44  ;;  %v2684_v55 = vpop.f32.mrf.mxu0  ;;  %v6581_v3 = vld [vmem:[#allocation18_spill] sm:$0xff]  ;;  %v6582_v51 = vld [vmem:[#allocation48_spill] sm:$0xff] }
 0x3b2   : > { %v1807_v18 = vadd.f32 %v6581_v3, %v5523_v1 }
 0x3b3   : > { %3204 = vmatmul.bf16.gmra.mxu2 %v3100_v54  ;;  %v3006_v35 = vmul.f32 %v5676_v12, %v2970_v62  ;;  %v2324_v54 = vld [vmem:[#allocation2 + $0x22f] sm:$0xff] }
 0x3b4   : > { %v2441_v43 = vpop.f32.mrf.mxu3  ;;  %v2040_v8 = vadd.f32 %v6582_v51, %v1807_v18 }
 0x3b5   : > { %v2505_v42 = vadd.f32 %v2441_v43, %v2271_v60  ;;  %v3042_v37 = vadd.f32 %v5683_v0, %v3006_v35  ;;  %v5830_v27 = vpop.f32.mrf.mxu2 }
 0x3b6   : > { %v2273_v62 = vadd.f32 %v5627_v17, %v2040_v8 }
 0x3b7   : > { %v2738_v25 = vadd.f32 %v5752_v45, %v2505_v42  ;;  %v2920_v60 = vpop.f32.mrf.mxu1 }
 0x3b9   : > { %v2971_v28 = vadd.f32 %v5754_v56, %v2738_v25  ;;  %2483 = vmatmul.bf16.gmra.mxu3 %v2339_v21  ;;  %v3074_v56 = vmax.f32 %v3042_v37, 0.0  ;;  %v2687_v1 = vpop.f32.mrf.mxu0  ;;  %v2041_v25 = vadd.f32 %v5427_v48, %v1808_v47  ;;  %v6587_v47 = vld [vmem:[#allocation26_spill] sm:$0xff] }
 0x3bb   : > { %v3007_v40 = vmul.f32 %v5676_v12, %v2971_v28  ;;  %v2274_v22 = vadd.f32 %v5634_v32, %v2041_v25 }
 0x3bc   : > { %v2444_v45 = vpop.f32.mrf.mxu3 }
 0x3bd   : > { %v2506_v38 = vadd.f32 %v2444_v45, %v2272_v58  ;;  %v3043_v7 = vadd.f32 %v5683_v0, %v3007_v40  ;;  %v5844_v45 = vpop.f32.mrf.mxu2 }
 0x3bf   : > { %v2739_v46 = vadd.f32 %v5766_v15, %v2506_v38  ;;  %v3075_v44 = vmax.f32 %v3043_v7, 0.0  ;;  %v2340_v15 = vpack.c.bf16 %v2324_v54, %v2323_v20  ;;  %v6585_v38 = vld [vmem:[#allocation24_spill] sm:$0xff] }
 0x3c0   : > { %v1810_v32 = vadd.f32 %v6585_v38, %v5549_v34  ;;  %v1811_v34 = vadd.f32 %v6587_v47, %v5554_v26  ;;  %v6589_v26 = vld [vmem:[#allocation28_spill] sm:$0xff]  ;;  %v4413_v38 = vld [vmem:[%s6462_s10 + $0x38] sm:$0xff] }
 0x3c1   : > { %v3101_v9 = vpack.c.bf16 %v3075_v44, %v3074_v56  ;;  %v2972_v41 = vadd.f32 %v5773_v11, %v2739_v46  ;;  %v1809_v11 = vadd.f32 %v6584_v29, %v5539_v14  ;;  %v2689_v28 = vpop.f32.mrf.mxu0  ;;  %3448 = vmatpush.bf16.msrb.mxu3 %v4413_v38 }
 0x3c3   : > { %3209 = vmatmul.bf16.gmra.mxu2 %v3101_v9  ;;  %v3008_v42 = vmul.f32 %v5676_v12, %v2972_v41  ;;  %v2042_v37 = vadd.f32 %v5440_v5, %v1809_v11  ;;  %v6586_v9 = vld [vmem:[#allocation53_spill] sm:$0xff]  ;;  %v1812_v11 = vadd.f32 %v6589_v26, %v5560_v30 }
 0x3c4   : > { %v2446_v43 = vpop.f32.mrf.mxu3  ;;  %v2043_v20 = vadd.f32 %v6586_v9, %v1810_v32  ;;  %v6593_v9 = vld [vmem:[#allocation69_spill] sm:$0xff] }
 0x3c5   : > { %v2507_v36 = vadd.f32 %v2446_v43, %v2273_v62  ;;  %v3044_v19 = vadd.f32 %v5683_v0, %v3008_v42  ;;  %v2275_v46 = vadd.f32 %v5645_v10, %v2042_v37  ;;  %v5852_v6 = vpop.f32.mrf.mxu2  ;;  %v6591_v37 = vld [vmem:[#allocation31_spill] sm:$0xff] }
 0x3c6   : > { %v2276_v41 = vadd.f32 %v5658_v50, %v2043_v20  ;;  %v6594_v20 = vld [vmem:[#allocation34_spill] sm:$0xff] }
 0x3c7   : > { %v2740_v35 = vadd.f32 %v5784_v59, %v2507_v36  ;;  %v2922_v59 = vpop.f32.mrf.mxu1  ;;  %v3076_v58 = vmax.f32 %v3044_v19, 0.0 }
 0x3c9   : > { %v2973_v21 = vadd.f32 %v5786_v49, %v2740_v35  ;;  %2488 = vmatmul.bf16.gmra.mxu3 %v2340_v15  ;;  %v2692_v51 = vpop.f32.mrf.mxu0  ;;  %v6588_v35 = vld [vmem:[#allocation55_spill] sm:$0xff] }
 0x3cb   : > { %v3009_v17 = vmul.f32 %v5676_v12, %v2973_v21 }
 0x3cc   : > { %v2449_v3 = vpop.f32.mrf.mxu3 }
 0x3cd   : > { %v2508_v18 = vadd.f32 %v2449_v3, %v2274_v22  ;;  %v3045_v40 = vadd.f32 %v5683_v0, %v3009_v17  ;;  %v5864_v22 = vpop.f32.mrf.mxu2 }
 0x3cf   : > { %v2741_v48 = vadd.f32 %v5800_v13, %v2508_v18  ;;  %v3077_v49 = vmax.f32 %v3045_v40, 0.0  ;;  %v2925_v5 = vpop.f32.mrf.mxu1  ;;  %v6590_v40 = vld [vmem:[#allocation57_spill] sm:$0xff] }
 0x3d1   : > { %v3102_v14 = vpack.c.bf16 %v3077_v49, %v3076_v58  ;;  %v2974_v7 = vadd.f32 %v5804_v24, %v2741_v48  ;;  %v2694_v25 = vpop.f32.mrf.mxu0  ;;  %v2045_v48 = vadd.f32 %v6590_v40, %v1812_v11 }
 0x3d3   : > { %3214 = vmatmul.bf16.gmra.mxu2 %v3102_v14  ;;  %v3010_v13 = vmul.f32 %v5676_v12, %v2974_v7  ;;  %v1813_v14 = vadd.f32 %v6591_v37, %v5565_v61  ;;  %v6599_v37 = vld [vmem:[#allocation72_spill] sm:$0xff] }
 0x3d4   : > { %v2451_v56 = vpop.f32.mrf.mxu3 }
 0x3d5   : > { %v2509_v44 = vadd.f32 %v2451_v56, %v2275_v46  ;;  %v3046_v10 = vadd.f32 %v5683_v0, %v3010_v13  ;;  %v6592_v13 = vld [vmem:[#allocation59_spill] sm:$0xff] }
 0x3d7   : > { %v2742_v8 = vadd.f32 %v2684_v55, %v2509_v44  ;;  %v3078_v15 = vmax.f32 %v3046_v10, 0.0  ;;  %v2927_v29 = vpop.f32.mrf.mxu1 }
 0x3d9   : > { %v2975_v54 = vadd.f32 %v2917_v39, %v2742_v8  ;;  %v2044_v39 = vadd.f32 %v6588_v35, %v1811_v34  ;;  %v2697_v49 = vpop.f32.mrf.mxu0  ;;  %v2046_v8 = vadd.f32 %v6592_v13, %v1813_v14  ;;  %v6596_v35 = vld [vmem:[#allocation70_spill] sm:$0xff]  ;;  %v6600_v14 = vld [vmem:[#allocation39_spill] sm:$0xff] }
 0x3db   : > { %v3011_v24 = vmul.f32 %v5676_v12, %v2975_v54  ;;  %v2277_v50 = vadd.f32 %v5669_v16, %v2044_v39  ;;  %v1814_v54 = vadd.f32 %v6594_v20, %v6593_v9  ;;  %v2279_v34 = vadd.f32 %v5710_v4, %v2046_v8  ;;  %v6597_v39 = vld [vmem:[#allocation37_spill] sm:$0xff]  ;;  %v6602_v8 = vld [vmem:[#allocation74_spill] sm:$0xff] }
 0x3dc   : > { %v2454_v62 = vpop.f32.mrf.mxu3 }
 0x3dd   : > { %v2510_v43 = vadd.f32 %v2454_v62, %v2276_v41  ;;  %v3047_v36 = vadd.f32 %v5683_v0, %v3011_v24 }
 0x3df   : > { %v2743_v55 = vadd.f32 %v2687_v1, %v2510_v43  ;;  %v3079_v42 = vmax.f32 %v3047_v36, 0.0  ;;  %v2930_v32 = vpop.f32.mrf.mxu1 }
 0x3e1   : > { %v3103_v21 = vpack.c.bf16 %v3079_v42, %v3078_v15  ;;  %v2976_v17 = vadd.f32 %v2920_v60, %v2743_v55  ;;  %v2278_v60 = vadd.f32 %v5697_v57, %v2045_v48  ;;  %v2699_v24 = vpop.f32.mrf.mxu0  ;;  %v6595_v55 = vld [vmem:[#allocation60_spill] sm:$0xff] }
 0x3e2   : > { %v2047_v15 = vadd.f32 %v6595_v55, %v1814_v54  ;;  %v4412_v54 = vld [vmem:[%s6462_s10 + $0x30] sm:$0xff] }
 0x3e3   : > { %3219 = vmatmul.bf16.gmra.mxu2 %v3103_v21  ;;  %v3012_v1 = vmul.f32 %v5676_v12, %v2976_v17  ;;  %v1815_v21 = vadd.f32 %v6597_v39, %v6596_v35  ;;  %3449 = vmatpush.bf16.msrb.mxu3 %v4412_v54  ;;  %v6606_v35 = vld [vmem:[#allocation44_spill] sm:$0xff] }
 0x3e4   : > { %v2456_v19 = vpop.f32.mrf.mxu3  ;;  %v2280_v26 = vadd.f32 %v5728_v63, %v2047_v15 }
 0x3e5   : > { %v2511_v3 = vadd.f32 %v2456_v19, %v2277_v50  ;;  %v3048_v16 = vadd.f32 %v5683_v0, %v3012_v1 }
 0x3e7   : > { %v2744_v18 = vadd.f32 %v2689_v28, %v2511_v3  ;;  %v3080_v61 = vmax.f32 %v3048_v16, 0.0  ;;  %v2932_v62 = vpop.f32.mrf.mxu1 }
 0x3e9   : > { %v2977_v58 = vadd.f32 %v2922_v59, %v2744_v18  ;;  %v5877_v59 = vpop.f32.mrf.mxu2  ;;  %v2702_v19 = vpop.f32.mrf.mxu0 }
 0x3eb   : > { %v3013_v30 = vmul.f32 %v5676_v12, %v2977_v58 }
 0x3ec   : > { %v2459_v7 = vpop.f32.mrf.mxu3 }
 0x3ed   : > { %v2512_v28 = vadd.f32 %v2459_v7, %v2278_v60  ;;  %v3049_v46 = vadd.f32 %v5683_v0, %v3013_v30  ;;  %v1816_v30 = vadd.f32 %v6600_v14, %v6599_v37 }
 0x3ef   : > { %v2745_v56 = vadd.f32 %v2692_v51, %v2512_v28  ;;  %v3081_v44 = vmax.f32 %v3049_v46, 0.0  ;;  %v2935_v48 = vpop.f32.mrf.mxu1  ;;  %v6601_v46 = vld [vmem:[#allocation62_spill] sm:$0xff] }
 0x3f1   : > { %v3104_v57 = vpack.c.bf16 %v3081_v44, %v3080_v61  ;;  %v2978_v47 = vadd.f32 %v2925_v5, %v2745_v56  ;;  %v2049_v56 = vadd.f32 %v6601_v46, %v1816_v30  ;;  %v2704_v61 = vpop.f32.mrf.mxu0 }
 0x3f3   : > { %3224 = vmatmul.bf16.gmra.mxu2 %v3104_v57  ;;  %v3014_v51 = vmul.f32 %v5676_v12, %v2978_v47  ;;  %v6603_v57 = vld [vmem:[#allocation41_spill] sm:$0xff]  ;;  %v2282_v20 = vadd.f32 %v5760_v33, %v2049_v56 }
 0x3f4   : > { %v2461_v41 = vpop.f32.mrf.mxu3  ;;  %v1817_v9 = vadd.f32 %v6603_v57, %v6602_v8  ;;  %v6610_v56 = vld [vmem:[#allocation65_spill] sm:$0xff]  ;;  %v6612_v8 = vld [vmem:[#allocation50_spill] sm:$0xff] }
 0x3f5   : > { %v2513_v10 = vadd.f32 %v2461_v41, %v2279_v34  ;;  %v3050_v4 = vadd.f32 %v5683_v0, %v3014_v51 }
 0x3f6   : > { %v5883_v43 = vpop.f32.mrf.mxu2 }
 0x3f7   : > { %v2746_v36 = vadd.f32 %v2694_v25, %v2513_v10  ;;  %v3082_v1 = vmax.f32 %v3050_v4, 0.0  ;;  %v2937_v13 = vpop.f32.mrf.mxu1 }
 0x3f9   : > { %v2979_v42 = vadd.f32 %v2927_v29, %v2746_v36  ;;  %v6598_v29 = vld [vmem:[#allocation61_spill] sm:$0xff]  ;;  %v6604_v36 = vld [vmem:[#allocation63_spill] sm:$0xff]  ;;  %v2707_v33 = vpop.f32.mrf.mxu0 }
 0x3fa   : > { %v2048_v40 = vadd.f32 %v6598_v29, %v1815_v21  ;;  %v2050_v55 = vadd.f32 %v6604_v36, %v1817_v9  ;;  %v6608_v29 = vld [vmem:[#allocation77_spill] sm:$0xff]  ;;  %v6614_v36 = vld [vmem:[#allocation79_spill] sm:$0xff] }
 0x3fb   : > { %v3015_v5 = vmul.f32 %v5676_v12, %v2979_v42  ;;  %v6605_v42 = vld [vmem:[#allocation76_spill] sm:$0xff] }
 0x3fc   : > { %v2464_v11 = vpop.f32.mrf.mxu3  ;;  %v2281_v60 = vadd.f32 %v5742_v52, %v2048_v40  ;;  %v1818_v39 = vadd.f32 %v6606_v35, %v6605_v42  ;;  %v6609_v40 = vld [vmem:[#allocation47_spill] sm:$0xff]  ;;  %v4411_v35 = vld [vmem:[%s6462_s10 + $0x28] sm:$0xff] }
 0x3fd   : > { %v2514_v17 = vadd.f32 %v2464_v11, %v2280_v26  ;;  %v3051_v50 = vadd.f32 %v5683_v0, %v3015_v5  ;;  %v2283_v5 = vadd.f32 %v5776_v2, %v2050_v55  ;;  %v6615_v55 = vld [vmem:[#allocation51_spill] sm:$0xff]  ;;  %3450 = vmatpush.bf16.msrb.mxu3 %v4411_v35 }
 0x3fe   : > { %v5893_v3 = vpop.f32.mrf.mxu2 }
 0x3ff   : > { %v2747_v25 = vadd.f32 %v2697_v49, %v2514_v17  ;;  %v3083_v18 = vmax.f32 %v3051_v50, 0.0  ;;  %v2940_v26 = vpop.f32.mrf.mxu1 }
 0x401   : > { %v3105_v58 = vpack.c.bf16 %v3083_v18, %v3082_v1  ;;  %v2980_v63 = vadd.f32 %v2930_v32, %v2747_v25  ;;  %v6607_v25 = vld [vmem:[#allocation64_spill] sm:$0xff]  ;;  %v2709_v14 = vpop.f32.mrf.mxu0 }
 0x402   : > { %v2051_v1 = vadd.f32 %v6607_v25, %v1818_v39 }
 0x403   : > { %3229 = vmatmul.bf16.gmra.mxu2 %v3105_v58  ;;  %v3016_v28 = vmul.f32 %v5676_v12, %v2980_v63  ;;  %v1819_v58 = vadd.f32 %v6609_v40, %v6608_v29  ;;  %v6617_v29 = vld [vmem:[#allocation80_spill] sm:$0xff] }
 0x404   : > { %v2466_v16 = vpop.f32.mrf.mxu3  ;;  %v6618_v40 = vld [vmem:[#allocation52_spill] sm:$0xff] }
 0x405   : > { %v2515_v38 = vadd.f32 %v2466_v16, %v2281_v60  ;;  %v3052_v52 = vadd.f32 %v5683_v0, %v3016_v28 }
 0x406   : > { %v5899_v7 = vpop.f32.mrf.mxu2 }
 0x407   : > { %v2748_v49 = vadd.f32 %v2699_v24, %v2515_v38  ;;  %v2942_v16 = vpop.f32.mrf.mxu1 }
 0x409   : > { %v2981_v44 = vadd.f32 %v2932_v62, %v2748_v49  ;;  %v3084_v62 = vmax.f32 %v3052_v52, 0.0  ;;  %v2712_v52 = vpop.f32.mrf.mxu0 }
 0x40b   : > { %v3017_v32 = vmul.f32 %v5676_v12, %v2981_v44 }
 0x40c   : > { %v2469_v47 = vpop.f32.mrf.mxu3 }
 0x40d   : > { %v2516_v34 = vadd.f32 %v2469_v47, %v2282_v20  ;;  %v3053_v24 = vadd.f32 %v5683_v0, %v3017_v32 }
 0x40e   : > { %v5912_v41 = vpop.f32.mrf.mxu2 }
 0x40f   : > { %v2749_v10 = vadd.f32 %v2702_v19, %v2516_v34  ;;  %v3085_v51 = vmax.f32 %v3053_v24, 0.0  ;;  %v6613_v24 = vld [vmem:[#allocation66_spill] sm:$0xff] }
 0x411   : > { %v3106_v15 = vpack.c.bf16 %v3085_v51, %v3084_v62  ;;  %v2982_v21 = vadd.f32 %v2935_v48, %v2749_v10  ;;  %v2284_v48 = vadd.f32 %v5791_v31, %v2051_v1  ;;  %v2945_v62 = vpop.f32.mrf.mxu1  ;;  %v2714_v1 = vpop.f32.mrf.mxu0 }
 0x413   : > { %3234 = vmatmul.bf16.gmra.mxu2 %v3106_v15  ;;  %v3018_v50 = vmul.f32 %v5676_v12, %v2982_v21  ;;  %v1821_v15 = vadd.f32 %v6615_v55, %v6614_v36  ;;  %v6624_v36 = vld [vmem:[#allocation56_spill] sm:$0xff] }
 0x414   : > { %v2471_v4 = vpop.f32.mrf.mxu3 }
 0x415   : > { %v2517_v11 = vadd.f32 %v2471_v4, %v2283_v5  ;;  %v3054_v2 = vadd.f32 %v5683_v0, %v3018_v50 }
 0x416   : > { %v5918_v17 = vpop.f32.mrf.mxu2 }
 0x417   : > { %v2750_v19 = vadd.f32 %v2704_v61, %v2517_v11  ;;  %v3086_v49 = vmax.f32 %v3054_v2, 0.0  ;;  %v2052_v61 = vadd.f32 %v6610_v56, %v1819_v58  ;;  %v1822_v58 = vadd.f32 %v6618_v40, %v6617_v29  ;;  %v6620_v56 = vld [vmem:[#allocation81_spill] sm:$0xff] }
 0x419   : > { %v2983_v18 = vadd.f32 %v2937_v13, %v2750_v19  ;;  %v6611_v13 = vld [vmem:[#allocation78_spill] sm:$0xff]  ;;  %v2285_v9 = vadd.f32 %v5806_v53, %v2052_v61  ;;  %v6616_v19 = vld [vmem:[#allocation67_spill] sm:$0xff] }
 0x41a   : > { %v1820_v57 = vadd.f32 %v6612_v8, %v6611_v13  ;;  %v2054_v25 = vadd.f32 %v6616_v19, %v1821_v15  ;;  %v6621_v61 = vld [vmem:[#allocation54_spill] sm:$0xff] }
 0x41b   : > { %v3019_v37 = vmul.f32 %v5676_v12, %v2983_v18  ;;  %v2947_v18 = vpop.f32.mrf.mxu1 }
 0x41c   : > { %v2474_v30 = vpop.f32.mrf.mxu3  ;;  %v2053_v10 = vadd.f32 %v6613_v24, %v1820_v57  ;;  %v6622_v24 = vld [vmem:[#allocation71_spill] sm:$0xff] }
 0x41d   : > { %v2518_v63 = vadd.f32 %v2474_v30, %v2284_v48  ;;  %v3055_v60 = vadd.f32 %v5683_v0, %v3019_v37  ;;  %v2287_v48 = vadd.f32 %v5830_v27, %v2054_v25  ;;  %v6626_v25 = vld [vmem:[#allocation5_spill] sm:$0xff] }
 0x41e   : > { %v5928_v38 = vpop.f32.mrf.mxu2  ;;  %v2286_v42 = vadd.f32 %v5821_v23, %v2053_v10 }
 0x41f   : > { %v2751_v28 = vadd.f32 %v2707_v33, %v2518_v63  ;;  %v3087_v46 = vmax.f32 %v3055_v60, 0.0 }
 0x421   : > { %v3107_v44 = vpack.c.bf16 %v3087_v46, %v3086_v49  ;;  %v2984_v31 = vadd.f32 %v2940_v26, %v2751_v28  ;;  %v2717_v46 = vpop.f32.mrf.mxu0 }
 0x423   : > { %3239 = vmatmul.bf16.gmra.mxu2 %v3107_v44  ;;  %v3020_v47 = vmul.f32 %v5676_v12, %v2984_v31  ;;  %v1823_v44 = vadd.f32 %v6621_v61, %v6620_v56  ;;  %v2950_v57 = vpop.f32.mrf.mxu1 }
 0x424   : > { %v2476_v32 = vpop.f32.mrf.mxu3 }
 0x425   : > { %v2519_v20 = vadd.f32 %v2476_v32, %v2285_v9  ;;  %v3056_v53 = vadd.f32 %v5683_v0, %v3020_v47  ;;  %v2056_v10 = vadd.f32 %v6622_v24, %v1823_v44 }
 0x426   : > { %v5934_v54 = vpop.f32.mrf.mxu2 }
 0x427   : > { %v2752_v34 = vadd.f32 %v2709_v14, %v2519_v20  ;;  %v3088_v11 = vmax.f32 %v3056_v53, 0.0 }
 0x429   : > { %v2985_v51 = vadd.f32 %v2942_v16, %v2752_v34  ;;  %v6619_v16 = vld [vmem:[#allocation68_spill] sm:$0xff] }
 0x42a   : > { %v2055_v28 = vadd.f32 %v6619_v16, %v1822_v58 }
 0x42b   : > { %v3021_v33 = vmul.f32 %v5676_v12, %v2985_v51  ;;  %v6623_v51 = vld [vmem:[#allocation82_spill] sm:$0xff] }
 0x42c   : > { %v2479_v39 = vpop.f32.mrf.mxu3  ;;  %v2288_v8 = vadd.f32 %v5844_v45, %v2055_v28  ;;  %v1824_v55 = vadd.f32 %v6624_v36, %v6623_v51  ;;  %v2289_v45 = vadd.f32 %v5852_v6, %v2056_v10  ;;  %v6628_v28 = vld [vmem:[#allocation75_spill] sm:$0xff] }
 0x42d   : > { %v2520_v21 = vadd.f32 %v2479_v39, %v2286_v42  ;;  %v3057_v5 = vadd.f32 %v5683_v0, %v3021_v33  ;;  %v4410_v33 = vld [vmem:[%s6462_s10 + $0x20] sm:$0xff]  ;;  %v2719_v42 = vpop.f32.mrf.mxu0  ;;  %v2952_v39 = vpop.f32.mrf.mxu1 }
 0x42e   : > { %v5947_v26 = vpop.f32.mrf.mxu2  ;;  %3451 = vmatpush.bf16.msrb.mxu3 %v4410_v33 }
 0x42f   : > { %v2753_v4 = vadd.f32 %v2712_v52, %v2520_v21  ;;  %v3089_v50 = vmax.f32 %v3057_v5, 0.0 }
 0x431   : > { %v3108_v23 = vpack.c.bf16 %v3089_v50, %v3088_v11  ;;  %v2986_v37 = vadd.f32 %v2945_v62, %v2753_v4  ;;  %v6625_v11 = vld [vmem:[#allocation73_spill] sm:$0xff] }
 0x432   : > { %v2057_v50 = vadd.f32 %v6625_v11, %v1824_v55 }
 0x433   : > { %3244 = vmatmul.bf16.gmra.mxu2 %v3108_v23  ;;  %v3022_v63 = vmul.f32 %v5676_v12, %v2986_v37 }
 0x434   : > { %v2481_v2 = vpop.f32.mrf.mxu3 }
 0x435   : > { %v2521_v14 = vadd.f32 %v2481_v2, %v2287_v48  ;;  %v3058_v27 = vadd.f32 %v5683_v0, %v3022_v63  ;;  %v2722_v40 = vpop.f32.mrf.mxu0  ;;  %v2955_v2 = vpop.f32.mrf.mxu1 }
 0x436   : > { %v5953_v30 = vpop.f32.mrf.mxu2 }
 0x437   : > { %v2754_v60 = vadd.f32 %v2714_v1, %v2521_v14  ;;  %v3090_v47 = vmax.f32 %v3058_v27, 0.0  ;;  %v6627_v1 = vld [vmem:[#allocation58_spill] sm:$0xff] }
 0x438   : > { %v1825_v6 = vadd.f32 %v6627_v1, %v6626_v25 }
 0x439   : > { %v2987_v49 = vadd.f32 %v2947_v18, %v2754_v60  ;;  %v2290_v18 = vadd.f32 %v5864_v22, %v2057_v50  ;;  %v6027_v50 = vld [vmem:[%s6461_s9] ss:$0 sm:$0xff] }
 0x43b   : > { %v3023_v13 = vmul.f32 %v5676_v12, %v2987_v49  ;;  %v2058_v49 = vadd.f32 %v6628_v28, %v1825_v6 }
 0x43c   : > { %v2484_v31 = vpop.f32.mrf.mxu3 }
 0x43d   : > { %v2522_v9 = vadd.f32 %v2484_v31, %v2288_v8  ;;  %v3059_v32 = vadd.f32 %v5683_v0, %v3023_v13  ;;  %v2291_v22 = vadd.f32 %v5877_v59, %v2058_v49  ;;  %v2724_v13 = vpop.f32.mrf.mxu0  ;;  %v2957_v31 = vpop.f32.mrf.mxu1 }
 0x43e   : > { %v5963_v20 = vpop.f32.mrf.mxu2 }
 0x43f   : > { %v2755_v52 = vadd.f32 %v2717_v46, %v2522_v9  ;;  %v3091_v34 = vmax.f32 %v3059_v32, 0.0 }
 0x441   : > { %v3109_v62 = vpack.c.bf16 %v3091_v34, %v3090_v47  ;;  %v2988_v15 = vadd.f32 %v2950_v57, %v2755_v52 }
 0x443   : > { %3249 = vmatmul.bf16.gmra.mxu2 %v3109_v62  ;;  %v3024_v5 = vmul.f32 %v5676_v12, %v2988_v15  ;;  %v4409_v62 = vld [vmem:[%s6462_s10 + $0x18] sm:$0xff] }
 0x444   : > { %v2486_v53 = vpop.f32.mrf.mxu3  ;;  %3452 = vmatpush.bf16.msrb.mxu3 %v4409_v62 }
 0x445   : > { %v2523_v35 = vadd.f32 %v2486_v53, %v2289_v45  ;;  %v3060_v29 = vadd.f32 %v5683_v0, %v3024_v5  ;;  %v4407_v53 = vld [vmem:[%s6462_s10 + $0x8] sm:$0xff] }
 0x446   : > { %v5972_v21 = vpop.f32.mrf.mxu2 }
 0x447   : > { %v2756_v4 = vadd.f32 %v2719_v42, %v2523_v35  ;;  %v3092_v60 = vmax.f32 %v3060_v29, 0.0 }
 0x449   : > { %v2989_v19 = vadd.f32 %v2952_v39, %v2756_v4  ;;  %v6016_v39 = vld [vmem:[%s6460_s8] ss:$0 sm:$0xff] }
 0x44a   : > { %v3270_v4 = vmul.f32 %v6016_v39, %v5893_v3  ;;  %v3269_v11 = vmul.f32 %v6016_v39, %v5883_v43  ;;  %v3272_v1 = vmul.f32 %v6016_v39, %v5912_v41  ;;  %v3273_v43 = vmul.f32 %v6016_v39, %v5918_v17 }
 0x44b   : > { %v3025_v23 = vmul.f32 %v5676_v12, %v2989_v19  ;;  %v3271_v19 = vmul.f32 %v6016_v39, %v5899_v7  ;;  %v3274_v41 = vmul.f32 %v6016_v39, %v5928_v38  ;;  %v3278_v28 = vmul.f32 %v6016_v39, %v5963_v20  ;;  %v4406_v20 = vld [vmem:[%s6462_s10] sm:$0xff] }
 0x44c   : > { %v2489_v58 = vpop.f32.mrf.mxu3  ;;  %v6032_v25 = vadd.f32 %v6027_v50, %v3270_v4  ;;  %v6037_v6 = vadd.f32 %v6027_v50, %v3269_v11 }
 0x44d   : > { %v2524_v37 = vadd.f32 %v2489_v58, %v2290_v18  ;;  %v3061_v48 = vadd.f32 %v5683_v0, %v3025_v23  ;;  %v6040_v3 = vadd.f32 %v6027_v50, %v3271_v19  ;;  %v6049_v18 = vadd.f32 %v6027_v50, %v3272_v1 }
 0x44e   : > { %v5982_v14 = vpop.f32.mrf.mxu2  ;;  %v3337_v7 = vadd.f32 %v6032_v25, %v6037_v6  ;;  %v3275_v58 = vmul.f32 %v6016_v39, %v5934_v54 }
 0x44f   : > { %v2757_v63 = vadd.f32 %v2722_v40, %v2524_v37  ;;  %v3093_v16 = vmax.f32 %v3061_v48, 0.0  ;;  %v6055_v40 = vadd.f32 %v6027_v50, %v3273_v43  ;;  %v6061_v37 = vadd.f32 %v6027_v50, %v3274_v41 }
 0x450   : > { %v3338_v29 = vadd.f32 %v3337_v7, %v6040_v3  ;;  %v3276_v48 = vmul.f32 %v6016_v39, %v5947_v26  ;;  %v6067_v38 = vadd.f32 %v6027_v50, %v3275_v58 }
 0x451   : > { %v3110_v46 = vpack.c.bf16 %v3093_v16, %v3092_v60  ;;  %v2990_v56 = vadd.f32 %v2955_v2, %v2757_v63  ;;  %v3277_v63 = vmul.f32 %v6016_v39, %v5953_v30  ;;  %v6085_v30 = vadd.f32 %v6027_v50, %v3278_v28 }
 0x452   : > { %v3339_v17 = vadd.f32 %v3338_v29, %v6049_v18  ;;  %v6073_v54 = vadd.f32 %v6027_v50, %v3276_v48 }
 0x453   : > { %3254 = vmatmul.bf16.gmra.mxu2 %v3110_v46  ;;  %v3026_v27 = vmul.f32 %v5676_v12, %v2990_v56  ;;  %v6079_v26 = vadd.f32 %v6027_v50, %v3277_v63  ;;  %v3279_v46 = vmul.f32 %v6016_v39, %v5972_v21 }
 0x454   : > { %v2491_v61 = vpop.f32.mrf.mxu3  ;;  %v3340_v2 = vadd.f32 %v3339_v17, %v6055_v40 }
 0x455   : > { %v2525_v44 = vadd.f32 %v2491_v61, %v2291_v22  ;;  %v3062_v52 = vadd.f32 %v5683_v0, %v3026_v27  ;;  %v3280_v22 = vmul.f32 %v6016_v39, %v5982_v14 }
 0x456   : > { %v5986_v8 = vpop.f32.mrf.mxu2  ;;  %v3341_v16 = vadd.f32 %v3340_v2, %v6061_v37 }
 0x457   : > { %v2758_v57 = vadd.f32 %v2724_v13, %v2525_v44  ;;  %v3094_v24 = vmax.f32 %v3062_v52, 0.0  ;;  %v6094_v44 = vadd.f32 %v6027_v50, %v3279_v46  ;;  %v3281_v21 = vmul.f32 %v6016_v39, %v5986_v8 }
 0x458   : > { %v3342_v49 = vadd.f32 %v3341_v16, %v6067_v38 }
 0x459   : > { %v2991_v9 = vadd.f32 %v2957_v31, %v2758_v57  ;;  %v6100_v57 = vadd.f32 %v6027_v50, %v3280_v22 }
 0x45a   : > { %v3343_v56 = vadd.f32 %v3342_v49, %v6073_v54 }
 0x45b   : > { %v3027_v32 = vmul.f32 %v5676_v12, %v2991_v9  ;;  %v4408_v12 = vld [vmem:[%s6462_s10 + $0x10] sm:$0xff]  ;;  %v6105_v9 = vadd.f32 %v6027_v50, %v3281_v21 }
 0x45c   : > { %3453 = vmatpush.bf16.msrb.mxu3 %v4408_v12  ;;  %v3344_v61 = vadd.f32 %v3343_v56, %v6079_v26 }
 0x45d   : > { %v3063_v47 = vadd.f32 %v5683_v0, %v3027_v32 }
 0x45e   : > { %v3217_v34 = vpop.f32.mrf.mxu2  ;;  %v3345_v27 = vadd.f32 %v3344_v61, %v6085_v30 }
 0x45f   : > { %v3095_v10 = vmax.f32 %v3063_v47, 0.0  ;;  %v3282_v14 = vmul.f32 %v6016_v39, %v3217_v34 }
 0x460   : > { %3454 = vmatpush.bf16.msrb.mxu3 %v4407_v53  ;;  %v3346_v31 = vadd.f32 %v3345_v27, %v6094_v44 }
 0x461   : > { %v3111_v59 = vpack.c.bf16 %v3095_v10, %v3094_v24  ;;  %v6110_v8 = vadd.f32 %v6027_v50, %v3282_v14  ;;  %v4574_v14 = vmov 256.0  }
 0x462   : > { %v3347_v52 = vadd.f32 %v3346_v31, %v6100_v57  ;;  %4557 = vrcp.f32 %v4574_v14 }
 0x463   : > { %3259 = vmatmul.bf16.gmra.mxu2 %v3111_v59 }
 0x464   : > { %3455 = vmatpush.bf16.msrb.mxu3 %v4406_v20  ;;  %v3348_v24 = vadd.f32 %v3347_v52, %v6105_v9 }
 0x466   : > { %v3220_v51 = vpop.f32.mrf.mxu2  ;;  %v3349_v62 = vadd.f32 %v3348_v24, %v6110_v8  ;;  %v4420_v24 = vld [vmem:[%s6464_s12 + $0x30] sm:$0xff] }
 0x467   : > { %v3283_v32 = vmul.f32 %v6016_v39, %v3220_v51 }
 0x469   : > { %v6115_v10 = vadd.f32 %v6027_v50, %v3283_v32 }
 0x46b   : > { %v3350_v53 = vadd.f32 %v3349_v62, %v6115_v10 }
 0x46e   : > { %v3222_v36 = vpop.f32.mrf.mxu2 }
 0x46f   : > { %v3284_v47 = vmul.f32 %v6016_v39, %v3222_v36 }
 0x471   : > { %v6120_v12 = vadd.f32 %v6027_v50, %v3284_v47 }
 0x473   : > { %v3351_v11 = vadd.f32 %v3350_v53, %v6120_v12 }
 0x476   : > { %v3225_v55 = vpop.f32.mrf.mxu2 }
 0x477   : > { %v3285_v34 = vmul.f32 %v6016_v39, %v3225_v55 }
 0x479   : > { %v6126_v36 = vadd.f32 %v6027_v50, %v3285_v34 }
 0x47b   : > { %v3352_v1 = vadd.f32 %v3351_v11, %v6126_v36  ;;  %v4419_v11 = vld [vmem:[%s6464_s12 + $0x28] sm:$0xff] }
 0x47e   : > { %v5995_v15 = vpop.f32.mrf.mxu2 }
 0x47f   : > { %v3286_v51 = vmul.f32 %v6016_v39, %v5995_v15 }
 0x481   : > { %v6132_v55 = vadd.f32 %v6027_v50, %v3286_v51  ;;  %v4558_v51 = vpop.eup %4557 }
 0x482   : > { %vm3379_vm0 = vweird.f32 %v4558_v51 }
 0x483   : > { %v3353_v41 = vadd.f32 %v3352_v1, %v6132_v55 }
 0x486   : > { %v6000_v0 = vpop.f32.mrf.mxu2 }
 0x487   : > { %v3287_v4 = vmul.f32 %v6016_v39, %v6000_v0 }
 0x489   : > { %v6138_v15 = vadd.f32 %v6027_v50, %v3287_v4 }
 0x48b   : > { %v3354_v58 = vadd.f32 %v3353_v41, %v6138_v15 }
 0x48e   : > { %v6002_v45 = vpop.f32.mrf.mxu2 }
 0x48f   : > { %v3288_v19 = vmul.f32 %v6016_v39, %v6002_v45 }
 0x491   : > { %v6144_v0 = vadd.f32 %v6027_v50, %v3288_v19 }
 0x493   : > { %v3355_v48 = vadd.f32 %v3354_v58, %v6144_v0  ;;  %v4418_v58 = vld [vmem:[%s6464_s12 + $0x20] sm:$0xff] }
 0x496   : > { %v6004_v33 = vpop.f32.mrf.mxu2 }
 0x497   : > { %v3289_v43 = vmul.f32 %v6016_v39, %v6004_v33 }
 0x499   : > { %v6150_v45 = vadd.f32 %v6027_v50, %v3289_v43 }
 0x49b   : > { %v3356_v63 = vadd.f32 %v3355_v48, %v6150_v45 }
 0x49e   : > { %v6006_v42 = vpop.f32.mrf.mxu2 }
 0x49f   : > { %v3290_v29 = vmul.f32 %v6016_v39, %v6006_v42 }
 0x4a1   : > { %v6156_v33 = vadd.f32 %v6027_v50, %v3290_v29 }
 0x4a3   : > { %v3357_v49 = vadd.f32 %v3356_v63, %v6156_v33 }
 0x4a6   : > { %v6011_v35 = vpop.f32.mrf.mxu2 }
 0x4a7   : > { %v3291_v17 = vmul.f32 %v6016_v39, %v6011_v35 }
 0x4a9   : > { %v6162_v42 = vadd.f32 %v6027_v50, %v3291_v17 }
 0x4ab   : > { %v3358_v56 = vadd.f32 %v3357_v49, %v6162_v42 }
 0x4ae   : > { %v6018_v5 = vpop.f32.mrf.mxu2 }
 0x4af   : > { %v3292_v2 = vmul.f32 %v6016_v39, %v6018_v5 }
 0x4b1   : > { %v6168_v35 = vadd.f32 %v6027_v50, %v3292_v2 }
 0x4b3   : > { %v3359_v20 = vadd.f32 %v3358_v56, %v6168_v35 }
 0x4b6   : > { %v6044_v23 = vpop.f32.mrf.mxu2 }
 0x4b7   : > { %v3293_v16 = vmul.f32 %v6016_v39, %v6044_v23 }
 0x4b9   : > { %v6173_v5 = vadd.f32 %v6027_v50, %v3293_v16  ;;  %v4417_v16 = vld [vmem:[%s6464_s12 + $0x18] sm:$0xff] }
 0x4bb   : > { %v3360_v21 = vadd.f32 %v3359_v20, %v6173_v5 }
 0x4be   : > { %v3247_v60 = vpop.f32.mrf.mxu2 }
 0x4bf   : > { %v3294_v46 = vmul.f32 %v6016_v39, %v3247_v60 }
 0x4c1   : > { %v6178_v61 = vadd.f32 %v6027_v50, %v3294_v46  ;;  %v4416_v46 = vld [vmem:[%s6464_s12 + $0x10] sm:$0xff] }
 0x4c3   : > { %v3361_v32 = vadd.f32 %v3360_v21, %v6178_v61 }
 0x4c6   : > { %v3250_v13 = vpop.f32.mrf.mxu2 }
 0x4c7   : > { %v3295_v22 = vmul.f32 %v6016_v39, %v3250_v13  ;;  %v4421_v13 = vld [vmem:[%s6464_s12 + $0x38] sm:$0xff] }
 0x4c8   : > { %3528 = vmatpush.bf16.msra.mxu3 %v4421_v13  ;;  %v4415_v13 = vld [vmem:[%s6464_s12 + $0x8] sm:$0xff] }
 0x4c9   : > { %v6183_v27 = vadd.f32 %v6027_v50, %v3295_v22 }
 0x4cb   : > { %v3362_v34 = vadd.f32 %v3361_v32, %v6183_v27  ;;  %v3399_v32 = vld [vmem:[%s6463_s11] sm:$0x1] }
 0x4cc   : > { %3529 = vmatpush.bf16.msra.mxu3 %v4420_v24 }
 0x4ce   : > { %v3252_v59 = vpop.f32.mrf.mxu2 }
 0x4cf   : > { %v3296_v23 = vmul.f32 %v6016_v39, %v3252_v59 }
 0x4d0   : > { %3530 = vmatpush.bf16.msra.mxu3 %v4419_v11 }
 0x4d1   : > { %v6191_v52 = vadd.f32 %v6027_v50, %v3296_v23 }
 0x4d3   : > { %v3363_v53 = vadd.f32 %v3362_v34, %v6191_v52 }
 0x4d4   : > { %3531 = vmatpush.bf16.msra.mxu3 %v4418_v58 }
 0x4d6   : > { %v3255_v7 = vpop.f32.mrf.mxu2 }
 0x4d7   : > { %v3297_v60 = vmul.f32 %v6016_v39, %v3255_v7  ;;  %v3375_v7 = vmul.f32 256.0, %v4558_v51 }
 0x4d8   : > { %3532 = vmatpush.bf16.msra.mxu3 %v4417_v16 }
 0x4d9   : > { %v6199_v59 = vadd.f32 %v6027_v50, %v3297_v60  ;;  %v3376_v2 = vsub.f32 1.0, %v3375_v7 }
 0x4db   : > { %v3364_v19 = vadd.f32 %v3363_v53, %v6199_v59  ;;  %v3479_v53 = vld [vmem:[%s6465_s13] sm:$0x1] }
 0x4dc   : > { %3533 = vmatpush.bf16.msra.mxu3 %v4416_v46 }
 0x4de   : > { %v3257_v28 = vpop.f32.mrf.mxu2 }
 0x4df   : > { %v3298_v47 = vmul.f32 %v6016_v39, %v3257_v28 }
 0x4e0   : > { %3534 = vmatpush.bf16.msra.mxu3 %v4415_v13 }
 0x4e1   : > { %v6204_v4 = vadd.f32 %v6027_v50, %v3298_v47 }
 0x4e3   : > { %v3365_v41 = vadd.f32 %v3364_v19, %v6204_v4 }
 0x4e6   : > { %v3260_v31 = vpop.f32.mrf.mxu2 }
 0x4e7   : > { %v3299_v62 = vmul.f32 %v6016_v39, %v3260_v31  ;;  %v4414_v31 = vld [vmem:[%s6464_s12] sm:$0xff] }
 0x4e8   : > { %3535 = vmatpush.bf16.msra.mxu3 %v4414_v31 }
 0x4e9   : > { %v6211_v1 = vadd.f32 %v6027_v50, %v3299_v62 }
 0x4eb   : > { %v3366_v17 = vadd.f32 %v3365_v41, %v6211_v1 }
 0x4ee   : > { %v3262_v43 = vpop.f32.mrf.mxu2 }
 0x4ef   : > { %v3300_v29 = vmul.f32 %v6016_v39, %v3262_v43  ;;  %v3377_v39 = vmul.f32 %v4558_v51, %v3376_v2 }
 0x4f1   : > { %v6220_v48 = vadd.f32 %v6027_v50, %v3300_v29  ;;  %v3378_v22 = vadd.f32 %v4558_v51, %v3377_v39  ;;  %v6245_v39 = vld [vmem:[%s4690_s20 + $0x8] sm:$0xff]  }
 0x4f3   : > { %v3367_v63 = vadd.f32 %v3366_v17, %v6220_v48  ;;  %v3380_v23 = vsel %vm3379_vm0, %v4558_v51, %v3378_v22 }
 0x4f5   : > { %v3368_v28 = vrot.slane %v3367_v63, 4 }
 0x4f7   : > { %v3369_v49 = vadd.f32 %v3368_v28, %v3367_v63  ;;  %v6242_v28 = vld [vmem:[%s4690_s20] sm:$0xff]  }
 0x4f8   : > { %v3560_v13 = vunpack.c.l.bf16 %v6242_v28  ;;  %v3561_v31 = vunpack.c.h.bf16 %v6242_v28 }
 0x4f9   : > { %v3370_v56 = vrot.slane %v3369_v49, 2 }
 0x4fb   : > { %v3371_v50 = vadd.f32 %v3370_v56, %v3369_v49  ;;  %v6248_v56 = vld [vmem:[%s4690_s20 + $0x10] sm:$0xff]  }
 0x4fd   : > { %v3372_v20 = vrot.slane %v3371_v50, 1 }
 0x4ff   : > { %v3373_v21 = vadd.f32 %v3372_v20, %v3371_v50  ;;  %v6255_v50 = vld [vmem:[%s4690_s20 + $0x18] sm:$0xff]   ;;  %v6258_v20 = vld [vmem:[%s4690_s20 + $0x20] sm:$0xff]  }
 0x500   : > { %v6635_v28 = vunpack.c.l.bf16 %v6258_v20 }
 0x501   : > { %v3381_v60 = vmul.f32 %v3380_v23, %v3373_v21  ;;  %v6263_v21 = vld [vmem:[%s4690_s20 + $0x28] sm:$0xff]  }
 0x503   : > { %v3382_v14 = vpack.c.bf16 %v3381_v60, %v3381_v60  ;;  %v6266_v60 = vld [vmem:[%s4690_s20 + $0x30] sm:$0xff]  }
 0x505   : > { %3456 = vmatmul.bf16.vlgmr.msrb.gmra.mxu3 %v3382_v14 }
 0x588   : > { %v3457_v47 = vpop.f32.mrf.mxu3 }
 0x589   : > { %v3458_v24 = vadd.f32 %v3457_v47, %v3399_v32  ;;  %v3562_v32 = vunpack.c.l.bf16 %v6245_v39  ;;  %v6272_v47 = vld [vmem:[%s4690_s20 + $0x38] sm:$0xff]  }
 0x58b   : > { %v3461_v34 = vmax.f32 %v3458_v24, 0.0  ;;  %v6275_v24 = vld [vmem:[%s4690_s20 + $0x40] sm:$0xff]  }
 0x58d   : > { %v3462_v62 = vpack.c.bf16 %v3461_v34, %v3461_v34  ;;  %v3563_v34 = vunpack.c.h.bf16 %v6245_v39  ;;  %v6637_v39 = vunpack.c.l.bf16 %v6263_v21 }
 0x58f   : > { %3536 = vmatmul.bf16.vlgmr.msra.gmra.mxu3 %v3462_v62 }
 0x590   : > { %v3459_v51 = vpop.f32.mrf.mxu3 }
 0x612   : > { %v3537_v11 = vpop.f32.mrf.mxu3 }
 0x613   : > { %v3538_v19 = vadd.f32 %v3537_v11, %v3479_v53  ;;  %v6281_v53 = vld [vmem:[%s4690_s20 + $0x48] sm:$0xff]  }
 0x615   : > { %v4297_v43 = vmul.f32 -1.442695, %v3538_v19 }
 0x617   : > { %4559 = vpow2.f32 %v4297_v43 }
 0x61a   : > { %v3539_v7 = vpop.f32.mrf.mxu3 }
 0x61b   : > { %v6307_v7 = vld [vmem:[%s4690_s20 + $0x70] sm:$0xff]  }
 0x61d   : > { %v4560_v41 = vpop.eup %4559 }
 0x61e   : > { %v3544_v29 = vadd.f32 1.0, %v4560_v41  ;;  %v6287_v41 = vld [vmem:[%s4690_s20 + $0x50] sm:$0xff]  }
 0x620   : > { %4561 = vrcp.f32 %v3544_v29  ;;  %v3556_v16 = vand.u32 2147483648, %v3544_v29  ;;  %vm3550_vm2 = vweird.f32 %v3544_v29  ;;  %v3554_v46 = vand.u32 2147483647, %v3544_v29 }
 0x622   : > { %v3557_v14 = vor.u32 1.1754944e-38, %v3556_v16  ;;  %vm3555_vm4 = vcmp.eq.f32.partialorder %v3554_v46, 8.507059e+37  ;;  %v6297_v16 = vld [vmem:[%s4690_s20 + $0x60] sm:$0xff]  }
 0x626   : > { %v4562_v58 = vpop.eup %4561 }
 0x627   : > { %v3546_v17 = vmul.f32 %v4562_v58, %v3544_v29  ;;  %vm3551_vm1 = vweird.f32 %v4562_v58  ;;  %v6290_v29 = vld [vmem:[%s4690_s20 + $0x58] sm:$0xff]  }
 0x628   : > { %vm6250_vm3 = vmor %vm3550_vm2, %vm3551_vm1 }
 0x629   : > { %v3547_v2 = vsub.f32 1.0, %v3546_v17  ;;  %v3579_v17 = vunpack.c.h.bf16 %v6281_v53 }
 0x62b   : > { %v3548_v63 = vmul.f32 %v4562_v58, %v3547_v2 }
 0x62d   : > { %v3549_v49 = vadd.f32 %v4562_v58, %v3548_v63 }
 0x62f   : > { %v3553_v23 = vsel %vm6250_vm3, %v4562_v58, %v3549_v49  ;;  %v6300_v49 = vld [vmem:[%s4690_s20 + $0x68] sm:$0xff]   ;;  %v6310_v58 = vld [vmem:[%s4690_s20 + $0x78] sm:$0xff]  }
 0x630   : > { %v3558_v11 = vsel %vm3555_vm4, %v3557_v14, %v3553_v23 }
 0x631   : > { %v3592_v43 = vperm.slane %v3558_v11, 0 }
 0x633   : > { %v3593_v22 = vmul.f32 %v3592_v43, %v6037_v6  ;;  %v3594_v23 = vmul.f32 %v3592_v43, %v6032_v25  ;;  %v3595_v14 = vmul.f32 %v3592_v43, %v6040_v3  ;;  %v3596_v51 = vmul.f32 %v3592_v43, %v6049_v18 }
 0x634   : > { %v3597_v62 = vmul.f32 %v3592_v43, %v6055_v40  ;;  %v3598_v2 = vmul.f32 %v3592_v43, %v6061_v37  ;;  %v3599_v63 = vmul.f32 %v3592_v43, %v6067_v38  ;;  %v3600_v11 = vmul.f32 %v3592_v43, %v6073_v54 }
 0x635   : > { %v3601_v19 = vmul.f32 %v3592_v43, %v6079_v26  ;;  %v3602_v46 = vmul.f32 %v3592_v43, %v6085_v30  ;;  %v3603_v6 = vmul.f32 %v3592_v43, %v6094_v44  ;;  %v3604_v25 = vmul.f32 %v3592_v43, %v6100_v57 }
 0x636   : > { %v3605_v3 = vmul.f32 %v3592_v43, %v6105_v9  ;;  %v3606_v18 = vmul.f32 %v3592_v43, %v6110_v8  ;;  %v3607_v40 = vmul.f32 %v3592_v43, %v6115_v10  ;;  %v3608_v37 = vmul.f32 %v3592_v43, %v6120_v12 }
 0x637   : > { %v3609_v38 = vmul.f32 %v3592_v43, %v6126_v36  ;;  %v3610_v54 = vmul.f32 %v3592_v43, %v6132_v55  ;;  %v3611_v26 = vmul.f32 %v3592_v43, %v6138_v15  ;;  %v3612_v30 = vmul.f32 %v3592_v43, %v6144_v0 }
 0x638   : > { %v3613_v44 = vmul.f32 %v3592_v43, %v6150_v45  ;;  %v3614_v57 = vmul.f32 %v3592_v43, %v6156_v33  ;;  %v3615_v9 = vmul.f32 %v3592_v43, %v6162_v42  ;;  %v3616_v8 = vmul.f32 %v3592_v43, %v6168_v35 }
 0x639   : > { %v3617_v10 = vmul.f32 %v3592_v43, %v6173_v5  ;;  %v3618_v12 = vmul.f32 %v3592_v43, %v6178_v61  ;;  %v3619_v36 = vmul.f32 %v3592_v43, %v6183_v27  ;;  %v3620_v55 = vmul.f32 %v3592_v43, %v6191_v52 }
 0x63a   : > { %v3621_v15 = vmul.f32 %v3592_v43, %v6199_v59  ;;  %v3622_v0 = vmul.f32 %v3592_v43, %v6204_v4  ;;  %v3623_v45 = vmul.f32 %v3592_v43, %v6211_v1  ;;  %v6359_v33 = vmul.f32 %v3592_v43, %v6220_v48 }
 0x63b   : > { %v3625_v42 = vadd.f32 %v3593_v22, %v3560_v13  ;;  %v3626_v35 = vadd.f32 %v3594_v23, %v3561_v31  ;;  %v3627_v5 = vadd.f32 %v3595_v14, %v3562_v32  ;;  %v3628_v61 = vadd.f32 %v3596_v51, %v3563_v34 }
 0x63c   : > { %v6631_v27 = vunpack.c.l.bf16 %v6248_v56  ;;  %v6632_v59 = vunpack.c.h.bf16 %v6248_v56  ;;  %v6633_v1 = vunpack.c.l.bf16 %v6255_v50  ;;  %v6634_v13 = vunpack.c.h.bf16 %v6255_v50 }
 0x63d   : > { %v3633_v31 = vadd.f32 %v3601_v19, %v6635_v28  ;;  %v6636_v32 = vunpack.c.h.bf16 %v6258_v20  ;;  %v3635_v34 = vadd.f32 %v3603_v6, %v6637_v39  ;;  %v6639_v56 = vunpack.c.l.bf16 %v6266_v60 }
 0x63e   : > { %v3629_v52 = vadd.f32 %v3597_v62, %v6631_v27  ;;  %v3630_v4 = vadd.f32 %v3598_v2, %v6632_v59  ;;  %v3631_v48 = vadd.f32 %v3599_v63, %v6633_v1  ;;  %v3632_v43 = vadd.f32 %v3600_v11, %v6634_v13 }
 0x63f   : > { %v3634_v22 = vadd.f32 %v3602_v46, %v6636_v32  ;;  %v6638_v62 = vunpack.c.h.bf16 %v6263_v21  ;;  %v3637_v2 = vadd.f32 %v3605_v3, %v6639_v56  ;;  %v6640_v63 = vunpack.c.h.bf16 %v6266_v60 }
 0x640   : > { %v6641_v50 = vunpack.c.l.bf16 %v6272_v47  ;;  %v6642_v19 = vunpack.c.h.bf16 %v6272_v47  ;;  %v6643_v20 = vunpack.c.l.bf16 %v6275_v24  ;;  %v6644_v6 = vunpack.c.h.bf16 %v6275_v24 }
 0x641   : > { %v3636_v51 = vadd.f32 %v3604_v25, %v6638_v62  ;;  %v3638_v23 = vadd.f32 %v3606_v18, %v6640_v63  ;;  %v6645_v21 = vunpack.c.l.bf16 %v6281_v53  ;;  %v3644_v3 = vadd.f32 %v3612_v30, %v3579_v17 }
 0x642   : > { %v3639_v14 = vadd.f32 %v3607_v40, %v6641_v50  ;;  %v3640_v11 = vadd.f32 %v3608_v37, %v6642_v19  ;;  %v3641_v46 = vadd.f32 %v3609_v38, %v6643_v20  ;;  %v3642_v27 = vadd.f32 %v3610_v54, %v6644_v6 }
 0x643   : > { %v3643_v25 = vadd.f32 %v3611_v26, %v6645_v21  ;;  %v6646_v60 = vunpack.c.l.bf16 %v6287_v41  ;;  %v6647_v40 = vunpack.c.h.bf16 %v6287_v41  ;;  %v3657_v37 = vmax.f32 %v3625_v42, 0.0 }
 0x644   : > { %v3658_v59 = vmax.f32 %v3626_v35, 0.0  ;;  %v3659_v1 = vmax.f32 %v3627_v5, 0.0  ;;  %v3660_v38 = vmax.f32 %v3628_v61, 0.0  ;;  %v3661_v13 = vmax.f32 %v3629_v52, 0.0 }
 0x645   : > { %v3645_v18 = vadd.f32 %v3613_v44, %v6646_v60  ;;  %v3646_v47 = vadd.f32 %v3614_v57, %v6647_v40  ;;  %v3662_v24 = vmax.f32 %v3630_v4, 0.0  ;;  %v6648_v54 = vunpack.c.l.bf16 %v6290_v29 }
 0x646   : > { %v6649_v26 = vunpack.c.h.bf16 %v6290_v29  ;;  %v3663_v17 = vmax.f32 %v3631_v48, 0.0  ;;  %v3664_v30 = vmax.f32 %v3632_v43, 0.0  ;;  %v6650_v44 = vunpack.c.l.bf16 %v6297_v16 }
 0x647   : > { %v3647_v28 = vadd.f32 %v3615_v9, %v6648_v54  ;;  %v6651_v41 = vunpack.c.h.bf16 %v6297_v16  ;;  %v3665_v42 = vmax.f32 %v3633_v31, 0.0  ;;  %v3666_v35 = vmax.f32 %v3634_v22, 0.0 }
 0x648   : > { %v3648_v53 = vadd.f32 %v3616_v8, %v6649_v26  ;;  %v3649_v32 = vadd.f32 %v3617_v10, %v6650_v44  ;;  %v6652_v9 = vunpack.c.l.bf16 %v6300_v49  ;;  %v3667_v8 = vmax.f32 %v3635_v34, 0.0 }
 0x649   : > { %v3650_v57 = vadd.f32 %v3618_v12, %v6651_v41  ;;  %v3668_v5 = vmax.f32 %v3636_v51, 0.0  ;;  %v3669_v61 = vmax.f32 %v3637_v2, 0.0  ;;  %v3670_v52 = vmax.f32 %v3638_v23, 0.0 }
 0x64a   : > { %v3651_v29 = vadd.f32 %v3619_v36, %v6652_v9  ;;  %v4425_v10 = vpack.c.bf16 %v3658_v59, %v3657_v37  ;;  %v4430_v16 = vpack.c.bf16 %v3660_v38, %v3659_v1  ;;  %v4435_v12 = vpack.c.bf16 %v3662_v24, %v3661_v13 }
 0x64b   : > { %v6653_v4 = vunpack.c.h.bf16 %v6300_v49  ;;  %v3671_v43 = vmax.f32 %v3639_v14, 0.0  ;;  %v3672_v31 = vmax.f32 %v3640_v11, 0.0  ;;  %v4440_v22 = vpack.c.bf16 %v3664_v30, %v3663_v17 }
 0x64c   : > { %v6654_v39 = vunpack.c.l.bf16 %v6307_v7  ;;  %v3673_v56 = vmax.f32 %v3641_v46, 0.0  ;;  %v3674_v36 = vmax.f32 %v3642_v27, 0.0  ;;  %4426 = vst [vmem:[%s6418_s26] sm:$0xff] %v4425_v10   ;;  %v4445_v34 = vpack.c.bf16 %v3666_v35, %v3665_v42 }
 0x64d   : > { %v3652_v48 = vadd.f32 %v3620_v55, %v6653_v4  ;;  %v6655_v51 = vunpack.c.h.bf16 %v6307_v7  ;;  %v3675_v63 = vmax.f32 %v3643_v25, 0.0  ;;  %v3676_v23 = vmax.f32 %v3644_v3, 0.0  ;;  %4502 = vst [vmem:[%s6418_s26 + $0x8] sm:$0xff] %v4430_v16  }
 0x64e   : > { %v3653_v62 = vadd.f32 %v3621_v15, %v6654_v39  ;;  %v4450_v49 = vpack.c.bf16 %v3668_v5, %v3667_v8  ;;  %v6656_v55 = vunpack.c.l.bf16 %v6310_v58  ;;  %v3677_v14 = vmax.f32 %v3645_v18, 0.0  ;;  %4503 = vst [vmem:[%s6418_s26 + $0x10] sm:$0xff] %v4435_v12  }
 0x64f   : > { %v3654_v2 = vadd.f32 %v3622_v0, %v6655_v51  ;;  %v3678_v19 = vmax.f32 %v3646_v47, 0.0  ;;  %v4455_v15 = vpack.c.bf16 %v3670_v52, %v3669_v61  ;;  %v6657_v11 = vunpack.c.h.bf16 %v6310_v58  ;;  %4504 = vst [vmem:[%s6418_s26 + $0x18] sm:$0xff] %v4440_v22  }
 0x650   : > { %v3655_v50 = vadd.f32 %v3623_v45, %v6656_v55  ;;  %v3679_v7 = vmax.f32 %v3647_v28, 0.0  ;;  %v3680_v0 = vmax.f32 %v3648_v53, 0.0  ;;  %v4460_v46 = vpack.c.bf16 %v3672_v31, %v3671_v43  ;;  %4505 = vst [vmem:[%s6418_s26 + $0x20] sm:$0xff] %v4445_v34  }
 0x651   : > { %v3656_v20 = vadd.f32 %v6359_v33, %v6657_v11  ;;  %v3681_v6 = vmax.f32 %v3649_v32, 0.0  ;;  %v3682_v27 = vmax.f32 %v3650_v57, 0.0  ;;  %v4465_v45 = vpack.c.bf16 %v3674_v36, %v3673_v56  ;;  %4506 = vst [vmem:[%s6418_s26 + $0x28] sm:$0xff] %v4450_v49  }
 0x652   : > { %v3683_v21 = vmax.f32 %v3651_v29, 0.0  ;;  %v3684_v25 = vmax.f32 %v3652_v48, 0.0  ;;  %v4470_v58 = vpack.c.bf16 %v3676_v23, %v3675_v63  ;;  %v3685_v3 = vmax.f32 %v3653_v62, 0.0  ;;  %4507 = vst [vmem:[%s6418_s26 + $0x30] sm:$0xff] %v4455_v15  }
 0x653   : > { %v3686_v33 = vmax.f32 %v3654_v2, 0.0  ;;  %v4475_v60 = vpack.c.bf16 %v3678_v19, %v3677_v14  ;;  %v3687_v18 = vmax.f32 %v3655_v50, 0.0  ;;  %v3688_v40 = vmax.f32 %v3656_v20, 0.0  ;;  %4508 = vst [vmem:[%s6418_s26 + $0x38] sm:$0xff] %v4460_v46  }
 0x654   : > { %v4480_v47 = vpack.c.bf16 %v3680_v0, %v3679_v7  ;;  %4509 = vst [vmem:[%s6418_s26 + $0x40] sm:$0xff] %v4465_v45   ;;  %v4485_v37 = vpack.c.bf16 %v3682_v27, %v3681_v6  ;;  %v4490_v59 = vpack.c.bf16 %v3684_v25, %v3683_v21 }
 0x655   : > { %4510 = vst [vmem:[%s6418_s26 + $0x48] sm:$0xff] %v4470_v58   ;;  %v4495_v1 = vpack.c.bf16 %v3686_v33, %v3685_v3  ;;  %v4500_v38 = vpack.c.bf16 %v3688_v40, %v3687_v18 }
 0x656   : > { %4511 = vst [vmem:[%s6418_s26 + $0x50] sm:$0xff] %v4475_v60  }
 0x657   : > { %4512 = vst [vmem:[%s6418_s26 + $0x58] sm:$0xff] %v4480_v47  }
 0x658   : > { %4513 = vst [vmem:[%s6418_s26 + $0x60] sm:$0xff] %v4485_v37  }
 0x659   : > { %4514 = vst [vmem:[%s6418_s26 + $0x68] sm:$0xff] %v4490_v59  }
 0x65a   : > { %4515 = vst [vmem:[%s6418_s26 + $0x70] sm:$0xff] %v4495_v1  }
 0x65b   : > { %4516 = vst [vmem:[%s6418_s26 + $0x78] sm:$0xff] %v4500_v38  }
 0x65c PF: > { %s24_s29 = sadd.s32 1, %s4570_s29  }
 0x65d   : > { %p21_p4 = scmp.ge.s32.totalorder %s24_s29, 4  }
 0x65f   :  { %23 = sbr.rel (!%p21_p4) target bundleno = 1 (0x1), region = 108 }

// kernel: landmarks_model_forward.9
= control target key start
LH: loop header
LB: loop body
LE: loop exit
PB: predicated region body
PF: predicated region fallthrough
CT: control target
= control target key end

     0   :  { %s3588_s0 = inlined_call_operand.vmem [shape: bf16[2,4,128], index: 0, kind: input, shape index: {}]   ;;  %s3589_s1 = inlined_call_operand.vmem [shape: bf16[128,128], index: 1, kind: input, shape index: {}]   ;;  %s3590_s2 = inlined_call_operand.vmem [shape: f32[1,128], index: 2, kind: input, shape index: {}]   ;;  %s3591_s3 = inlined_call_operand.vmem [shape: f32[1,128], index: 3, kind: input, shape index: {}]   ;;  %s3592_s4 = inlined_call_operand.vmem [shape: bf16[1152,128], index: 4, kind: input, shape index: {}]   ;;  %s3593_s5 = inlined_call_operand.vmem [shape: f32[1,128], index: 5, kind: input, shape index: {}]   ;;  %s3594_s6 = inlined_call_operand.vmem [shape: f32[1,128], index: 6, kind: input, shape index: {}]   ;;  %s3595_s7 = inlined_call_operand.vmem [shape: bf16[128,128], index: 7, kind: input, shape index: {}]   ;;  %s3596_s8 = inlined_call_operand.vmem [shape: f32[1,128], index: 8, kind: input, shape index: {}]   ;;  %s3597_s9 = inlined_call_operand.vmem [shape: f32[1,128], index: 9, kind: input, shape index: {}]   ;;  %s3598_s10 = inlined_call_operand.vmem [shape: bf16[128,128], index: 10, kind: input, shape index: {}]   ;;  %s3599_s11 = inlined_call_operand.vmem [shape: f32[1,128], index: 11, kind: input, shape index: {}]   ;;  %s3600_s12 = inlined_call_operand.vmem [shape: bf16[128,128], index: 12, kind: input, shape index: {}]   ;;  %s3601_s13 = inlined_call_operand.vmem [shape: f32[1,128], index: 13, kind: input, shape index: {}]   ;;  %s3602_s14 = inlined_call_operand.vmem [shape: bf16[128,128], index: 14, kind: input, shape index: {}]   ;;  %s3603_s15 = inlined_call_operand.hbm [shape: f32[1,128], index: 15, kind: input, shape index: {}]   ;;  %s3604_s16 = inlined_call_operand.hbm [shape: f32[1,128], index: 16, kind: input, shape index: {}]   ;;  %s3605_s17 = inlined_call_operand.vmem [shape: bf16[128,128], index: 17, kind: input, shape index: {}]   ;;  %s3606_s18 = inlined_call_operand.hbm [shape: f32[1,128], index: 18, kind: input, shape index: {}]   ;;  %s3607_s19 = inlined_call_operand.hbm [shape: f32[2,1,128], index: 19, kind: output, shape index: {}]  }
   0x1   :  { %3615 = sst [smem:[#allocation19_spill]] %s3588_s0 }
   0x2   :  { %3616 = sst [smem:[#allocation20_spill]] %s3589_s1 }
   0x3   :  { %3617 = sst [smem:[#allocation21_spill]] %s3590_s2 }
   0x4   :  { %3618 = sst [smem:[#allocation22_spill]] %s3591_s3 }
   0x5   :  { %3619 = sst [smem:[#allocation23_spill]] %s3592_s4 }
   0x6   :  { %3620 = sst [smem:[#allocation24_spill]] %s3604_s16 }
   0x7   :  { %24 = vsyncpa [#allocation4], 0 }
   0x8   :  { %25 = vsyncpa [#allocation7], 0 }
   0x9   :  { %26 = vsyncpa [#allocation5], 0 }
   0xa   :  { %28 = vsyncpa [#allocation5 + $0x1], 0  ;;  %s3077_s0 = smov 0   ;;  %s3079_s30 = smov 0  }
   0xb   :  { %s3081_s20 = smov 0   ;;  %s3083_s21 = smov 0  }
   0xc LB: > { %3621 = sst [smem:[#allocation13_spill]] %s2958_s0  ;;  %s3098_s1 = sadd.s32 4294967295, %s2970_s21   ;;  %s2970_s21 = sphi %s3083_s21, %s3639_s21   ;;  %s2966_s20 = sphi %s3081_s20, %s3641_s20   ;;  %s2962_s30 = sphi %s3079_s30, %s3643_s30   ;;  %s2958_s0 = sphi %s3077_s0, %s3642_s0  }
   0xd   : > { %3622 = sst [smem:[#allocation14_spill]] %s2966_s20  ;;  %s2110_s22 = sadd.s32 4294967294, %s2970_s21  }
   0xe   : > { %3623 = sst [smem:[#allocation15_spill]] %s2970_s21  ;;  %s3102_s2 = sadd.s32 1, %s2970_s21  }
   0xf   : > { %3624 = sst [smem:[#allocation16_spill]] %s3102_s2  ;;  %s445_s23 = sadd.s32 1, %s2966_s20 }
  0x10   : > { %s442_s24 = ssub.s32 %s2970_s21, %s3102_s2  ;;  %p455_p0 = scmp.ne.s32.totalorder %s2966_s20, %s2962_s30 }
  0x11   : > { %p443_p1 = scmp.eq.s32.totalorder %s442_s24, 0  ;;  %p456_p2 = scmp.eq.s32.totalorder %s3098_s1, 1 }
  0x12   : > { %p461_p3 = scmp.ne.s32.totalorder %s2962_s30, %s2958_s0  ;;  %p462_p4 = scmp.eq.s32.totalorder %s2110_s22, 1 }
  0x13   : > { %s3113_s25 = scalar_select %p443_p1, %s2966_s20, %s445_s23  }
  0x14   : > { %p3115_p5 = por %p456_p2, %p455_p0  ;;  %p3119_p6 = por %p462_p4, %p461_p3 }
  0x15   : > { %3625 = sst [smem:[#allocation17_spill]] %s3113_s25  ;;  %p2111_p7 = scmp.ge.s32.totalorder %s2970_s21, 1 }
  0x16   : > { %s3627_s26 = scalar_select %p3119_p6, 1, 0 }
  0x17   : > { %p469_p8 = scmp.lt.s32.totalorder %s2970_s21, 3  ;;  %p2752_p9 = scmp.eq.s32.totalorder %s3098_s1, 0 }
  0x18   : > { %3628 = sst [smem:[#allocation18_spill]] %s3627_s26  ;;  %s2972_s23 = smov [#allocation6]  }
  0x19   : > { %p3126_p10 = pnand %p2111_p7, %p469_p8  ;;  %s3630_s16 = sld [smem:[#allocation24_spill]] }
  0x1a   : > { %s537_s24 = sshll.u32 %s2972_s23, 4  ;;  %s523_s2 = sshll.u32 %s3603_s15, 4  ;;  %s538_s24 = int_to_ptr.vmem [resolvable:$true] %s537_s24  ;;  %s524_s2 = int_to_ptr.hbm [resolvable:$true] %s523_s2 }
  0x1b   : > { %p2738_p11 = pneg %p3126_p10  ;;  %s550_s21 = sshll.u32 %s3606_s18, 4  ;;  %s551_s21 = int_to_ptr.hbm [resolvable:$true] %s550_s21 }
  0x1c   : > { %s2973_s28 = smov [#allocation3]  }
  0x1d   : > { %p2739_p12 = pnand %p2752_p9, %p2738_p11  ;;  %s525_s29 = sshll.u32 %s2973_s28, 4  ;;  %s526_s29 = int_to_ptr.vmem [resolvable:$true] %s525_s29 }
  0x1f   : > { %s535_s22 = sshll.u32 %s3630_s16, 4  ;;  %s2974_s16 = smov [#allocation8]   ;;  %s536_s22 = int_to_ptr.hbm [resolvable:$true] %s535_s22 }
  0x20   : > { %2744 = dma.hbm_to_vmem [thread:$0]  (!%p2739_p12), %s536_s22, 16, %s538_s24, [#allocation7]  }
  0x21   : > { %2741 = dma.hbm_to_vmem [thread:$0]  (!%p2739_p12), %s524_s2, 16, %s526_s29, [#allocation4]  }
  0x22   : > { %s552_s23 = sshll.u32 %s2974_s16, 4  ;;  %572 = sbr.rel (%p3126_p10) target bundleno = 1050 (0x41a), region = 96  ;;  %s553_s23 = int_to_ptr.vmem [resolvable:$true] %s552_s23 }
  0x23   : > { %2747 = dma.hbm_to_vmem [thread:$0]  (!%p2739_p12), %s551_s21, 16, %s553_s23, [#allocation7]  }
  0x27   : > { %2945 = dma.done.wait (%p2752_p9), [#allocation4], 16  }
  0x28   : > { %2947 = vsyncadd (%p2752_p9), [#allocation4], 4294967280 }
  0x29   : > { %2949 = dma.done.wait (%p2752_p9), [#allocation7], 32  }
  0x2a   : > { %2951 = vsyncadd (%p2752_p9), [#allocation7], 4294967264  ;;  %s3631_s16 = sld [smem:[#allocation20_spill]]  ;;  %p637_p13 = scmp.lt.s32.totalorder %s3098_s1, 1  ;;  %v2975_v15 = vmov 0.0   ;;  %vm1638_vm0 = vcmask 1043456  }
  0x2b   : > { %s3632_s4 = sld [smem:[#allocation23_spill]]  ;;  %730 = vst [vmem:[#allocation2] sm:$0xff] %v2975_v15  ;;  %s635_s0 = sand.u32 1, %s2962_s30  }
  0x2c   : > { %s638_s27 = scalar_select %p637_p13, %s3098_s1, 1  ;;  %731 = vst [vmem:[#allocation2 + $0x8] sm:$0xff] %v2975_v15 }
  0x2d   : > { %s3633_s21 = sld [smem:[#allocation19_spill]]  ;;  %733 = vst [vmem:[#allocation2 + $0x18] sm:$0xff] %v2975_v15  ;;  %s636_s25 = scalar_lea.vmem [#allocation9], %s635_s0 }
  0x2e   : > { %s2120_s28 = sshll.u32 %s638_s27, 1  ;;  %734 = vst [vmem:[#allocation2 + $0x20] sm:$0xff] %v2975_v15  ;;  %s3635_s23 = sld [smem:[#allocation22_spill]] }
  0x2f   : > { %736 = vst [vmem:[#allocation2 + $0x30] sm:$0xff] %v2975_v15  ;;  %s2022_s26 = sshll.u32 %s636_s25, 4  ;;  %s2012_s27 = scalar_lea.sflag [#allocation5], %s635_s0  ;;  %s2023_s26 = int_to_ptr.vmem [resolvable:$true] %s2022_s26 }
  0x30   : > { %v2611_v0 = vld [vmem:[%s3631_s16 + $0x38] sm:$0xff]  ;;  %v2610_v1 = vld [vmem:[%s3631_s16 + $0x30] sm:$0xff]  ;;  %v2609_v5 = vld [vmem:[%s3631_s16 + $0x28] sm:$0xff]  ;;  %737 = vst [vmem:[#allocation2 + $0x38] sm:$0xff] %v2975_v15 }
  0x31   : > { %706 = vmatpush.bf16.msra.mxu0 %v2611_v0  ;;  %v2619_v2 = vld [vmem:[%s3632_s4 + $0x38] sm:$0xff]  ;;  %v2618_v4 = vld [vmem:[%s3632_s4 + $0x30] sm:$0xff]  ;;  %v2608_v6 = vld [vmem:[%s3631_s16 + $0x20] sm:$0xff]  ;;  %739 = vst [vmem:[#allocation2 + $0x48] sm:$0xff] %v2975_v15 }
  0x32   : > { %v2627_v3 = vld [vmem:[%s3632_s4 + $0x78] sm:$0xff]  ;;  %909 = vmatpush.bf16.msra.mxu2 %v2619_v2  ;;  %v2606_v8 = vld [vmem:[%s3631_s16 + $0x10] sm:$0xff]  ;;  %v2605_v9 = vld [vmem:[%s3631_s16 + $0x8] sm:$0xff]  ;;  %740 = vst [vmem:[#allocation2 + $0x50] sm:$0xff] %v2975_v15 }
  0x33   : > { %848 = vmatpush.bf16.msra.mxu1 %v2627_v3  ;;  %v2607_v7 = vld [vmem:[%s3631_s16 + $0x18] sm:$0xff]  ;;  %v2604_v10 = vld [vmem:[%s3631_s16] sm:$0xff]  ;;  %s640_s2 = scalar_lea.vmem %s3633_s21, %s2120_s28  ;;  %v2626_v12 = vld [vmem:[%s3632_s4 + $0x70] sm:$0xff]  ;;  %s3634_s21 = sld [smem:[#allocation21_spill]] }
  0x34   : > { %v3191_v11 = vld [vmem:[%s640_s2] sm:$0x3]  ;;  %v2617_v13 = vld [vmem:[%s3632_s4 + $0x28] sm:$0xff]  ;;  %v2615_v18 = vld [vmem:[%s3632_s4 + $0x18] sm:$0xff]  ;;  %s2020_s2 = scalar_lea.hbm %s3607_s19, %s3098_s1  ;;  %s2920_s1 = scalar_lea.hbm %s3607_s19, 2 }
  0x35   : > { %707 = vmatpush.bf16.msra.mxu0 %v2610_v1  ;;  %v2625_v14 = vld [vmem:[%s3632_s4 + $0x68] sm:$0xff]  ;;  %v2616_v16 = vld [vmem:[%s3632_s4 + $0x20] sm:$0xff]  ;;  %v2635_v19 = vld [vmem:[%s3632_s4 + $0xb8] sm:$0xff]  ;;  %s2024_s22 = sshll.u32 %s2020_s2, 4  ;;  %s2025_s22 = int_to_ptr.hbm [resolvable:$true] %s2024_s22 }
  0x36   : > { %910 = vmatpush.bf16.msra.mxu2 %v2618_v4  ;;  %v2624_v17 = vld [vmem:[%s3632_s4 + $0x60] sm:$0xff]  ;;  %996 = vmatpush.bf16.msra.mxu3 %v2635_v19  ;;  %v2623_v20 = vld [vmem:[%s3632_s4 + $0x58] sm:$0xff]  ;;  %v2614_v21 = vld [vmem:[%s3632_s4 + $0x10] sm:$0xff]  ;;  %s2914_s24 = sshra.s32 %s2025_s22, 4  ;;  %s2915_s24 = int_to_ptr.hbm [resolvable:$true] %s2914_s24 }
  0x37   : > { %849 = vmatpush.bf16.msra.mxu1 %v2626_v12  ;;  %v2634_v22 = vld [vmem:[%s3632_s4 + $0xb0] sm:$0xff]  ;;  %v2613_v25 = vld [vmem:[%s3632_s4 + $0x8] sm:$0xff]  ;;  %v2643_v27 = vld [vmem:[%s3632_s4 + $0xf8] sm:$0xff]  ;;  %s2916_s29 = scalar_lea.hbm %s2915_s24, 1  ;;  %p2921_p3 = scmp.lt.s32.totalorder %s2915_s24, %s3607_s19 }
  0x38   : > { %v748_v23 = vld [vmem:[#allocation2 + $0x7] sm:$0x3]  ;;  %v2612_v29 = vld [vmem:[%s3632_s4] sm:$0xff]  ;;  %v2631_v33 = vld [vmem:[%s3632_s4 + $0x98] sm:$0xff]  ;;  %p2917_p0 = scmp.ne.s32.totalorder %s2915_s24, %s2916_s29  ;;  %p2922_p4 = scmp.lt.s32.totalorder %s2920_s1, %s2916_s29 }
  0x39   : > { %708 = vmatpush.bf16.msra.mxu0 %v2609_v5  ;;  %v2622_v24 = vld [vmem:[%s3632_s4 + $0x50] sm:$0xff]  ;;  %752 = vst [vmem:[#allocation1] ss:$4 sm:$0xff] %v748_v23  ;;  %v2633_v26 = vld [vmem:[%s3632_s4 + $0xa8] sm:$0xff]  ;;  %v2632_v30 = vld [vmem:[%s3632_s4 + $0xa0] sm:$0xff] }
  0x3a   : > { %911 = vmatpush.bf16.msra.mxu2 %v2617_v13  ;;  %997 = vmatpush.bf16.msra.mxu3 %v2634_v22  ;;  %v2621_v28 = vld [vmem:[%s3632_s4 + $0x48] sm:$0xff]  ;;  %v2642_v31 = vld [vmem:[%s3632_s4 + $0xf0] sm:$0xff]  ;;  %v2620_v32 = vld [vmem:[%s3632_s4 + $0x40] sm:$0xff]  ;;  %p2918_p1 = pnand %p2917_p0, %p3115_p5  ;;  %p2923_p7 = por %p2922_p4, %p2921_p3 }
  0x3b   : > { %850 = vmatpush.bf16.msra.mxu1 %v2625_v14  ;;  %v2641_v34 = vld [vmem:[%s3632_s4 + $0xe8] sm:$0xff]  ;;  %v2651_v35 = vld [vmem:[%s3632_s4 + $0x138] sm:$0xff]  ;;  %v2796_v36 = vld [vmem:[%s3634_s21] ss:$0 sm:$0xff] }
  0x3c   : > { %v2630_v37 = vld [vmem:[%s3632_s4 + $0x90] sm:$0xff]  ;;  %v2640_v38 = vld [vmem:[%s3632_s4 + $0xe0] sm:$0xff]  ;;  %v2629_v43 = vld [vmem:[%s3632_s4 + $0x88] sm:$0xff]  ;;  %p2919_p2 = pneg %p2918_p1 }
  0x3d   : > { %709 = vmatpush.bf16.msra.mxu0 %v2608_v6  ;;  %v2650_v39 = vld [vmem:[%s3632_s4 + $0x130] sm:$0xff]  ;;  %v2797_v40 = vld [vmem:[%s3635_s23] ss:$0 sm:$0xff]  ;;  %v2639_v44 = vld [vmem:[%s3632_s4 + $0xd8] sm:$0xff] }
  0x3e   : > { %912 = vmatpush.bf16.msra.mxu2 %v2616_v16  ;;  %998 = vmatpush.bf16.msra.mxu3 %v2633_v26  ;;  %v2649_v45 = vld [vmem:[%s3632_s4 + $0x128] sm:$0xff]  ;;  %v2659_v47 = vld [vmem:[%s3632_s4 + $0x178] sm:$0xff]  ;;  %v2628_v48 = vld [vmem:[%s3632_s4 + $0x80] sm:$0xff]  ;;  %p2924_p8 = pnand %p2923_p7, %p2919_p2 }
  0x3f   : > { %851 = vmatpush.bf16.msra.mxu1 %v2624_v17  ;;  %v2648_v49 = vld [vmem:[%s3632_s4 + $0x120] sm:$0xff]  ;;  %v2638_v51 = vld [vmem:[%s3632_s4 + $0xd0] sm:$0xff]  ;;  %v2637_v55 = vld [vmem:[%s3632_s4 + $0xc8] sm:$0xff] }
  0x40   : > { %v2658_v52 = vld [vmem:[%s3632_s4 + $0x170] sm:$0xff]  ;;  %v2647_v56 = vld [vmem:[%s3632_s4 + $0x118] sm:$0xff]  ;;  %v2657_v57 = vld [vmem:[%s3632_s4 + $0x168] sm:$0xff] }
  0x41   : > { %710 = vmatpush.bf16.msra.mxu0 %v2607_v7  ;;  %v2667_v58 = vld [vmem:[%s3632_s4 + $0x1b8] sm:$0xff]  ;;  %v2636_v59 = vld [vmem:[%s3632_s4 + $0xc0] sm:$0xff]  ;;  %v2646_v60 = vld [vmem:[%s3632_s4 + $0x110] sm:$0xff] }
  0x42   : > { %913 = vmatpush.bf16.msra.mxu2 %v2615_v18  ;;  %999 = vmatpush.bf16.msra.mxu3 %v2632_v30  ;;  %v2656_v62 = vld [vmem:[%s3632_s4 + $0x160] sm:$0xff]  ;;  %v2666_v63 = vld [vmem:[%s3632_s4 + $0x1b0] sm:$0xff]  ;;  %v2645_v1 = vld [vmem:[%s3632_s4 + $0x108] sm:$0xff] }
  0x43   : > { %852 = vmatpush.bf16.msra.mxu1 %v2623_v20  ;;  %v774_v0 = vld [vmem:[#allocation2 + $0x8] sm:$0x3]  ;;  %v2655_v2 = vld [vmem:[%s3632_s4 + $0x158] sm:$0xff]  ;;  %v2665_v3 = vld [vmem:[%s3632_s4 + $0x1a8] sm:$0xff] }
  0x44   : > { %v2675_v4 = vld [vmem:[%s3632_s4 + $0x1f8] sm:$0xff]  ;;  %v2644_v6 = vld [vmem:[%s3632_s4 + $0x100] sm:$0xff]  ;;  %v2654_v7 = vld [vmem:[%s3632_s4 + $0x150] sm:$0xff] }
  0x45   : > { %711 = vmatpush.bf16.msra.mxu0 %v2606_v8  ;;  %v2674_v12 = vld [vmem:[%s3632_s4 + $0x1f0] sm:$0xff]  ;;  %v2653_v13 = vld [vmem:[%s3632_s4 + $0x148] sm:$0xff]  ;;  %v2663_v14 = vld [vmem:[%s3632_s4 + $0x198] sm:$0xff] }
  0x46   : > { %914 = vmatpush.bf16.msra.mxu2 %v2614_v21  ;;  %1000 = vmatpush.bf16.msra.mxu3 %v2631_v33  ;;  %v2673_v15 = vld [vmem:[%s3632_s4 + $0x1e8] sm:$0xff]  ;;  %v922_v17 = vld [vmem:[#allocation2 + $0x9] sm:$0x3]  ;;  %v2683_v19 = vld [vmem:[%s3632_s4 + $0x238] sm:$0xff] }
  0x47   : > { %853 = vmatpush.bf16.msra.mxu1 %v2622_v24  ;;  %v2652_v20 = vld [vmem:[%s3632_s4 + $0x140] sm:$0xff]  ;;  %v2662_v22 = vld [vmem:[%s3632_s4 + $0x190] sm:$0xff]  ;;  %v2671_v26 = vld [vmem:[%s3632_s4 + $0x1d8] sm:$0xff] }
  0x48   : > { %v2672_v23 = vld [vmem:[%s3632_s4 + $0x1e0] sm:$0xff]  ;;  %v2682_v24 = vld [vmem:[%s3632_s4 + $0x230] sm:$0xff] }
  0x49   : > { %712 = vmatpush.bf16.msra.mxu0 %v2605_v9  ;;  %v2660_v30 = vld [vmem:[%s3632_s4 + $0x180] sm:$0xff] }
  0x4a   : > { %915 = vmatpush.bf16.msra.mxu2 %v2613_v25  ;;  %1001 = vmatpush.bf16.msra.mxu3 %v2630_v37  ;;  %v2661_v25 = vld [vmem:[%s3632_s4 + $0x188] sm:$0xff] }
  0x4b   : > { %854 = vmatpush.bf16.msra.mxu1 %v2621_v28  ;;  %v2681_v28 = vld [vmem:[%s3632_s4 + $0x228] sm:$0xff] }
  0x4d   : > { %713 = vmatpush.bf16.msra.mxu0 %v2604_v10  ;;  %v2664_v10 = vld [vmem:[%s3632_s4 + $0x1a0] sm:$0xff] }
  0x4e   : > { %916 = vmatpush.bf16.msra.mxu2 %v2612_v29  ;;  %1002 = vmatpush.bf16.msra.mxu3 %v2629_v43  ;;  %v2677_v43 = vld [vmem:[%s3632_s4 + $0x208] sm:$0xff] }
  0x4f   : > { %855 = vmatpush.bf16.msra.mxu1 %v2620_v32 }
  0x50   : > { %714 = vmatmul.bf16.vlgmr.msra.gmra.mxu0 %v3191_v11 }
  0x51   : > { %1084 = vmatpush.bf16.msrb.mxu0 %v2643_v27 }
  0x52   : > { %1260 = vmatpush.bf16.msrb.mxu2 %v2659_v47  ;;  %1003 = vmatpush.bf16.msra.mxu3 %v2628_v48  ;;  %v2676_v48 = vld [vmem:[%s3632_s4 + $0x200] sm:$0xff] }
  0x53   : > { %1172 = vmatpush.bf16.msrb.mxu1 %v2651_v35  ;;  %v2669_v35 = vld [vmem:[%s3632_s4 + $0x1c8] sm:$0xff] }
  0x55   : > { %1085 = vmatpush.bf16.msrb.mxu0 %v2642_v31  ;;  %v2670_v31 = vld [vmem:[%s3632_s4 + $0x1d0] sm:$0xff] }
  0x56   : > { %1261 = vmatpush.bf16.msrb.mxu2 %v2658_v52  ;;  %1349 = vmatpush.bf16.msrb.mxu3 %v2667_v58 }
  0x57   : > { %1173 = vmatpush.bf16.msrb.mxu1 %v2650_v39  ;;  %v2668_v39 = vld [vmem:[%s3632_s4 + $0x1c0] sm:$0xff] }
  0x59   : > { %1086 = vmatpush.bf16.msrb.mxu0 %v2641_v34  ;;  %v2680_v34 = vld [vmem:[%s3632_s4 + $0x220] sm:$0xff] }
  0x5a   : > { %1262 = vmatpush.bf16.msrb.mxu2 %v2657_v57  ;;  %1350 = vmatpush.bf16.msrb.mxu3 %v2666_v63  ;;  %v1452_v57 = vld [vmem:[#allocation2 + $0x51] sm:$0x3] }
  0x5b   : > { %1174 = vmatpush.bf16.msrb.mxu1 %v2649_v45 }
  0x5d   : > { %1087 = vmatpush.bf16.msrb.mxu0 %v2640_v38 }
  0x5e   : > { %1263 = vmatpush.bf16.msrb.mxu2 %v2656_v62  ;;  %1351 = vmatpush.bf16.msrb.mxu3 %v2665_v3 }
  0x5f   : > { %1175 = vmatpush.bf16.msrb.mxu1 %v2648_v49  ;;  %v1276_v49 = vld [vmem:[#allocation2 + $0x4f] sm:$0x3] }
  0x61   : > { %1088 = vmatpush.bf16.msrb.mxu0 %v2639_v44 }
  0x62   : > { %1264 = vmatpush.bf16.msrb.mxu2 %v2655_v2  ;;  %1352 = vmatpush.bf16.msrb.mxu3 %v2664_v10  ;;  %v2687_v10 = vld [vmem:[%s3595_s7 + $0x18] sm:$0xff] }
  0x63   : > { %1176 = vmatpush.bf16.msrb.mxu1 %v2647_v56 }
  0x65   : > { %1089 = vmatpush.bf16.msrb.mxu0 %v2638_v51 }
  0x66   : > { %1265 = vmatpush.bf16.msrb.mxu2 %v2654_v7  ;;  %1353 = vmatpush.bf16.msrb.mxu3 %v2663_v14  ;;  %v2686_v14 = vld [vmem:[%s3595_s7 + $0x10] sm:$0xff] }
  0x67   : > { %1177 = vmatpush.bf16.msrb.mxu1 %v2646_v60 }
  0x69   : > { %1090 = vmatpush.bf16.msrb.mxu0 %v2637_v55 }
  0x6a   : > { %1266 = vmatpush.bf16.msrb.mxu2 %v2653_v13  ;;  %1354 = vmatpush.bf16.msrb.mxu3 %v2662_v22 }
  0x6b   : > { %1178 = vmatpush.bf16.msrb.mxu1 %v2645_v1  ;;  %v2691_v1 = vld [vmem:[%s3595_s7 + $0x38] sm:$0xff] }
  0x6d   : > { %1091 = vmatpush.bf16.msrb.mxu0 %v2636_v59 }
  0x6e   : > { %1267 = vmatpush.bf16.msrb.mxu2 %v2652_v20  ;;  %1355 = vmatpush.bf16.msrb.mxu3 %v2661_v25  ;;  %v2698_v20 = vld [vmem:[%s3598_s10 + $0x30] sm:$0xff] }
  0x6f   : > { %1179 = vmatpush.bf16.msrb.mxu1 %v2644_v6 }
  0x71   : > { %1437 = vmatpush.bf16.msra.mxu0 %v2675_v4  ;;  %v2690_v4 = vld [vmem:[%s3595_s7 + $0x30] sm:$0xff] }
  0x72   : > { %1356 = vmatpush.bf16.msrb.mxu3 %v2660_v30 }
  0x75   : > { %1438 = vmatpush.bf16.msra.mxu0 %v2674_v12 }
  0x79   : > { %1439 = vmatpush.bf16.msra.mxu0 %v2673_v15  ;;  %v2685_v15 = vld [vmem:[%s3595_s7 + $0x8] sm:$0xff] }
  0x7d   : > { %1440 = vmatpush.bf16.msra.mxu0 %v2672_v23  ;;  %v2697_v23 = vld [vmem:[%s3598_s10 + $0x28] sm:$0xff] }
  0x81   : > { %1441 = vmatpush.bf16.msra.mxu0 %v2671_v26 }
  0x85   : > { %1442 = vmatpush.bf16.msra.mxu0 %v2670_v31 }
  0x89   : > { %1443 = vmatpush.bf16.msra.mxu0 %v2669_v35 }
  0x8d   : > { %1444 = vmatpush.bf16.msra.mxu0 %v2668_v39 }
  0xcd   : > { %v715_v41 = vpop.f32.mrf.mxu0 }
  0xce   : > { %v723_v42 = vmul.f32 %v2796_v36, %v715_v41  ;;  %v2679_v36 = vld [vmem:[%s3632_s4 + $0x218] sm:$0xff] }
  0xd0   : > { %v728_v46 = vadd.f32 %v2797_v40, %v723_v42  ;;  %v2678_v42 = vld [vmem:[%s3632_s4 + $0x210] sm:$0xff] }
  0xd2   : > { %v729_v50 = vmax.f32 %v728_v46, 0.0 }
  0xd4   : > { %v743_v53 = vrot.slane %v729_v50, 2  ;;  %746 = vst [vmem:[#allocation2 + $0x20] sm:$0x3] %v729_v50 }
  0xd5   : > { %v717_v54 = vpop.f32.mrf.mxu0 }
  0xd6   : > { %747 = vst [vmem:[#allocation2 + $0x38] sm:$0x3] %v743_v53  ;;  %v1364_v53 = vld [vmem:[#allocation2 + $0x50] sm:$0x3] }
  0xdb   : > { %v749_v61 = vld [vmem:[#allocation2 + $0x1f] sm:$0x3]  ;;  %v923_v16 = vld [vmem:[#allocation2 + $0x21] sm:$0x3] }
  0xdc   : > { %754 = vst [vmem:[#allocation1 + $0x1] ss:$4 sm:$0xff] %v749_v61  ;;  %v775_v8 = vld [vmem:[#allocation2 + $0x20] sm:$0x3] }
  0xdd   : > { %v1010_v27 = vld [vmem:[#allocation2 + $0x1f] sm:$0x3]  ;;  %v1011_v32 = vld [vmem:[#allocation2 + $0x37] sm:$0x3]  ;;  %v1186_v44 = vld [vmem:[#allocation2 + $0x21] sm:$0x3] }
  0xde   : > { %v1098_v37 = vld [vmem:[#allocation2 + $0x20] sm:$0x3]  ;;  %v1099_v40 = vld [vmem:[#allocation2 + $0x38] sm:$0x3] }
  0xdf   : > { %v1187_v46 = vld [vmem:[#allocation2 + $0x39] sm:$0x3]  ;;  %v1275_v50 = vld [vmem:[#allocation2 + $0x37] sm:$0x3] }
  0xe0   : > { %v1363_v54 = vld [vmem:[#allocation2 + $0x38] sm:$0x3] }
  0xe1   : > { %v1451_v58 = vld [vmem:[#allocation2 + $0x39] sm:$0x3] }
  0xe3   : > { %v755_v5 = vld.sshfl [vmem:[#allocation1] sm:$0xff pattern:$0x73625140] }
  0xe4   : > { %778 = vst [vmem:[#allocation1] ss:$4 sm:$0xff] %v774_v0  ;;  %v757_v9 = vpack.c.bf16 %v755_v5, %v755_v5  ;;  %v2689_v5 = vld [vmem:[%s3595_s7 + $0x28] sm:$0xff] }
  0xe5   : > { %780 = vst [vmem:[#allocation1 + $0x1] ss:$4 sm:$0xff] %v775_v8  ;;  %v2688_v8 = vld [vmem:[%s3595_s7 + $0x20] sm:$0xff] }
  0xe6   : > { %917 = vmatmul.bf16.vlgmr.msra.gmra.mxu2 %v757_v9 }
  0xe7   : > { %1615 = vmatpush.bf16.msra.mxu2 %v2691_v1 }
  0xeb   : > { %1616 = vmatpush.bf16.msra.mxu2 %v2690_v4  ;;  %v2702_v4 = vld [vmem:[%s3600_s12 + $0x10] sm:$0xff] }
  0xec   : > { %v781_v18 = vld.sshfl [vmem:[#allocation1] sm:$0xff pattern:$0x73625140] }
  0xed   : > { %928 = vst [vmem:[#allocation1 + $0x1] ss:$4 sm:$0xff] %v923_v16  ;;  %v783_v21 = vpack.c.bf16 %v781_v18, %v781_v18 }
  0xee   : > { %926 = vst [vmem:[#allocation1] ss:$4 sm:$0xff] %v922_v17  ;;  %v2684_v17 = vld [vmem:[%s3595_s7] sm:$0xff] }
  0xef   : > { %856 = vmatmul.bf16.vlgmr.msra.gmra.mxu1 %v783_v21  ;;  %1617 = vmatpush.bf16.msra.mxu2 %v2689_v5 }
  0xf0   : > { %1525 = vmatpush.bf16.msra.mxu1 %v2683_v19  ;;  %v2699_v19 = vld [vmem:[%s3598_s10 + $0x38] sm:$0xff] }
  0xf3   : > { %1618 = vmatpush.bf16.msra.mxu2 %v2688_v8 }
  0xf4   : > { %1526 = vmatpush.bf16.msra.mxu1 %v2682_v24 }
  0xf5   : > { %v929_v29 = vld.sshfl [vmem:[#allocation1] sm:$0xff pattern:$0x73625140] }
  0xf6   : > { %v931_v33 = vpack.c.bf16 %v929_v29, %v929_v29  ;;  %1014 = vst [vmem:[#allocation1] ss:$4 sm:$0xff] %v1010_v27 }
  0xf7   : > { %1016 = vst [vmem:[#allocation1 + $0x1] ss:$4 sm:$0xff] %v1011_v32  ;;  %1619 = vmatpush.bf16.msra.mxu2 %v2687_v10 }
  0xf8   : > { %1004 = vmatmul.bf16.vlgmr.msra.gmra.mxu3 %v931_v33  ;;  %1527 = vmatpush.bf16.msra.mxu1 %v2681_v28 }
  0xf9   : > { %1720 = vmatpush.bf16.msra.mxu3 %v2699_v19  ;;  %v2711_v19 = vld [vmem:[%s3602_s14 + $0x18] sm:$0xff] }
  0xfb   : > { %1620 = vmatpush.bf16.msra.mxu2 %v2686_v14  ;;  %v2701_v14 = vld [vmem:[%s3600_s12 + $0x8] sm:$0xff] }
  0xfc   : > { %1528 = vmatpush.bf16.msra.mxu1 %v2680_v34  ;;  %v2798_v34 = vld [vmem:[%s3593_s5] ss:$0 sm:$0xff] }
  0xfd   : > { %1721 = vmatpush.bf16.msra.mxu3 %v2698_v20  ;;  %v2710_v20 = vld [vmem:[%s3602_s14 + $0x10] sm:$0xff] }
  0xfe   : > { %v1017_v38 = vld.sshfl [vmem:[#allocation1] sm:$0xff pattern:$0x73625140] }
  0xff   : > { %v1019_v41 = vpack.c.bf16 %v1017_v38, %v1017_v38  ;;  %1102 = vst [vmem:[#allocation1] ss:$4 sm:$0xff] %v1098_v37  ;;  %1621 = vmatpush.bf16.msra.mxu2 %v2685_v15  ;;  %v2799_v37 = vld [vmem:[%s3594_s6] ss:$0 sm:$0xff]  ;;  %v2714_v15 = vld [vmem:[%s3602_s14 + $0x30] sm:$0xff] }
 0x100   : > { %1104 = vst [vmem:[#allocation1 + $0x1] ss:$4 sm:$0xff] %v1099_v40  ;;  %1529 = vmatpush.bf16.msra.mxu1 %v2679_v36 }
 0x101   : > { %1092 = vmatmul.bf16.vlgmr.msrb.gmra.mxu0 %v1019_v41  ;;  %1722 = vmatpush.bf16.msra.mxu3 %v2697_v23  ;;  %v1671_v23 = vld [vmem:[%s3599_s11] sm:$0x1] }
 0x103   : > { %1622 = vmatpush.bf16.msra.mxu2 %v2684_v17  ;;  %v2713_v17 = vld [vmem:[%s3602_s14 + $0x28] sm:$0xff] }
 0x104   : > { %1530 = vmatpush.bf16.msra.mxu1 %v2678_v42 }
 0x107   : > { %v1105_v45 = vld.sshfl [vmem:[#allocation1] sm:$0xff pattern:$0x73625140] }
 0x108   : > { %v1107_v47 = vpack.c.bf16 %v1105_v45, %v1105_v45  ;;  %1190 = vst [vmem:[#allocation1] ss:$4 sm:$0xff] %v1186_v44  ;;  %1531 = vmatpush.bf16.msra.mxu1 %v2677_v43  ;;  %v2696_v43 = vld [vmem:[%s3598_s10 + $0x20] sm:$0xff]  ;;  %v2695_v44 = vld [vmem:[%s3598_s10 + $0x18] sm:$0xff]  ;;  %v2694_v45 = vld [vmem:[%s3598_s10 + $0x10] sm:$0xff] }
 0x109   : > { %1192 = vst [vmem:[#allocation1 + $0x1] ss:$4 sm:$0xff] %v1187_v46  ;;  %1723 = vmatpush.bf16.msra.mxu3 %v2696_v43  ;;  %v2693_v46 = vld [vmem:[%s3598_s10 + $0x8] sm:$0xff] }
 0x10a   : > { %1180 = vmatmul.bf16.vlgmr.msrb.gmra.mxu1 %v1107_v47  ;;  %v2692_v47 = vld [vmem:[%s3598_s10] sm:$0xff]  ;;  %v2717_v43 = vld [vmem:[%s3605_s17 + $0x8] sm:$0xff] }
 0x10c   : > { %1532 = vmatpush.bf16.msra.mxu1 %v2676_v48  ;;  %v2976_v48 = vmov 4.0  }
 0x10d   : > { %1724 = vmatpush.bf16.msra.mxu3 %v2695_v44  ;;  %2804 = vrcp.f32 %v2976_v48  ;;  %v2716_v44 = vld [vmem:[%s3605_s17] sm:$0xff]  ;;  %v2802_v48 = vld [vmem:[#allocation3] ss:$0 sm:$0xff] }
 0x110   : > { %v1193_v51 = vld.sshfl [vmem:[#allocation1] sm:$0xff pattern:$0x73625140] }
 0x111   : > { %v1195_v52 = vpack.c.bf16 %v1193_v51, %v1193_v51  ;;  %1279 = vst [vmem:[#allocation1] ss:$4 sm:$0xff] %v1275_v50  ;;  %1725 = vmatpush.bf16.msra.mxu3 %v2694_v45  ;;  %v2706_v50 = vld [vmem:[%s3600_s12 + $0x30] sm:$0xff]  ;;  %v2715_v51 = vld [vmem:[%s3602_s14 + $0x38] sm:$0xff] }
 0x112   : > { %1281 = vst [vmem:[#allocation1 + $0x1] ss:$4 sm:$0xff] %v1276_v49  ;;  %v2707_v49 = vld [vmem:[%s3600_s12 + $0x38] sm:$0xff]  ;;  %1896 = vmatpush.bf16.msrb.mxu1 %v2715_v51 }
 0x113   : > { %1268 = vmatmul.bf16.vlgmr.msrb.gmra.mxu2 %v1195_v52  ;;  %1800 = vmatpush.bf16.msrb.mxu0 %v2707_v49  ;;  %v2805_v52 = vpop.eup %2804 }
 0x114   : > { %vm1651_vm1 = vweird.f32 %v2805_v52 }
 0x115   : > { %1726 = vmatpush.bf16.msra.mxu3 %v2693_v46 }
 0x116   : > { %1897 = vmatpush.bf16.msrb.mxu1 %v2714_v15 }
 0x117   : > { %1801 = vmatpush.bf16.msrb.mxu0 %v2706_v50 }
 0x119   : > { %v1282_v55 = vld.sshfl [vmem:[#allocation1] sm:$0xff pattern:$0x73625140]  ;;  %1727 = vmatpush.bf16.msra.mxu3 %v2692_v47 }
 0x11a   : > { %v1284_v56 = vpack.c.bf16 %v1282_v55, %v1282_v55  ;;  %1367 = vst [vmem:[#allocation1] ss:$4 sm:$0xff] %v1363_v54  ;;  %v2800_v54 = vld [vmem:[%s3596_s8] ss:$0 sm:$0xff]  ;;  %1898 = vmatpush.bf16.msrb.mxu1 %v2713_v17 }
 0x11b   : > { %1369 = vst [vmem:[#allocation1 + $0x1] ss:$4 sm:$0xff] %v1364_v53  ;;  %v2705_v53 = vld [vmem:[%s3600_s12 + $0x28] sm:$0xff]  ;;  %v2801_v55 = vld [vmem:[%s3597_s9] ss:$0 sm:$0xff] }
 0x11c   : > { %1357 = vmatmul.bf16.vlgmr.msrb.gmra.mxu3 %v1284_v56  ;;  %v1647_v56 = vmul.f32 4.0, %v2805_v52  ;;  %1802 = vmatpush.bf16.msrb.mxu0 %v2705_v53 }
 0x122   : > { %v1370_v59 = vld.sshfl [vmem:[#allocation1] sm:$0xff pattern:$0x73625140] }
 0x123   : > { %v1372_v60 = vpack.c.bf16 %v1370_v59, %v1370_v59  ;;  %1455 = vst [vmem:[#allocation1] ss:$4 sm:$0xff] %v1451_v58  ;;  %v2704_v58 = vld [vmem:[%s3600_s12 + $0x20] sm:$0xff] }
 0x124   : > { %1457 = vst [vmem:[#allocation1 + $0x1] ss:$4 sm:$0xff] %v1452_v57  ;;  %1803 = vmatpush.bf16.msrb.mxu0 %v2704_v58 }
 0x125   : > { %1445 = vmatmul.bf16.vlgmr.msra.gmra.mxu0 %v1372_v60 }
 0x12b   : > { %v1458_v61 = vld.sshfl [vmem:[#allocation1] sm:$0xff pattern:$0x73625140] }
 0x12c   : > { %v1460_v62 = vpack.c.bf16 %v1458_v61, %v1458_v61  ;;  %v1648_v61 = vsub.f32 1.0, %v1647_v56 }
 0x12e   : > { %1533 = vmatmul.bf16.vlgmr.msra.gmra.mxu1 %v1460_v62  ;;  %v2703_v62 = vld [vmem:[%s3600_s12 + $0x18] sm:$0xff]  ;;  %v1649_v1 = vmul.f32 %v2805_v52, %v1648_v61 }
 0x12f   : > { %1804 = vmatpush.bf16.msrb.mxu0 %v2703_v62 }
 0x133   : > { %1805 = vmatpush.bf16.msrb.mxu0 %v2702_v4 }
 0x137   : > { %1806 = vmatpush.bf16.msrb.mxu0 %v2701_v14 }
 0x169   : > { %v918_v63 = vpop.f32.mrf.mxu2 }
 0x16c   : > { %v857_v0 = vpop.f32.mrf.mxu1 }
 0x16d   : > { %v919_v21 = vadd.f32 %v918_v63, %v857_v0 }
 0x171   : > { %v920_v2 = vpop.f32.mrf.mxu2 }
 0x174   : > { %v859_v3 = vpop.f32.mrf.mxu1 }
 0x17b   : > { %v1005_v6 = vpop.f32.mrf.mxu3 }
 0x17c   : > { %v1009_v22 = vadd.f32 %v1005_v6, %v919_v21  ;;  %v1650_v6 = vadd.f32 %v2805_v52, %v1649_v1  ;;  %v2709_v21 = vld [vmem:[%s3602_s14 + $0x8] sm:$0xff] }
 0x17e   : > { %v1093_v7 = vpop.f32.mrf.mxu0 }
 0x17f   : > { %v1097_v26 = vadd.f32 %v1093_v7, %v1009_v22  ;;  %v2708_v22 = vld [vmem:[%s3602_s14] sm:$0xff] }
 0x183   : > { %v1007_v9 = vpop.f32.mrf.mxu3 }
 0x184   : > { %v3492_v9 = vsel %vm1651_vm1, %v2805_v52, %v1650_v6 }
 0x186   : > { %v1095_v12 = vpop.f32.mrf.mxu0 }
 0x187   : > { %v1181_v13 = vpop.f32.mrf.mxu1 }
 0x188   : > { %v1185_v27 = vadd.f32 %v1181_v13, %v1097_v26 }
 0x18f   : > { %v1183_v16 = vpop.f32.mrf.mxu1 }
 0x190   : > { %v2700_v16 = vld [vmem:[%s3600_s12] sm:$0xff] }
 0x191   : > { %1807 = vmatpush.bf16.msrb.mxu0 %v2700_v16 }
 0x196   : > { %v1269_v18 = vpop.f32.mrf.mxu2 }
 0x197   : > { %v1273_v29 = vadd.f32 %v1269_v18, %v1185_v27  ;;  %v2712_v18 = vld [vmem:[%s3602_s14 + $0x20] sm:$0xff] }
 0x198   : > { %1899 = vmatpush.bf16.msrb.mxu1 %v2712_v18 }
 0x19c   : > { %1900 = vmatpush.bf16.msrb.mxu1 %v2711_v19 }
 0x19e   : > { %v1271_v24 = vpop.f32.mrf.mxu2 }
 0x19f   : > { %v1358_v25 = vpop.f32.mrf.mxu3 }
 0x1a0   : > { %v1362_v30 = vadd.f32 %v1358_v25, %v1273_v29  ;;  %1901 = vmatpush.bf16.msrb.mxu1 %v2710_v20 }
 0x1a2   : > { %v1446_v28 = vpop.f32.mrf.mxu0 }
 0x1a3   : > { %v1450_v32 = vadd.f32 %v1446_v28, %v1362_v30  ;;  %v2723_v30 = vld [vmem:[%s3605_s17 + $0x38] sm:$0xff] }
 0x1a4   : > { %1902 = vmatpush.bf16.msrb.mxu1 %v2709_v21  ;;  %1997 = vmatpush.bf16.msrb.mxu2 %v2723_v30 }
 0x1a7   : > { %v1360_v31 = vpop.f32.mrf.mxu3 }
 0x1a8   : > { %1903 = vmatpush.bf16.msrb.mxu1 %v2708_v22  ;;  %v1751_v31 = vld [vmem:[%s3601_s13] sm:$0x1] }
 0x1aa   : > { %v1448_v33 = vpop.f32.mrf.mxu0 }
 0x1ab   : > { %v1534_v35 = vpop.f32.mrf.mxu1  ;;  %1904 = vmatmul.bf16.vlgmr.msrb.gmra.mxu1 %v3191_v11  ;;  %v2722_v11 = vld [vmem:[%s3605_s17 + $0x30] sm:$0xff]  ;;  %v2721_v33 = vld [vmem:[%s3605_s17 + $0x28] sm:$0xff] }
 0x1ac   : > { %v1538_v36 = vadd.f32 %v1534_v35, %v1450_v32  ;;  %1998 = vmatpush.bf16.msrb.mxu2 %v2722_v11 }
 0x1ae   : > { %v1543_v38 = vmul.f32 %v2798_v34, %v1538_v36 }
 0x1b0   : > { %v1548_v39 = vadd.f32 %v2799_v37, %v1543_v38  ;;  %1999 = vmatpush.bf16.msrb.mxu2 %v2721_v33  ;;  %v2720_v37 = vld [vmem:[%s3605_s17 + $0x20] sm:$0xff]  ;;  %v2719_v38 = vld [vmem:[%s3605_s17 + $0x18] sm:$0xff] }
 0x1b2   : > { %v1549_v40 = vmax.f32 %v1548_v39, 0.0 }
 0x1b3   : > { %v1536_v41 = vpop.f32.mrf.mxu1 }
 0x1b4   : > { %v1550_v42 = vpack.c.bf16 %v1549_v40, %v1549_v40  ;;  %2000 = vmatpush.bf16.msrb.mxu2 %v2720_v37  ;;  %v2718_v41 = vld [vmem:[%s3605_s17 + $0x10] sm:$0xff] }
 0x1b6   : > { %1623 = vmatmul.bf16.vlgmr.msra.gmra.mxu2 %v1550_v42 }
 0x1b8   : > { %2001 = vmatpush.bf16.msrb.mxu2 %v2719_v38 }
 0x1bc   : > { %2002 = vmatpush.bf16.msrb.mxu2 %v2718_v41 }
 0x1c0   : > { %2003 = vmatpush.bf16.msrb.mxu2 %v2717_v43 }
 0x1c4   : > { %2004 = vmatpush.bf16.msrb.mxu2 %v2716_v44 }
 0x228   : > { %v1905_v29 = vpop.f32.mrf.mxu1 }
 0x229   : > { %v1913_v53 = vmul.f32 %v2802_v48, %v1905_v29 }
 0x230   : > { %v1907_v32 = vpop.f32.mrf.mxu1 }
 0x239   : > { %v1624_v57 = vpop.f32.mrf.mxu2 }
 0x23a   : > { %v1632_v59 = vmul.f32 %v2800_v54, %v1624_v57  ;;  %v2803_v54 = vld [vmem:[#allocation6] ss:$0 sm:$0xff] }
 0x23b   : > { %v1918_v58 = vadd.f32 %v2803_v54, %v1913_v53 }
 0x23c   : > { %v3482_v60 = vadd.f32 %v2801_v55, %v1632_v59 }
 0x23e   : > { %v1639_v63 = vsel %vm1638_vm0, %v3482_v60, 0.0 }
 0x23f   : > { %v1640_v0 = vrot.slane %v1639_v63, 4 }
 0x241   : > { %v1641_v2 = vadd.f32 %v1640_v0, %v1639_v63  ;;  %v1626_v3 = vpop.f32.mrf.mxu2 }
 0x243   : > { %v1642_v5 = vrot.slane %v1641_v2, 2 }
 0x245   : > { %v1643_v7 = vadd.f32 %v1642_v5, %v1641_v2 }
 0x247   : > { %v1644_v8 = vrot.slane %v1643_v7, 1 }
 0x249   : > { %v1645_v10 = vadd.f32 %v1644_v8, %v1643_v7 }
 0x24b   : > { %v1653_v12 = vmul.f32 %v3492_v9, %v1645_v10 }
 0x24d   : > { %v1654_v13 = vpack.c.bf16 %v1653_v12, %v1653_v12 }
 0x24f   : > { %1728 = vmatmul.bf16.vlgmr.msra.gmra.mxu3 %v1654_v13 }
 0x2d2   : > { %v1729_v24 = vpop.f32.mrf.mxu3 }
 0x2d3   : > { %v1730_v25 = vadd.f32 %v1729_v24, %v1671_v23 }
 0x2d5   : > { %v1733_v26 = vmax.f32 %v1730_v25, 0.0 }
 0x2d7   : > { %v1734_v27 = vpack.c.bf16 %v1733_v26, %v1733_v26 }
 0x2d9   : > { %1808 = vmatmul.bf16.vlgmr.msrb.gmra.mxu0 %v1734_v27 }
 0x2da   : > { %v1731_v28 = vpop.f32.mrf.mxu3 }
 0x356   : > { %v1809_v34 = vpop.f32.mrf.mxu0 }
 0x357   : > { %v1810_v35 = vadd.f32 %v1809_v34, %v1751_v31 }
 0x359   : > { %v2537_v36 = vmul.f32 -1.442695, %v1810_v35 }
 0x35b   : > { %2806 = vpow2.f32 %v2537_v36 }
 0x35e   : > { %v1811_v39 = vpop.f32.mrf.mxu0 }
 0x361   : > { %v2807_v40 = vpop.eup %2806 }
 0x362   : > { %v1816_v42 = vadd.f32 1.0, %v2807_v40 }
 0x364   : > { %2808 = vrcp.f32 %v1816_v42  ;;  %v1828_v49 = vand.u32 2147483648, %v1816_v42  ;;  %v1826_v51 = vand.u32 2147483647, %v1816_v42  ;;  %vm1822_vm3 = vweird.f32 %v1816_v42 }
 0x366   : > { %v1829_v55 = vor.u32 1.1754944e-38, %v1828_v49  ;;  %vm1827_vm5 = vcmp.eq.f32.partialorder %v1826_v51, 8.507059e+37 }
 0x36a   : > { %v2809_v45 = vpop.eup %2808 }
 0x36b   : > { %v1818_v46 = vmul.f32 %v2809_v45, %v1816_v42  ;;  %vm1823_vm2 = vweird.f32 %v2809_v45 }
 0x36c   : > { %vm1824_vm4 = vmor %vm1822_vm3, %vm1823_vm2 }
 0x36d   : > { %v1819_v47 = vsub.f32 1.0, %v1818_v46 }
 0x36f   : > { %v1820_v50 = vmul.f32 %v2809_v45, %v1819_v47 }
 0x371   : > { %v1821_v52 = vadd.f32 %v2809_v45, %v1820_v50 }
 0x373   : > { %v1825_v56 = vsel %vm1824_vm4, %v2809_v45, %v1821_v52 }
 0x374   : > { %v1830_v57 = vsel %vm1827_vm5, %v1829_v55, %v1825_v56 }
 0x375   : > { %v1919_v59 = vperm.slane %v1830_v57, 0 }
 0x377   : > { %v1920_v61 = vmul.f32 %v1919_v59, %v3482_v60  ;;  %v1948_v60 = vld [vmem:[#allocation8] sm:$0x1] }
 0x379   : > { %v1921_v62 = vadd.f32 %v1920_v61, %v1918_v58 }
 0x37b   : > { %v1922_v63 = vmax.f32 %v1921_v62, 0.0 }
 0x37d   : > { %v1923_v0 = vsel %vm1638_vm0, %v1922_v63, 0.0 }
 0x37e   : > { %v1924_v1 = vrot.slane %v1923_v0, 4 }
 0x380   : > { %v1925_v2 = vadd.f32 %v1924_v1, %v1923_v0 }
 0x382   : > { %v1926_v3 = vrot.slane %v1925_v2, 2 }
 0x384   : > { %v1927_v4 = vadd.f32 %v1926_v3, %v1925_v2 }
 0x386   : > { %v1928_v5 = vrot.slane %v1927_v4, 1 }
 0x388   : > { %v1929_v6 = vadd.f32 %v1928_v5, %v1927_v4 }
 0x38a   : > { %v1930_v7 = vmul.f32 %v1929_v6, %v3492_v9 }
 0x38c   : > { %v1931_v8 = vpack.c.bf16 %v1930_v7, %v1930_v7 }
 0x38e   : > { %2005 = vmatmul.bf16.vlgmr.msrb.gmra.mxu2 %v1931_v8 }
 0x411   : > { %v2006_v10 = vpop.f32.mrf.mxu2 }
 0x412   : > { %v2007_v12 = vadd.f32 %v2006_v10, %v1948_v60 }
 0x414   : > { %2010 = vst [vmem:[%s636_s25] sm:$0x1] %v2007_v12 }
 0x415   : > { %2927 = shalt.err (!%p2924_p8)
}
 0x416   : > { %2736 = dma.vmem_to_hbm [thread:$0]  (%p3115_p5), %s2023_s26, 16, %s2025_s22, %s2012_s27  }
 0x419   : > { %v2008_v9 = vpop.f32.mrf.mxu2 }
 0x41a PF: > { %s3636_s0 = sld [smem:[#allocation15_spill]] }
 0x41b   : > { %s3637_s2 = sld [smem:[#allocation13_spill]] }
 0x420   : > { %p2758_p9 = scmp.ge.s32.totalorder %s3636_s0, 2 }
 0x421   : > { %s2036_s4 = sand.u32 1, %s3637_s2  }
 0x422   : > { %p2749_p10 = pnand %p2758_p9, %p3119_p6  ;;  %s2037_s28 = scalar_lea.sflag [#allocation5], %s2036_s4 }
 0x424   : > { %p2750_p11 = pneg %p2749_p10 }
 0x426   : > { %2953 = dma.done.wait (%p2750_p11), %s2037_s28, 16  }
 0x427   : > { %2955 = vsyncadd (%p2750_p11), %s2037_s28, 4294967280  ;;  %s3639_s21 = sld [smem:[#allocation16_spill]]  ;;  %s3642_s0 = smov %s2962_s30 }
 0x428   : > { %s3640_s24 = sld [smem:[#allocation14_spill]] }
 0x429   : > { %s3641_s20 = sld [smem:[#allocation17_spill]] }
 0x42d   : > { %p31_p12 = scmp.ge.s32.totalorder %s3639_s21, 4  }
 0x42e   : > { %s3643_s30 = smov %s3640_s24 }
 0x42f   :  { %33 = sbr.rel (!%p31_p12) target bundleno = 12 (0xc), region = 155 }
 0x434   :  { %2042 = vsyncpa [#allocation4], 1 }
 0x435   :  { %2044 = vsyncpa [#allocation4 + $0x1], 1 }
 0x436   :  { %2045 = vsyncpa [#allocation7], 1 }
 0x437   :  { %2046 = vsyncpa [#allocation5], 1 }
 0x438   :  { %2048 = vsyncpa [#allocation5 + $0x1], 1 }

</bundles_post_ra>
